<compile_context>
chip_gen: v6e
topology: v6e:2x2x1
jax: 0.10.0
libtpu: 0.0.40
codegen_flags: <defaults>
</compile_context>

<pallas_src>
import jax
import jax.numpy as jnp
import numpy as np
from jax.experimental import pallas as pl
from jax.experimental.pallas import tpu as pltpu

L_IN = 34                 # input sequence length
L_PAD = 40                # padded to a multiple of 8 sublane groups
L_OUT = 32                # conv_last output length ('valid', k=3)
C_HID = 256
C_LAST = 32
N_FEAT = C_LAST * L_OUT   # 1024 = fc1 in-features
N_FC1 = 256
N_CLS = 2


def _round_up(x, m):
    return ((x + m - 1) // m) * m


def pong_kernel(x_ref, w1_ref, w2_ref, b2_ref, wl_ref, bl_ref,
                wf1_ref, bf1_ref, wf2_ref, bf2_ref, out_ref, fbuf_ref):
    """Full forward for a block of BB batch elements.

    Activations live as a flat (L_PAD*BB, C) slab with POSITION-major rows:
    row r = l * BB + b.  Rows with l >= L_IN are zero padding; roll wrap-around
    therefore reproduces zero 'same' padding exactly.
    """
    bb = x_ref.shape[1]          # batch block (multiple of 8)
    m = L_PAD * bb

    def rot(v, shift):
        # == np.roll(v, shift, axis=0).  |shift| is a multiple of bb (multiple of 8),
        # so both pieces are vreg-aligned slices -> near-free row reindexing.
        if shift > 0:
            return jnp.concatenate([v[m - shift:, :], v[:m - shift, :]], axis=0)
        s = -shift
        return jnp.concatenate([v[s:, :], v[:s, :]], axis=0)

    # ---------- conv1 ('same', 2 -> 256): one K=8 MXU matmul on the im2col slab ----------
    x = x_ref[...].reshape(m, 8)                       # leading-dim collapse, free
    h = jnp.maximum(jnp.dot(x, w1_ref[...], preferred_element_type=jnp.float32), 0.0)
    # im2col rows with l >= 34 (incl. the bias-indicator lane) were zeroed in the wrapper,
    # so padding rows of h are exactly 0 here -> no mask needed.

    # ---------- conv2 ('same', 256 -> 256) x 2 : big-M MXU matmuls ----------
    row = jax.lax.broadcasted_iota(jnp.int32, (m, 1), 0)
    valid = row < (L_IN * bb)                          # computed once, used once
    for layer in range(2):
        y0 = jnp.dot(h, w2_ref[0], preferred_element_type=jnp.float32)
        y1 = jnp.dot(h, w2_ref[1], preferred_element_type=jnp.float32)
        y2 = jnp.dot(h, w2_ref[2], preferred_element_type=jnp.float32)
        # out[l] = y0[l-1] + y1[l] + y2[l+1]  (wrap-around lands on zero padding rows)
        h = jnp.maximum(rot(y0, bb) + y1 + rot(y2, -bb) + b2_ref[...], 0.0)
        if layer == 0:
            # padding rows hold relu(b2); zero them so layer-2's taps stay clean.
            h = jnp.where(valid, h, 0.0)
        # After layer 2 the padding rows hold junk, but conv_last only reads rows
        # l <= 33 for the output positions (l < 32) that feed fc1 -> no mask needed.

    # ---------- conv_last ('valid', 256 -> 32): single N=96 matmul ----------
    z = jnp.dot(h, wl_ref[...], preferred_element_type=jnp.float32)   # (m, 96)
    a = jnp.maximum(z[:, 0:C_LAST]
                    + rot(z[:, C_LAST:2 * C_LAST], -bb)
                    + rot(z[:, 2 * C_LAST:3 * C_LAST], -2 * bb)
                    + bl_ref[...], 0.0)                               # (m, 32)

    # ---------- flatten -> lane-dense (bb, 1024) ----------
    # Position-major rows make each per-position block a free vreg-aligned slice;
    # fbuf[b, l*32 + c] = conv_last[b, channel c, position l]; fc1's weight is
    # pre-permuted in the wrapper to this feature order.
    for l in range(L_OUT):
        fbuf_ref[:, l * C_LAST:(l + 1) * C_LAST] = a[l * bb:(l + 1) * bb, :]

    # ---------- fc1 -> fc2 -> softmax ----------
    f = fbuf_ref[...]                                                  # (bb, 1024)
    t = jnp.dot(f, wf1_ref[...], preferred_element_type=jnp.float32) + bf1_ref[...]
    logits = jnp.dot(t, wf2_ref[...], preferred_element_type=jnp.float32) + bf2_ref[...]
    mx = jnp.max(logits, axis=-1, keepdims=True)
    e = jnp.exp(logits - mx)
    out_ref[...] = e / jnp.sum(e, axis=-1, keepdims=True)


def pong_forward(x, params, *, block_b=64):
    """x: (B, 2, 34) float32, same NCL convention as the PyTorch module."""
    (w1, b1, w2, b2, wl, bl, wf1, bf1, wf2, bf2) = params
    B = x.shape[0]
    BB = min(block_b, _round_up(B, 8))        # batch block, multiple of 8
    Bp = _round_up(B, BB)

    # ---- layout plumbing (cheap XLA ops, once per call) ----
    # Position-major input + im2col for conv1: col[l, b, :] =
    #   [x[l-1, 0:2], x[l, 0:2], x[l+1, 0:2], bias_indicator, 0]
    xt = jnp.transpose(x, (2, 0, 1))                                   # (34, B, 2)
    xt = jnp.pad(xt, ((0, L_PAD - L_IN), (0, Bp - B), (0, 0)))         # (40, Bp, 2)
    zrow = jnp.zeros((1, Bp, 2), jnp.float32)
    prev = jnp.concatenate([zrow, xt[:-1]], axis=0)                    # in[l-1]
    nxt = jnp.concatenate([xt[1:], zrow], axis=0)                      # in[l+1]
    ind = (jnp.arange(L_PAD) < L_IN).astype(jnp.float32)               # (40,)
    ind3 = jnp.broadcast_to(ind[:, None, None], (L_PAD, Bp, 1))
    zlane = jnp.zeros((L_PAD, Bp, 1), jnp.float32)
    col = jnp.concatenate([prev, xt, nxt, ind3, zlane], axis=-1)       # (40, Bp, 8)
    col = col * ind[:, None, None]          # zero padding rows entirely (l >= 34)

    # conv1 weight as (8, 256): rows (k*2 + cin), row 6 = bias (paired with indicator).
    w1_rows = jnp.transpose(w1, (2, 1, 0)).reshape(3 * 2, C_HID)       # (6, 256)
    w1_aug = jnp.concatenate(
        [w1_rows, b1[None, :], jnp.zeros((1, C_HID), jnp.float32)], axis=0)  # (8, 256)

    w2_t = jnp.transpose(w2, (2, 1, 0))                                # (3, 256, 256)
    wl_t = jnp.transpose(wl, (2, 1, 0))                                # (3, 256, 32)
    wl_cat = jnp.concatenate([wl_t[0], wl_t[1], wl_t[2]], axis=-1)     # (256, 96)
    # fc1 weight permuted to the kernel's (position-major, channel-minor) feature order.
    wf1_p = jnp.transpose(wf1.reshape(N_FC1, C_LAST, L_OUT),
                          (2, 1, 0)).reshape(N_FEAT, N_FC1)            # (1024, 256)
    wf2_t = wf2.T                                                      # (256, 2)

    out = pl.pallas_call(
        pong_kernel,
        out_shape=jax.ShapeDtypeStruct((Bp, N_CLS), jnp.float32),
        grid=(Bp // BB,),
        in_specs=[
            pl.BlockSpec((L_PAD, BB, 8), lambda i: (0, i, 0)),         # im2col input slab
            pl.BlockSpec((8, C_HID), lambda i: (0, 0)),                # conv1 w (+bias row)
            pl.BlockSpec((3, C_HID, C_HID), lambda i: (0, 0, 0)),      # conv2 w
            pl.BlockSpec((1, C_HID), lambda i: (0, 0)),                # conv2 b
            pl.BlockSpec((C_HID, 3 * C_LAST), lambda i: (0, 0)),       # conv_last w (N=96)
            pl.BlockSpec((1, C_LAST), lambda i: (0, 0)),               # conv_last b
            pl.BlockSpec((N_FEAT, N_FC1), lambda i: (0, 0)),           # fc1 w (permuted)
            pl.BlockSpec((1, N_FC1), lambda i: (0, 0)),                # fc1 b
            pl.BlockSpec((N_FC1, N_CLS), lambda i: (0, 0)),            # fc2 w^T
            pl.BlockSpec((1, N_CLS), lambda i: (0, 0)),                # fc2 b
        ],
        out_specs=pl.BlockSpec((BB, N_CLS), lambda i: (i, 0)),
        scratch_shapes=[pltpu.VMEM((BB, N_FEAT), jnp.float32)],
        compiler_params=pltpu.CompilerParams(
            dimension_semantics=("parallel",),
            vmem_limit_bytes=48 * 1024 * 1024,
        ),
    )(col, w1_aug, w2_t, b2[None], wl_cat, bl[None],
      wf1_p, bf1[None], wf2_t, bf2[None])
    return out[:B]


# ---------------- pure-JAX reference (for correctness check only) ----------------
def _ref_conv1d(x, w, b, same):
    xp = jnp.pad(x, ((0, 0), (0, 0), (1, 1))) if same else x
    K = w.shape[2]
    Lo = xp.shape[2] - K + 1
    cols = jnp.stack([xp[:, :, k:k + Lo] for k in range(K)], axis=-1)  # (B, Cin, Lo, K)
    y = jnp.einsum('bclk,ock->bol', cols, w,
                   precision=jax.lax.Precision.HIGHEST)
    return y + b[None, :, None]


def _ref_forward(x, params):
    (w1, b1, w2, b2, wl, bl, wf1, bf1, wf2, bf2) = params
    out = jax.nn.relu(_ref_conv1d(x, w1, b1, True))
    for _ in range(2):
        out = jax.nn.relu(_ref_conv1d(out, w2, b2, True))
    out = jax.nn.relu(_ref_conv1d(out, wl, bl, False))
    out = out.reshape(out.shape[0], -1)
    out = jnp.dot(out, wf1.T, precision=jax.lax.Precision.HIGHEST) + bf1
    out = jnp.dot(out, wf2.T, precision=jax.lax.Precision.HIGHEST) + bf2
    return jax.nn.softmax(out, axis=1)


if __name__ == "__main__":
    key = jax.random.PRNGKey(0)
    ks = jax.random.split(key, 11)

    def init(k, shape, scale):
        return jax.random.normal(k, shape, dtype=jnp.float32) * scale

    params = (
        init(ks[0], (256, 2, 3), 0.3),    init(ks[1], (256,), 0.1),    # conv1
        init(ks[2], (256, 256, 3), 0.05), init(ks[3], (256,), 0.1),    # conv2
        init(ks[4], (32, 256, 3), 0.05),  init(ks[5], (32,), 0.1),     # conv_last
        init(ks[6], (256, 1024), 0.03),   init(ks[7], (256,), 0.1),    # fc1
        init(ks[8], (2, 256), 0.05),      init(ks[9], (2,), 0.1),      # fc2
    )
    x = jax.random.normal(ks[10], (2, 2, L_IN), dtype=jnp.float32)     # (B, Cin, L)

    out = jax.block_until_ready(pong_forward(x, params))
    ref = jax.block_until_ready(_ref_forward(x, params))

    assert out.shape == (2, 2)
    np.testing.assert_allclose(np.asarray(out), np.asarray(ref), rtol=1e-3, atol=1e-3)
    print("KERNEL_OK")
</pallas_src>

<mosaic_0001>
module attributes {stable_mosaic.version = 11 : i64} {
  func.func @pong_kernel(%arg0: i32, %arg1: memref<40x8x8xf32, #tpu.memory_space<vmem>>, %arg2: memref<8x256xf32, #tpu.memory_space<vmem>>, %arg3: memref<3x256x256xf32, #tpu.memory_space<vmem>>, %arg4: memref<1x256xf32, #tpu.memory_space<vmem>>, %arg5: memref<256x96xf32, #tpu.memory_space<vmem>>, %arg6: memref<1x32xf32, #tpu.memory_space<vmem>>, %arg7: memref<1024x256xf32, #tpu.memory_space<vmem>>, %arg8: memref<1x256xf32, #tpu.memory_space<vmem>>, %arg9: memref<256x2xf32, #tpu.memory_space<vmem>>, %arg10: memref<1x2xf32, #tpu.memory_space<vmem>>, %arg11: memref<8x2xf32, #tpu.memory_space<vmem>>, %arg12: memref<8x1024xf32, #tpu.memory_space<vmem>>) attributes {dimension_semantics = [#tpu.dimension_semantics<parallel>], iteration_bounds = array<i64: 1>, scalar_prefetch = 0 : i64, scratch_operands = 1 : i64, tpu.core_type = #tpu.core_type<tc>, window_params = [{transform_indices = @transform_0, window_bounds = array<i64: 40, 8, 8>}, {pipeline_mode = #tpu.pipeline_mode<synchronous>, transform_indices = @transform_1, window_bounds = array<i64: 8, 256>}, {pipeline_mode = #tpu.pipeline_mode<synchronous>, transform_indices = @transform_2, window_bounds = array<i64: 3, 256, 256>}, {pipeline_mode = #tpu.pipeline_mode<synchronous>, transform_indices = @transform_3, window_bounds = array<i64: 1, 256>}, {pipeline_mode = #tpu.pipeline_mode<synchronous>, transform_indices = @transform_4, window_bounds = array<i64: 256, 96>}, {pipeline_mode = #tpu.pipeline_mode<synchronous>, transform_indices = @transform_5, window_bounds = array<i64: 1, 32>}, {pipeline_mode = #tpu.pipeline_mode<synchronous>, transform_indices = @transform_6, window_bounds = array<i64: 1024, 256>}, {pipeline_mode = #tpu.pipeline_mode<synchronous>, transform_indices = @transform_7, window_bounds = array<i64: 1, 256>}, {pipeline_mode = #tpu.pipeline_mode<synchronous>, transform_indices = @transform_8, window_bounds = array<i64: 256, 2>}, {pipeline_mode = #tpu.pipeline_mode<synchronous>, transform_indices = @transform_9, window_bounds = array<i64: 1, 2>}, {transform_indices = @transform_10, window_bounds = array<i64: 8, 2>}]} {
    %c0 = arith.constant 0 : index
    %c0_0 = arith.constant 0 : index
    %c0_1 = arith.constant 0 : index
    %0 = vector.load %arg1[%c0, %c0_0, %c0_1] : memref<40x8x8xf32, #tpu.memory_space<vmem>>, vector<40x8x8xf32>
    %1 = vector.shape_cast %0 : vector<40x8x8xf32> to vector<320x8xf32>
    %c0_2 = arith.constant 0 : index
    %c0_3 = arith.constant 0 : index
    %2 = vector.load %arg2[%c0_2, %c0_3] : memref<8x256xf32, #tpu.memory_space<vmem>>, vector<8x256xf32>
    %cst = arith.constant dense<0.000000e+00> : vector<320x256xf32>
    %3 = tpu.matmul %1, %2, %cst {dimension_numbers = #tpu.dot_dimension_numbers<[1], [0], [0], [1], [0, 0, 1, 1], [], []>} : vector<320x8xf32>, vector<8x256xf32>, vector<320x256xf32> -> vector<320x256xf32>
    %cst_4 = arith.constant 0.000000e+00 : f32
    %4 = vector.broadcast %cst_4 : f32 to vector<320x256xf32>
    %5 = arith.maximumf %3, %4 : vector<320x256xf32>
    %6 = tpu.iota {dimensions = array<i32: 0>} : vector<320x1xi32>
    %c272_i32 = arith.constant 272 : i32
    %7 = vector.broadcast %c272_i32 : i32 to vector<320x1xi32>
    %8 = arith.cmpi slt, %6, %7 : vector<320x1xi32>
    %c0_5 = arith.constant 0 : index
    %c0_6 = arith.constant 0 : index
    %c0_7 = arith.constant 0 : index
    %9 = vector.load %arg3[%c0_5, %c0_6, %c0_7] : memref<3x256x256xf32, #tpu.memory_space<vmem>>, vector<1x256x256xf32>
    %10 = vector.shape_cast %9 : vector<1x256x256xf32> to vector<256x256xf32>
    %cst_8 = arith.constant dense<0.000000e+00> : vector<320x256xf32>
    %11 = tpu.matmul %5, %10, %cst_8 {dimension_numbers = #tpu.dot_dimension_numbers<[1], [0], [0], [1], [0, 0, 1, 1], [], []>} : vector<320x256xf32>, vector<256x256xf32>, vector<320x256xf32> -> vector<320x256xf32>
    %c1 = arith.constant 1 : index
    %c0_9 = arith.constant 0 : index
    %c0_10 = arith.constant 0 : index
    %12 = vector.load %arg3[%c1, %c0_9, %c0_10] : memref<3x256x256xf32, #tpu.memory_space<vmem>>, vector<1x256x256xf32>
    %13 = vector.shape_cast %12 : vector<1x256x256xf32> to vector<256x256xf32>
    %cst_11 = arith.constant dense<0.000000e+00> : vector<320x256xf32>
    %14 = tpu.matmul %5, %13, %cst_11 {dimension_numbers = #tpu.dot_dimension_numbers<[1], [0], [0], [1], [0, 0, 1, 1], [], []>} : vector<320x256xf32>, vector<256x256xf32>, vector<320x256xf32> -> vector<320x256xf32>
    %c2 = arith.constant 2 : index
    %c0_12 = arith.constant 0 : index
    %c0_13 = arith.constant 0 : index
    %15 = vector.load %arg3[%c2, %c0_12, %c0_13] : memref<3x256x256xf32, #tpu.memory_space<vmem>>, vector<1x256x256xf32>
    %16 = vector.shape_cast %15 : vector<1x256x256xf32> to vector<256x256xf32>
    %cst_14 = arith.constant dense<0.000000e+00> : vector<320x256xf32>
    %17 = tpu.matmul %5, %16, %cst_14 {dimension_numbers = #tpu.dot_dimension_numbers<[1], [0], [0], [1], [0, 0, 1, 1], [], []>} : vector<320x256xf32>, vector<256x256xf32>, vector<320x256xf32> -> vector<320x256xf32>
    %18 = vector.extract_strided_slice %11 {offsets = [312, 0], sizes = [8, 256], strides = [1, 1]} : vector<320x256xf32> to vector<8x256xf32>
    %19 = vector.extract_strided_slice %11 {offsets = [0, 0], sizes = [312, 256], strides = [1, 1]} : vector<320x256xf32> to vector<312x256xf32>
    %20 = tpu.concatenate %18, %19 in 0 : vector<8x256xf32>, vector<312x256xf32> -> vector<320x256xf32>
    %21 = arith.addf %20, %14 : vector<320x256xf32>
    %22 = vector.extract_strided_slice %17 {offsets = [8, 0], sizes = [312, 256], strides = [1, 1]} : vector<320x256xf32> to vector<312x256xf32>
    %23 = vector.extract_strided_slice %17 {offsets = [0, 0], sizes = [8, 256], strides = [1, 1]} : vector<320x256xf32> to vector<8x256xf32>
    %24 = tpu.concatenate %22, %23 in 0 : vector<312x256xf32>, vector<8x256xf32> -> vector<320x256xf32>
    %25 = arith.addf %21, %24 : vector<320x256xf32>
    %c0_15 = arith.constant 0 : index
    %c0_16 = arith.constant 0 : index
    %26 = vector.load %arg4[%c0_15, %c0_16] : memref<1x256xf32, #tpu.memory_space<vmem>>, vector<1x256xf32>
    %27 = vector.broadcast %26 : vector<1x256xf32> to vector<320x256xf32>
    %28 = arith.addf %25, %27 : vector<320x256xf32>
    %cst_17 = arith.constant 0.000000e+00 : f32
    %29 = vector.broadcast %cst_17 : f32 to vector<320x256xf32>
    %30 = arith.maximumf %28, %29 : vector<320x256xf32>
    %cst_18 = arith.constant 0.000000e+00 : f32
    %31 = vector.shape_cast %8 : vector<320x1xi1> to vector<320x1xi1>
    %32 = vector.broadcast %31 : vector<320x1xi1> to vector<320x256xi1>
    %33 = vector.broadcast %cst_18 : f32 to vector<320x256xf32>
    %34 = arith.select %32, %30, %33 : vector<320x256xi1>, vector<320x256xf32>
    %c0_19 = arith.constant 0 : index
    %c0_20 = arith.constant 0 : index
    %c0_21 = arith.constant 0 : index
    %35 = vector.load %arg3[%c0_19, %c0_20, %c0_21] : memref<3x256x256xf32, #tpu.memory_space<vmem>>, vector<1x256x256xf32>
    %36 = vector.shape_cast %35 : vector<1x256x256xf32> to vector<256x256xf32>
    %cst_22 = arith.constant dense<0.000000e+00> : vector<320x256xf32>
    %37 = tpu.matmul %34, %36, %cst_22 {dimension_numbers = #tpu.dot_dimension_numbers<[1], [0], [0], [1], [0, 0, 1, 1], [], []>} : vector<320x256xf32>, vector<256x256xf32>, vector<320x256xf32> -> vector<320x256xf32>
    %c1_23 = arith.constant 1 : index
    %c0_24 = arith.constant 0 : index
    %c0_25 = arith.constant 0 : index
    %38 = vector.load %arg3[%c1_23, %c0_24, %c0_25] : memref<3x256x256xf32, #tpu.memory_space<vmem>>, vector<1x256x256xf32>
    %39 = vector.shape_cast %38 : vector<1x256x256xf32> to vector<256x256xf32>
    %cst_26 = arith.constant dense<0.000000e+00> : vector<320x256xf32>
    %40 = tpu.matmul %34, %39, %cst_26 {dimension_numbers = #tpu.dot_dimension_numbers<[1], [0], [0], [1], [0, 0, 1, 1], [], []>} : vector<320x256xf32>, vector<256x256xf32>, vector<320x256xf32> -> vector<320x256xf32>
    %c2_27 = arith.constant 2 : index
    %c0_28 = arith.constant 0 : index
    %c0_29 = arith.constant 0 : index
    %41 = vector.load %arg3[%c2_27, %c0_28, %c0_29] : memref<3x256x256xf32, #tpu.memory_space<vmem>>, vector<1x256x256xf32>
    %42 = vector.shape_cast %41 : vector<1x256x256xf32> to vector<256x256xf32>
    %cst_30 = arith.constant dense<0.000000e+00> : vector<320x256xf32>
    %43 = tpu.matmul %34, %42, %cst_30 {dimension_numbers = #tpu.dot_dimension_numbers<[1], [0], [0], [1], [0, 0, 1, 1], [], []>} : vector<320x256xf32>, vector<256x256xf32>, vector<320x256xf32> -> vector<320x256xf32>
    %44 = vector.extract_strided_slice %37 {offsets = [312, 0], sizes = [8, 256], strides = [1, 1]} : vector<320x256xf32> to vector<8x256xf32>
    %45 = vector.extract_strided_slice %37 {offsets = [0, 0], sizes = [312, 256], strides = [1, 1]} : vector<320x256xf32> to vector<312x256xf32>
    %46 = tpu.concatenate %44, %45 in 0 : vector<8x256xf32>, vector<312x256xf32> -> vector<320x256xf32>
    %47 = arith.addf %46, %40 : vector<320x256xf32>
    %48 = vector.extract_strided_slice %43 {offsets = [8, 0], sizes = [312, 256], strides = [1, 1]} : vector<320x256xf32> to vector<312x256xf32>
    %49 = vector.extract_strided_slice %43 {offsets = [0, 0], sizes = [8, 256], strides = [1, 1]} : vector<320x256xf32> to vector<8x256xf32>
    %50 = tpu.concatenate %48, %49 in 0 : vector<312x256xf32>, vector<8x256xf32> -> vector<320x256xf32>
    %51 = arith.addf %47, %50 : vector<320x256xf32>
    %c0_31 = arith.constant 0 : index
    %c0_32 = arith.constant 0 : index
    %52 = vector.load %arg4[%c0_31, %c0_32] : memref<1x256xf32, #tpu.memory_space<vmem>>, vector<1x256xf32>
    %53 = vector.broadcast %52 : vector<1x256xf32> to vector<320x256xf32>
    %54 = arith.addf %51, %53 : vector<320x256xf32>
    %cst_33 = arith.constant 0.000000e+00 : f32
    %55 = vector.broadcast %cst_33 : f32 to vector<320x256xf32>
    %56 = arith.maximumf %54, %55 : vector<320x256xf32>
    %c0_34 = arith.constant 0 : index
    %c0_35 = arith.constant 0 : index
    %57 = vector.load %arg5[%c0_34, %c0_35] : memref<256x96xf32, #tpu.memory_space<vmem>>, vector<256x96xf32>
    %cst_36 = arith.constant dense<0.000000e+00> : vector<320x96xf32>
    %58 = tpu.matmul %56, %57, %cst_36 {dimension_numbers = #tpu.dot_dimension_numbers<[1], [0], [0], [1], [0, 0, 1, 1], [], []>} : vector<320x256xf32>, vector<256x96xf32>, vector<320x96xf32> -> vector<320x96xf32>
    %59 = vector.extract_strided_slice %58 {offsets = [0, 0], sizes = [320, 32], strides = [1, 1]} : vector<320x96xf32> to vector<320x32xf32>
    %60 = vector.extract_strided_slice %58 {offsets = [0, 32], sizes = [320, 32], strides = [1, 1]} : vector<320x96xf32> to vector<320x32xf32>
    %61 = vector.extract_strided_slice %60 {offsets = [8, 0], sizes = [312, 32], strides = [1, 1]} : vector<320x32xf32> to vector<312x32xf32>
    %62 = vector.extract_strided_slice %60 {offsets = [0, 0], sizes = [8, 32], strides = [1, 1]} : vector<320x32xf32> to vector<8x32xf32>
    %63 = tpu.concatenate %61, %62 in 0 : vector<312x32xf32>, vector<8x32xf32> -> vector<320x32xf32>
    %64 = arith.addf %59, %63 : vector<320x32xf32>
    %65 = vector.extract_strided_slice %58 {offsets = [0, 64], sizes = [320, 32], strides = [1, 1]} : vector<320x96xf32> to vector<320x32xf32>
    %66 = vector.extract_strided_slice %65 {offsets = [16, 0], sizes = [304, 32], strides = [1, 1]} : vector<320x32xf32> to vector<304x32xf32>
    %67 = vector.extract_strided_slice %65 {offsets = [0, 0], sizes = [16, 32], strides = [1, 1]} : vector<320x32xf32> to vector<16x32xf32>
    %68 = tpu.concatenate %66, %67 in 0 : vector<304x32xf32>, vector<16x32xf32> -> vector<320x32xf32>
    %69 = arith.addf %64, %68 : vector<320x32xf32>
    %c0_37 = arith.constant 0 : index
    %c0_38 = arith.constant 0 : index
    %70 = vector.load %arg6[%c0_37, %c0_38] : memref<1x32xf32, #tpu.memory_space<vmem>>, vector<1x32xf32>
    %71 = vector.broadcast %70 : vector<1x32xf32> to vector<320x32xf32>
    %72 = arith.addf %69, %71 : vector<320x32xf32>
    %cst_39 = arith.constant 0.000000e+00 : f32
    %73 = vector.broadcast %cst_39 : f32 to vector<320x32xf32>
    %74 = arith.maximumf %72, %73 : vector<320x32xf32>
    %75 = vector.extract_strided_slice %74 {offsets = [0, 0], sizes = [8, 32], strides = [1, 1]} : vector<320x32xf32> to vector<8x32xf32>
    %c0_40 = arith.constant 0 : index
    %c0_41 = arith.constant 0 : index
    %76 = vector.load %arg12[%c0_40, %c0_41] : memref<8x1024xf32, #tpu.memory_space<vmem>>, vector<8x32xf32>
    tpu.vector_store %arg12[%c0_40, %c0_41], %75 {strides = array<i32>} : memref<8x1024xf32, #tpu.memory_space<vmem>>, vector<8x32xf32>,
    %77 = vector.extract_strided_slice %74 {offsets = [8, 0], sizes = [8, 32], strides = [1, 1]} : vector<320x32xf32> to vector<8x32xf32>
    %c0_42 = arith.constant 0 : index
    %c32 = arith.constant 32 : index
    %78 = vector.load %arg12[%c0_42, %c32] : memref<8x1024xf32, #tpu.memory_space<vmem>>, vector<8x32xf32>
    tpu.vector_store %arg12[%c0_42, %c32], %77 {strides = array<i32>} : memref<8x1024xf32, #tpu.memory_space<vmem>>, vector<8x32xf32>,
    %79 = vector.extract_strided_slice %74 {offsets = [16, 0], sizes = [8, 32], strides = [1, 1]} : vector<320x32xf32> to vector<8x32xf32>
    %c0_43 = arith.constant 0 : index
    %c64 = arith.constant 64 : index
    %80 = vector.load %arg12[%c0_43, %c64] : memref<8x1024xf32, #tpu.memory_space<vmem>>, vector<8x32xf32>
    tpu.vector_store %arg12[%c0_43, %c64], %79 {strides = array<i32>} : memref<8x1024xf32, #tpu.memory_space<vmem>>, vector<8x32xf32>,
    %81 = vector.extract_strided_slice %74 {offsets = [24, 0], sizes = [8, 32], strides = [1, 1]} : vector<320x32xf32> to vector<8x32xf32>
    %c0_44 = arith.constant 0 : index
    %c96 = arith.constant 96 : index
    %82 = vector.load %arg12[%c0_44, %c96] : memref<8x1024xf32, #tpu.memory_space<vmem>>, vector<8x32xf32>
    tpu.vector_store %arg12[%c0_44, %c96], %81 {strides = array<i32>} : memref<8x1024xf32, #tpu.memory_space<vmem>>, vector<8x32xf32>,
    %83 = vector.extract_strided_slice %74 {offsets = [32, 0], sizes = [8, 32], strides = [1, 1]} : vector<320x32xf32> to vector<8x32xf32>
    %c0_45 = arith.constant 0 : index
    %c128 = arith.constant 128 : index
    %84 = vector.load %arg12[%c0_45, %c128] : memref<8x1024xf32, #tpu.memory_space<vmem>>, vector<8x32xf32>
    tpu.vector_store %arg12[%c0_45, %c128], %83 {strides = array<i32>} : memref<8x1024xf32, #tpu.memory_space<vmem>>, vector<8x32xf32>,
    %85 = vector.extract_strided_slice %74 {offsets = [40, 0], sizes = [8, 32], strides = [1, 1]} : vector<320x32xf32> to vector<8x32xf32>
    %c0_46 = arith.constant 0 : index
    %c160 = arith.constant 160 : index
    %86 = vector.load %arg12[%c0_46, %c160] : memref<8x1024xf32, #tpu.memory_space<vmem>>, vector<8x32xf32>
    tpu.vector_store %arg12[%c0_46, %c160], %85 {strides = array<i32>} : memref<8x1024xf32, #tpu.memory_space<vmem>>, vector<8x32xf32>,
    %87 = vector.extract_strided_slice %74 {offsets = [48, 0], sizes = [8, 32], strides = [1, 1]} : vector<320x32xf32> to vector<8x32xf32>
    %c0_47 = arith.constant 0 : index
    %c192 = arith.constant 192 : index
    %88 = vector.load %arg12[%c0_47, %c192] : memref<8x1024xf32, #tpu.memory_space<vmem>>, vector<8x32xf32>
    tpu.vector_store %arg12[%c0_47, %c192], %87 {strides = array<i32>} : memref<8x1024xf32, #tpu.memory_space<vmem>>, vector<8x32xf32>,
    %89 = vector.extract_strided_slice %74 {offsets = [56, 0], sizes = [8, 32], strides = [1, 1]} : vector<320x32xf32> to vector<8x32xf32>
    %c0_48 = arith.constant 0 : index
    %c224 = arith.constant 224 : index
    %90 = vector.load %arg12[%c0_48, %c224] : memref<8x1024xf32, #tpu.memory_space<vmem>>, vector<8x32xf32>
    tpu.vector_store %arg12[%c0_48, %c224], %89 {strides = array<i32>} : memref<8x1024xf32, #tpu.memory_space<vmem>>, vector<8x32xf32>,
    %91 = vector.extract_strided_slice %74 {offsets = [64, 0], sizes = [8, 32], strides = [1, 1]} : vector<320x32xf32> to vector<8x32xf32>
    %c0_49 = arith.constant 0 : index
    %c256 = arith.constant 256 : index
    %92 = vector.load %arg12[%c0_49, %c256] : memref<8x1024xf32, #tpu.memory_space<vmem>>, vector<8x32xf32>
    tpu.vector_store %arg12[%c0_49, %c256], %91 {strides = array<i32>} : memref<8x1024xf32, #tpu.memory_space<vmem>>, vector<8x32xf32>,
    %93 = vector.extract_strided_slice %74 {offsets = [72, 0], sizes = [8, 32], strides = [1, 1]} : vector<320x32xf32> to vector<8x32xf32>
    %c0_50 = arith.constant 0 : index
    %c288 = arith.constant 288 : index
    %94 = vector.load %arg12[%c0_50, %c288] : memref<8x1024xf32, #tpu.memory_space<vmem>>, vector<8x32xf32>
    tpu.vector_store %arg12[%c0_50, %c288], %93 {strides = array<i32>} : memref<8x1024xf32, #tpu.memory_space<vmem>>, vector<8x32xf32>,
    %95 = vector.extract_strided_slice %74 {offsets = [80, 0], sizes = [8, 32], strides = [1, 1]} : vector<320x32xf32> to vector<8x32xf32>
    %c0_51 = arith.constant 0 : index
    %c320 = arith.constant 320 : index
    %96 = vector.load %arg12[%c0_51, %c320] : memref<8x1024xf32, #tpu.memory_space<vmem>>, vector<8x32xf32>
    tpu.vector_store %arg12[%c0_51, %c320], %95 {strides = array<i32>} : memref<8x1024xf32, #tpu.memory_space<vmem>>, vector<8x32xf32>,
    %97 = vector.extract_strided_slice %74 {offsets = [88, 0], sizes = [8, 32], strides = [1, 1]} : vector<320x32xf32> to vector<8x32xf32>
    %c0_52 = arith.constant 0 : index
    %c352 = arith.constant 352 : index
    %98 = vector.load %arg12[%c0_52, %c352] : memref<8x1024xf32, #tpu.memory_space<vmem>>, vector<8x32xf32>
    tpu.vector_store %arg12[%c0_52, %c352], %97 {strides = array<i32>} : memref<8x1024xf32, #tpu.memory_space<vmem>>, vector<8x32xf32>,
    %99 = vector.extract_strided_slice %74 {offsets = [96, 0], sizes = [8, 32], strides = [1, 1]} : vector<320x32xf32> to vector<8x32xf32>
    %c0_53 = arith.constant 0 : index
    %c384 = arith.constant 384 : index
    %100 = vector.load %arg12[%c0_53, %c384] : memref<8x1024xf32, #tpu.memory_space<vmem>>, vector<8x32xf32>
    tpu.vector_store %arg12[%c0_53, %c384], %99 {strides = array<i32>} : memref<8x1024xf32, #tpu.memory_space<vmem>>, vector<8x32xf32>,
    %101 = vector.extract_strided_slice %74 {offsets = [104, 0], sizes = [8, 32], strides = [1, 1]} : vector<320x32xf32> to vector<8x32xf32>
    %c0_54 = arith.constant 0 : index
    %c416 = arith.constant 416 : index
    %102 = vector.load %arg12[%c0_54, %c416] : memref<8x1024xf32, #tpu.memory_space<vmem>>, vector<8x32xf32>
    tpu.vector_store %arg12[%c0_54, %c416], %101 {strides = array<i32>} : memref<8x1024xf32, #tpu.memory_space<vmem>>, vector<8x32xf32>,
    %103 = vector.extract_strided_slice %74 {offsets = [112, 0], sizes = [8, 32], strides = [1, 1]} : vector<320x32xf32> to vector<8x32xf32>
    %c0_55 = arith.constant 0 : index
    %c448 = arith.constant 448 : index
    %104 = vector.load %arg12[%c0_55, %c448] : memref<8x1024xf32, #tpu.memory_space<vmem>>, vector<8x32xf32>
    tpu.vector_store %arg12[%c0_55, %c448], %103 {strides = array<i32>} : memref<8x1024xf32, #tpu.memory_space<vmem>>, vector<8x32xf32>,
    %105 = vector.extract_strided_slice %74 {offsets = [120, 0], sizes = [8, 32], strides = [1, 1]} : vector<320x32xf32> to vector<8x32xf32>
    %c0_56 = arith.constant 0 : index
    %c480 = arith.constant 480 : index
    %106 = vector.load %arg12[%c0_56, %c480] : memref<8x1024xf32, #tpu.memory_space<vmem>>, vector<8x32xf32>
    tpu.vector_store %arg12[%c0_56, %c480], %105 {strides = array<i32>} : memref<8x1024xf32, #tpu.memory_space<vmem>>, vector<8x32xf32>,
    %107 = vector.extract_strided_slice %74 {offsets = [128, 0], sizes = [8, 32], strides = [1, 1]} : vector<320x32xf32> to vector<8x32xf32>
    %c0_57 = arith.constant 0 : index
    %c512 = arith.constant 512 : index
    %108 = vector.load %arg12[%c0_57, %c512] : memref<8x1024xf32, #tpu.memory_space<vmem>>, vector<8x32xf32>
    tpu.vector_store %arg12[%c0_57, %c512], %107 {strides = array<i32>} : memref<8x1024xf32, #tpu.memory_space<vmem>>, vector<8x32xf32>,
    %109 = vector.extract_strided_slice %74 {offsets = [136, 0], sizes = [8, 32], strides = [1, 1]} : vector<320x32xf32> to vector<8x32xf32>
    %c0_58 = arith.constant 0 : index
    %c544 = arith.constant 544 : index
    %110 = vector.load %arg12[%c0_58, %c544] : memref<8x1024xf32, #tpu.memory_space<vmem>>, vector<8x32xf32>
    tpu.vector_store %arg12[%c0_58, %c544], %109 {strides = array<i32>} : memref<8x1024xf32, #tpu.memory_space<vmem>>, vector<8x32xf32>,
    %111 = vector.extract_strided_slice %74 {offsets = [144, 0], sizes = [8, 32], strides = [1, 1]} : vector<320x32xf32> to vector<8x32xf32>
    %c0_59 = arith.constant 0 : index
    %c576 = arith.constant 576 : index
    %112 = vector.load %arg12[%c0_59, %c576] : memref<8x1024xf32, #tpu.memory_space<vmem>>, vector<8x32xf32>
    tpu.vector_store %arg12[%c0_59, %c576], %111 {strides = array<i32>} : memref<8x1024xf32, #tpu.memory_space<vmem>>, vector<8x32xf32>,
    %113 = vector.extract_strided_slice %74 {offsets = [152, 0], sizes = [8, 32], strides = [1, 1]} : vector<320x32xf32> to vector<8x32xf32>
    %c0_60 = arith.constant 0 : index
    %c608 = arith.constant 608 : index
    %114 = vector.load %arg12[%c0_60, %c608] : memref<8x1024xf32, #tpu.memory_space<vmem>>, vector<8x32xf32>
    tpu.vector_store %arg12[%c0_60, %c608], %113 {strides = array<i32>} : memref<8x1024xf32, #tpu.memory_space<vmem>>, vector<8x32xf32>,
    %115 = vector.extract_strided_slice %74 {offsets = [160, 0], sizes = [8, 32], strides = [1, 1]} : vector<320x32xf32> to vector<8x32xf32>
    %c0_61 = arith.constant 0 : index
    %c640 = arith.constant 640 : index
    %116 = vector.load %arg12[%c0_61, %c640] : memref<8x1024xf32, #tpu.memory_space<vmem>>, vector<8x32xf32>
    tpu.vector_store %arg12[%c0_61, %c640], %115 {strides = array<i32>} : memref<8x1024xf32, #tpu.memory_space<vmem>>, vector<8x32xf32>,
    %117 = vector.extract_strided_slice %74 {offsets = [168, 0], sizes = [8, 32], strides = [1, 1]} : vector<320x32xf32> to vector<8x32xf32>
    %c0_62 = arith.constant 0 : index
    %c672 = arith.constant 672 : index
    %118 = vector.load %arg12[%c0_62, %c672] : memref<8x1024xf32, #tpu.memory_space<vmem>>, vector<8x32xf32>
    tpu.vector_store %arg12[%c0_62, %c672], %117 {strides = array<i32>} : memref<8x1024xf32, #tpu.memory_space<vmem>>, vector<8x32xf32>,
    %119 = vector.extract_strided_slice %74 {offsets = [176, 0], sizes = [8, 32], strides = [1, 1]} : vector<320x32xf32> to vector<8x32xf32>
    %c0_63 = arith.constant 0 : index
    %c704 = arith.constant 704 : index
    %120 = vector.load %arg12[%c0_63, %c704] : memref<8x1024xf32, #tpu.memory_space<vmem>>, vector<8x32xf32>
    tpu.vector_store %arg12[%c0_63, %c704], %119 {strides = array<i32>} : memref<8x1024xf32, #tpu.memory_space<vmem>>, vector<8x32xf32>,
    %121 = vector.extract_strided_slice %74 {offsets = [184, 0], sizes = [8, 32], strides = [1, 1]} : vector<320x32xf32> to vector<8x32xf32>
    %c0_64 = arith.constant 0 : index
    %c736 = arith.constant 736 : index
    %122 = vector.load %arg12[%c0_64, %c736] : memref<8x1024xf32, #tpu.memory_space<vmem>>, vector<8x32xf32>
    tpu.vector_store %arg12[%c0_64, %c736], %121 {strides = array<i32>} : memref<8x1024xf32, #tpu.memory_space<vmem>>, vector<8x32xf32>,
    %123 = vector.extract_strided_slice %74 {offsets = [192, 0], sizes = [8, 32], strides = [1, 1]} : vector<320x32xf32> to vector<8x32xf32>
    %c0_65 = arith.constant 0 : index
    %c768 = arith.constant 768 : index
    %124 = vector.load %arg12[%c0_65, %c768] : memref<8x1024xf32, #tpu.memory_space<vmem>>, vector<8x32xf32>
    tpu.vector_store %arg12[%c0_65, %c768], %123 {strides = array<i32>} : memref<8x1024xf32, #tpu.memory_space<vmem>>, vector<8x32xf32>,
    %125 = vector.extract_strided_slice %74 {offsets = [200, 0], sizes = [8, 32], strides = [1, 1]} : vector<320x32xf32> to vector<8x32xf32>
    %c0_66 = arith.constant 0 : index
    %c800 = arith.constant 800 : index
    %126 = vector.load %arg12[%c0_66, %c800] : memref<8x1024xf32, #tpu.memory_space<vmem>>, vector<8x32xf32>
    tpu.vector_store %arg12[%c0_66, %c800], %125 {strides = array<i32>} : memref<8x1024xf32, #tpu.memory_space<vmem>>, vector<8x32xf32>,
    %127 = vector.extract_strided_slice %74 {offsets = [208, 0], sizes = [8, 32], strides = [1, 1]} : vector<320x32xf32> to vector<8x32xf32>
    %c0_67 = arith.constant 0 : index
    %c832 = arith.constant 832 : index
    %128 = vector.load %arg12[%c0_67, %c832] : memref<8x1024xf32, #tpu.memory_space<vmem>>, vector<8x32xf32>
    tpu.vector_store %arg12[%c0_67, %c832], %127 {strides = array<i32>} : memref<8x1024xf32, #tpu.memory_space<vmem>>, vector<8x32xf32>,
    %129 = vector.extract_strided_slice %74 {offsets = [216, 0], sizes = [8, 32], strides = [1, 1]} : vector<320x32xf32> to vector<8x32xf32>
    %c0_68 = arith.constant 0 : index
    %c864 = arith.constant 864 : index
    %130 = vector.load %arg12[%c0_68, %c864] : memref<8x1024xf32, #tpu.memory_space<vmem>>, vector<8x32xf32>
    tpu.vector_store %arg12[%c0_68, %c864], %129 {strides = array<i32>} : memref<8x1024xf32, #tpu.memory_space<vmem>>, vector<8x32xf32>,
    %131 = vector.extract_strided_slice %74 {offsets = [224, 0], sizes = [8, 32], strides = [1, 1]} : vector<320x32xf32> to vector<8x32xf32>
    %c0_69 = arith.constant 0 : index
    %c896 = arith.constant 896 : index
    %132 = vector.load %arg12[%c0_69, %c896] : memref<8x1024xf32, #tpu.memory_space<vmem>>, vector<8x32xf32>
    tpu.vector_store %arg12[%c0_69, %c896], %131 {strides = array<i32>} : memref<8x1024xf32, #tpu.memory_space<vmem>>, vector<8x32xf32>,
    %133 = vector.extract_strided_slice %74 {offsets = [232, 0], sizes = [8, 32], strides = [1, 1]} : vector<320x32xf32> to vector<8x32xf32>
    %c0_70 = arith.constant 0 : index
    %c928 = arith.constant 928 : index
    %134 = vector.load %arg12[%c0_70, %c928] : memref<8x1024xf32, #tpu.memory_space<vmem>>, vector<8x32xf32>
    tpu.vector_store %arg12[%c0_70, %c928], %133 {strides = array<i32>} : memref<8x1024xf32, #tpu.memory_space<vmem>>, vector<8x32xf32>,
    %135 = vector.extract_strided_slice %74 {offsets = [240, 0], sizes = [8, 32], strides = [1, 1]} : vector<320x32xf32> to vector<8x32xf32>
    %c0_71 = arith.constant 0 : index
    %c960 = arith.constant 960 : index
    %136 = vector.load %arg12[%c0_71, %c960] : memref<8x1024xf32, #tpu.memory_space<vmem>>, vector<8x32xf32>
    tpu.vector_store %arg12[%c0_71, %c960], %135 {strides = array<i32>} : memref<8x1024xf32, #tpu.memory_space<vmem>>, vector<8x32xf32>,
    %137 = vector.extract_strided_slice %74 {offsets = [248, 0], sizes = [8, 32], strides = [1, 1]} : vector<320x32xf32> to vector<8x32xf32>
    %c0_72 = arith.constant 0 : index
    %c992 = arith.constant 992 : index
    %138 = vector.load %arg12[%c0_72, %c992] : memref<8x1024xf32, #tpu.memory_space<vmem>>, vector<8x32xf32>
    tpu.vector_store %arg12[%c0_72, %c992], %137 {strides = array<i32>} : memref<8x1024xf32, #tpu.memory_space<vmem>>, vector<8x32xf32>,
    %c0_73 = arith.constant 0 : index
    %c0_74 = arith.constant 0 : index
    %139 = vector.load %arg12[%c0_73, %c0_74] : memref<8x1024xf32, #tpu.memory_space<vmem>>, vector<8x1024xf32>
    %c0_75 = arith.constant 0 : index
    %c0_76 = arith.constant 0 : index
    %140 = vector.load %arg7[%c0_75, %c0_76] : memref<1024x256xf32, #tpu.memory_space<vmem>>, vector<1024x256xf32>
    %cst_77 = arith.constant dense<0.000000e+00> : vector<8x256xf32>
    %141 = tpu.matmul %139, %140, %cst_77 {dimension_numbers = #tpu.dot_dimension_numbers<[1], [0], [0], [1], [0, 0, 1, 1], [], []>} : vector<8x1024xf32>, vector<1024x256xf32>, vector<8x256xf32> -> vector<8x256xf32>
    %c0_78 = arith.constant 0 : index
    %c0_79 = arith.constant 0 : index
    %142 = vector.load %arg8[%c0_78, %c0_79] : memref<1x256xf32, #tpu.memory_space<vmem>>, vector<1x256xf32>
    %143 = vector.broadcast %142 : vector<1x256xf32> to vector<8x256xf32>
    %144 = arith.addf %141, %143 : vector<8x256xf32>
    %c0_80 = arith.constant 0 : index
    %c0_81 = arith.constant 0 : index
    %145 = vector.load %arg9[%c0_80, %c0_81] : memref<256x2xf32, #tpu.memory_space<vmem>>, vector<256x2xf32>
    %cst_82 = arith.constant dense<0.000000e+00> : vector<8x2xf32>
    %146 = tpu.matmul %144, %145, %cst_82 {dimension_numbers = #tpu.dot_dimension_numbers<[1], [0], [0], [1], [0, 0, 1, 1], [], []>} : vector<8x256xf32>, vector<256x2xf32>, vector<8x2xf32> -> vector<8x2xf32>
    %c0_83 = arith.constant 0 : index
    %c0_84 = arith.constant 0 : index
    %147 = vector.load %arg10[%c0_83, %c0_84] : memref<1x2xf32, #tpu.memory_space<vmem>>, vector<1x2xf32>
    %148 = vector.broadcast %147 : vector<1x2xf32> to vector<8x2xf32>
    %149 = arith.addf %146, %148 : vector<8x2xf32>
    %cst_85 = arith.constant dense<0xFF800000> : vector<8xf32>
    %150 = vector.multi_reduction <maximumf>, %149, %cst_85 [1] : vector<8x2xf32> to vector<8xf32>
    %151 = vector.shape_cast %150 : vector<8xf32> to vector<8x1xf32>
    %152 = vector.broadcast %151 : vector<8x1xf32> to vector<8x2xf32>
    %153 = arith.subf %149, %152 : vector<8x2xf32>
    %154 = math.exp %153 : vector<8x2xf32>
    %cst_86 = arith.constant dense<0.000000e+00> : vector<8xf32>
    %155 = vector.multi_reduction <add>, %154, %cst_86 [1] : vector<8x2xf32> to vector<8xf32>
    %156 = vector.shape_cast %155 : vector<8xf32> to vector<8x1xf32>
    %157 = vector.broadcast %156 : vector<8x1xf32> to vector<8x2xf32>
    %158 = arith.divf %154, %157 : vector<8x2xf32>
    %c0_87 = arith.constant 0 : index
    %c0_88 = arith.constant 0 : index
    %159 = vector.load %arg11[%c0_87, %c0_88] : memref<8x2xf32, #tpu.memory_space<vmem>>, vector<8x2xf32>
    tpu.vector_store %arg11[%c0_87, %c0_88], %158 {strides = array<i32>} : memref<8x2xf32, #tpu.memory_space<vmem>>, vector<8x2xf32>,
    return
  }
  func.func @transform_0(%arg0: i32) -> (i32, i32, i32) {
    %c0_i32 = arith.constant 0 : i32
    %c0_i32_0 = arith.constant 0 : i32
    %c0_i32_1 = arith.constant 0 : i32
    return %c0_i32, %arg0, %c0_i32_0 : i32, i32, i32
  }
  func.func @transform_1(%arg0: i32) -> (i32, i32) {
    %c0_i32 = arith.constant 0 : i32
    %c0_i32_0 = arith.constant 0 : i32
    %c0_i32_1 = arith.constant 0 : i32
    return %c0_i32, %c0_i32_0 : i32, i32
  }
  func.func @transform_2(%arg0: i32) -> (i32, i32, i32) {
    %c0_i32 = arith.constant 0 : i32
    %c0_i32_0 = arith.constant 0 : i32
    %c0_i32_1 = arith.constant 0 : i32
    %c0_i32_2 = arith.constant 0 : i32
    return %c0_i32, %c0_i32_0, %c0_i32_1 : i32, i32, i32
  }
  func.func @transform_3(%arg0: i32) -> (i32, i32) {
    %c0_i32 = arith.constant 0 : i32
    %c0_i32_0 = arith.constant 0 : i32
    %c0_i32_1 = arith.constant 0 : i32
    return %c0_i32, %c0_i32_0 : i32, i32
  }
  func.func @transform_4(%arg0: i32) -> (i32, i32) {
    %c0_i32 = arith.constant 0 : i32
    %c0_i32_0 = arith.constant 0 : i32
    %c0_i32_1 = arith.constant 0 : i32
    return %c0_i32, %c0_i32_0 : i32, i32
  }
  func.func @transform_5(%arg0: i32) -> (i32, i32) {
    %c0_i32 = arith.constant 0 : i32
    %c0_i32_0 = arith.constant 0 : i32
    %c0_i32_1 = arith.constant 0 : i32
    return %c0_i32, %c0_i32_0 : i32, i32
  }
  func.func @transform_6(%arg0: i32) -> (i32, i32) {
    %c0_i32 = arith.constant 0 : i32
    %c0_i32_0 = arith.constant 0 : i32
    %c0_i32_1 = arith.constant 0 : i32
    return %c0_i32, %c0_i32_0 : i32, i32
  }
  func.func @transform_7(%arg0: i32) -> (i32, i32) {
    %c0_i32 = arith.constant 0 : i32
    %c0_i32_0 = arith.constant 0 : i32
    %c0_i32_1 = arith.constant 0 : i32
    return %c0_i32, %c0_i32_0 : i32, i32
  }
  func.func @transform_8(%arg0: i32) -> (i32, i32) {
    %c0_i32 = arith.constant 0 : i32
    %c0_i32_0 = arith.constant 0 : i32
    %c0_i32_1 = arith.constant 0 : i32
    return %c0_i32, %c0_i32_0 : i32, i32
  }
  func.func @transform_9(%arg0: i32) -> (i32, i32) {
    %c0_i32 = arith.constant 0 : i32
    %c0_i32_0 = arith.constant 0 : i32
    %c0_i32_1 = arith.constant 0 : i32
    return %c0_i32, %c0_i32_0 : i32, i32
  }
  func.func @transform_10(%arg0: i32) -> (i32, i32) {
    %c0_i32 = arith.constant 0 : i32
    %c0_i32_0 = arith.constant 0 : i32
    return %arg0, %c0_i32 : i32, i32
  }
}

</mosaic_0001>

<bundles_post_ra>
// kernel: tpu_custom_call.1
= control target key start
LH: loop header
LB: loop body
LE: loop exit
PB: predicated region body
PF: predicated region fallthrough
CT: control target
= control target key end

     0   :  { %15 = vsyncpa [#allocation4], 0  ;;  %s8055_s0 = inlined_call_operand.vmem [shape: f32[40,8,8], index: 0, kind: input, shape index: {}]   ;;  %s8056_s1 = inlined_call_operand.vmem [shape: f32[8,256], index: 1, kind: input, shape index: {}]   ;;  %s8057_s2 = inlined_call_operand.hbm [shape: f32[3,256,256], index: 2, kind: input, shape index: {}]   ;;  %s8058_s3 = inlined_call_operand.vmem [shape: f32[1,256], index: 3, kind: input, shape index: {}]   ;;  %s8059_s4 = inlined_call_operand.vmem [shape: f32[256,96], index: 4, kind: input, shape index: {}]   ;;  %s8060_s5 = inlined_call_operand.vmem [shape: f32[1,32], index: 5, kind: input, shape index: {}]   ;;  %s8061_s6 = inlined_call_operand.hbm [shape: f32[1024,256], index: 6, kind: input, shape index: {}]   ;;  %s8062_s7 = inlined_call_operand.vmem [shape: f32[1,256], index: 7, kind: input, shape index: {}]   ;;  %s8063_s8 = inlined_call_operand.vmem [shape: f32[256,2], index: 8, kind: input, shape index: {}]   ;;  %s8064_s9 = inlined_call_operand.vmem [shape: f32[1,2], index: 9, kind: input, shape index: {}]   ;;  %s8065_s10 = inlined_call_operand.vmem [shape: f32[8,2], index: 10, kind: output, shape index: {}]  }
   0x1   :  { %16 = vsyncpa [#allocation6], 0  ;;  %s5259_s13 = smov [#allocation3]  }
   0x2   :  { %s26_s14 = sshll.u32 %s5259_s13, 4  ;;  %s27_s14 = int_to_ptr.vmem [resolvable:$true] %s26_s14 }
   0x3   :  { %s5223_s15 = scalar_lea.vmem %s27_s14, 24576  ;;  %p5228_p1 = scmp.lt.s32.totalorder %s27_s14, %s27_s14 }
   0x4   :  { %p5224_p0 = scmp.ne.s32.totalorder %s27_s14, %s5223_s15  ;;  %p5229_p2 = scmp.lt.s32.totalorder %s5223_s15, %s5223_s15 }
   0x6   :  { %p5230_p3 = por %p5229_p2, %p5228_p1 }
   0x8   :  { %p5231_p4 = pnand %p5230_p3, %p5224_p0 }
   0xa   :  { %5234 = shalt.err (!%p5231_p4)
}
   0xb   :  { %s5260_s16 = smov 256   ;;  %s5261_s17 = smov 16  }
   0xc   :  { %32 = dma.hbm_to_vmem [thread:$0]  %s8057_s2, 24576, %s27_s14, [#allocation4], %s5260_s16, %s5260_s16, %s5261_s17  }
   0xd   :  { %s5262_s20 = smov [#allocation5]  }
   0xe   :  { %s44_s21 = sshll.u32 %s5262_s20, 4  ;;  %s45_s21 = int_to_ptr.vmem [resolvable:$true] %s44_s21 }
   0xf   :  { %s5243_s22 = scalar_lea.vmem %s45_s21, 32768  ;;  %p5248_p6 = scmp.lt.s32.totalorder %s45_s21, %s45_s21 }
  0x10   :  { %p5244_p5 = scmp.ne.s32.totalorder %s45_s21, %s5243_s22  ;;  %p5249_p7 = scmp.lt.s32.totalorder %s5243_s22, %s5243_s22 }
  0x12   :  { %p5250_p8 = por %p5249_p7, %p5248_p6 }
  0x14   :  { %p5251_p9 = pnand %p5250_p8, %p5244_p5 }
  0x16   :  { %5254 = shalt.err (!%p5251_p9)
}
  0x17   :  { %50 = dma.hbm_to_vmem [thread:$0]  %s8061_s6, 32768, %s45_s21, [#allocation6], %s5260_s16, %s5260_s16, %s5261_s17  }
  0x18   :  { %5255 = dma.done.wait [#allocation4], 24576  }
  0x19   :  { %5256 = vsyncadd [#allocation4], 4294942720 }
  0x1a   :  { %5257 = dma.done.wait [#allocation6], 32768  }
  0x1b   :  { %5258 = vsyncadd [#allocation6], 4294934528  ;;  %v8066_v0 = vmov 0.0   ;;  %v104_v1 = vld [vmem:[%s8056_s1 + $0x8] sm:$0xff]  ;;  %v103_v2 = vld [vmem:[%s8056_s1] sm:$0xff]  ;;  %vm105_vm0 = vcmask 64512  }
  0x1c   :  { %290 = vmatprep.mubr.f32.mxu0 %v8066_v0  ;;  %v63_v3 = vld [vmem:[%s8055_s0] sm:$0xff]  ;;  %256 = vmatprep.subr.mxu0 %v104_v1  ;;  %v64_v4 = vld [vmem:[%s8055_s0 + $0x8] sm:$0xff]  ;;  %v65_v5 = vld [vmem:[%s8055_s0 + $0x10] sm:$0xff]  ;;  %s5265_s6 = smov 64   ;;  %vm4179_vm1 = vcmask 261120   ;;  %vm4185_vm2 = vcmask 523520  }
  0x1d   :  { %257 = vmatpush1.msra.mxu0 %v103_v2  ;;  %v66_v6 = vld [vmem:[%s8055_s0 + $0x18] sm:$0xff]  ;;  %v5355_v8 = vld [vmem:[#allocation3 + $0xf0] sm:$0xff]  ;;  %v5358_v10 = vld [vmem:[#allocation3 + $0xe8] sm:$0xff]  ;;  %vm4191_vm3 = vcmask 785920   ;;  %vm4197_vm4 = vcmask 1048320   ;;  %vm4980_vm5 = vcmask 15360  }
  0x1e   :  { %4999 = vmatmul.mubr.msk.f32.vlgmr.msra.gmra.mxu0 %vm105_vm0, %v63_v3  ;;  %v5353_v7 = vld [vmem:[#allocation3 + $0xf8] sm:$0xff]  ;;  %v1092_v11 = vld [vmem:[#allocation3 + $0x2f0] sm:$0xff]  ;;  %v5361_v12 = vld [vmem:[#allocation3 + $0xe0] sm:$0xff] }
  0x1f   :  { %296 = vmatprep.mubr.f32.mxu0 %v8066_v0  ;;  %v1093_v9 = vld [vmem:[#allocation3 + $0x2f8] sm:$0xff]  ;;  %756 = vmatprep.subr.mxu1 %v5353_v7  ;;  %v1091_v13 = vld [vmem:[#allocation3 + $0x2e8] sm:$0xff]  ;;  %v1090_v15 = vld [vmem:[#allocation3 + $0x2e0] sm:$0xff] }
  0x20   :  { %1126 = vmatprep.subr.mxu0 %v1093_v9  ;;  %757 = vmatpush1.msra.mxu1 %v5355_v8  ;;  %v5363_v14 = vld [vmem:[#allocation3 + $0xd8] sm:$0xff]  ;;  %v5367_v16 = vld [vmem:[#allocation3 + $0xd0] sm:$0xff]  ;;  %v67_v17 = vld [vmem:[%s8055_s0 + $0x20] sm:$0xff] }
  0x21   :  { %1127 = vmatpush1.msra.mxu0 %v1092_v11  ;;  %758 = vmatprep.subr.mxu1 %v5358_v10  ;;  %v1089_v18 = vld [vmem:[#allocation3 + $0x2d8] sm:$0xff]  ;;  %v5375_v19 = vld [vmem:[#allocation3 + $0xc8] sm:$0xff]  ;;  %v1088_v20 = vld [vmem:[#allocation3 + $0x2d0] sm:$0xff] }
  0x22   :  { %5000 = vmatmul.mubr.msk.f32.gmra.mxu0 %vm105_vm0, %v64_v4  ;;  %759 = vmatpush1.msra.mxu1 %v5361_v12  ;;  %v5378_v21 = vld [vmem:[#allocation3 + $0xc0] sm:$0xff]  ;;  %v1087_v22 = vld [vmem:[#allocation3 + $0x2c8] sm:$0xff]  ;;  %v5381_v23 = vld [vmem:[#allocation3 + $0xb8] sm:$0xff] }
  0x23   :  { %302 = vmatprep.mubr.f32.mxu0 %v8066_v0  ;;  %1128 = vmatprep.subr.mxu0 %v1091_v13  ;;  %v68_v24 = vld [vmem:[%s8055_s0 + $0x28] sm:$0xff]  ;;  %v5388_v25 = vld [vmem:[#allocation3 + $0xb0] sm:$0xff]  ;;  %v1086_v26 = vld [vmem:[#allocation3 + $0x2c0] sm:$0xff] }
  0x24   :  { %760 = vmatprep.subr.mxu1 %v5363_v14  ;;  %1129 = vmatpush1.msra.mxu0 %v1090_v15  ;;  %v1085_v27 = vld [vmem:[#allocation3 + $0x2b8] sm:$0xff]  ;;  %v5392_v28 = vld [vmem:[#allocation3 + $0xa8] sm:$0xff]  ;;  %v1084_v29 = vld [vmem:[#allocation3 + $0x2b0] sm:$0xff] }
  0x25   :  { %761 = vmatpush1.msra.mxu1 %v5367_v16  ;;  %1130 = vmatprep.subr.mxu0 %v1089_v18  ;;  %v5396_v30 = vld [vmem:[#allocation3 + $0xa0] sm:$0xff]  ;;  %v69_v31 = vld [vmem:[%s8055_s0 + $0x30] sm:$0xff]  ;;  %v1083_v32 = vld [vmem:[#allocation3 + $0x2a8] sm:$0xff] }
  0x26   :  { %5001 = vmatmul.mubr.msk.f32.gmra.mxu0 %vm105_vm0, %v65_v5  ;;  %762 = vmatprep.subr.mxu1 %v5375_v19  ;;  %v5403_v33 = vld [vmem:[#allocation3 + $0x98] sm:$0xff]  ;;  %v1082_v34 = vld [vmem:[#allocation3 + $0x2a0] sm:$0xff]  ;;  %v5406_v35 = vld [vmem:[#allocation3 + $0x90] sm:$0xff] }
  0x27   :  { %308 = vmatprep.mubr.f32.mxu0 %v8066_v0  ;;  %1131 = vmatpush1.msra.mxu0 %v1088_v20  ;;  %v1081_v36 = vld [vmem:[#allocation3 + $0x298] sm:$0xff]  ;;  %v5409_v37 = vld [vmem:[#allocation3 + $0x88] sm:$0xff]  ;;  %v5416_v39 = vld [vmem:[#allocation3 + $0x80] sm:$0xff] }
  0x28   :  { %763 = vmatpush1.msra.mxu1 %v5378_v21  ;;  %1132 = vmatprep.subr.mxu0 %v1087_v22  ;;  %v70_v38 = vld [vmem:[%s8055_s0 + $0x38] sm:$0xff]  ;;  %v1080_v40 = vld [vmem:[#allocation3 + $0x290] sm:$0xff]  ;;  %v1079_v41 = vld [vmem:[#allocation3 + $0x288] sm:$0xff] }
  0x29   :  { %764 = vmatprep.subr.mxu1 %v5381_v23  ;;  %1133 = vmatpush1.msra.mxu0 %v1086_v26  ;;  %v5420_v42 = vld [vmem:[#allocation3 + $0x78] sm:$0xff]  ;;  %v1078_v43 = vld [vmem:[#allocation3 + $0x280] sm:$0xff]  ;;  %v5424_v44 = vld [vmem:[#allocation3 + $0x70] sm:$0xff] }
  0x2a   :  { %5002 = vmatmul.mubr.msk.f32.gmra.mxu0 %vm105_vm0, %v66_v6  ;;  %765 = vmatpush1.msra.mxu1 %v5388_v25  ;;  %v71_v45 = vld [vmem:[%s8055_s0 + $0x40] sm:$0xff]  ;;  %v1077_v46 = vld [vmem:[#allocation3 + $0x278] sm:$0xff]  ;;  %v5431_v47 = vld [vmem:[#allocation3 + $0x68] sm:$0xff] }
  0x2b   :  { %314 = vmatprep.mubr.f32.mxu0 %v8066_v0  ;;  %1134 = vmatprep.subr.mxu0 %v1085_v27  ;;  %v1076_v48 = vld [vmem:[#allocation3 + $0x270] sm:$0xff]  ;;  %v5434_v49 = vld [vmem:[#allocation3 + $0x60] sm:$0xff]  ;;  %v1075_v50 = vld [vmem:[#allocation3 + $0x268] sm:$0xff] }
  0x2c   :  { %766 = vmatprep.subr.mxu1 %v5392_v28  ;;  %1135 = vmatpush1.msra.mxu0 %v1084_v29  ;;  %v5437_v51 = vld [vmem:[#allocation3 + $0x58] sm:$0xff]  ;;  %v72_v52 = vld [vmem:[%s8055_s0 + $0x48] sm:$0xff]  ;;  %v5444_v53 = vld [vmem:[#allocation3 + $0x50] sm:$0xff] }
  0x2d   :  { %767 = vmatpush1.msra.mxu1 %v5396_v30  ;;  %1136 = vmatprep.subr.mxu0 %v1083_v32  ;;  %v1074_v54 = vld [vmem:[#allocation3 + $0x260] sm:$0xff]  ;;  %v1073_v55 = vld [vmem:[#allocation3 + $0x258] sm:$0xff]  ;;  %v5448_v56 = vld [vmem:[#allocation3 + $0x48] sm:$0xff] }
  0x2e   :  { %5003 = vmatmul.mubr.msk.f32.gmra.mxu0 %vm105_vm0, %v67_v17  ;;  %768 = vmatprep.subr.mxu1 %v5403_v33  ;;  %v1072_v57 = vld [vmem:[#allocation3 + $0x250] sm:$0xff]  ;;  %v5452_v58 = vld [vmem:[#allocation3 + $0x40] sm:$0xff]  ;;  %v1071_v60 = vld [vmem:[#allocation3 + $0x248] sm:$0xff] }
  0x2f   :  { %320 = vmatprep.mubr.f32.mxu0 %v8066_v0  ;;  %1137 = vmatpush1.msra.mxu0 %v1082_v34  ;;  %v73_v59 = vld [vmem:[%s8055_s0 + $0x50] sm:$0xff]  ;;  %v5459_v61 = vld [vmem:[#allocation3 + $0x38] sm:$0xff]  ;;  %v1070_v62 = vld [vmem:[#allocation3 + $0x240] sm:$0xff] }
  0x30   :  { %769 = vmatpush1.msra.mxu1 %v5406_v35  ;;  %1138 = vmatprep.subr.mxu0 %v1081_v36  ;;  %v5462_v63 = vld [vmem:[#allocation3 + $0x30] sm:$0xff]  ;;  %v1069_v1 = vld [vmem:[#allocation3 + $0x238] sm:$0xff]  ;;  %v5465_v2 = vld [vmem:[#allocation3 + $0x28] sm:$0xff] }
  0x31   :  { %770 = vmatprep.subr.mxu1 %v5409_v37  ;;  %1139 = vmatpush1.msra.mxu0 %v1080_v40  ;;  %v74_v3 = vld [vmem:[%s8055_s0 + $0x58] sm:$0xff]  ;;  %v5472_v4 = vld [vmem:[#allocation3 + $0x20] sm:$0xff]  ;;  %v1068_v5 = vld [vmem:[#allocation3 + $0x230] sm:$0xff] }
  0x32   :  { %5004 = vmatmul.mubr.msk.f32.gmra.mxu0 %vm105_vm0, %v68_v24  ;;  %771 = vmatpush1.msra.mxu1 %v5416_v39  ;;  %v1067_v6 = vld [vmem:[#allocation3 + $0x228] sm:$0xff]  ;;  %v5476_v9 = vld [vmem:[#allocation3 + $0x18] sm:$0xff]  ;;  %v1066_v11 = vld [vmem:[#allocation3 + $0x220] sm:$0xff] }
  0x33   :  { %326 = vmatprep.mubr.f32.mxu0 %v8066_v0  ;;  %1140 = vmatprep.subr.mxu0 %v1079_v41  ;;  %v5480_v13 = vld [vmem:[#allocation3 + $0x10] sm:$0xff]  ;;  %v75_v15 = vld [vmem:[%s8055_s0 + $0x60] sm:$0xff]  ;;  %v1065_v17 = vld [vmem:[#allocation3 + $0x218] sm:$0xff] }
  0x34   :  { %772 = vmatprep.subr.mxu1 %v5420_v42  ;;  %1141 = vmatpush1.msra.mxu0 %v1078_v43  ;;  %v5487_v18 = vld [vmem:[#allocation3 + $0x8] sm:$0xff]  ;;  %v1064_v20 = vld [vmem:[#allocation3 + $0x210] sm:$0xff]  ;;  %v5490_v22 = vld [vmem:[#allocation3] sm:$0xff] }
  0x35   :  { %773 = vmatpush1.msra.mxu1 %v5424_v44  ;;  %1142 = vmatprep.subr.mxu0 %v1077_v46  ;;  %v1063_v24 = vld [vmem:[#allocation3 + $0x208] sm:$0xff]  ;;  %v5493_v26 = vld [vmem:[#allocation3 + $0x1f8] sm:$0xff]  ;;  %v5500_v29 = vld [vmem:[#allocation3 + $0x1f0] sm:$0xff] }
  0x36   :  { %5005 = vmatmul.mubr.msk.f32.gmra.mxu0 %vm105_vm0, %v69_v31  ;;  %774 = vmatprep.subr.mxu1 %v5431_v47  ;;  %v76_v27 = vld [vmem:[%s8055_s0 + $0x68] sm:$0xff]  ;;  %v1062_v31 = vld [vmem:[#allocation3 + $0x200] sm:$0xff]  ;;  %v1125_v32 = vld [vmem:[#allocation3 + $0x3f8] sm:$0xff] }
  0x37   :  { %332 = vmatprep.mubr.f32.mxu0 %v8066_v0  ;;  %1143 = vmatpush1.msra.mxu0 %v1076_v48  ;;  %v5504_v34 = vld [vmem:[#allocation3 + $0x1e8] sm:$0xff]  ;;  %v1124_v36 = vld [vmem:[#allocation3 + $0x3f0] sm:$0xff]  ;;  %v5515_v43 = vld [vmem:[#allocation3 + $0x1d8] sm:$0xff] }
  0x38   :  { %775 = vmatpush1.msra.mxu1 %v5434_v49  ;;  %1144 = vmatprep.subr.mxu0 %v1075_v50  ;;  %v77_v40 = vld [vmem:[%s8055_s0 + $0x70] sm:$0xff]  ;;  %v1123_v41 = vld [vmem:[#allocation3 + $0x3e8] sm:$0xff]  ;;  %v1121_v48 = vld [vmem:[#allocation3 + $0x3d8] sm:$0xff] }
  0x39   :  { %776 = vmatprep.subr.mxu1 %v5437_v51  ;;  %1145 = vmatpush1.msra.mxu0 %v1074_v54  ;;  %v5518_v46 = vld [vmem:[#allocation3 + $0x1d0] sm:$0xff]  ;;  %v5521_v50 = vld [vmem:[#allocation3 + $0x1c8] sm:$0xff]  ;;  %v5528_v54 = vld [vmem:[#allocation3 + $0x1c0] sm:$0xff] }
  0x3a   :  { %5006 = vmatmul.mubr.msk.f32.gmra.mxu0 %vm105_vm0, %v70_v38  ;;  %777 = vmatpush1.msra.mxu1 %v5444_v53  ;;  %v5508_v38 = vld [vmem:[#allocation3 + $0x1e0] sm:$0xff] }
  0x3b   :  { %338 = vmatprep.mubr.f32.mxu0 %v8066_v0  ;;  %1146 = vmatprep.subr.mxu0 %v1073_v55  ;;  %v1120_v55 = vld [vmem:[#allocation3 + $0x3d0] sm:$0xff] }
  0x3c   :  { %778 = vmatprep.subr.mxu1 %v5448_v56  ;;  %1147 = vmatpush1.msra.mxu0 %v1072_v57  ;;  %v1119_v57 = vld [vmem:[#allocation3 + $0x3c8] sm:$0xff] }
  0x3d   :  { %779 = vmatpush1.msra.mxu1 %v5452_v58  ;;  %1148 = vmatprep.subr.mxu0 %v1071_v60  ;;  %v1118_v60 = vld [vmem:[#allocation3 + $0x3c0] sm:$0xff] }
  0x3e   :  { %5007 = vmatmul.mubr.msk.f32.gmra.mxu0 %vm105_vm0, %v71_v45  ;;  %780 = vmatprep.subr.mxu1 %v5459_v61  ;;  %v1122_v45 = vld [vmem:[#allocation3 + $0x3e0] sm:$0xff] }
  0x3f   :  { %344 = vmatprep.mubr.f32.mxu0 %v8066_v0  ;;  %1149 = vmatpush1.msra.mxu0 %v1070_v62  ;;  %v5536_v62 = vld [vmem:[#allocation3 + $0x1b0] sm:$0xff] }
  0x40   :  { %781 = vmatpush1.msra.mxu1 %v5462_v63  ;;  %1150 = vmatprep.subr.mxu0 %v1069_v1  ;;  %v79_v1 = vld [vmem:[%s8055_s0 + $0x80] sm:$0xff] }
  0x41   :  { %782 = vmatprep.subr.mxu1 %v5465_v2  ;;  %1151 = vmatpush1.msra.mxu0 %v1068_v5  ;;  %v5543_v5 = vld [vmem:[#allocation3 + $0x1a8] sm:$0xff] }
  0x42   :  { %5008 = vmatmul.mubr.msk.f32.gmra.mxu0 %vm105_vm0, %v72_v52  ;;  %783 = vmatpush1.msra.mxu1 %v5472_v4  ;;  %v78_v52 = vld [vmem:[%s8055_s0 + $0x78] sm:$0xff] }
  0x43   :  { %350 = vmatprep.mubr.f32.mxu0 %v8066_v0  ;;  %1152 = vmatprep.subr.mxu0 %v1067_v6  ;;  %v1116_v6 = vld [vmem:[#allocation3 + $0x3b0] sm:$0xff] }
  0x44   :  { %784 = vmatprep.subr.mxu1 %v5476_v9  ;;  %1153 = vmatpush1.msra.mxu0 %v1066_v11  ;;  %v5546_v11 = vld [vmem:[#allocation3 + $0x1a0] sm:$0xff] }
  0x45   :  { %785 = vmatpush1.msra.mxu1 %v5480_v13  ;;  %1154 = vmatprep.subr.mxu0 %v1065_v17  ;;  %v5549_v17 = vld [vmem:[#allocation3 + $0x198] sm:$0xff] }
  0x46   :  { %5009 = vmatmul.mubr.msk.f32.gmra.mxu0 %vm105_vm0, %v73_v59  ;;  %786 = vmatprep.subr.mxu1 %v5487_v18  ;;  %v5532_v59 = vld [vmem:[#allocation3 + $0x1b8] sm:$0xff] }
  0x47   :  { %356 = vmatprep.mubr.f32.mxu0 %v8066_v0  ;;  %1155 = vmatpush1.msra.mxu0 %v1064_v20  ;;  %v80_v20 = vld [vmem:[%s8055_s0 + $0x88] sm:$0xff] }
  0x48   :  { %787 = vmatpush1.msra.mxu1 %v5490_v22  ;;  %1156 = vmatprep.subr.mxu0 %v1063_v24  ;;  %v5556_v24 = vld [vmem:[#allocation3 + $0x190] sm:$0xff] }
  0x49   :  { %788 = vmatprep.subr.mxu1 %v5493_v26  ;;  %1157 = vmatpush1.msra.mxu0 %v1062_v31  ;;  %v1113_v31 = vld [vmem:[#allocation3 + $0x398] sm:$0xff] }
  0x4a   :  { %5010 = vmatmul.mubr.msk.f32.gmra.mxu0 %vm105_vm0, %v74_v3  ;;  %789 = vmatpush2.msra.mxu1 %v5500_v29  ;;  %v1117_v3 = vld [vmem:[#allocation3 + $0x3b8] sm:$0xff] }
  0x4b   :  { %362 = vmatprep.mubr.f32.mxu0 %v8066_v0  ;;  %1158 = vmatprep.subr.mxu0 %v1125_v32  ;;  %v5560_v32 = vld [vmem:[#allocation3 + $0x188] sm:$0xff] }
  0x4c   :  { %790 = vmatprep.subr.mxu1 %v5504_v34  ;;  %1159 = vmatpush2.msra.mxu0 %v1124_v36  ;;  %v1112_v36 = vld [vmem:[#allocation3 + $0x390] sm:$0xff] }
  0x4d   :  { %791 = vmatpush2.msra.mxu1 %v5508_v38  ;;  %1160 = vmatprep.subr.mxu0 %v1123_v41  ;;  %v81_v41 = vld [vmem:[%s8055_s0 + $0x90] sm:$0xff] }
  0x4e   :  { %5011 = vmatmul.mubr.msk.f32.gmra.mxu0 %vm105_vm0, %v75_v15  ;;  %792 = vmatprep.subr.mxu1 %v5515_v43  ;;  %v1115_v15 = vld [vmem:[#allocation3 + $0x3a8] sm:$0xff] }
  0x4f   :  { %368 = vmatprep.mubr.f32.mxu0 %v8066_v0  ;;  %1161 = vmatpush2.msra.mxu0 %v1122_v45  ;;  %v1111_v45 = vld [vmem:[#allocation3 + $0x388] sm:$0xff] }
  0x50   :  { %793 = vmatpush2.msra.mxu1 %v5518_v46  ;;  %1162 = vmatprep.subr.mxu0 %v1121_v48  ;;  %v5571_v48 = vld [vmem:[#allocation3 + $0x178] sm:$0xff] }
  0x51   :  { %794 = vmatprep.subr.mxu1 %v5521_v50  ;;  %1163 = vmatpush2.msra.mxu0 %v1120_v55  ;;  %v5574_v55 = vld [vmem:[#allocation3 + $0x170] sm:$0xff] }
  0x52   :  { %5012 = vmatmul.mubr.msk.f32.gmra.mxu0 %vm105_vm0, %v76_v27  ;;  %795 = vmatpush2.msra.mxu1 %v5528_v54  ;;  %v1114_v27 = vld [vmem:[#allocation3 + $0x3a0] sm:$0xff] }
  0x53   :  { %374 = vmatprep.mubr.f32.mxu0 %v8066_v0  ;;  %1164 = vmatprep.subr.mxu0 %v1119_v57  ;;  %v1109_v57 = vld [vmem:[#allocation3 + $0x378] sm:$0xff] }
  0x54   :  { %796 = vmatprep.subr.mxu1 %v5532_v59  ;;  %1165 = vmatpush2.msra.mxu0 %v1118_v60  ;;  %v5577_v60 = vld [vmem:[#allocation3 + $0x168] sm:$0xff] }
  0x55   :  { %797 = vmatpush2.msra.mxu1 %v5536_v62  ;;  %1166 = vmatprep.subr.mxu0 %v1117_v3  ;;  %v5584_v3 = vld [vmem:[#allocation3 + $0x160] sm:$0xff] }
  0x56   :  { %5013 = vmatmul.mubr.msk.f32.gmra.mxu0 %vm105_vm0, %v77_v40  ;;  %798 = vmatprep.subr.mxu1 %v5543_v5  ;;  %v5564_v40 = vld [vmem:[#allocation3 + $0x180] sm:$0xff]  ;;  %8125 = vst [vmem:[#allocation9_spill] sm:$0xff] %v5584_v3 }
  0x57   :  { %380 = vmatprep.mubr.f32.mxu0 %v8066_v0  ;;  %1167 = vmatpush2.msra.mxu0 %v1116_v6  ;;  %v1108_v6 = vld [vmem:[#allocation3 + $0x370] sm:$0xff] }
  0x58   :  { %799 = vmatpush2.msra.mxu1 %v5546_v11  ;;  %1168 = vmatprep.subr.mxu0 %v1115_v15  ;;  %v1107_v15 = vld [vmem:[#allocation3 + $0x368] sm:$0xff] }
  0x59   :  { %800 = vmatprep.subr.mxu1 %v5549_v17  ;;  %1169 = vmatpush2.msra.mxu0 %v1114_v27  ;;  %v1106_v27 = vld [vmem:[#allocation3 + $0x360] sm:$0xff] }
  0x5a   :  { %5014 = vmatmul.mubr.msk.f32.gmra.mxu0 %vm105_vm0, %v78_v52  ;;  %801 = vmatpush2.msra.mxu1 %v5556_v24  ;;  %v1110_v52 = vld [vmem:[#allocation3 + $0x380] sm:$0xff] }
  0x5b   :  { %386 = vmatprep.mubr.f32.mxu0 %v8066_v0  ;;  %1170 = vmatprep.subr.mxu0 %v1113_v31  ;;  %v5592_v31 = vld [vmem:[#allocation3 + $0x150] sm:$0xff] }
  0x5c   :  { %802 = vmatprep.subr.mxu1 %v5560_v32  ;;  %1171 = vmatpush2.msra.mxu0 %v1112_v36  ;;  %8127 = vst [vmem:[#allocation11_spill] sm:$0xff] %v5592_v31  ;;  %v83_v36 = vld [vmem:[%s8055_s0 + $0xa0] sm:$0xff] }
  0x5d   :  { %803 = vmatpush2.msra.mxu1 %v5564_v40  ;;  %1172 = vmatprep.subr.mxu0 %v1111_v45  ;;  %v5599_v45 = vld [vmem:[#allocation3 + $0x148] sm:$0xff] }
  0x5e   :  { %5015 = vmatmul.mubr.msk.f32.gmra.mxu0 %vm105_vm0, %v79_v1  ;;  %v82_v1 = vld [vmem:[%s8055_s0 + $0x98] sm:$0xff]  ;;  %804 = vmatprep.subr.mxu1 %v5571_v48  ;;  %8128 = vst [vmem:[#allocation12_spill] sm:$0xff] %v5599_v45 }
  0x5f   :  { %392 = vmatprep.mubr.f32.mxu0 %v8066_v0  ;;  %1173 = vmatpush2.msra.mxu0 %v1110_v52  ;;  %v1104_v52 = vld [vmem:[#allocation3 + $0x350] sm:$0xff] }
  0x60   :  { %805 = vmatpush2.msra.mxu1 %v5574_v55  ;;  %1174 = vmatprep.subr.mxu0 %v1109_v57  ;;  %v5602_v57 = vld [vmem:[#allocation3 + $0x140] sm:$0xff] }
  0x61   :  { %806 = vmatprep.subr.mxu1 %v5577_v60  ;;  %1175 = vmatpush2.msra.mxu0 %v1108_v6  ;;  %8129 = vst [vmem:[#allocation13_spill] sm:$0xff] %v5602_v57  ;;  %v84_v6 = vld [vmem:[%s8055_s0 + $0xa8] sm:$0xff] }
  0x62   :  { %5016 = vmatmul.mubr.msk.f32.gmra.mxu0 %vm105_vm0, %v80_v20  ;;  %v5588_v20 = vld [vmem:[#allocation3 + $0x158] sm:$0xff]  ;;  %807 = vmatpush2.msra.mxu1 %v5584_v3  ;;  %v8131_v3 = vmov 0.0  }
  0x63   :  { %398 = vmatprep.mubr.f32.mxu0 %v8066_v0  ;;  %8126 = vst [vmem:[#allocation10_spill] sm:$0xff] %v5588_v20  ;;  %1176 = vmatprep.subr.mxu0 %v1107_v15  ;;  %v5612_v15 = vld [vmem:[#allocation3 + $0x130] sm:$0xff] }
  0x64   :  { %808 = vmatprep.subr.mxu1 %v5588_v20  ;;  %1177 = vmatpush2.msra.mxu0 %v1106_v27  ;;  %8132 = vst [vmem:[#allocation15_spill] sm:$0xff] %v5612_v15  ;;  %v1102_v27 = vld [vmem:[#allocation3 + $0x340] sm:$0xff] }
  0x65   :  { %809 = vmatpush2.msra.mxu1 %v5592_v31  ;;  %v1100_v31 = vld [vmem:[#allocation3 + $0x330] sm:$0xff]  ;;  %v5620_v20 = vld [vmem:[#allocation3 + $0x120] sm:$0xff] }
  0x66   :  { %5017 = vmatmul.mubr.msk.f32.gmra.mxu0 %vm105_vm0, %v81_v41  ;;  %v1105_v41 = vld [vmem:[#allocation3 + $0x358] sm:$0xff]  ;;  %810 = vmatprep.subr.mxu1 %v5599_v45  ;;  %8133 = vst [vmem:[#allocation16_spill] sm:$0xff] %v5620_v20  ;;  %v5633_v45 = vld [vmem:[#allocation3 + $0x108] sm:$0xff] }
  0x67   :  { %404 = vmatprep.mubr.f32.mxu0 %v8066_v0  ;;  %1178 = vmatprep.subr.mxu0 %v1105_v41  ;;  %v5616_v41 = vld [vmem:[#allocation3 + $0x128] sm:$0xff]  ;;  %8134 = vst [vmem:[#allocation17_spill] sm:$0xff] %v5633_v45 }
  0x68   :  { %1179 = vmatpush2.msra.mxu0 %v1104_v52  ;;  %811 = vmatpush2.msra.mxu1 %v5602_v57  ;;  %v85_v52 = vld [vmem:[%s8055_s0 + $0xb0] sm:$0xff]  ;;  %v1097_v57 = vld [vmem:[#allocation3 + $0x318] sm:$0xff] }
  0x6a   :  { %5018 = vmatmul.mubr.msk.f32.gmra.mxu0 %vm105_vm0, %v82_v1  ;;  %v1103_v1 = vld [vmem:[#allocation3 + $0x348] sm:$0xff] }
  0x6b   :  { %410 = vmatprep.mubr.f32.mxu0 %v8066_v0  ;;  %v5605_v0 = vld [vmem:[#allocation3 + $0x138] sm:$0xff]  ;;  %1180 = vmatprep.subr.mxu0 %v1103_v1  ;;  %v1099_v1 = vld [vmem:[#allocation3 + $0x328] sm:$0xff] }
  0x6c   :  { %8130 = vst [vmem:[#allocation14_spill] sm:$0xff] %v5605_v0  ;;  %812 = vmatprep.subr.mxu1 %v5605_v0  ;;  %1181 = vmatpush2.msra.mxu0 %v1102_v27  ;;  %v5627_v0 = vld [vmem:[#allocation3 + $0x118] sm:$0xff] }
  0x6d   :  { %813 = vmatpush2.msra.mxu1 %v5612_v15  ;;  %v5630_v15 = vld [vmem:[#allocation3 + $0x110] sm:$0xff]  ;;  %v86_v27 = vld [vmem:[%s8055_s0 + $0xb8] sm:$0xff] }
  0x6e   :  { %5019 = vmatmul.mubr.msk.f32.gmra.mxu0 %vm105_vm0, %v83_v36  ;;  %v1101_v36 = vld [vmem:[#allocation3 + $0x338] sm:$0xff]  ;;  %814 = vmatprep.subr.mxu1 %v5616_v41 }
  0x6f   :  { %416 = vmatprep.mubr.f32.mxu0 %v8131_v3  ;;  %1182 = vmatprep.subr.mxu0 %v1101_v36  ;;  %v1096_v36 = vld [vmem:[#allocation3 + $0x310] sm:$0xff] }
  0x70   :  { %1183 = vmatpush2.msra.mxu0 %v1100_v31  ;;  %815 = vmatpush2.msra.mxu1 %v5620_v20  ;;  %v5640_v31 = vld [vmem:[#allocation3 + $0x100] sm:$0xff] }
  0x71   :  { %1184 = vmatprep.subr.mxu0 %v1099_v1  ;;  %816 = vmatprep.subr.mxu1 %v5627_v0  ;;  %8135 = vst [vmem:[#allocation18_spill] sm:$0xff] %v5640_v31  ;;  %v5644_v1 = vld [vmem:[#allocation3 + $0x4f8] sm:$0xff]  ;;  %v1094_v20 = vld [vmem:[#allocation3 + $0x300] sm:$0xff] }
  0x72   :  { %5020 = vmatmul.mubr.msk.f32.gmra.mxu0 %vm105_vm0, %v84_v6  ;;  %v1098_v6 = vld [vmem:[#allocation3 + $0x320] sm:$0xff]  ;;  %817 = vmatpush2.msra.mxu1 %v5630_v15  ;;  %8136 = vst [vmem:[#allocation19_spill] sm:$0xff] %v5644_v1 }
  0x73   :  { %422 = vmatprep.mubr.f32.mxu0 %v8131_v3  ;;  %1185 = vmatpush2.msra.mxu0 %v1098_v6  ;;  %v87_v6 = vld [vmem:[%s8055_s0 + $0xc0] sm:$0xff] }
  0x74   :  { %1186 = vmatprep.subr.mxu0 %v1097_v57  ;;  %818 = vmatprep.subr.mxu1 %v5633_v45  ;;  %v88_v57 = vld [vmem:[%s8055_s0 + $0xc8] sm:$0xff] }
  0x75   :  { %819 = vmatpush2.msra.mxu1 %v5640_v31  ;;  %1187 = vmatpush2.msra.mxu0 %v1096_v36  ;;  %v92_v36 = vld [vmem:[%s8055_s0 + $0xe8] sm:$0xff] }
  0x76   :  { %5021 = vmatmul.mubr.msk.f32.gmra.mxu0 %vm105_vm0, %v85_v52  ;;  %v1095_v52 = vld [vmem:[#allocation3 + $0x308] sm:$0xff]  ;;  %1496 = vmatprep.subr.mxu1 %v5644_v1  ;;  %v1462_v1 = vld [vmem:[#allocation3 + $0x4f0] sm:$0xff] }
  0x77   :  { %428 = vmatprep.mubr.f32.mxu0 %v8131_v3  ;;  %1188 = vmatprep.subr.mxu0 %v1095_v52  ;;  %v93_v52 = vld [vmem:[%s8055_s0 + $0xf0] sm:$0xff] }
  0x78   :  { %1189 = vmatpush2.msra.mxu0 %v1094_v20  ;;  %v91_v20 = vld [vmem:[%s8055_s0 + $0xe0] sm:$0xff] }
  0x79   :  { %2293 = vmatprep.subr.mxu0 %v5353_v7  ;;  %v90_v7 = vld [vmem:[%s8055_s0 + $0xd8] sm:$0xff] }
  0x7a   :  { %5022 = vmatmul.mubr.msk.f32.gmra.mxu0 %vm105_vm0, %v86_v27  ;;  %v89_v27 = vld [vmem:[%s8055_s0 + $0xd0] sm:$0xff] }
  0x7b   :  { %434 = vmatprep.mubr.f32.mxu0 %v8131_v3 }
  0x7e   :  { %5023 = vmatmul.mubr.msk.f32.gmra.mxu0 %vm105_vm0, %v87_v6  ;;  %v94_v6 = vld [vmem:[%s8055_s0 + $0xf8] sm:$0xff] }
  0x7f   :  { %440 = vmatprep.mubr.f32.mxu0 %v8131_v3 }
  0x82   :  { %5024 = vmatmul.mubr.msk.f32.gmra.mxu0 %vm105_vm0, %v88_v57  ;;  %v95_v57 = vld [vmem:[%s8055_s0 + $0x100] sm:$0xff] }
  0x83   :  { %446 = vmatprep.mubr.f32.mxu0 %v8131_v3 }
  0x86   :  { %5025 = vmatmul.mubr.msk.f32.gmra.mxu0 %vm105_vm0, %v89_v27  ;;  %v96_v27 = vld [vmem:[%s8055_s0 + $0x108] sm:$0xff] }
  0x87   :  { %452 = vmatprep.mubr.f32.mxu0 %v8131_v3 }
  0x8a   :  { %5026 = vmatmul.mubr.msk.f32.gmra.mxu0 %vm105_vm0, %v90_v7  ;;  %v97_v7 = vld [vmem:[%s8055_s0 + $0x110] sm:$0xff] }
  0x8b   :  { %458 = vmatprep.mubr.f32.mxu0 %v8131_v3 }
  0x8e   :  { %5027 = vmatmul.mubr.msk.f32.gmra.mxu0 %vm105_vm0, %v91_v20  ;;  %v98_v20 = vld [vmem:[%s8055_s0 + $0x118] sm:$0xff] }
  0x8f   :  { %464 = vmatprep.mubr.f32.mxu0 %v8131_v3 }
  0x92   :  { %5028 = vmatmul.mubr.msk.f32.gmra.mxu0 %vm105_vm0, %v92_v36  ;;  %v99_v36 = vld [vmem:[%s8055_s0 + $0x120] sm:$0xff] }
  0x93   :  { %470 = vmatprep.mubr.f32.mxu0 %v8131_v3 }
  0x96   :  { %5029 = vmatmul.mubr.msk.f32.gmra.mxu0 %vm105_vm0, %v93_v52  ;;  %v100_v52 = vld [vmem:[%s8055_s0 + $0x128] sm:$0xff] }
  0x97   :  { %476 = vmatprep.mubr.f32.mxu0 %v8131_v3 }
  0x9a   :  { %5030 = vmatmul.mubr.msk.f32.gmra.mxu0 %vm105_vm0, %v94_v6  ;;  %v101_v6 = vld [vmem:[%s8055_s0 + $0x130] sm:$0xff] }
  0x9b   :  { %482 = vmatprep.mubr.f32.mxu0 %v8131_v3 }
  0x9e   :  { %5031 = vmatmul.mubr.msk.f32.gmra.mxu0 %vm105_vm0, %v95_v57  ;;  %v102_v57 = vld [vmem:[%s8055_s0 + $0x138] sm:$0xff] }
  0x9f   :  { %488 = vmatprep.mubr.f32.mxu0 %v8131_v3 }
  0xa2   :  { %5032 = vmatmul.mubr.msk.f32.gmra.mxu0 %vm105_vm0, %v96_v27 }
  0xa3   :  { %494 = vmatprep.mubr.f32.mxu0 %v8131_v3 }
  0xa6   :  { %5033 = vmatmul.mubr.msk.f32.gmra.mxu0 %vm105_vm0, %v97_v7 }
  0xa7   :  { %500 = vmatprep.mubr.f32.mxu0 %v8131_v3 }
  0xaa   :  { %5034 = vmatmul.mubr.msk.f32.gmra.mxu0 %vm105_vm0, %v98_v20 }
  0xab   :  { %506 = vmatprep.mubr.f32.mxu0 %v8131_v3 }
  0xae   :  { %5035 = vmatmul.mubr.msk.f32.gmra.mxu0 %vm105_vm0, %v99_v36 }
  0xaf   :  { %512 = vmatprep.mubr.f32.mxu0 %v8131_v3 }
  0xb2   :  { %5036 = vmatmul.mubr.msk.f32.gmra.mxu0 %vm105_vm0, %v100_v52 }
  0xb3   :  { %518 = vmatprep.mubr.f32.mxu0 %v8131_v3 }
  0xb6   :  { %5037 = vmatmul.mubr.msk.f32.gmra.mxu0 %vm105_vm0, %v101_v6  ;;  %v1461_v6 = vld [vmem:[#allocation3 + $0x4e8] sm:$0xff] }
  0xb7   :  { %524 = vmatprep.mubr.f32.mxu0 %v8131_v3 }
  0xba   :  { %5038 = vmatmul.mubr.msk.f32.gmra.mxu0 %vm105_vm0, %v102_v57 }
  0xde   :  { %v292_v27 = vpop.f32.mrf.mxu0 }
  0xdf   :  { %v5732_v36 = vmax.f32 %v292_v27, 0.0 }
  0xe0   :  { %v294_v7 = vpop.f32.mrf.mxu0 }
  0xe1   :  { %v5730_v20 = vmax.f32 %v294_v7, 0.0  ;;  %v1460_v7 = vld [vmem:[#allocation3 + $0x4e0] sm:$0xff] }
  0xe2   :  { %v298_v52 = vpop.f32.mrf.mxu0 }
  0xe3   :  { %8137 = vst [vmem:[#allocation20_spill] sm:$0xff] %v5730_v20  ;;  %820 = vmatprep.mubr.f32.mxu1 %v5730_v20  ;;  %1190 = vmatprep.mubr.f32.mxu0 %v5730_v20  ;;  %v5741_v57 = vmax.f32 %v298_v52, 0.0  ;;  %v1459_v20 = vld [vmem:[#allocation3 + $0x4d8] sm:$0xff]  ;;  %v1457_v52 = vld [vmem:[#allocation3 + $0x4c8] sm:$0xff] }
  0xe4   :  { %v300_v3 = vpop.f32.mrf.mxu0  ;;  %821 = vmatmul.mubr.f32.vlgmr.msra.gmra.mxu1 %v5732_v36  ;;  %1191 = vmatmul.mubr.f32.vlgmr.msra.gmra.mxu0 %v5732_v36 }
  0xe5   :  { %v5738_v31 = vmax.f32 %v300_v3, 0.0  ;;  %1497 = vmatpush1.msra.mxu1 %v1462_v1  ;;  %2294 = vmatpush1.msra.mxu0 %v5355_v8 }
  0xe6   :  { %v304_v27 = vpop.f32.mrf.mxu0  ;;  %1498 = vmatprep.subr.mxu1 %v1461_v6  ;;  %2295 = vmatprep.subr.mxu0 %v5358_v10  ;;  %v1458_v10 = vld [vmem:[#allocation3 + $0x4d0] sm:$0xff] }
  0xe7   :  { %826 = vmatprep.mubr.f32.mxu1 %v5738_v31  ;;  %1196 = vmatprep.mubr.f32.mxu0 %v5738_v31  ;;  %v5751_v8 = vmax.f32 %v304_v27, 0.0  ;;  %v1455_v27 = vld [vmem:[#allocation3 + $0x4b8] sm:$0xff] }
  0xe8   :  { %v306_v45 = vpop.f32.mrf.mxu0  ;;  %827 = vmatmul.mubr.f32.gmra.mxu1 %v5741_v57  ;;  %1197 = vmatmul.mubr.f32.gmra.mxu0 %v5741_v57 }
  0xe9   :  { %v5748_v3 = vmax.f32 %v306_v45, 0.0  ;;  %1499 = vmatpush1.msra.mxu1 %v1460_v7  ;;  %2296 = vmatpush1.msra.mxu0 %v5361_v12 }
  0xea   :  { %v310_v1 = vpop.f32.mrf.mxu0  ;;  %1500 = vmatprep.subr.mxu1 %v1459_v20  ;;  %2297 = vmatprep.subr.mxu0 %v5363_v14  ;;  %v1456_v14 = vld [vmem:[#allocation3 + $0x4c0] sm:$0xff] }
  0xeb   :  { %832 = vmatprep.mubr.f32.mxu1 %v5748_v3  ;;  %1202 = vmatprep.mubr.f32.mxu0 %v5748_v3  ;;  %v5761_v12 = vmax.f32 %v310_v1, 0.0 }
  0xec   :  { %v312_v6 = vpop.f32.mrf.mxu0  ;;  %833 = vmatmul.mubr.f32.gmra.mxu1 %v5751_v8  ;;  %1203 = vmatmul.mubr.f32.gmra.mxu0 %v5751_v8 }
  0xed   :  { %v5758_v45 = vmax.f32 %v312_v6, 0.0  ;;  %1501 = vmatpush1.msra.mxu1 %v1458_v10  ;;  %2298 = vmatpush1.msra.mxu0 %v5367_v16 }
  0xee   :  { %v316_v20 = vpop.f32.mrf.mxu0  ;;  %1502 = vmatprep.subr.mxu1 %v1457_v52  ;;  %2299 = vmatprep.subr.mxu0 %v5375_v19  ;;  %v1454_v19 = vld [vmem:[#allocation3 + $0x4b0] sm:$0xff]  ;;  %v1453_v52 = vld [vmem:[#allocation3 + $0x4a8] sm:$0xff] }
  0xef   :  { %838 = vmatprep.mubr.f32.mxu1 %v5758_v45  ;;  %1208 = vmatprep.mubr.f32.mxu0 %v5758_v45  ;;  %v5771_v16 = vmax.f32 %v316_v20, 0.0 }
  0xf0   :  { %v318_v7 = vpop.f32.mrf.mxu0  ;;  %839 = vmatmul.mubr.f32.gmra.mxu1 %v5761_v12  ;;  %1209 = vmatmul.mubr.f32.gmra.mxu0 %v5761_v12 }
  0xf1   :  { %v5768_v10 = vmax.f32 %v318_v7, 0.0  ;;  %1503 = vmatpush1.msra.mxu1 %v1456_v14  ;;  %2300 = vmatpush1.msra.mxu0 %v5378_v21 }
  0xf2   :  { %v322_v1 = vpop.f32.mrf.mxu0  ;;  %1504 = vmatprep.subr.mxu1 %v1455_v27  ;;  %2301 = vmatprep.subr.mxu0 %v5381_v23  ;;  %v1452_v23 = vld [vmem:[#allocation3 + $0x4a0] sm:$0xff]  ;;  %v1451_v27 = vld [vmem:[#allocation3 + $0x498] sm:$0xff] }
  0xf3   :  { %844 = vmatprep.mubr.f32.mxu1 %v5768_v10  ;;  %1214 = vmatprep.mubr.f32.mxu0 %v5768_v10  ;;  %v5781_v21 = vmax.f32 %v322_v1, 0.0 }
  0xf4   :  { %v324_v6 = vpop.f32.mrf.mxu0  ;;  %845 = vmatmul.mubr.f32.gmra.mxu1 %v5771_v16  ;;  %1215 = vmatmul.mubr.f32.gmra.mxu0 %v5771_v16 }
  0xf5   :  { %v5778_v14 = vmax.f32 %v324_v6, 0.0  ;;  %1505 = vmatpush1.msra.mxu1 %v1454_v19  ;;  %2302 = vmatpush1.msra.mxu0 %v5388_v25 }
  0xf6   :  { %v328_v20 = vpop.f32.mrf.mxu0  ;;  %1506 = vmatprep.subr.mxu1 %v1453_v52  ;;  %2303 = vmatprep.subr.mxu0 %v5392_v28  ;;  %v1450_v28 = vld [vmem:[#allocation3 + $0x490] sm:$0xff]  ;;  %v1449_v52 = vld [vmem:[#allocation3 + $0x488] sm:$0xff] }
  0xf7   :  { %850 = vmatprep.mubr.f32.mxu1 %v5778_v14  ;;  %1220 = vmatprep.mubr.f32.mxu0 %v5778_v14  ;;  %v5791_v25 = vmax.f32 %v328_v20, 0.0 }
  0xf8   :  { %v330_v7 = vpop.f32.mrf.mxu0  ;;  %851 = vmatmul.mubr.f32.gmra.mxu1 %v5781_v21  ;;  %1221 = vmatmul.mubr.f32.gmra.mxu0 %v5781_v21 }
  0xf9   :  { %v5788_v19 = vmax.f32 %v330_v7, 0.0  ;;  %1507 = vmatpush1.msra.mxu1 %v1452_v23  ;;  %2304 = vmatpush1.msra.mxu0 %v5396_v30 }
  0xfa   :  { %v334_v1 = vpop.f32.mrf.mxu0  ;;  %1508 = vmatprep.subr.mxu1 %v1451_v27  ;;  %2305 = vmatprep.subr.mxu0 %v5403_v33  ;;  %v1448_v33 = vld [vmem:[#allocation3 + $0x480] sm:$0xff]  ;;  %v1447_v27 = vld [vmem:[#allocation3 + $0x478] sm:$0xff] }
  0xfb   :  { %856 = vmatprep.mubr.f32.mxu1 %v5788_v19  ;;  %1226 = vmatprep.mubr.f32.mxu0 %v5788_v19  ;;  %v5801_v30 = vmax.f32 %v334_v1, 0.0 }
  0xfc   :  { %v336_v6 = vpop.f32.mrf.mxu0  ;;  %857 = vmatmul.mubr.f32.gmra.mxu1 %v5791_v25  ;;  %1227 = vmatmul.mubr.f32.gmra.mxu0 %v5791_v25 }
  0xfd   :  { %v5798_v23 = vmax.f32 %v336_v6, 0.0  ;;  %1509 = vmatpush1.msra.mxu1 %v1450_v28  ;;  %2306 = vmatpush1.msra.mxu0 %v5406_v35 }
  0xfe   :  { %v340_v20 = vpop.f32.mrf.mxu0  ;;  %1510 = vmatprep.subr.mxu1 %v1449_v52  ;;  %2307 = vmatprep.subr.mxu0 %v5409_v37  ;;  %v1446_v37 = vld [vmem:[#allocation3 + $0x470] sm:$0xff]  ;;  %v1445_v52 = vld [vmem:[#allocation3 + $0x468] sm:$0xff] }
  0xff   :  { %862 = vmatprep.mubr.f32.mxu1 %v5798_v23  ;;  %1232 = vmatprep.mubr.f32.mxu0 %v5798_v23  ;;  %v5811_v35 = vmax.f32 %v340_v20, 0.0 }
 0x100   :  { %v342_v7 = vpop.f32.mrf.mxu0  ;;  %863 = vmatmul.mubr.f32.gmra.mxu1 %v5801_v30  ;;  %1233 = vmatmul.mubr.f32.gmra.mxu0 %v5801_v30 }
 0x101   :  { %v5808_v28 = vmax.f32 %v342_v7, 0.0  ;;  %1511 = vmatpush1.msra.mxu1 %v1448_v33  ;;  %2308 = vmatpush1.msra.mxu0 %v5416_v39 }
 0x102   :  { %v346_v1 = vpop.f32.mrf.mxu0  ;;  %1512 = vmatprep.subr.mxu1 %v1447_v27  ;;  %2309 = vmatprep.subr.mxu0 %v5420_v42  ;;  %v1444_v42 = vld [vmem:[#allocation3 + $0x460] sm:$0xff]  ;;  %v1443_v27 = vld [vmem:[#allocation3 + $0x458] sm:$0xff] }
 0x103   :  { %868 = vmatprep.mubr.f32.mxu1 %v5808_v28  ;;  %1238 = vmatprep.mubr.f32.mxu0 %v5808_v28  ;;  %v5821_v39 = vmax.f32 %v346_v1, 0.0 }
 0x104   :  { %v348_v6 = vpop.f32.mrf.mxu0  ;;  %869 = vmatmul.mubr.f32.gmra.mxu1 %v5811_v35  ;;  %1239 = vmatmul.mubr.f32.gmra.mxu0 %v5811_v35 }
 0x105   :  { %v5818_v33 = vmax.f32 %v348_v6, 0.0  ;;  %1513 = vmatpush1.msra.mxu1 %v1446_v37  ;;  %2310 = vmatpush1.msra.mxu0 %v5424_v44 }
 0x106   :  { %v352_v20 = vpop.f32.mrf.mxu0  ;;  %1514 = vmatprep.subr.mxu1 %v1445_v52  ;;  %2311 = vmatprep.subr.mxu0 %v5431_v47  ;;  %v1442_v47 = vld [vmem:[#allocation3 + $0x450] sm:$0xff]  ;;  %v1441_v52 = vld [vmem:[#allocation3 + $0x448] sm:$0xff] }
 0x107   :  { %874 = vmatprep.mubr.f32.mxu1 %v5818_v33  ;;  %1244 = vmatprep.mubr.f32.mxu0 %v5818_v33  ;;  %v5831_v44 = vmax.f32 %v352_v20, 0.0 }
 0x108   :  { %v354_v7 = vpop.f32.mrf.mxu0  ;;  %875 = vmatmul.mubr.f32.gmra.mxu1 %v5821_v39  ;;  %1245 = vmatmul.mubr.f32.gmra.mxu0 %v5821_v39 }
 0x109   :  { %v5828_v37 = vmax.f32 %v354_v7, 0.0  ;;  %1515 = vmatpush1.msra.mxu1 %v1444_v42  ;;  %2312 = vmatpush1.msra.mxu0 %v5434_v49 }
 0x10a   :  { %v358_v1 = vpop.f32.mrf.mxu0  ;;  %1516 = vmatprep.subr.mxu1 %v1443_v27  ;;  %2313 = vmatprep.subr.mxu0 %v5437_v51  ;;  %v1440_v51 = vld [vmem:[#allocation3 + $0x440] sm:$0xff]  ;;  %v1439_v27 = vld [vmem:[#allocation3 + $0x438] sm:$0xff] }
 0x10b   :  { %880 = vmatprep.mubr.f32.mxu1 %v5828_v37  ;;  %1250 = vmatprep.mubr.f32.mxu0 %v5828_v37  ;;  %v5841_v49 = vmax.f32 %v358_v1, 0.0 }
 0x10c   :  { %v360_v6 = vpop.f32.mrf.mxu0  ;;  %881 = vmatmul.mubr.f32.gmra.mxu1 %v5831_v44  ;;  %1251 = vmatmul.mubr.f32.gmra.mxu0 %v5831_v44 }
 0x10d   :  { %v5838_v42 = vmax.f32 %v360_v6, 0.0  ;;  %1517 = vmatpush1.msra.mxu1 %v1442_v47  ;;  %2314 = vmatpush1.msra.mxu0 %v5444_v53 }
 0x10e   :  { %v364_v20 = vpop.f32.mrf.mxu0  ;;  %1518 = vmatprep.subr.mxu1 %v1441_v52  ;;  %2315 = vmatprep.subr.mxu0 %v5448_v56  ;;  %v1438_v56 = vld [vmem:[#allocation3 + $0x430] sm:$0xff]  ;;  %v1437_v52 = vld [vmem:[#allocation3 + $0x428] sm:$0xff] }
 0x10f   :  { %886 = vmatprep.mubr.f32.mxu1 %v5838_v42  ;;  %1256 = vmatprep.mubr.f32.mxu0 %v5838_v42  ;;  %v5851_v53 = vmax.f32 %v364_v20, 0.0 }
 0x110   :  { %v366_v7 = vpop.f32.mrf.mxu0  ;;  %887 = vmatmul.mubr.f32.gmra.mxu1 %v5841_v49  ;;  %1257 = vmatmul.mubr.f32.gmra.mxu0 %v5841_v49 }
 0x111   :  { %v5848_v47 = vmax.f32 %v366_v7, 0.0  ;;  %1519 = vmatpush1.msra.mxu1 %v1440_v51  ;;  %2316 = vmatpush1.msra.mxu0 %v5452_v58 }
 0x112   :  { %v370_v1 = vpop.f32.mrf.mxu0  ;;  %1520 = vmatprep.subr.mxu1 %v1439_v27  ;;  %2317 = vmatprep.subr.mxu0 %v5459_v61  ;;  %v1436_v61 = vld [vmem:[#allocation3 + $0x420] sm:$0xff]  ;;  %v1435_v27 = vld [vmem:[#allocation3 + $0x418] sm:$0xff] }
 0x113   :  { %892 = vmatprep.mubr.f32.mxu1 %v5848_v47  ;;  %1262 = vmatprep.mubr.f32.mxu0 %v5848_v47  ;;  %v5861_v58 = vmax.f32 %v370_v1, 0.0 }
 0x114   :  { %v372_v6 = vpop.f32.mrf.mxu0  ;;  %893 = vmatmul.mubr.f32.gmra.mxu1 %v5851_v53  ;;  %1263 = vmatmul.mubr.f32.gmra.mxu0 %v5851_v53 }
 0x115   :  { %v5858_v51 = vmax.f32 %v372_v6, 0.0  ;;  %1521 = vmatpush1.msra.mxu1 %v1438_v56  ;;  %2318 = vmatpush1.msra.mxu0 %v5462_v63 }
 0x116   :  { %v376_v20 = vpop.f32.mrf.mxu0  ;;  %1522 = vmatprep.subr.mxu1 %v1437_v52  ;;  %2319 = vmatprep.subr.mxu0 %v5465_v2  ;;  %v1434_v2 = vld [vmem:[#allocation3 + $0x410] sm:$0xff]  ;;  %v1433_v52 = vld [vmem:[#allocation3 + $0x408] sm:$0xff] }
 0x117   :  { %898 = vmatprep.mubr.f32.mxu1 %v5858_v51  ;;  %1268 = vmatprep.mubr.f32.mxu0 %v5858_v51  ;;  %v5871_v63 = vmax.f32 %v376_v20, 0.0 }
 0x118   :  { %v378_v7 = vpop.f32.mrf.mxu0  ;;  %899 = vmatmul.mubr.f32.gmra.mxu1 %v5861_v58  ;;  %1269 = vmatmul.mubr.f32.gmra.mxu0 %v5861_v58 }
 0x119   :  { %v5868_v56 = vmax.f32 %v378_v7, 0.0  ;;  %1523 = vmatpush1.msra.mxu1 %v1436_v61  ;;  %2320 = vmatpush1.msra.mxu0 %v5472_v4 }
 0x11a   :  { %v382_v1 = vpop.f32.mrf.mxu0  ;;  %1524 = vmatprep.subr.mxu1 %v1435_v27  ;;  %2321 = vmatprep.subr.mxu0 %v5476_v9  ;;  %v1432_v9 = vld [vmem:[#allocation3 + $0x400] sm:$0xff]  ;;  %v1495_v27 = vld [vmem:[#allocation3 + $0x5f8] sm:$0xff] }
 0x11b   :  { %904 = vmatprep.mubr.f32.mxu1 %v5868_v56  ;;  %1274 = vmatprep.mubr.f32.mxu0 %v5868_v56  ;;  %v5881_v4 = vmax.f32 %v382_v1, 0.0 }
 0x11c   :  { %v384_v6 = vpop.f32.mrf.mxu0  ;;  %905 = vmatmul.mubr.f32.gmra.mxu1 %v5871_v63  ;;  %1275 = vmatmul.mubr.f32.gmra.mxu0 %v5871_v63 }
 0x11d   :  { %v5878_v61 = vmax.f32 %v384_v6, 0.0  ;;  %1525 = vmatpush1.msra.mxu1 %v1434_v2  ;;  %2322 = vmatpush1.msra.mxu0 %v5480_v13 }
 0x11e   :  { %v388_v20 = vpop.f32.mrf.mxu0  ;;  %1526 = vmatprep.subr.mxu1 %v1433_v52  ;;  %2323 = vmatprep.subr.mxu0 %v5487_v18  ;;  %v1494_v18 = vld [vmem:[#allocation3 + $0x5f0] sm:$0xff]  ;;  %v1493_v52 = vld [vmem:[#allocation3 + $0x5e8] sm:$0xff] }
 0x11f   :  { %910 = vmatprep.mubr.f32.mxu1 %v5878_v61  ;;  %1280 = vmatprep.mubr.f32.mxu0 %v5878_v61  ;;  %v5891_v13 = vmax.f32 %v388_v20, 0.0 }
 0x120   :  { %v390_v7 = vpop.f32.mrf.mxu0  ;;  %911 = vmatmul.mubr.f32.gmra.mxu1 %v5881_v4  ;;  %1281 = vmatmul.mubr.f32.gmra.mxu0 %v5881_v4 }
 0x121   :  { %v5888_v2 = vmax.f32 %v390_v7, 0.0  ;;  %1527 = vmatpush1.msra.mxu1 %v1432_v9  ;;  %2324 = vmatpush1.msra.mxu0 %v5490_v22 }
 0x122   :  { %v394_v1 = vpop.f32.mrf.mxu0  ;;  %1528 = vmatprep.subr.mxu1 %v1495_v27  ;;  %2325 = vmatprep.subr.mxu0 %v5493_v26  ;;  %v1492_v26 = vld [vmem:[#allocation3 + $0x5e0] sm:$0xff]  ;;  %v1491_v27 = vld [vmem:[#allocation3 + $0x5d8] sm:$0xff] }
 0x123   :  { %916 = vmatprep.mubr.f32.mxu1 %v5888_v2  ;;  %1286 = vmatprep.mubr.f32.mxu0 %v5888_v2  ;;  %v5901_v22 = vmax.f32 %v394_v1, 0.0 }
 0x124   :  { %v396_v6 = vpop.f32.mrf.mxu0  ;;  %917 = vmatmul.mubr.f32.gmra.mxu1 %v5891_v13  ;;  %1287 = vmatmul.mubr.f32.gmra.mxu0 %v5891_v13 }
 0x125   :  { %v5898_v9 = vmax.f32 %v396_v6, 0.0  ;;  %1529 = vmatpush2.msra.mxu1 %v1494_v18  ;;  %2326 = vmatpush2.msra.mxu0 %v5500_v29 }
 0x126   :  { %v400_v20 = vpop.f32.mrf.mxu0  ;;  %1530 = vmatprep.subr.mxu1 %v1493_v52  ;;  %2327 = vmatprep.subr.mxu0 %v5504_v34  ;;  %v1490_v34 = vld [vmem:[#allocation3 + $0x5d0] sm:$0xff]  ;;  %v1489_v52 = vld [vmem:[#allocation3 + $0x5c8] sm:$0xff] }
 0x127   :  { %922 = vmatprep.mubr.f32.mxu1 %v5898_v9  ;;  %1292 = vmatprep.mubr.f32.mxu0 %v5898_v9  ;;  %v5911_v29 = vmax.f32 %v400_v20, 0.0 }
 0x128   :  { %v402_v7 = vpop.f32.mrf.mxu0  ;;  %923 = vmatmul.mubr.f32.gmra.mxu1 %v5901_v22  ;;  %1293 = vmatmul.mubr.f32.gmra.mxu0 %v5901_v22 }
 0x129   :  { %v5908_v18 = vmax.f32 %v402_v7, 0.0  ;;  %1531 = vmatpush2.msra.mxu1 %v1492_v26  ;;  %2328 = vmatpush2.msra.mxu0 %v5508_v38 }
 0x12a   :  { %v406_v1 = vpop.f32.mrf.mxu0  ;;  %1532 = vmatprep.subr.mxu1 %v1491_v27  ;;  %2329 = vmatprep.subr.mxu0 %v5515_v43  ;;  %v1488_v43 = vld [vmem:[#allocation3 + $0x5c0] sm:$0xff]  ;;  %v1487_v27 = vld [vmem:[#allocation3 + $0x5b8] sm:$0xff] }
 0x12b   :  { %928 = vmatprep.mubr.f32.mxu1 %v5908_v18  ;;  %1298 = vmatprep.mubr.f32.mxu0 %v5908_v18  ;;  %v5921_v38 = vmax.f32 %v406_v1, 0.0 }
 0x12c   :  { %v408_v6 = vpop.f32.mrf.mxu0  ;;  %929 = vmatmul.mubr.f32.gmra.mxu1 %v5911_v29  ;;  %1299 = vmatmul.mubr.f32.gmra.mxu0 %v5911_v29 }
 0x12d   :  { %v5918_v26 = vmax.f32 %v408_v6, 0.0  ;;  %1533 = vmatpush2.msra.mxu1 %v1490_v34  ;;  %2330 = vmatpush2.msra.mxu0 %v5518_v46 }
 0x12e   :  { %v412_v20 = vpop.f32.mrf.mxu0  ;;  %1534 = vmatprep.subr.mxu1 %v1489_v52  ;;  %2331 = vmatprep.subr.mxu0 %v5521_v50  ;;  %v1486_v50 = vld [vmem:[#allocation3 + $0x5b0] sm:$0xff]  ;;  %v1485_v52 = vld [vmem:[#allocation3 + $0x5a8] sm:$0xff] }
 0x12f   :  { %934 = vmatprep.mubr.f32.mxu1 %v5918_v26  ;;  %1304 = vmatprep.mubr.f32.mxu0 %v5918_v26  ;;  %v5931_v46 = vmax.f32 %v412_v20, 0.0 }
 0x130   :  { %v414_v7 = vpop.f32.mrf.mxu0  ;;  %935 = vmatmul.mubr.f32.gmra.mxu1 %v5921_v38  ;;  %1305 = vmatmul.mubr.f32.gmra.mxu0 %v5921_v38 }
 0x131   :  { %v5928_v34 = vmax.f32 %v414_v7, 0.0  ;;  %1535 = vmatpush2.msra.mxu1 %v1488_v43  ;;  %2332 = vmatpush2.msra.mxu0 %v5528_v54 }
 0x132   :  { %v418_v1 = vpop.f32.mrf.mxu0  ;;  %1536 = vmatprep.subr.mxu1 %v1487_v27  ;;  %2333 = vmatprep.subr.mxu0 %v5532_v59  ;;  %v1484_v59 = vld [vmem:[#allocation3 + $0x5a0] sm:$0xff]  ;;  %v1483_v27 = vld [vmem:[#allocation3 + $0x598] sm:$0xff] }
 0x133   :  { %940 = vmatprep.mubr.f32.mxu1 %v5928_v34  ;;  %1310 = vmatprep.mubr.f32.mxu0 %v5928_v34  ;;  %v5941_v54 = vmax.f32 %v418_v1, 0.0 }
 0x134   :  { %v420_v6 = vpop.f32.mrf.mxu0  ;;  %941 = vmatmul.mubr.f32.gmra.mxu1 %v5931_v46  ;;  %1311 = vmatmul.mubr.f32.gmra.mxu0 %v5931_v46 }
 0x135   :  { %v5938_v43 = vmax.f32 %v420_v6, 0.0  ;;  %1537 = vmatpush2.msra.mxu1 %v1486_v50  ;;  %2334 = vmatpush2.msra.mxu0 %v5536_v62 }
 0x136   :  { %v424_v20 = vpop.f32.mrf.mxu0  ;;  %1538 = vmatprep.subr.mxu1 %v1485_v52  ;;  %2335 = vmatprep.subr.mxu0 %v5543_v5  ;;  %v1482_v5 = vld [vmem:[#allocation3 + $0x590] sm:$0xff]  ;;  %v1481_v52 = vld [vmem:[#allocation3 + $0x588] sm:$0xff] }
 0x137   :  { %946 = vmatprep.mubr.f32.mxu1 %v5938_v43  ;;  %1316 = vmatprep.mubr.f32.mxu0 %v5938_v43  ;;  %v5951_v62 = vmax.f32 %v424_v20, 0.0 }
 0x138   :  { %v426_v7 = vpop.f32.mrf.mxu0  ;;  %947 = vmatmul.mubr.f32.gmra.mxu1 %v5941_v54  ;;  %1317 = vmatmul.mubr.f32.gmra.mxu0 %v5941_v54 }
 0x139   :  { %v5948_v50 = vmax.f32 %v426_v7, 0.0  ;;  %1539 = vmatpush2.msra.mxu1 %v1484_v59  ;;  %2336 = vmatpush2.msra.mxu0 %v5546_v11 }
 0x13a   :  { %v430_v1 = vpop.f32.mrf.mxu0  ;;  %1540 = vmatprep.subr.mxu1 %v1483_v27  ;;  %2337 = vmatprep.subr.mxu0 %v5549_v17  ;;  %v1480_v17 = vld [vmem:[#allocation3 + $0x580] sm:$0xff]  ;;  %v1479_v27 = vld [vmem:[#allocation3 + $0x578] sm:$0xff] }
 0x13b   :  { %952 = vmatprep.mubr.f32.mxu1 %v5948_v50  ;;  %1322 = vmatprep.mubr.f32.mxu0 %v5948_v50  ;;  %v5961_v11 = vmax.f32 %v430_v1, 0.0 }
 0x13c   :  { %v432_v6 = vpop.f32.mrf.mxu0  ;;  %953 = vmatmul.mubr.f32.gmra.mxu1 %v5951_v62  ;;  %1323 = vmatmul.mubr.f32.gmra.mxu0 %v5951_v62 }
 0x13d   :  { %v5958_v59 = vmax.f32 %v432_v6, 0.0  ;;  %1541 = vmatpush2.msra.mxu1 %v1482_v5  ;;  %2338 = vmatpush2.msra.mxu0 %v5556_v24 }
 0x13e   :  { %v436_v20 = vpop.f32.mrf.mxu0  ;;  %1542 = vmatprep.subr.mxu1 %v1481_v52  ;;  %2339 = vmatprep.subr.mxu0 %v5560_v32  ;;  %v1478_v32 = vld [vmem:[#allocation3 + $0x570] sm:$0xff]  ;;  %v1477_v52 = vld [vmem:[#allocation3 + $0x568] sm:$0xff] }
 0x13f   :  { %958 = vmatprep.mubr.f32.mxu1 %v5958_v59  ;;  %1328 = vmatprep.mubr.f32.mxu0 %v5958_v59  ;;  %v5971_v24 = vmax.f32 %v436_v20, 0.0 }
 0x140   :  { %v438_v7 = vpop.f32.mrf.mxu0  ;;  %959 = vmatmul.mubr.f32.gmra.mxu1 %v5961_v11  ;;  %1329 = vmatmul.mubr.f32.gmra.mxu0 %v5961_v11 }
 0x141   :  { %v5968_v5 = vmax.f32 %v438_v7, 0.0  ;;  %1543 = vmatpush2.msra.mxu1 %v1480_v17  ;;  %2340 = vmatpush2.msra.mxu0 %v5564_v40  ;;  %8138 = vst [vmem:[#allocation21_spill] sm:$0xff] %v5971_v24 }
 0x142   :  { %v442_v1 = vpop.f32.mrf.mxu0  ;;  %1544 = vmatprep.subr.mxu1 %v1479_v27  ;;  %2341 = vmatprep.subr.mxu0 %v5571_v48  ;;  %v1476_v48 = vld [vmem:[#allocation3 + $0x560] sm:$0xff]  ;;  %v1475_v27 = vld [vmem:[#allocation3 + $0x558] sm:$0xff] }
 0x143   :  { %964 = vmatprep.mubr.f32.mxu1 %v5968_v5  ;;  %1334 = vmatprep.mubr.f32.mxu0 %v5968_v5  ;;  %v5981_v40 = vmax.f32 %v442_v1, 0.0 }
 0x144   :  { %v444_v6 = vpop.f32.mrf.mxu0  ;;  %965 = vmatmul.mubr.f32.gmra.mxu1 %v5971_v24  ;;  %1335 = vmatmul.mubr.f32.gmra.mxu0 %v5971_v24 }
 0x145   :  { %v5978_v17 = vmax.f32 %v444_v6, 0.0  ;;  %1545 = vmatpush2.msra.mxu1 %v1478_v32  ;;  %2342 = vmatpush2.msra.mxu0 %v5574_v55  ;;  %8140 = vst [vmem:[#allocation23_spill] sm:$0xff] %v5981_v40  ;;  %v8142_v55 = vld [vmem:[#allocation9_spill] sm:$0xff]  ;;  %v8144_v6 = vld [vmem:[#allocation10_spill] sm:$0xff] }
 0x146   :  { %v448_v20 = vpop.f32.mrf.mxu0  ;;  %1546 = vmatprep.subr.mxu1 %v1477_v52  ;;  %2343 = vmatprep.subr.mxu0 %v5577_v60  ;;  %v1474_v60 = vld [vmem:[#allocation3 + $0x550] sm:$0xff] }
 0x147   :  { %8139 = vst [vmem:[#allocation22_spill] sm:$0xff] %v5978_v17  ;;  %970 = vmatprep.mubr.f32.mxu1 %v5978_v17  ;;  %1340 = vmatprep.mubr.f32.mxu0 %v5978_v17  ;;  %v5991_v1 = vmax.f32 %v448_v20, 0.0  ;;  %v1473_v17 = vld [vmem:[#allocation3 + $0x548] sm:$0xff]  ;;  %v8146_v20 = vld [vmem:[#allocation11_spill] sm:$0xff] }
 0x148   :  { %v450_v7 = vpop.f32.mrf.mxu0  ;;  %971 = vmatmul.mubr.f32.gmra.mxu1 %v5981_v40  ;;  %1341 = vmatmul.mubr.f32.gmra.mxu0 %v5981_v40 }
 0x149   :  { %v5988_v32 = vmax.f32 %v450_v7, 0.0  ;;  %1547 = vmatpush2.msra.mxu1 %v1476_v48  ;;  %2344 = vmatpush2.msra.mxu0 %v8142_v55  ;;  %8143 = vst [vmem:[#allocation9_spill] sm:$0xff] %v5991_v1  ;;  %v1472_v55 = vld [vmem:[#allocation3 + $0x540] sm:$0xff] }
 0x14a   :  { %v454_v52 = vpop.f32.mrf.mxu0  ;;  %1548 = vmatprep.subr.mxu1 %v1475_v27  ;;  %2345 = vmatprep.subr.mxu0 %v8144_v6  ;;  %v8147_v6 = vld [vmem:[#allocation12_spill] sm:$0xff] }
 0x14b   :  { %8141 = vst [vmem:[#allocation24_spill] sm:$0xff] %v5988_v32  ;;  %976 = vmatprep.mubr.f32.mxu1 %v5988_v32  ;;  %1346 = vmatprep.mubr.f32.mxu0 %v5988_v32  ;;  %v6001_v7 = vmax.f32 %v454_v52, 0.0  ;;  %v1471_v32 = vld [vmem:[#allocation3 + $0x538] sm:$0xff]  ;;  %v8149_v52 = vld [vmem:[#allocation13_spill] sm:$0xff] }
 0x14c   :  { %v456_v24 = vpop.f32.mrf.mxu0  ;;  %977 = vmatmul.mubr.f32.gmra.mxu1 %v5991_v1  ;;  %1347 = vmatmul.mubr.f32.gmra.mxu0 %v5991_v1 }
 0x14d   :  { %v5998_v48 = vmax.f32 %v456_v24, 0.0  ;;  %1549 = vmatpush2.msra.mxu1 %v1474_v60  ;;  %2346 = vmatpush2.msra.mxu0 %v8146_v20  ;;  %v1470_v20 = vld [vmem:[#allocation3 + $0x530] sm:$0xff] }
 0x14e   :  { %v460_v27 = vpop.f32.mrf.mxu0  ;;  %1550 = vmatprep.subr.mxu1 %v1473_v17  ;;  %2347 = vmatprep.subr.mxu0 %v8147_v6  ;;  %v8150_v6 = vld [vmem:[#allocation14_spill] sm:$0xff] }
 0x14f   :  { %8145 = vst [vmem:[#allocation10_spill] sm:$0xff] %v5998_v48  ;;  %982 = vmatprep.mubr.f32.mxu1 %v5998_v48  ;;  %1352 = vmatprep.mubr.f32.mxu0 %v5998_v48  ;;  %v6011_v60 = vmax.f32 %v460_v27, 0.0  ;;  %v1469_v48 = vld [vmem:[#allocation3 + $0x528] sm:$0xff]  ;;  %v8152_v27 = vld [vmem:[#allocation15_spill] sm:$0xff] }
 0x150   :  { %v462_v40 = vpop.f32.mrf.mxu0  ;;  %983 = vmatmul.mubr.f32.gmra.mxu1 %v6001_v7  ;;  %1353 = vmatmul.mubr.f32.gmra.mxu0 %v6001_v7 }
 0x151   :  { %v6008_v24 = vmax.f32 %v462_v40, 0.0  ;;  %1551 = vmatpush2.msra.mxu1 %v1472_v55  ;;  %2348 = vmatpush2.msra.mxu0 %v8149_v52  ;;  %v1468_v52 = vld [vmem:[#allocation3 + $0x520] sm:$0xff] }
 0x152   :  { %v466_v17 = vpop.f32.mrf.mxu0  ;;  %1552 = vmatprep.subr.mxu1 %v1471_v32  ;;  %2349 = vmatprep.subr.mxu0 %v8150_v6  ;;  %v1467_v6 = vld [vmem:[#allocation3 + $0x518] sm:$0xff] }
 0x153   :  { %8148 = vst [vmem:[#allocation11_spill] sm:$0xff] %v6008_v24  ;;  %988 = vmatprep.mubr.f32.mxu1 %v6008_v24  ;;  %1358 = vmatprep.mubr.f32.mxu0 %v6008_v24  ;;  %v6021_v55 = vmax.f32 %v466_v17, 0.0  ;;  %v8153_v17 = vld [vmem:[#allocation16_spill] sm:$0xff] }
 0x154   :  { %v468_v1 = vpop.f32.mrf.mxu0  ;;  %989 = vmatmul.mubr.f32.gmra.mxu1 %v6011_v60  ;;  %1359 = vmatmul.mubr.f32.gmra.mxu0 %v6011_v60 }
 0x155   :  { %v6018_v40 = vmax.f32 %v468_v1, 0.0  ;;  %1553 = vmatpush2.msra.mxu1 %v1470_v20  ;;  %2350 = vmatpush2.msra.mxu0 %v8152_v27  ;;  %v1465_v27 = vld [vmem:[#allocation3 + $0x508] sm:$0xff] }
 0x156   :  { %v472_v32 = vpop.f32.mrf.mxu0  ;;  %1554 = vmatprep.subr.mxu1 %v1469_v48  ;;  %2351 = vmatprep.subr.mxu0 %v5616_v41  ;;  %v1466_v41 = vld [vmem:[#allocation3 + $0x510] sm:$0xff] }
 0x157   :  { %8151 = vst [vmem:[#allocation12_spill] sm:$0xff] %v6018_v40  ;;  %994 = vmatprep.mubr.f32.mxu1 %v6018_v40  ;;  %1364 = vmatprep.mubr.f32.mxu0 %v6018_v40  ;;  %v6031_v20 = vmax.f32 %v472_v32, 0.0 }
 0x158   :  { %v474_v24 = vpop.f32.mrf.mxu0  ;;  %995 = vmatmul.mubr.f32.gmra.mxu1 %v6021_v55  ;;  %1365 = vmatmul.mubr.f32.gmra.mxu0 %v6021_v55 }
 0x159   :  { %v6028_v1 = vmax.f32 %v474_v24, 0.0  ;;  %1555 = vmatpush2.msra.mxu1 %v1468_v52  ;;  %2352 = vmatpush2.msra.mxu0 %v8153_v17 }
 0x15a   :  { %v478_v48 = vpop.f32.mrf.mxu0  ;;  %1556 = vmatprep.subr.mxu1 %v1467_v6  ;;  %2353 = vmatprep.subr.mxu0 %v5627_v0  ;;  %v1464_v0 = vld [vmem:[#allocation3 + $0x500] sm:$0xff] }
 0x15b   :  { %1000 = vmatprep.mubr.f32.mxu1 %v6028_v1  ;;  %1370 = vmatprep.mubr.f32.mxu0 %v6028_v1  ;;  %v6041_v32 = vmax.f32 %v478_v48, 0.0  ;;  %v8155_v6 = vld [vmem:[#allocation17_spill] sm:$0xff] }
 0x15c   :  { %v480_v40 = vpop.f32.mrf.mxu0  ;;  %1001 = vmatmul.mubr.f32.gmra.mxu1 %v6031_v20  ;;  %1371 = vmatmul.mubr.f32.gmra.mxu0 %v6031_v20 }
 0x15d   :  { %v6038_v24 = vmax.f32 %v480_v40, 0.0  ;;  %1557 = vmatpush2.msra.mxu1 %v1466_v41  ;;  %2354 = vmatpush2.msra.mxu0 %v5630_v15  ;;  %v8157_v15 = vld [vmem:[#allocation18_spill] sm:$0xff] }
 0x15e   :  { %v484_v52 = vpop.f32.mrf.mxu0  ;;  %1558 = vmatprep.subr.mxu1 %v1465_v27  ;;  %2355 = vmatprep.subr.mxu0 %v8155_v6  ;;  %v5088_v27 = vld [vmem:[#allocation3 + $0x2f8] sm:$0xff]  ;;  %v8159_v6 = vld [vmem:[#allocation19_spill] sm:$0xff] }
 0x15f   :  { %8154 = vst [vmem:[#allocation13_spill] sm:$0xff] %v6038_v24  ;;  %1006 = vmatprep.mubr.f32.mxu1 %v6038_v24  ;;  %1376 = vmatprep.mubr.f32.mxu0 %v6038_v24  ;;  %v6051_v48 = vmax.f32 %v484_v52, 0.0 }
 0x160   :  { %v486_v17 = vpop.f32.mrf.mxu0  ;;  %1007 = vmatmul.mubr.f32.gmra.mxu1 %v6041_v32  ;;  %1377 = vmatmul.mubr.f32.gmra.mxu0 %v6041_v32 }
 0x161   :  { %v6048_v40 = vmax.f32 %v486_v17, 0.0  ;;  %1559 = vmatpush2.msra.mxu1 %v1464_v0  ;;  %2356 = vmatpush2.msra.mxu0 %v8157_v15  ;;  %8158 = vst [vmem:[#allocation15_spill] sm:$0xff] %v6051_v48 }
 0x162   :  { %v490_v41 = vpop.f32.mrf.mxu0  ;;  %2598 = vmatprep.subr.mxu1 %v5088_v27  ;;  %2903 = vmatprep.subr.mxu0 %v8159_v6 }
 0x163   :  { %8156 = vst [vmem:[#allocation14_spill] sm:$0xff] %v6048_v40  ;;  %1012 = vmatprep.mubr.f32.mxu1 %v6048_v40  ;;  %1382 = vmatprep.mubr.f32.mxu0 %v6048_v40  ;;  %v6060_v0 = vmax.f32 %v490_v41, 0.0 }
 0x164   :  { %v492_v24 = vpop.f32.mrf.mxu0  ;;  %1013 = vmatmul.mubr.f32.gmra.mxu1 %v6051_v48  ;;  %1383 = vmatmul.mubr.f32.gmra.mxu0 %v6051_v48 }
 0x165   :  { %v6058_v17 = vmax.f32 %v492_v24, 0.0  ;;  %8161 = vst [vmem:[#allocation17_spill] sm:$0xff] %v6060_v0 }
 0x166   :  { %v496_v52 = vpop.f32.mrf.mxu0 }
 0x167   :  { %8160 = vst [vmem:[#allocation16_spill] sm:$0xff] %v6058_v17  ;;  %1018 = vmatprep.mubr.f32.mxu1 %v6058_v17  ;;  %1388 = vmatprep.mubr.f32.mxu0 %v6058_v17  ;;  %v6068_v6 = vmax.f32 %v496_v52, 0.0 }
 0x168   :  { %v498_v15 = vpop.f32.mrf.mxu0  ;;  %1019 = vmatmul.mubr.f32.gmra.mxu1 %v6060_v0  ;;  %1389 = vmatmul.mubr.f32.gmra.mxu0 %v6060_v0 }
 0x169   :  { %v6066_v27 = vmax.f32 %v498_v15, 0.0  ;;  %8163 = vst [vmem:[#allocation19_spill] sm:$0xff] %v6068_v6 }
 0x16a   :  { %v502_v40 = vpop.f32.mrf.mxu0 }
 0x16b   :  { %8162 = vst [vmem:[#allocation18_spill] sm:$0xff] %v6066_v27  ;;  %1024 = vmatprep.mubr.f32.mxu1 %v6066_v27  ;;  %1394 = vmatprep.mubr.f32.mxu0 %v6066_v27  ;;  %v6076_v17 = vmax.f32 %v502_v40, 0.0 }
 0x16c   :  { %v504_v24 = vpop.f32.mrf.mxu0  ;;  %1025 = vmatmul.mubr.f32.gmra.mxu1 %v6068_v6  ;;  %1395 = vmatmul.mubr.f32.gmra.mxu0 %v6068_v6 }
 0x16d   :  { %v6074_v41 = vmax.f32 %v504_v24, 0.0  ;;  %8165 = vst [vmem:[#allocation26_spill] sm:$0xff] %v6076_v17 }
 0x16e   :  { %v508_v48 = vpop.f32.mrf.mxu0 }
 0x16f   :  { %8164 = vst [vmem:[#allocation25_spill] sm:$0xff] %v6074_v41  ;;  %1030 = vmatprep.mubr.f32.mxu1 %v6074_v41  ;;  %1400 = vmatprep.mubr.f32.mxu0 %v6074_v41  ;;  %v6084_v27 = vmax.f32 %v508_v48, 0.0 }
 0x170   :  { %v510_v52 = vpop.f32.mrf.mxu0  ;;  %1031 = vmatmul.mubr.f32.gmra.mxu1 %v6076_v17  ;;  %1401 = vmatmul.mubr.f32.gmra.mxu0 %v6076_v17 }
 0x171   :  { %v6082_v15 = vmax.f32 %v510_v52, 0.0 }
 0x172   :  { %v514_v0 = vpop.f32.mrf.mxu0 }
 0x173   :  { %8166 = vst [vmem:[#allocation27_spill] sm:$0xff] %v6082_v15  ;;  %1036 = vmatprep.mubr.f32.mxu1 %v6082_v15  ;;  %1406 = vmatprep.mubr.f32.mxu0 %v6082_v15  ;;  %v6092_v41 = vmax.f32 %v514_v0, 0.0 }
 0x174   :  { %v516_v40 = vpop.f32.mrf.mxu0  ;;  %1037 = vmatmul.mubr.f32.gmra.mxu1 %v6084_v27  ;;  %1407 = vmatmul.mubr.f32.gmra.mxu0 %v6084_v27 }
 0x175   :  { %v6090_v24 = vmax.f32 %v516_v40, 0.0 }
 0x176   :  { %v520_v6 = vpop.f32.mrf.mxu0 }
 0x177   :  { %8167 = vst [vmem:[#allocation28_spill] sm:$0xff] %v6090_v24  ;;  %1042 = vmatprep.mubr.f32.mxu1 %v6090_v24  ;;  %1412 = vmatprep.mubr.f32.mxu0 %v6090_v24  ;;  %v6100_v15 = vmax.f32 %v520_v6, 0.0  ;;  %v8171_v6 = vld [vmem:[#allocation20_spill] sm:$0xff] }
 0x178   :  { %v522_v48 = vpop.f32.mrf.mxu0  ;;  %1043 = vmatmul.mubr.f32.gmra.mxu1 %v6092_v41  ;;  %1413 = vmatmul.mubr.f32.gmra.mxu0 %v6092_v41 }
 0x179   :  { %v6098_v52 = vmax.f32 %v522_v48, 0.0  ;;  %8168 = vst [vmem:[#allocation29_spill] sm:$0xff] %v6100_v15  ;;  %v5089_v48 = vld [vmem:[#allocation3 + $0x2f0] sm:$0xff] }
 0x17a   :  { %v526_v17 = vpop.f32.mrf.mxu0 }
 0x17b   :  { %1048 = vmatprep.mubr.f32.mxu1 %v6098_v52  ;;  %1418 = vmatprep.mubr.f32.mxu0 %v6098_v52  ;;  %v6108_v24 = vmax.f32 %v526_v17, 0.0  ;;  %v5091_v17 = vld [vmem:[#allocation3 + $0x2e0] sm:$0xff] }
 0x17c   :  { %v528_v0 = vpop.f32.mrf.mxu0  ;;  %1049 = vmatmul.mubr.f32.gmra.mxu1 %v6100_v15  ;;  %1419 = vmatmul.mubr.f32.gmra.mxu0 %v6100_v15  ;;  %v5092_v15 = vld [vmem:[#allocation3 + $0x2d8] sm:$0xff] }
 0x17d   :  { %v6106_v40 = vmax.f32 %v528_v0, 0.0  ;;  %8170 = vst [vmem:[#allocation31_spill] sm:$0xff] %v6108_v24  ;;  %v5090_v0 = vld [vmem:[#allocation3 + $0x2e8] sm:$0xff] }
 0x17f   :  { %8169 = vst [vmem:[#allocation30_spill] sm:$0xff] %v6106_v40  ;;  %1054 = vmatprep.mubr.f32.mxu1 %v6106_v40  ;;  %1424 = vmatprep.mubr.f32.mxu0 %v6106_v40  ;;  %v5093_v40 = vld [vmem:[#allocation3 + $0x2d0] sm:$0xff] }
 0x180   :  { %1055 = vmatmul.mubr.f32.gmra.mxu1 %v6108_v24  ;;  %1425 = vmatmul.mubr.f32.gmra.mxu0 %v6108_v24  ;;  %v5094_v24 = vld [vmem:[#allocation3 + $0x2c8] sm:$0xff] }
 0x181   :  { %1560 = vmatprep.mubr.f32.mxu1 %v8171_v6  ;;  %v5095_v6 = vld [vmem:[#allocation3 + $0x2c0] sm:$0xff] }
 0x184   :  { %1561 = vmatmul.mubr.f32.vlgmr.msra.gmra.mxu1 %v5732_v36  ;;  %v5097_v36 = vld [vmem:[#allocation3 + $0x2b0] sm:$0xff] }
 0x185   :  { %1566 = vmatprep.mubr.f32.mxu1 %v5738_v31  ;;  %2599 = vmatpush1.msra.mxu1 %v5089_v48  ;;  %v5096_v31 = vld [vmem:[#allocation3 + $0x2b8] sm:$0xff]  ;;  %v5098_v48 = vld [vmem:[#allocation3 + $0x2a8] sm:$0xff] }
 0x186   :  { %2600 = vmatprep.subr.mxu1 %v5090_v0  ;;  %v5106_v0 = vld [vmem:[#allocation3 + $0x268] sm:$0xff] }
 0x187   :  { %2601 = vmatpush1.msra.mxu1 %v5091_v17  ;;  %v5109_v17 = vld [vmem:[#allocation3 + $0x250] sm:$0xff] }
 0x188   :  { %1567 = vmatmul.mubr.f32.gmra.mxu1 %v5741_v57  ;;  %2602 = vmatprep.subr.mxu1 %v5092_v15  ;;  %v5099_v57 = vld [vmem:[#allocation3 + $0x2a0] sm:$0xff]  ;;  %v5101_v15 = vld [vmem:[#allocation3 + $0x290] sm:$0xff] }
 0x189   :  { %1572 = vmatprep.mubr.f32.mxu1 %v5748_v3  ;;  %2603 = vmatpush1.msra.mxu1 %v5093_v40  ;;  %v5100_v3 = vld [vmem:[#allocation3 + $0x298] sm:$0xff]  ;;  %v5105_v40 = vld [vmem:[#allocation3 + $0x270] sm:$0xff] }
 0x18a   :  { %2604 = vmatprep.subr.mxu1 %v5094_v24  ;;  %v5102_v24 = vld [vmem:[#allocation3 + $0x288] sm:$0xff] }
 0x18b   :  { %2605 = vmatpush1.msra.mxu1 %v5095_v6  ;;  %v5110_v6 = vld [vmem:[#allocation3 + $0x248] sm:$0xff] }
 0x18c   :  { %1573 = vmatmul.mubr.f32.gmra.mxu1 %v5751_v8  ;;  %2606 = vmatprep.subr.mxu1 %v5096_v31  ;;  %v5103_v8 = vld [vmem:[#allocation3 + $0x280] sm:$0xff]  ;;  %v5113_v31 = vld [vmem:[#allocation3 + $0x230] sm:$0xff] }
 0x18d   :  { %1578 = vmatprep.mubr.f32.mxu1 %v5758_v45  ;;  %2607 = vmatpush1.msra.mxu1 %v5097_v36  ;;  %v5104_v45 = vld [vmem:[#allocation3 + $0x278] sm:$0xff]  ;;  %v5114_v36 = vld [vmem:[#allocation3 + $0x228] sm:$0xff] }
 0x18e   :  { %2608 = vmatprep.subr.mxu1 %v5098_v48  ;;  %v5117_v48 = vld [vmem:[#allocation3 + $0x210] sm:$0xff] }
 0x18f   :  { %2609 = vmatpush1.msra.mxu1 %v5099_v57  ;;  %v5118_v57 = vld [vmem:[#allocation3 + $0x208] sm:$0xff] }
 0x190   :  { %1579 = vmatmul.mubr.f32.gmra.mxu1 %v5761_v12  ;;  %2610 = vmatprep.subr.mxu1 %v5100_v3  ;;  %v5107_v12 = vld [vmem:[#allocation3 + $0x260] sm:$0xff] }
 0x191   :  { %1584 = vmatprep.mubr.f32.mxu1 %v5768_v10  ;;  %2611 = vmatpush1.msra.mxu1 %v5101_v15  ;;  %v5108_v10 = vld [vmem:[#allocation3 + $0x258] sm:$0xff] }
 0x192   :  { %2612 = vmatprep.subr.mxu1 %v5102_v24  ;;  %v5120_v15 = vld [vmem:[#allocation3 + $0x3f8] sm:$0xff] }
 0x193   :  { %2613 = vmatpush1.msra.mxu1 %v5103_v8  ;;  %v5122_v8 = vld [vmem:[#allocation3 + $0x3e8] sm:$0xff] }
 0x194   :  { %1585 = vmatmul.mubr.f32.gmra.mxu1 %v5771_v16  ;;  %2614 = vmatprep.subr.mxu1 %v5104_v45  ;;  %v5111_v16 = vld [vmem:[#allocation3 + $0x240] sm:$0xff] }
 0x195   :  { %1590 = vmatprep.mubr.f32.mxu1 %v5778_v14  ;;  %2615 = vmatpush1.msra.mxu1 %v5105_v40  ;;  %v5112_v14 = vld [vmem:[#allocation3 + $0x238] sm:$0xff]  ;;  %v5123_v45 = vld [vmem:[#allocation3 + $0x3e0] sm:$0xff] }
 0x196   :  { %2616 = vmatprep.subr.mxu1 %v5106_v0 }
 0x197   :  { %2617 = vmatpush1.msra.mxu1 %v5107_v12  ;;  %v5124_v12 = vld [vmem:[#allocation3 + $0x3d8] sm:$0xff] }
 0x198   :  { %1591 = vmatmul.mubr.f32.gmra.mxu1 %v5781_v21  ;;  %2618 = vmatprep.subr.mxu1 %v5108_v10  ;;  %v5115_v21 = vld [vmem:[#allocation3 + $0x220] sm:$0xff] }
 0x199   :  { %1596 = vmatprep.mubr.f32.mxu1 %v5788_v19  ;;  %2619 = vmatpush1.msra.mxu1 %v5109_v17  ;;  %v5116_v19 = vld [vmem:[#allocation3 + $0x218] sm:$0xff] }
 0x19a   :  { %2620 = vmatprep.subr.mxu1 %v5110_v6  ;;  %v5126_v6 = vld [vmem:[#allocation3 + $0x3c8] sm:$0xff] }
 0x19b   :  { %2621 = vmatpush1.msra.mxu1 %v5111_v16  ;;  %v5127_v16 = vld [vmem:[#allocation3 + $0x3c0] sm:$0xff] }
 0x19c   :  { %1597 = vmatmul.mubr.f32.gmra.mxu1 %v5791_v25  ;;  %2622 = vmatprep.subr.mxu1 %v5112_v14  ;;  %v5119_v25 = vld [vmem:[#allocation3 + $0x200] sm:$0xff] }
 0x19d   :  { %1602 = vmatprep.mubr.f32.mxu1 %v5798_v23  ;;  %2623 = vmatpush1.msra.mxu1 %v5113_v31 }
 0x19e   :  { %2624 = vmatprep.subr.mxu1 %v5114_v36 }
 0x19f   :  { %2625 = vmatpush1.msra.mxu1 %v5115_v21 }
 0x1a0   :  { %1603 = vmatmul.mubr.f32.gmra.mxu1 %v5801_v30  ;;  %2626 = vmatprep.subr.mxu1 %v5116_v19  ;;  %v5121_v30 = vld [vmem:[#allocation3 + $0x3f0] sm:$0xff] }
 0x1a1   :  { %1608 = vmatprep.mubr.f32.mxu1 %v5808_v28  ;;  %2627 = vmatpush1.msra.mxu1 %v5117_v48  ;;  %v5130_v48 = vld [vmem:[#allocation3 + $0x3a8] sm:$0xff] }
 0x1a2   :  { %2628 = vmatprep.subr.mxu1 %v5118_v57  ;;  %v5131_v57 = vld [vmem:[#allocation3 + $0x3a0] sm:$0xff] }
 0x1a3   :  { %2629 = vmatpush1.msra.mxu1 %v5119_v25 }
 0x1a4   :  { %v822_v3 = vpop.f32.mrf.mxu1  ;;  %v6131_v23 = vpop.f32.mrf.mxu0  ;;  %1609 = vmatmul.mubr.f32.gmra.mxu1 %v5811_v35  ;;  %2630 = vmatprep.subr.mxu1 %v5120_v15 }
 0x1a5   :  { %1614 = vmatprep.mubr.f32.mxu1 %v5818_v33  ;;  %2631 = vmatpush2.msra.mxu1 %v5121_v30  ;;  %v5125_v33 = vld [vmem:[#allocation3 + $0x3d0] sm:$0xff] }
 0x1a6   :  { %v6135_v24 = vpop.f32.mrf.mxu1  ;;  %v6137_v28 = vpop.f32.mrf.mxu0  ;;  %2632 = vmatprep.subr.mxu1 %v5122_v8 }
 0x1a7   :  { %2633 = vmatpush2.msra.mxu1 %v5123_v45  ;;  %v5134_v45 = vld [vmem:[#allocation3 + $0x388] sm:$0xff] }
 0x1a8   :  { %v828_v40 = vpop.f32.mrf.mxu1  ;;  %v1198_v0 = vpop.f32.mrf.mxu0  ;;  %1615 = vmatmul.mubr.f32.gmra.mxu1 %v5821_v39  ;;  %2634 = vmatprep.subr.mxu1 %v5124_v12  ;;  %v5128_v39 = vld [vmem:[#allocation3 + $0x3b8] sm:$0xff] }
 0x1a9   :  { %v6140_v35 = vadd.f32 %v1198_v0, %v822_v3  ;;  %1620 = vmatprep.mubr.f32.mxu1 %v5828_v37  ;;  %2635 = vmatpush2.msra.mxu1 %v5125_v33  ;;  %v5129_v37 = vld [vmem:[#allocation3 + $0x3b0] sm:$0xff] }
 0x1aa   :  { %v6143_v10 = vpop.f32.mrf.mxu1  ;;  %v6145_v17 = vpop.f32.mrf.mxu0  ;;  %2636 = vmatprep.subr.mxu1 %v5126_v6 }
 0x1ab   :  { %2637 = vmatpush2.msra.mxu1 %v5127_v16 }
 0x1ac   :  { %v834_v14 = vpop.f32.mrf.mxu1  ;;  %v1204_v31 = vpop.f32.mrf.mxu0  ;;  %1621 = vmatmul.mubr.f32.gmra.mxu1 %v5831_v44  ;;  %2638 = vmatprep.subr.mxu1 %v5128_v39  ;;  %v5132_v44 = vld [vmem:[#allocation3 + $0x398] sm:$0xff] }
 0x1ad   :  { %v6148_v36 = vadd.f32 %v1204_v31, %v828_v40  ;;  %1626 = vmatprep.mubr.f32.mxu1 %v5838_v42  ;;  %2639 = vmatpush2.msra.mxu1 %v5129_v37  ;;  %v5133_v42 = vld [vmem:[#allocation3 + $0x390] sm:$0xff]  ;;  %v5135_v40 = vld [vmem:[#allocation3 + $0x380] sm:$0xff] }
 0x1ae   :  { %v6151_v21 = vpop.f32.mrf.mxu1  ;;  %v6153_v19 = vpop.f32.mrf.mxu0  ;;  %2640 = vmatprep.subr.mxu1 %v5130_v48  ;;  %v5139_v31 = vld [vmem:[#allocation3 + $0x360] sm:$0xff] }
 0x1af   :  { %2641 = vmatpush2.msra.mxu1 %v5131_v57 }
 0x1b0   :  { %v840_v25 = vpop.f32.mrf.mxu1  ;;  %v1210_v3 = vpop.f32.mrf.mxu0  ;;  %1627 = vmatmul.mubr.f32.gmra.mxu1 %v5841_v49  ;;  %2642 = vmatprep.subr.mxu1 %v5132_v44  ;;  %v5136_v49 = vld [vmem:[#allocation3 + $0x378] sm:$0xff]  ;;  %v5143_v44 = vld [vmem:[#allocation3 + $0x340] sm:$0xff] }
 0x1b1   :  { %v6156_v15 = vadd.f32 %v1210_v3, %v834_v14  ;;  %1632 = vmatprep.mubr.f32.mxu1 %v5848_v47  ;;  %2643 = vmatpush2.msra.mxu1 %v5133_v42  ;;  %v5137_v47 = vld [vmem:[#allocation3 + $0x370] sm:$0xff]  ;;  %v5138_v14 = vld [vmem:[#allocation3 + $0x368] sm:$0xff] }
 0x1b2   :  { %v6159_v30 = vpop.f32.mrf.mxu1  ;;  %v6161_v8 = vpop.f32.mrf.mxu0  ;;  %2644 = vmatprep.subr.mxu1 %v5134_v45  ;;  %v5142_v3 = vld [vmem:[#allocation3 + $0x348] sm:$0xff] }
 0x1b3   :  { %2645 = vmatpush2.msra.mxu1 %v5135_v40 }
 0x1b4   :  { %v846_v0 = vpop.f32.mrf.mxu1  ;;  %v1216_v12 = vpop.f32.mrf.mxu0  ;;  %1633 = vmatmul.mubr.f32.gmra.mxu1 %v5851_v53  ;;  %2646 = vmatprep.subr.mxu1 %v5136_v49  ;;  %v5140_v53 = vld [vmem:[#allocation3 + $0x358] sm:$0xff]  ;;  %v5146_v49 = vld [vmem:[#allocation3 + $0x328] sm:$0xff] }
 0x1b5   :  { %v6164_v33 = vadd.f32 %v1216_v12, %v840_v25  ;;  %1638 = vmatprep.mubr.f32.mxu1 %v5858_v51  ;;  %2647 = vmatpush2.msra.mxu1 %v5137_v47  ;;  %v5141_v51 = vld [vmem:[#allocation3 + $0x350] sm:$0xff]  ;;  %v5147_v47 = vld [vmem:[#allocation3 + $0x320] sm:$0xff] }
 0x1b6   :  { %v6167_v6 = vpop.f32.mrf.mxu1  ;;  %v6169_v16 = vpop.f32.mrf.mxu0  ;;  %2648 = vmatprep.subr.mxu1 %v5138_v14 }
 0x1b7   :  { %2649 = vmatpush2.msra.mxu1 %v5139_v31 }
 0x1b8   :  { %v852_v39 = vpop.f32.mrf.mxu1  ;;  %v1222_v37 = vpop.f32.mrf.mxu0  ;;  %1639 = vmatmul.mubr.f32.gmra.mxu1 %v5861_v58  ;;  %2650 = vmatprep.subr.mxu1 %v5140_v53  ;;  %v5144_v58 = vld [vmem:[#allocation3 + $0x338] sm:$0xff] }
 0x1b9   :  { %v6172_v48 = vadd.f32 %v1222_v37, %v846_v0  ;;  %1644 = vmatprep.mubr.f32.mxu1 %v5868_v56  ;;  %2651 = vmatpush2.msra.mxu1 %v5141_v51  ;;  %v5145_v56 = vld [vmem:[#allocation3 + $0x330] sm:$0xff]  ;;  %v5150_v51 = vld [vmem:[#allocation3 + $0x308] sm:$0xff] }
 0x1ba   :  { %v6175_v57 = vpop.f32.mrf.mxu1  ;;  %v6177_v25 = vpop.f32.mrf.mxu0  ;;  %2652 = vmatprep.subr.mxu1 %v5142_v3  ;;  %v5151_v3 = vld [vmem:[#allocation3 + $0x300] sm:$0xff] }
 0x1bb   :  { %2653 = vmatpush2.msra.mxu1 %v5143_v44 }
 0x1bc   :  { %v858_v42 = vpop.f32.mrf.mxu1  ;;  %v1228_v45 = vpop.f32.mrf.mxu0  ;;  %1645 = vmatmul.mubr.f32.gmra.mxu1 %v5871_v63  ;;  %2654 = vmatprep.subr.mxu1 %v5144_v58  ;;  %v5148_v63 = vld [vmem:[#allocation3 + $0x318] sm:$0xff] }
 0x1bd   :  { %v6180_v40 = vadd.f32 %v1228_v45, %v852_v39  ;;  %1650 = vmatprep.mubr.f32.mxu1 %v5878_v61  ;;  %2655 = vmatpush2.msra.mxu1 %v5145_v56  ;;  %v5149_v61 = vld [vmem:[#allocation3 + $0x310] sm:$0xff] }
 0x1be   :  { %v6183_v0 = vpop.f32.mrf.mxu1  ;;  %v6185_v12 = vpop.f32.mrf.mxu0  ;;  %2656 = vmatprep.subr.mxu1 %v5146_v49 }
 0x1bf   :  { %2657 = vmatpush2.msra.mxu1 %v5147_v47 }
 0x1c0   :  { %v864_v14 = vpop.f32.mrf.mxu1  ;;  %v1234_v31 = vpop.f32.mrf.mxu0  ;;  %1651 = vmatmul.mubr.f32.gmra.mxu1 %v5881_v4  ;;  %2658 = vmatprep.subr.mxu1 %v5148_v63  ;;  %v8172_v4 = vmov 0.0  }
 0x1c1   :  { %v6188_v39 = vadd.f32 %v1234_v31, %v858_v42  ;;  %1656 = vmatprep.mubr.f32.mxu1 %v5888_v2  ;;  %2659 = vmatpush2.msra.mxu1 %v5149_v61 }
 0x1c2   :  { %v6191_v37 = vpop.f32.mrf.mxu1  ;;  %v6193_v53 = vpop.f32.mrf.mxu0  ;;  %2660 = vmatprep.subr.mxu1 %v5150_v51 }
 0x1c3   :  { %2661 = vmatpush2.msra.mxu1 %v5151_v3 }
 0x1c4   :  { %v870_v44 = vpop.f32.mrf.mxu1  ;;  %v1240_v45 = vpop.f32.mrf.mxu0  ;;  %1657 = vmatmul.mubr.f32.gmra.mxu1 %v5891_v13  ;;  %3560 = vmatprep.subr.mxu1 %v8172_v4 }
 0x1c5   :  { %v6197_v42 = vadd.f32 %v1240_v45, %v864_v14  ;;  %1662 = vmatprep.mubr.f32.mxu1 %v5898_v9 }
 0x1c6   :  { %v6200_v2 = vpop.f32.mrf.mxu1  ;;  %v6202_v58 = vpop.f32.mrf.mxu0 }
 0x1c8   :  { %v876_v56 = vpop.f32.mrf.mxu1  ;;  %v1246_v49 = vpop.f32.mrf.mxu0  ;;  %1663 = vmatmul.mubr.f32.gmra.mxu1 %v5901_v22 }
 0x1c9   :  { %v6205_v47 = vadd.f32 %v1246_v49, %v870_v44  ;;  %1668 = vmatprep.mubr.f32.mxu1 %v5908_v18 }
 0x1ca   :  { %v6208_v31 = vpop.f32.mrf.mxu1  ;;  %v6210_v13 = vpop.f32.mrf.mxu0 }
 0x1cc   :  { %v882_v14 = vpop.f32.mrf.mxu1  ;;  %v1252_v63 = vpop.f32.mrf.mxu0  ;;  %1669 = vmatmul.mubr.f32.gmra.mxu1 %v5911_v29 }
 0x1cd   :  { %v6213_v9 = vadd.f32 %v1252_v63, %v876_v56  ;;  %1674 = vmatprep.mubr.f32.mxu1 %v5918_v26 }
 0x1ce   :  { %v6216_v61 = vpop.f32.mrf.mxu1  ;;  %v6218_v51 = vpop.f32.mrf.mxu0 }
 0x1d0   :  { %v888_v22 = vpop.f32.mrf.mxu1  ;;  %v1258_v3 = vpop.f32.mrf.mxu0  ;;  %1675 = vmatmul.mubr.f32.gmra.mxu1 %v5921_v38 }
 0x1d1   :  { %v6221_v18 = vadd.f32 %v1258_v3, %v882_v14  ;;  %1680 = vmatprep.mubr.f32.mxu1 %v5928_v34 }
 0x1d2   :  { %v6224_v44 = vpop.f32.mrf.mxu1  ;;  %v6226_v45 = vpop.f32.mrf.mxu0 }
 0x1d4   :  { %v894_v29 = vpop.f32.mrf.mxu1  ;;  %v1264_v56 = vpop.f32.mrf.mxu0  ;;  %1681 = vmatmul.mubr.f32.gmra.mxu1 %v5931_v46 }
 0x1d5   :  { %v6229_v26 = vadd.f32 %v1264_v56, %v888_v22  ;;  %1686 = vmatprep.mubr.f32.mxu1 %v5938_v43 }
 0x1d6   :  { %v6232_v49 = vpop.f32.mrf.mxu1  ;;  %v6234_v63 = vpop.f32.mrf.mxu0 }
 0x1d7   :  { %8173 = vst [vmem:[#allocation20_spill] sm:$0xff] %v6232_v49 }
 0x1d8   :  { %v900_v38 = vpop.f32.mrf.mxu1  ;;  %v1270_v14 = vpop.f32.mrf.mxu0  ;;  %1687 = vmatmul.mubr.f32.gmra.mxu1 %v5941_v54 }
 0x1d9   :  { %v6237_v34 = vadd.f32 %v1270_v14, %v894_v29  ;;  %1692 = vmatprep.mubr.f32.mxu1 %v5948_v50 }
 0x1da   :  { %v6240_v3 = vpop.f32.mrf.mxu1  ;;  %v6242_v4 = vpop.f32.mrf.mxu0 }
 0x1db   :  { %8174 = vst [vmem:[#allocation32_spill] sm:$0xff] %v6240_v3 }
 0x1dc   :  { %v906_v46 = vpop.f32.mrf.mxu1  ;;  %v1276_v22 = vpop.f32.mrf.mxu0  ;;  %1693 = vmatmul.mubr.f32.gmra.mxu1 %v5951_v62 }
 0x1dd   :  { %v6245_v43 = vadd.f32 %v1276_v22, %v900_v38  ;;  %1698 = vmatprep.mubr.f32.mxu1 %v5958_v59  ;;  %v8181_v22 = vld [vmem:[#allocation21_spill] sm:$0xff] }
 0x1de   :  { %v6248_v56 = vpop.f32.mrf.mxu1  ;;  %v6250_v49 = vpop.f32.mrf.mxu0 }
 0x1df   :  { %8175 = vst [vmem:[#allocation33_spill] sm:$0xff] %v6245_v43  ;;  %8176 = vst [vmem:[#allocation34_spill] sm:$0xff] %v6248_v56  ;;  %v8183_v56 = vld [vmem:[#allocation22_spill] sm:$0xff] }
 0x1e0   :  { %8177 = vst [vmem:[#allocation35_spill] sm:$0xff] %v6250_v49  ;;  %v912_v54 = vpop.f32.mrf.mxu1  ;;  %v1282_v29 = vpop.f32.mrf.mxu0  ;;  %1699 = vmatmul.mubr.f32.gmra.mxu1 %v5961_v11 }
 0x1e1   :  { %v6253_v50 = vadd.f32 %v1282_v29, %v906_v46  ;;  %1704 = vmatprep.mubr.f32.mxu1 %v5968_v5  ;;  %v8186_v29 = vld [vmem:[#allocation23_spill] sm:$0xff] }
 0x1e2   :  { %v6256_v14 = vpop.f32.mrf.mxu1  ;;  %v6258_v3 = vpop.f32.mrf.mxu0 }
 0x1e3   :  { %8178 = vst [vmem:[#allocation36_spill] sm:$0xff] %v6253_v50  ;;  %8179 = vst [vmem:[#allocation37_spill] sm:$0xff] %v6256_v14  ;;  %v8188_v14 = vld [vmem:[#allocation24_spill] sm:$0xff] }
 0x1e4   :  { %8180 = vst [vmem:[#allocation38_spill] sm:$0xff] %v6258_v3  ;;  %v918_v62 = vpop.f32.mrf.mxu1  ;;  %v1288_v38 = vpop.f32.mrf.mxu0  ;;  %1705 = vmatmul.mubr.f32.gmra.mxu1 %v8181_v22  ;;  %v8190_v22 = vld [vmem:[#allocation9_spill] sm:$0xff] }
 0x1e5   :  { %v6261_v59 = vadd.f32 %v1288_v38, %v912_v54  ;;  %1710 = vmatprep.mubr.f32.mxu1 %v8183_v56 }
 0x1e6   :  { %v6264_v43 = vpop.f32.mrf.mxu1  ;;  %v6266_v49 = vpop.f32.mrf.mxu0 }
 0x1e7   :  { %8182 = vst [vmem:[#allocation21_spill] sm:$0xff] %v6261_v59  ;;  %8184 = vst [vmem:[#allocation22_spill] sm:$0xff] %v6264_v43  ;;  %v8192_v43 = vld [vmem:[#allocation10_spill] sm:$0xff] }
 0x1e8   :  { %8185 = vst [vmem:[#allocation39_spill] sm:$0xff] %v6266_v49  ;;  %v924_v11 = vpop.f32.mrf.mxu1  ;;  %v1294_v46 = vpop.f32.mrf.mxu0  ;;  %1711 = vmatmul.mubr.f32.gmra.mxu1 %v8186_v29  ;;  %v8194_v29 = vld [vmem:[#allocation11_spill] sm:$0xff] }
 0x1e9   :  { %v6269_v5 = vadd.f32 %v1294_v46, %v918_v62  ;;  %1716 = vmatprep.mubr.f32.mxu1 %v8188_v14 }
 0x1ea   :  { %v6272_v50 = vpop.f32.mrf.mxu1  ;;  %v6274_v3 = vpop.f32.mrf.mxu0 }
 0x1eb   :  { %8187 = vst [vmem:[#allocation23_spill] sm:$0xff] %v6269_v5  ;;  %8189 = vst [vmem:[#allocation24_spill] sm:$0xff] %v6272_v50 }
 0x1ec   :  { %v930_v54 = vpop.f32.mrf.mxu1  ;;  %v1300_v38 = vpop.f32.mrf.mxu0  ;;  %1717 = vmatmul.mubr.f32.gmra.mxu1 %v8190_v22  ;;  %v8197_v22 = vld [vmem:[#allocation12_spill] sm:$0xff] }
 0x1ed   :  { %v6277_v56 = vadd.f32 %v1300_v38, %v924_v11  ;;  %1722 = vmatprep.mubr.f32.mxu1 %v8192_v43 }
 0x1ee   :  { %v6280_v59 = vpop.f32.mrf.mxu1  ;;  %v6282_v49 = vpop.f32.mrf.mxu0 }
 0x1ef   :  { %8191 = vst [vmem:[#allocation9_spill] sm:$0xff] %v6277_v56  ;;  %8193 = vst [vmem:[#allocation10_spill] sm:$0xff] %v6280_v59 }
 0x1f0   :  { %v936_v62 = vpop.f32.mrf.mxu1  ;;  %v1306_v46 = vpop.f32.mrf.mxu0  ;;  %1723 = vmatmul.mubr.f32.gmra.mxu1 %v6001_v7 }
 0x1f1   :  { %v6285_v14 = vadd.f32 %v1306_v46, %v930_v54  ;;  %1728 = vmatprep.mubr.f32.mxu1 %v8194_v29 }
 0x1f2   :  { %v6288_v50 = vpop.f32.mrf.mxu1  ;;  %v6290_v5 = vpop.f32.mrf.mxu0 }
 0x1f3   :  { %8195 = vst [vmem:[#allocation11_spill] sm:$0xff] %v6288_v50 }
 0x1f4   :  { %v942_v11 = vpop.f32.mrf.mxu1  ;;  %v1312_v38 = vpop.f32.mrf.mxu0  ;;  %1729 = vmatmul.mubr.f32.gmra.mxu1 %v6011_v60 }
 0x1f5   :  { %v6293_v43 = vadd.f32 %v1312_v38, %v936_v62  ;;  %1734 = vmatprep.mubr.f32.mxu1 %v8197_v22  ;;  %v8204_v22 = vld [vmem:[#allocation13_spill] sm:$0xff] }
 0x1f6   :  { %v6296_v59 = vpop.f32.mrf.mxu1  ;;  %v6298_v56 = vpop.f32.mrf.mxu0 }
 0x1f7   :  { %8196 = vst [vmem:[#allocation40_spill] sm:$0xff] %v6293_v43  ;;  %8198 = vst [vmem:[#allocation12_spill] sm:$0xff] %v6296_v59 }
 0x1f8   :  { %8199 = vst [vmem:[#allocation41_spill] sm:$0xff] %v6298_v56  ;;  %v948_v7 = vpop.f32.mrf.mxu1  ;;  %v1318_v54 = vpop.f32.mrf.mxu0  ;;  %1735 = vmatmul.mubr.f32.gmra.mxu1 %v6021_v55 }
 0x1f9   :  { %v6301_v46 = vadd.f32 %v1318_v54, %v942_v11  ;;  %1740 = vmatprep.mubr.f32.mxu1 %v6028_v1  ;;  %v8208_v54 = vld [vmem:[#allocation14_spill] sm:$0xff] }
 0x1fa   :  { %v6304_v29 = vpop.f32.mrf.mxu1  ;;  %v6306_v50 = vpop.f32.mrf.mxu0 }
 0x1fb   :  { %8200 = vst [vmem:[#allocation42_spill] sm:$0xff] %v6301_v46  ;;  %8201 = vst [vmem:[#allocation43_spill] sm:$0xff] %v6304_v29 }
 0x1fc   :  { %8202 = vst [vmem:[#allocation44_spill] sm:$0xff] %v6306_v50  ;;  %v954_v60 = vpop.f32.mrf.mxu1  ;;  %v1324_v62 = vpop.f32.mrf.mxu0  ;;  %1741 = vmatmul.mubr.f32.gmra.mxu1 %v6031_v20 }
 0x1fd   :  { %v6309_v38 = vadd.f32 %v1324_v62, %v948_v7  ;;  %1746 = vmatprep.mubr.f32.mxu1 %v8204_v22  ;;  %v8211_v62 = vld [vmem:[#allocation15_spill] sm:$0xff] }
 0x1fe   :  { %v6312_v59 = vpop.f32.mrf.mxu1  ;;  %v6314_v43 = vpop.f32.mrf.mxu0 }
 0x1ff   :  { %8203 = vst [vmem:[#allocation45_spill] sm:$0xff] %v6309_v38  ;;  %8205 = vst [vmem:[#allocation13_spill] sm:$0xff] %v6312_v59  ;;  %v8213_v59 = vld [vmem:[#allocation16_spill] sm:$0xff] }
 0x200   :  { %8206 = vst [vmem:[#allocation46_spill] sm:$0xff] %v6314_v43  ;;  %v960_v55 = vpop.f32.mrf.mxu1  ;;  %v1330_v11 = vpop.f32.mrf.mxu0  ;;  %1747 = vmatmul.mubr.f32.gmra.mxu1 %v6041_v32 }
 0x201   :  { %v6317_v1 = vadd.f32 %v1330_v11, %v954_v60  ;;  %1752 = vmatprep.mubr.f32.mxu1 %v8208_v54  ;;  %v8216_v11 = vld [vmem:[#allocation17_spill] sm:$0xff] }
 0x202   :  { %v6320_v29 = vpop.f32.mrf.mxu1  ;;  %v6322_v46 = vpop.f32.mrf.mxu0 }
 0x203   :  { %8207 = vst [vmem:[#allocation47_spill] sm:$0xff] %v6317_v1  ;;  %8209 = vst [vmem:[#allocation14_spill] sm:$0xff] %v6320_v29  ;;  %v8218_v29 = vld [vmem:[#allocation18_spill] sm:$0xff] }
 0x204   :  { %8210 = vst [vmem:[#allocation48_spill] sm:$0xff] %v6322_v46  ;;  %v966_v20 = vpop.f32.mrf.mxu1  ;;  %v1336_v7 = vpop.f32.mrf.mxu0  ;;  %1753 = vmatmul.mubr.f32.gmra.mxu1 %v8211_v62  ;;  %v8221_v62 = vld [vmem:[#allocation19_spill] sm:$0xff] }
 0x205   :  { %v6325_v22 = vadd.f32 %v1336_v7, %v960_v55  ;;  %1758 = vmatprep.mubr.f32.mxu1 %v8213_v59 }
 0x206   :  { %v6328_v38 = vpop.f32.mrf.mxu1  ;;  %v6330_v43 = vpop.f32.mrf.mxu0 }
 0x207   :  { %8212 = vst [vmem:[#allocation15_spill] sm:$0xff] %v6325_v22  ;;  %8214 = vst [vmem:[#allocation16_spill] sm:$0xff] %v6328_v38  ;;  %v8223_v38 = vld [vmem:[#allocation25_spill] sm:$0xff] }
 0x208   :  { %8215 = vst [vmem:[#allocation49_spill] sm:$0xff] %v6330_v43  ;;  %v972_v32 = vpop.f32.mrf.mxu1  ;;  %v1342_v60 = vpop.f32.mrf.mxu0  ;;  %1759 = vmatmul.mubr.f32.gmra.mxu1 %v8216_v11  ;;  %v8226_v11 = vld [vmem:[#allocation26_spill] sm:$0xff] }
 0x209   :  { %v6333_v54 = vadd.f32 %v1342_v60, %v966_v20  ;;  %1764 = vmatprep.mubr.f32.mxu1 %v8218_v29 }
 0x20a   :  { %v6336_v1 = vpop.f32.mrf.mxu1  ;;  %v6338_v46 = vpop.f32.mrf.mxu0 }
 0x20b   :  { %8217 = vst [vmem:[#allocation17_spill] sm:$0xff] %v6333_v54  ;;  %8219 = vst [vmem:[#allocation18_spill] sm:$0xff] %v6336_v1  ;;  %v8228_v1 = vld [vmem:[#allocation27_spill] sm:$0xff] }
 0x20c   :  { %8220 = vst [vmem:[#allocation50_spill] sm:$0xff] %v6338_v46  ;;  %v978_v55 = vpop.f32.mrf.mxu1  ;;  %v1348_v7 = vpop.f32.mrf.mxu0  ;;  %1765 = vmatmul.mubr.f32.gmra.mxu1 %v8221_v62  ;;  %v8232_v62 = vld [vmem:[#allocation28_spill] sm:$0xff] }
 0x20d   :  { %v6341_v59 = vadd.f32 %v1348_v7, %v972_v32  ;;  %1770 = vmatprep.mubr.f32.mxu1 %v8223_v38 }
 0x20e   :  { %v6344_v22 = vpop.f32.mrf.mxu1  ;;  %v6346_v43 = vpop.f32.mrf.mxu0 }
 0x20f   :  { %8222 = vst [vmem:[#allocation19_spill] sm:$0xff] %v6341_v59  ;;  %8224 = vst [vmem:[#allocation25_spill] sm:$0xff] %v6344_v22 }
 0x210   :  { %8225 = vst [vmem:[#allocation51_spill] sm:$0xff] %v6346_v43  ;;  %v984_v20 = vpop.f32.mrf.mxu1  ;;  %v1354_v60 = vpop.f32.mrf.mxu0  ;;  %1771 = vmatmul.mubr.f32.gmra.mxu1 %v8226_v11 }
 0x211   :  { %v6349_v29 = vadd.f32 %v1354_v60, %v978_v55  ;;  %1776 = vmatprep.mubr.f32.mxu1 %v8228_v1 }
 0x212   :  { %v6352_v54 = vpop.f32.mrf.mxu1  ;;  %v6354_v46 = vpop.f32.mrf.mxu0 }
 0x213   :  { %8227 = vst [vmem:[#allocation26_spill] sm:$0xff] %v6349_v29  ;;  %8229 = vst [vmem:[#allocation27_spill] sm:$0xff] %v6352_v54 }
 0x214   :  { %8230 = vst [vmem:[#allocation52_spill] sm:$0xff] %v6354_v46  ;;  %v990_v32 = vpop.f32.mrf.mxu1  ;;  %v1360_v7 = vpop.f32.mrf.mxu0  ;;  %1777 = vmatmul.mubr.f32.gmra.mxu1 %v6084_v27 }
 0x215   :  { %v6357_v38 = vadd.f32 %v1360_v7, %v984_v20  ;;  %1782 = vmatprep.mubr.f32.mxu1 %v8232_v62  ;;  %v8238_v7 = vld [vmem:[#allocation29_spill] sm:$0xff] }
 0x216   :  { %v6360_v22 = vpop.f32.mrf.mxu1  ;;  %v6362_v59 = vpop.f32.mrf.mxu0 }
 0x217   :  { %8231 = vst [vmem:[#allocation53_spill] sm:$0xff] %v6357_v38  ;;  %8233 = vst [vmem:[#allocation28_spill] sm:$0xff] %v6360_v22  ;;  %v8240_v22 = vld [vmem:[#allocation30_spill] sm:$0xff] }
 0x218   :  { %8234 = vst [vmem:[#allocation54_spill] sm:$0xff] %v6362_v59  ;;  %v996_v55 = vpop.f32.mrf.mxu1  ;;  %v1366_v60 = vpop.f32.mrf.mxu0  ;;  %1783 = vmatmul.mubr.f32.gmra.mxu1 %v6092_v41 }
 0x219   :  { %v6365_v1 = vadd.f32 %v1366_v60, %v990_v32  ;;  %1788 = vmatprep.mubr.f32.mxu1 %v6098_v52  ;;  %v8243_v60 = vld [vmem:[#allocation31_spill] sm:$0xff] }
 0x21a   :  { %v6368_v11 = vpop.f32.mrf.mxu1  ;;  %v6370_v54 = vpop.f32.mrf.mxu0 }
 0x21b   :  { %8235 = vst [vmem:[#allocation55_spill] sm:$0xff] %v6365_v1  ;;  %8236 = vst [vmem:[#allocation56_spill] sm:$0xff] %v6368_v11 }
 0x21c   :  { %8237 = vst [vmem:[#allocation57_spill] sm:$0xff] %v6370_v54  ;;  %v1002_v27 = vpop.f32.mrf.mxu1  ;;  %v1372_v20 = vpop.f32.mrf.mxu0  ;;  %1789 = vmatmul.mubr.f32.gmra.mxu1 %v8238_v7 }
 0x21d   :  { %v6373_v62 = vadd.f32 %v1372_v20, %v996_v55  ;;  %1794 = vmatprep.mubr.f32.mxu1 %v8240_v22 }
 0x21e   :  { %v6376_v38 = vpop.f32.mrf.mxu1  ;;  %v6378_v59 = vpop.f32.mrf.mxu0 }
 0x21f   :  { %8239 = vst [vmem:[#allocation29_spill] sm:$0xff] %v6373_v62  ;;  %8241 = vst [vmem:[#allocation30_spill] sm:$0xff] %v6376_v38 }
 0x220   :  { %8242 = vst [vmem:[#allocation58_spill] sm:$0xff] %v6378_v59  ;;  %v1008_v41 = vpop.f32.mrf.mxu1  ;;  %v1378_v32 = vpop.f32.mrf.mxu0  ;;  %1795 = vmatmul.mubr.f32.gmra.mxu1 %v8243_v60 }
 0x221   :  { %v6381_v52 = vadd.f32 %v1378_v32, %v1002_v27 }
 0x222   :  { %v6383_v11 = vpop.f32.mrf.mxu1  ;;  %v6385_v1 = vpop.f32.mrf.mxu0 }
 0x223   :  { %8244 = vst [vmem:[#allocation31_spill] sm:$0xff] %v6381_v52  ;;  %8245 = vst [vmem:[#allocation59_spill] sm:$0xff] %v6383_v11 }
 0x224   :  { %8246 = vst [vmem:[#allocation60_spill] sm:$0xff] %v6385_v1  ;;  %v1014_v54 = vpop.f32.mrf.mxu1  ;;  %v1384_v7 = vpop.f32.mrf.mxu0 }
 0x225   :  { %v6387_v55 = vadd.f32 %v1384_v7, %v1008_v41 }
 0x226   :  { %v6389_v20 = vpop.f32.mrf.mxu1  ;;  %v6391_v22 = vpop.f32.mrf.mxu0 }
 0x227   :  { %8247 = vst [vmem:[#allocation61_spill] sm:$0xff] %v6387_v55  ;;  %8248 = vst [vmem:[#allocation62_spill] sm:$0xff] %v6389_v20 }
 0x228   :  { %8249 = vst [vmem:[#allocation63_spill] sm:$0xff] %v6391_v22  ;;  %v1020_v38 = vpop.f32.mrf.mxu1  ;;  %v1390_v62 = vpop.f32.mrf.mxu0 }
 0x229   :  { %v6393_v59 = vadd.f32 %v1390_v62, %v1014_v54 }
 0x22a   :  { %v1022_v29 = vpop.f32.mrf.mxu1  ;;  %v6395_v60 = vpop.f32.mrf.mxu0 }
 0x22b   :  { %8250 = vst [vmem:[#allocation64_spill] sm:$0xff] %v6393_v59  ;;  %8251 = vst [vmem:[#allocation65_spill] sm:$0xff] %v6395_v60  ;;  %v1963_v59 = vlaneseq }
 0x22c   :  { %v1026_v27 = vpop.f32.mrf.mxu1  ;;  %v1396_v32 = vpop.f32.mrf.mxu0 }
 0x22e   :  { %v1028_v11 = vpop.f32.mrf.mxu1  ;;  %v1398_v52 = vpop.f32.mrf.mxu0 }
 0x22f   :  { %v6397_v52 = vshrl.u32 %v1963_v59, 7 }
 0x230   :  { %v1032_v1 = vpop.f32.mrf.mxu1  ;;  %v1402_v46 = vpop.f32.mrf.mxu0 }
 0x231   :  { %8252 = vst [vmem:[#allocation66_spill] sm:$0xff] %v6397_v52 }
 0x232   :  { %v1034_v43 = vpop.f32.mrf.mxu1  ;;  %v1404_v41 = vpop.f32.mrf.mxu0 }
 0x234   :  { %v1038_v7 = vpop.f32.mrf.mxu1  ;;  %v1408_v55 = vpop.f32.mrf.mxu0 }
 0x235   :  { %v8103_v55 = vsub.s32 0, %v6397_v52 }
 0x236   :  { %v1040_v20 = vpop.f32.mrf.mxu1  ;;  %v1410_v50 = vpop.f32.mrf.mxu0 }
 0x237   :  { %v1961_v50 = vld [vmem:[%s8058_s3] sm:$0x3] }
 0x238   :  { %v1044_v22 = vpop.f32.mrf.mxu1  ;;  %v1414_v38 = vpop.f32.mrf.mxu0  ;;  %v6407_v41 = vrot.slane %v1961_v50, %v8103_v55 }
 0x23a   :  { %v1046_v56 = vpop.f32.mrf.mxu1  ;;  %v1416_v54 = vpop.f32.mrf.mxu0 }
 0x23b   :  { %v8104_v56 = vsub.s32 1, %v6397_v52 }
 0x23c   :  { %v1050_v62 = vpop.f32.mrf.mxu1  ;;  %v1420_v29 = vpop.f32.mrf.mxu0 }
 0x23d   :  { %v6412_v38 = vrot.slane %v1961_v50, %v8104_v56 }
 0x23e   :  { %v1052_v60 = vpop.f32.mrf.mxu1  ;;  %v1422_v27 = vpop.f32.mrf.mxu0 }
 0x240   :  { %v1056_v32 = vpop.f32.mrf.mxu1  ;;  %v1426_v11 = vpop.f32.mrf.mxu0 }
 0x241   :  { %v1801_v22 = vadd.f32 %v6131_v23, %v1056_v32  ;;  %v1804_v23 = vadd.f32 %v6145_v17, %v6135_v24 }
 0x242   :  { %v1058_v46 = vpop.f32.mrf.mxu1  ;;  %v1428_v43 = vpop.f32.mrf.mxu0 }
 0x243   :  { %v1802_v59 = vadd.f32 %v6137_v28, %v1058_v46 }
 0x244   :  { %v1562_v1 = vpop.f32.mrf.mxu1 }
 0x246   :  { %v1564_v20 = vpop.f32.mrf.mxu1 }
 0x248   :  { %v1568_v60 = vpop.f32.mrf.mxu1 }
 0x249   :  { %v1881_v7 = vadd.f32 %v1801_v22, %v1568_v60  ;;  %v1806_v22 = vadd.f32 %v6153_v19, %v6143_v10 }
 0x24a   :  { %v1570_v54 = vpop.f32.mrf.mxu1 }
 0x24b   :  { %v1882_v62 = vadd.f32 %v1802_v59, %v1570_v54  ;;  %v1973_v29 = vadd.f32 %v6407_v41, %v1881_v7  ;;  %v5152_v59 = vld [vmem:[#allocation3 + $0x4f0] sm:$0xff] }
 0x24c   :  { %v1574_v27 = vpop.f32.mrf.mxu1 }
 0x24d   :  { %v1974_v32 = vadd.f32 %v6412_v38, %v1882_v62  ;;  %v1883_v11 = vadd.f32 %v6140_v35, %v1574_v27  ;;  %v6421_v46 = vmax.f32 %v1973_v29, 0.0  ;;  %v1808_v62 = vadd.f32 %v6161_v8, %v6151_v21 }
 0x24e   :  { %v1576_v43 = vpop.f32.mrf.mxu1 }
 0x24f   :  { %v1884_v1 = vadd.f32 %v1804_v23, %v1576_v43  ;;  %v6419_v28 = vmax.f32 %v1974_v32, 0.0  ;;  %v1975_v50 = vadd.f32 %v6407_v41, %v1883_v11  ;;  %v5154_v11 = vld [vmem:[#allocation3 + $0x4e0] sm:$0xff] }
 0x250   :  { %v1580_v20 = vpop.f32.mrf.mxu1 }
 0x251   :  { %v1976_v60 = vadd.f32 %v6412_v38, %v1884_v1  ;;  %v1885_v24 = vadd.f32 %v6148_v36, %v1580_v20  ;;  %2357 = vmatprep.mubr.f32.mxu0 %v6419_v28  ;;  %2662 = vmatprep.mubr.f32.mxu1 %v6419_v28  ;;  %v6434_v54 = vmax.f32 %v1975_v50, 0.0  ;;  %v5153_v36 = vld [vmem:[#allocation3 + $0x4e8] sm:$0xff]  ;;  %v1810_v50 = vadd.f32 %v6169_v16, %v6159_v30 }
 0x252   :  { %v1582_v35 = vpop.f32.mrf.mxu1  ;;  %2358 = vmatmul.mubr.f32.vlgmr.msra.gmra.mxu0 %v6421_v46  ;;  %2663 = vmatmul.mubr.f32.vlgmr.msra.gmra.mxu1 %v6421_v46 }
 0x253   :  { %v1886_v17 = vadd.f32 %v1806_v22, %v1582_v35  ;;  %2904 = vmatpush1.msra.mxu0 %v5152_v59  ;;  %v6432_v7 = vmax.f32 %v1976_v60, 0.0  ;;  %v1977_v10 = vadd.f32 %v6407_v41, %v1885_v24  ;;  %v5156_v35 = vld [vmem:[#allocation3 + $0x4d0] sm:$0xff] }
 0x254   :  { %v1586_v19 = vpop.f32.mrf.mxu1  ;;  %2905 = vmatprep.subr.mxu0 %v5153_v36 }
 0x255   :  { %v1978_v29 = vadd.f32 %v6412_v38, %v1886_v17  ;;  %v1887_v27 = vadd.f32 %v6156_v15, %v1586_v19  ;;  %2363 = vmatprep.mubr.f32.mxu0 %v6432_v7  ;;  %2668 = vmatprep.mubr.f32.mxu1 %v6432_v7  ;;  %v6447_v1 = vmax.f32 %v1977_v10, 0.0  ;;  %v5155_v15 = vld [vmem:[#allocation3 + $0x4d8] sm:$0xff]  ;;  %v1812_v10 = vadd.f32 %v6177_v25, %v6167_v6 }
 0x256   :  { %v1588_v23 = vpop.f32.mrf.mxu1  ;;  %2364 = vmatmul.mubr.f32.gmra.mxu0 %v6434_v54  ;;  %2669 = vmatmul.mubr.f32.gmra.mxu1 %v6434_v54 }
 0x257   :  { %v1888_v32 = vadd.f32 %v1808_v62, %v1588_v23  ;;  %2906 = vmatpush1.msra.mxu0 %v5154_v11  ;;  %v6445_v43 = vmax.f32 %v1978_v29, 0.0  ;;  %v1979_v21 = vadd.f32 %v6407_v41, %v1887_v27  ;;  %v5158_v23 = vld [vmem:[#allocation3 + $0x4c0] sm:$0xff]  ;;  %v1814_v11 = vadd.f32 %v6185_v12, %v6175_v57 }
 0x258   :  { %v1592_v8 = vpop.f32.mrf.mxu1  ;;  %2907 = vmatprep.subr.mxu0 %v5155_v15 }
 0x259   :  { %v1980_v20 = vadd.f32 %v6412_v38, %v1888_v32  ;;  %v1889_v22 = vadd.f32 %v6164_v33, %v1592_v8  ;;  %2369 = vmatprep.mubr.f32.mxu0 %v6445_v43  ;;  %2674 = vmatprep.mubr.f32.mxu1 %v6445_v43  ;;  %v6460_v59 = vmax.f32 %v1979_v21, 0.0  ;;  %v5157_v33 = vld [vmem:[#allocation3 + $0x4c8] sm:$0xff] }
 0x25a   :  { %v1594_v60 = vpop.f32.mrf.mxu1  ;;  %2370 = vmatmul.mubr.f32.gmra.mxu0 %v6447_v1  ;;  %2675 = vmatmul.mubr.f32.gmra.mxu1 %v6447_v1 }
 0x25b   :  { %v1890_v24 = vadd.f32 %v1810_v50, %v1594_v60  ;;  %2908 = vmatpush1.msra.mxu0 %v5156_v35  ;;  %v6458_v17 = vmax.f32 %v1980_v20, 0.0  ;;  %v1981_v30 = vadd.f32 %v6407_v41, %v1889_v22  ;;  %v5160_v22 = vld [vmem:[#allocation3 + $0x4b0] sm:$0xff] }
 0x25c   :  { %v1598_v16 = vpop.f32.mrf.mxu1  ;;  %2909 = vmatprep.subr.mxu0 %v5157_v33 }
 0x25d   :  { %v1982_v19 = vadd.f32 %v6412_v38, %v1890_v24  ;;  %v1891_v36 = vadd.f32 %v6172_v48, %v1598_v16  ;;  %2375 = vmatprep.mubr.f32.mxu0 %v6458_v17  ;;  %2680 = vmatprep.mubr.f32.mxu1 %v6458_v17  ;;  %v6473_v32 = vmax.f32 %v1981_v30, 0.0  ;;  %v5159_v48 = vld [vmem:[#allocation3 + $0x4b8] sm:$0xff]  ;;  %v1816_v24 = vadd.f32 %v6193_v53, %v6183_v0 }
 0x25e   :  { %v1600_v62 = vpop.f32.mrf.mxu1  ;;  %2376 = vmatmul.mubr.f32.gmra.mxu0 %v6460_v59  ;;  %2681 = vmatmul.mubr.f32.gmra.mxu1 %v6460_v59 }
 0x25f   :  { %v1892_v29 = vadd.f32 %v1812_v10, %v1600_v62  ;;  %v6471_v27 = vmax.f32 %v1982_v19, 0.0  ;;  %2910 = vmatpush1.msra.mxu0 %v5158_v23  ;;  %v1983_v6 = vadd.f32 %v6407_v41, %v1891_v36  ;;  %v5162_v19 = vld [vmem:[#allocation3 + $0x4a0] sm:$0xff]  ;;  %v1818_v62 = vadd.f32 %v6202_v58, %v6191_v37 }
 0x260   :  { %v1604_v25 = vpop.f32.mrf.mxu1  ;;  %2911 = vmatprep.subr.mxu0 %v5159_v48 }
 0x261   :  { %v1984_v21 = vadd.f32 %v6412_v38, %v1892_v29  ;;  %v1893_v8 = vadd.f32 %v6180_v40, %v1604_v25  ;;  %2381 = vmatprep.mubr.f32.mxu0 %v6471_v27  ;;  %2686 = vmatprep.mubr.f32.mxu1 %v6471_v27  ;;  %v6486_v60 = vmax.f32 %v1983_v6, 0.0  ;;  %v5161_v40 = vld [vmem:[#allocation3 + $0x4a8] sm:$0xff] }
 0x262   :  { %v1606_v15 = vpop.f32.mrf.mxu1  ;;  %2382 = vmatmul.mubr.f32.gmra.mxu0 %v6473_v32  ;;  %2687 = vmatmul.mubr.f32.gmra.mxu1 %v6473_v32 }
 0x263   :  { %v1894_v50 = vadd.f32 %v1814_v11, %v1606_v15  ;;  %v6484_v20 = vmax.f32 %v1984_v21, 0.0  ;;  %2912 = vmatpush1.msra.mxu0 %v5160_v22  ;;  %v1985_v57 = vadd.f32 %v6407_v41, %v1893_v8  ;;  %v5164_v11 = vld [vmem:[#allocation3 + $0x490] sm:$0xff]  ;;  %v1820_v8 = vadd.f32 %v6210_v13, %v6200_v2 }
 0x264   :  { %v1610_v12 = vpop.f32.mrf.mxu1  ;;  %2913 = vmatprep.subr.mxu0 %v5161_v40  ;;  %v5166_v40 = vld [vmem:[#allocation3 + $0x480] sm:$0xff] }
 0x265   :  { %v1986_v35 = vadd.f32 %v6412_v38, %v1894_v50  ;;  %v1895_v30 = vadd.f32 %v6188_v39, %v1610_v12  ;;  %2387 = vmatprep.mubr.f32.mxu0 %v6484_v20  ;;  %2692 = vmatprep.mubr.f32.mxu1 %v6484_v20  ;;  %v6499_v36 = vmax.f32 %v1985_v57, 0.0  ;;  %v5163_v39 = vld [vmem:[#allocation3 + $0x498] sm:$0xff] }
 0x266   :  { %v1612_v16 = vpop.f32.mrf.mxu1  ;;  %2388 = vmatmul.mubr.f32.gmra.mxu0 %v6486_v60  ;;  %2693 = vmatmul.mubr.f32.gmra.mxu1 %v6486_v60 }
 0x267   :  { %v1896_v33 = vadd.f32 %v1816_v24, %v1612_v16  ;;  %v6497_v10 = vmax.f32 %v1986_v35, 0.0  ;;  %2914 = vmatpush1.msra.mxu0 %v5162_v19  ;;  %v1987_v0 = vadd.f32 %v6407_v41, %v1895_v30  ;;  %v1822_v35 = vadd.f32 %v6218_v51, %v6208_v31 }
 0x268   :  { %v1616_v53 = vpop.f32.mrf.mxu1  ;;  %2915 = vmatprep.subr.mxu0 %v5163_v39 }
 0x269   :  { %v1988_v29 = vadd.f32 %v6412_v38, %v1896_v33  ;;  %v1897_v23 = vadd.f32 %v6197_v42, %v1616_v53  ;;  %2393 = vmatprep.mubr.f32.mxu0 %v6497_v10  ;;  %2698 = vmatprep.mubr.f32.mxu1 %v6497_v10  ;;  %v6512_v21 = vmax.f32 %v1987_v0, 0.0  ;;  %v5165_v42 = vld [vmem:[#allocation3 + $0x488] sm:$0xff]  ;;  %v5168_v53 = vld [vmem:[#allocation3 + $0x470] sm:$0xff] }
 0x26a   :  { %v1618_v6 = vpop.f32.mrf.mxu1  ;;  %2394 = vmatmul.mubr.f32.gmra.mxu0 %v6499_v36  ;;  %2699 = vmatmul.mubr.f32.gmra.mxu1 %v6499_v36 }
 0x26b   :  { %v1898_v25 = vadd.f32 %v1818_v62, %v1618_v6  ;;  %v6510_v48 = vmax.f32 %v1988_v29, 0.0  ;;  %2916 = vmatpush1.msra.mxu0 %v5164_v11  ;;  %v1989_v37 = vadd.f32 %v6407_v41, %v1897_v23  ;;  %v1824_v62 = vadd.f32 %v6226_v45, %v6216_v61 }
 0x26c   :  { %v1622_v58 = vpop.f32.mrf.mxu1  ;;  %2917 = vmatprep.subr.mxu0 %v5165_v42  ;;  %v1826_v42 = vadd.f32 %v6234_v63, %v6224_v44 }
 0x26d   :  { %v1990_v15 = vadd.f32 %v6412_v38, %v1898_v25  ;;  %v1899_v50 = vadd.f32 %v6205_v47, %v1622_v58  ;;  %2399 = vmatprep.mubr.f32.mxu0 %v6510_v48  ;;  %2704 = vmatprep.mubr.f32.mxu1 %v6510_v48  ;;  %v6525_v24 = vmax.f32 %v1989_v37, 0.0  ;;  %v5167_v47 = vld [vmem:[#allocation3 + $0x478] sm:$0xff]  ;;  %v5170_v37 = vld [vmem:[#allocation3 + $0x460] sm:$0xff] }
 0x26e   :  { %v1624_v22 = vpop.f32.mrf.mxu1  ;;  %2400 = vmatmul.mubr.f32.gmra.mxu0 %v6512_v21  ;;  %2705 = vmatmul.mubr.f32.gmra.mxu1 %v6512_v21 }
 0x26f   :  { %v1900_v57 = vadd.f32 %v1820_v8, %v1624_v22  ;;  %v6523_v12 = vmax.f32 %v1990_v15, 0.0  ;;  %2918 = vmatpush1.msra.mxu0 %v5166_v40  ;;  %v1991_v2 = vadd.f32 %v6407_v41, %v1899_v50  ;;  %v5172_v40 = vld [vmem:[#allocation3 + $0x450] sm:$0xff] }
 0x270   :  { %v1628_v13 = vpop.f32.mrf.mxu1  ;;  %2919 = vmatprep.subr.mxu0 %v5167_v47 }
 0x271   :  { %v1992_v30 = vadd.f32 %v6412_v38, %v1900_v57  ;;  %v1901_v16 = vadd.f32 %v6213_v9, %v1628_v13  ;;  %2405 = vmatprep.mubr.f32.mxu0 %v6523_v12  ;;  %2710 = vmatprep.mubr.f32.mxu1 %v6523_v12  ;;  %v6538_v39 = vmax.f32 %v1991_v2, 0.0  ;;  %v5169_v9 = vld [vmem:[#allocation3 + $0x468] sm:$0xff]  ;;  %v8253_v13 = vld [vmem:[#allocation20_spill] sm:$0xff] }
 0x272   :  { %v1630_v33 = vpop.f32.mrf.mxu1  ;;  %2406 = vmatmul.mubr.f32.gmra.mxu0 %v6525_v24  ;;  %2711 = vmatmul.mubr.f32.gmra.mxu1 %v6525_v24  ;;  %v1828_v47 = vadd.f32 %v6242_v4, %v8253_v13 }
 0x273   :  { %v1902_v19 = vadd.f32 %v1822_v35, %v1630_v33  ;;  %v6536_v0 = vmax.f32 %v1992_v30, 0.0  ;;  %2920 = vmatpush1.msra.mxu0 %v5168_v53  ;;  %v1993_v31 = vadd.f32 %v6407_v41, %v1901_v16  ;;  %v5174_v53 = vld [vmem:[#allocation3 + $0x440] sm:$0xff] }
 0x274   :  { %v1634_v51 = vpop.f32.mrf.mxu1  ;;  %2921 = vmatprep.subr.mxu0 %v5169_v9  ;;  %v8254_v9 = vld [vmem:[#allocation32_spill] sm:$0xff] }
 0x275   :  { %v1994_v29 = vadd.f32 %v6412_v38, %v1902_v19  ;;  %v1903_v23 = vadd.f32 %v6221_v18, %v1634_v51  ;;  %2411 = vmatprep.mubr.f32.mxu0 %v6536_v0  ;;  %2716 = vmatprep.mubr.f32.mxu1 %v6536_v0  ;;  %v6551_v58 = vmax.f32 %v1993_v31, 0.0  ;;  %v5171_v18 = vld [vmem:[#allocation3 + $0x458] sm:$0xff] }
 0x276   :  { %v1636_v6 = vpop.f32.mrf.mxu1  ;;  %2412 = vmatmul.mubr.f32.gmra.mxu0 %v6538_v39  ;;  %2717 = vmatmul.mubr.f32.gmra.mxu1 %v6538_v39 }
 0x277   :  { %v1904_v25 = vadd.f32 %v1824_v62, %v1636_v6  ;;  %v6549_v11 = vmax.f32 %v1994_v29, 0.0  ;;  %2922 = vmatpush1.msra.mxu0 %v5170_v37  ;;  %v1995_v61 = vadd.f32 %v6407_v41, %v1903_v23  ;;  %v8255_v62 = vld [vmem:[#allocation35_spill] sm:$0xff]  ;;  %v8256_v6 = vld [vmem:[#allocation33_spill] sm:$0xff] }
 0x278   :  { %v1640_v45 = vpop.f32.mrf.mxu1  ;;  %2923 = vmatprep.subr.mxu0 %v5171_v18  ;;  %v1830_v29 = vadd.f32 %v8255_v62, %v8254_v9  ;;  %v5176_v18 = vld [vmem:[#allocation3 + $0x430] sm:$0xff] }
 0x279   :  { %v1996_v8 = vadd.f32 %v6412_v38, %v1904_v25  ;;  %v1905_v15 = vadd.f32 %v6229_v26, %v1640_v45  ;;  %2417 = vmatprep.mubr.f32.mxu0 %v6549_v11  ;;  %2722 = vmatprep.mubr.f32.mxu1 %v6549_v11  ;;  %v6564_v2 = vmax.f32 %v1995_v61, 0.0  ;;  %v5173_v26 = vld [vmem:[#allocation3 + $0x448] sm:$0xff]  ;;  %v8261_v9 = vld [vmem:[#allocation39_spill] sm:$0xff] }
 0x27a   :  { %v1642_v50 = vpop.f32.mrf.mxu1  ;;  %2418 = vmatmul.mubr.f32.gmra.mxu0 %v6551_v58  ;;  %2723 = vmatmul.mubr.f32.gmra.mxu1 %v6551_v58 }
 0x27b   :  { %v1906_v22 = vadd.f32 %v1826_v42, %v1642_v50  ;;  %v6562_v57 = vmax.f32 %v1996_v8, 0.0  ;;  %2924 = vmatpush1.msra.mxu0 %v5172_v40  ;;  %v1997_v44 = vadd.f32 %v6407_v41, %v1905_v15  ;;  %v5177_v50 = vld [vmem:[#allocation3 + $0x428] sm:$0xff] }
 0x27c   :  { %v1646_v63 = vpop.f32.mrf.mxu1  ;;  %2925 = vmatprep.subr.mxu0 %v5173_v26  ;;  %v8258_v40 = vld [vmem:[#allocation38_spill] sm:$0xff]  ;;  %v8259_v26 = vld [vmem:[#allocation36_spill] sm:$0xff] }
 0x27d   :  { %v1998_v35 = vadd.f32 %v6412_v38, %v1906_v22  ;;  %v1907_v30 = vadd.f32 %v6237_v34, %v1646_v63  ;;  %2423 = vmatprep.mubr.f32.mxu0 %v6562_v57  ;;  %2728 = vmatprep.mubr.f32.mxu1 %v6562_v57  ;;  %v6577_v31 = vmax.f32 %v1997_v44, 0.0  ;;  %v5175_v34 = vld [vmem:[#allocation3 + $0x438] sm:$0xff]  ;;  %v8257_v22 = vld [vmem:[#allocation34_spill] sm:$0xff] }
 0x27e   :  { %v1648_v16 = vpop.f32.mrf.mxu1  ;;  %2424 = vmatmul.mubr.f32.gmra.mxu0 %v6564_v2  ;;  %2729 = vmatmul.mubr.f32.gmra.mxu1 %v6564_v2  ;;  %v1832_v44 = vadd.f32 %v8258_v40, %v8257_v22  ;;  %v5181_v22 = vld [vmem:[#allocation3 + $0x408] sm:$0xff] }
 0x27f   :  { %v1908_v33 = vadd.f32 %v1828_v47, %v1648_v16  ;;  %v6575_v19 = vmax.f32 %v1998_v35, 0.0  ;;  %2926 = vmatpush1.msra.mxu0 %v5174_v53  ;;  %v1999_v4 = vadd.f32 %v6407_v41, %v1907_v30  ;;  %v5178_v16 = vld [vmem:[#allocation3 + $0x420] sm:$0xff]  ;;  %v8263_v40 = vld [vmem:[#allocation22_spill] sm:$0xff] }
 0x280   :  { %v1652_v51 = vpop.f32.mrf.mxu1  ;;  %2927 = vmatprep.subr.mxu0 %v5175_v34  ;;  %v8260_v34 = vld [vmem:[#allocation37_spill] sm:$0xff] }
 0x281   :  { %v2000_v23 = vadd.f32 %v6412_v38, %v1908_v33  ;;  %v1909_v25 = vadd.f32 %v8256_v6, %v1652_v51  ;;  %2429 = vmatprep.mubr.f32.mxu0 %v6575_v19  ;;  %2734 = vmatprep.mubr.f32.mxu1 %v6575_v19  ;;  %v6590_v42 = vmax.f32 %v1999_v4, 0.0  ;;  %v5179_v51 = vld [vmem:[#allocation3 + $0x418] sm:$0xff]  ;;  %v1834_v62 = vadd.f32 %v8261_v9, %v8260_v34 }
 0x282   :  { %v1654_v37 = vpop.f32.mrf.mxu1  ;;  %2430 = vmatmul.mubr.f32.gmra.mxu0 %v6577_v31  ;;  %2735 = vmatmul.mubr.f32.gmra.mxu1 %v6577_v31  ;;  %v5183_v34 = vld [vmem:[#allocation3 + $0x5f8] sm:$0xff] }
 0x283   :  { %v1910_v61 = vadd.f32 %v1830_v29, %v1654_v37  ;;  %v6588_v45 = vmax.f32 %v2000_v23, 0.0  ;;  %2928 = vmatpush1.msra.mxu0 %v5176_v18  ;;  %v2001_v8 = vadd.f32 %v6407_v41, %v1909_v25  ;;  %v8262_v23 = vld [vmem:[#allocation21_spill] sm:$0xff]  ;;  %v5180_v18 = vld [vmem:[#allocation3 + $0x410] sm:$0xff]  ;;  %v8265_v9 = vld [vmem:[#allocation24_spill] sm:$0xff] }
 0x284   :  { %v1658_v15 = vpop.f32.mrf.mxu1  ;;  %2929 = vmatprep.subr.mxu0 %v5177_v50 }
 0x285   :  { %v2002_v63 = vadd.f32 %v6412_v38, %v1910_v61  ;;  %v1911_v13 = vadd.f32 %v8259_v26, %v1658_v15  ;;  %2435 = vmatprep.mubr.f32.mxu0 %v6588_v45  ;;  %2740 = vmatprep.mubr.f32.mxu1 %v6588_v45  ;;  %v6603_v33 = vmax.f32 %v2001_v8, 0.0  ;;  %v8264_v26 = vld [vmem:[#allocation23_spill] sm:$0xff] }
 0x286   :  { %v1660_v47 = vpop.f32.mrf.mxu1  ;;  %2436 = vmatmul.mubr.f32.gmra.mxu0 %v6590_v42  ;;  %2741 = vmatmul.mubr.f32.gmra.mxu1 %v6590_v42 }
 0x287   :  { %v1912_v35 = vadd.f32 %v1832_v44, %v1660_v47  ;;  %v6601_v30 = vmax.f32 %v2002_v63, 0.0  ;;  %2930 = vmatpush1.msra.mxu0 %v5178_v16  ;;  %v2003_v53 = vadd.f32 %v6407_v41, %v1911_v13  ;;  %v1836_v44 = vadd.f32 %v6274_v3, %v8263_v40  ;;  %v5185_v40 = vld [vmem:[#allocation3 + $0x5e8] sm:$0xff] }
 0x288   :  { %v1664_v4 = vpop.f32.mrf.mxu1  ;;  %2931 = vmatprep.subr.mxu0 %v5179_v51 }
 0x289   :  { %v2004_v29 = vadd.f32 %v6412_v38, %v1912_v35  ;;  %v1913_v6 = vadd.f32 %v8262_v23, %v1664_v4  ;;  %2441 = vmatprep.mubr.f32.mxu0 %v6601_v30  ;;  %2746 = vmatprep.mubr.f32.mxu1 %v6601_v30  ;;  %v6616_v8 = vmax.f32 %v2003_v53, 0.0  ;;  %v5182_v53 = vld [vmem:[#allocation3 + $0x400] sm:$0xff] }
 0x28a   :  { %v1666_v25 = vpop.f32.mrf.mxu1  ;;  %2442 = vmatmul.mubr.f32.gmra.mxu0 %v6603_v33  ;;  %2747 = vmatmul.mubr.f32.gmra.mxu1 %v6603_v33  ;;  %v8266_v23 = vld [vmem:[#allocation9_spill] sm:$0xff] }
 0x28b   :  { %v1914_v37 = vadd.f32 %v1834_v62, %v1666_v25  ;;  %v6614_v61 = vmax.f32 %v2004_v29, 0.0  ;;  %2932 = vmatpush1.msra.mxu0 %v5180_v18  ;;  %v2005_v15 = vadd.f32 %v6407_v41, %v1913_v6  ;;  %v1838_v62 = vadd.f32 %v6282_v49, %v8265_v9  ;;  %v8268_v9 = vld [vmem:[#allocation11_spill] sm:$0xff] }
 0x28c   :  { %v1670_v50 = vpop.f32.mrf.mxu1  ;;  %2933 = vmatprep.subr.mxu0 %v5181_v22 }
 0x28d   :  { %v2006_v63 = vadd.f32 %v6412_v38, %v1914_v37  ;;  %v1915_v13 = vadd.f32 %v8264_v26, %v1670_v50  ;;  %2447 = vmatprep.mubr.f32.mxu0 %v6614_v61  ;;  %2752 = vmatprep.mubr.f32.mxu1 %v6614_v61  ;;  %v6629_v4 = vmax.f32 %v2005_v15, 0.0  ;;  %v5184_v15 = vld [vmem:[#allocation3 + $0x5f0] sm:$0xff] }
 0x28e   :  { %v1672_v47 = vpop.f32.mrf.mxu1  ;;  %2448 = vmatmul.mubr.f32.gmra.mxu0 %v6616_v8  ;;  %2753 = vmatmul.mubr.f32.gmra.mxu1 %v6616_v8 }
 0x28f   :  { %v1916_v35 = vadd.f32 %v1836_v44, %v1672_v47  ;;  %v6627_v16 = vmax.f32 %v2006_v63, 0.0  ;;  %2934 = vmatpush1.msra.mxu0 %v5182_v53  ;;  %v2007_v3 = vadd.f32 %v6407_v41, %v1915_v13  ;;  %v8267_v44 = vld [vmem:[#allocation10_spill] sm:$0xff] }
 0x290   :  { %v1676_v51 = vpop.f32.mrf.mxu1  ;;  %2935 = vmatprep.subr.mxu0 %v5183_v34  ;;  %v1840_v63 = vadd.f32 %v6290_v5, %v8267_v44 }
 0x291   :  { %v2008_v29 = vadd.f32 %v6412_v38, %v1916_v35  ;;  %v1917_v6 = vadd.f32 %v8266_v23, %v1676_v51  ;;  %2453 = vmatprep.mubr.f32.mxu0 %v6627_v16  ;;  %2758 = vmatprep.mubr.f32.mxu1 %v6627_v16  ;;  %v6642_v50 = vmax.f32 %v2007_v3, 0.0  ;;  %v5186_v3 = vld [vmem:[#allocation3 + $0x5e0] sm:$0xff] }
 0x292   :  { %v1678_v25 = vpop.f32.mrf.mxu1  ;;  %2454 = vmatmul.mubr.f32.gmra.mxu0 %v6629_v4  ;;  %2759 = vmatmul.mubr.f32.gmra.mxu1 %v6629_v4 }
 0x293   :  { %v1918_v37 = vadd.f32 %v1838_v62, %v1678_v25  ;;  %v6640_v18 = vmax.f32 %v2008_v29, 0.0  ;;  %2936 = vmatpush2.msra.mxu0 %v5184_v15  ;;  %v2009_v49 = vadd.f32 %v6407_v41, %v1917_v6  ;;  %v8269_v62 = vld [vmem:[#allocation41_spill] sm:$0xff]  ;;  %v8270_v6 = vld [vmem:[#allocation40_spill] sm:$0xff] }
 0x294   :  { %v1682_v22 = vpop.f32.mrf.mxu1  ;;  %2937 = vmatprep.subr.mxu0 %v5185_v40  ;;  %v1842_v29 = vadd.f32 %v8269_v62, %v8268_v9 }
 0x295   :  { %v2010_v26 = vadd.f32 %v6412_v38, %v1918_v37  ;;  %v1919_v13 = vadd.f32 %v6285_v14, %v1682_v22  ;;  %2459 = vmatprep.mubr.f32.mxu0 %v6640_v18  ;;  %2764 = vmatprep.mubr.f32.mxu1 %v6640_v18  ;;  %v6655_v51 = vmax.f32 %v2009_v49, 0.0  ;;  %v5187_v14 = vld [vmem:[#allocation3 + $0x5d8] sm:$0xff]  ;;  %v5188_v22 = vld [vmem:[#allocation3 + $0x5d0] sm:$0xff] }
 0x296   :  { %v1684_v47 = vpop.f32.mrf.mxu1  ;;  %2460 = vmatmul.mubr.f32.gmra.mxu0 %v6642_v50  ;;  %2765 = vmatmul.mubr.f32.gmra.mxu1 %v6642_v50 }
 0x297   :  { %v1920_v35 = vadd.f32 %v1840_v63, %v1684_v47  ;;  %v6653_v53 = vmax.f32 %v2010_v26, 0.0  ;;  %2938 = vmatpush2.msra.mxu0 %v5186_v3  ;;  %v2011_v5 = vadd.f32 %v6407_v41, %v1919_v13  ;;  %v5189_v26 = vld [vmem:[#allocation3 + $0x5c8] sm:$0xff]  ;;  %v8271_v13 = vld [vmem:[#allocation12_spill] sm:$0xff] }
 0x298   :  { %v1688_v34 = vpop.f32.mrf.mxu1  ;;  %2939 = vmatprep.subr.mxu0 %v5187_v14  ;;  %v8272_v47 = vld [vmem:[#allocation44_spill] sm:$0xff] }
 0x299   :  { %v2012_v23 = vadd.f32 %v6412_v38, %v1920_v35  ;;  %v1921_v25 = vadd.f32 %v8270_v6, %v1688_v34  ;;  %2465 = vmatprep.mubr.f32.mxu0 %v6653_v53  ;;  %2770 = vmatprep.mubr.f32.mxu1 %v6653_v53  ;;  %v6668_v40 = vmax.f32 %v2011_v5, 0.0  ;;  %v1844_v35 = vadd.f32 %v8272_v47, %v8271_v13  ;;  %v8273_v34 = vld [vmem:[#allocation42_spill] sm:$0xff]  ;;  %v8276_v13 = vld [vmem:[#allocation45_spill] sm:$0xff] }
 0x29a   :  { %v1690_v37 = vpop.f32.mrf.mxu1  ;;  %2466 = vmatmul.mubr.f32.gmra.mxu0 %v6655_v51  ;;  %2771 = vmatmul.mubr.f32.gmra.mxu1 %v6655_v51 }
 0x29b   :  { %v1922_v15 = vadd.f32 %v1842_v29, %v1690_v37  ;;  %v6666_v49 = vmax.f32 %v2012_v23, 0.0  ;;  %2940 = vmatpush2.msra.mxu0 %v5188_v22  ;;  %v2013_v44 = vadd.f32 %v6407_v41, %v1921_v25  ;;  %v5190_v29 = vld [vmem:[#allocation3 + $0x5c0] sm:$0xff]  ;;  %v5191_v37 = vld [vmem:[#allocation3 + $0x5b8] sm:$0xff]  ;;  %v8275_v22 = vld [vmem:[#allocation46_spill] sm:$0xff] }
 0x29c   :  { %v1694_v63 = vpop.f32.mrf.mxu1  ;;  %2941 = vmatprep.subr.mxu0 %v5189_v26 }
 0x29d   :  { %v2014_v3 = vadd.f32 %v6412_v38, %v1922_v15  ;;  %v1923_v14 = vadd.f32 %v8273_v34, %v1694_v63  ;;  %2471 = vmatprep.mubr.f32.mxu0 %v6666_v49  ;;  %2776 = vmatprep.mubr.f32.mxu1 %v6666_v49  ;;  %v6681_v23 = vmax.f32 %v2013_v44, 0.0  ;;  %v8274_v15 = vld [vmem:[#allocation43_spill] sm:$0xff]  ;;  %v3543_v44 = vld [vmem:[%s8059_s4 + $0x78] sm:$0xff] }
 0x29e   :  { %v1696_v9 = vpop.f32.mrf.mxu1  ;;  %2472 = vmatmul.mubr.f32.gmra.mxu0 %v6668_v40  ;;  %2777 = vmatmul.mubr.f32.gmra.mxu1 %v6668_v40  ;;  %v1846_v63 = vadd.f32 %v8275_v22, %v8274_v15  ;;  %v8278_v15 = vld [vmem:[#allocation13_spill] sm:$0xff]  ;;  %v8279_v22 = vld [vmem:[#allocation48_spill] sm:$0xff] }
 0x29f   :  { %v1924_v5 = vadd.f32 %v1844_v35, %v1696_v9  ;;  %v6679_v62 = vmax.f32 %v2014_v3, 0.0  ;;  %2942 = vmatpush2.msra.mxu0 %v5190_v29  ;;  %v2015_v6 = vadd.f32 %v6407_v41, %v1923_v14  ;;  %v5192_v14 = vld [vmem:[#allocation3 + $0x5b0] sm:$0xff]  ;;  %3561 = vmatpush1.msra.mxu1 %v3543_v44 }
 0x2a0   :  { %v1700_v25 = vpop.f32.mrf.mxu1  ;;  %2943 = vmatprep.subr.mxu0 %v5191_v37  ;;  %v8277_v37 = vmov 0.0  }
 0x2a1   :  { %v2016_v26 = vadd.f32 %v6412_v38, %v1924_v5  ;;  %v1925_v47 = vadd.f32 %v8276_v13, %v1700_v25  ;;  %2477 = vmatprep.mubr.f32.mxu0 %v6679_v62  ;;  %2782 = vmatprep.mubr.f32.mxu1 %v6679_v62  ;;  %v6697_v9 = vmax.f32 %v2015_v6, 0.0  ;;  %v5193_v25 = vld [vmem:[#allocation3 + $0x5a8] sm:$0xff]  ;;  %v1848_v13 = vadd.f32 %v8279_v22, %v8278_v15  ;;  %v3542_v6 = vld [vmem:[%s8059_s4 + $0x70] sm:$0xff]  ;;  %v5195_v15 = vld [vmem:[#allocation3 + $0x598] sm:$0xff] }
 0x2a2   :  { %v1702_v35 = vpop.f32.mrf.mxu1  ;;  %2478 = vmatmul.mubr.f32.gmra.mxu0 %v6681_v23  ;;  %2783 = vmatmul.mubr.f32.gmra.mxu1 %v6681_v23  ;;  %v8283_v22 = vld [vmem:[#allocation14_spill] sm:$0xff] }
 0x2a3   :  { %v1926_v3 = vadd.f32 %v1846_v63, %v1702_v35  ;;  %v6695_v34 = vmax.f32 %v2016_v26, 0.0  ;;  %2944 = vmatpush2.msra.mxu0 %v5192_v14  ;;  %v2017_v5 = vadd.f32 %v6407_v41, %v1925_v47  ;;  %3562 = vmatprep.subr.mxu1 %v8277_v37  ;;  %v8280_v63 = vld [vmem:[#allocation47_spill] sm:$0xff]  ;;  %v5194_v14 = vld [vmem:[#allocation3 + $0x5a0] sm:$0xff] }
 0x2a4   :  { %v1706_v29 = vpop.f32.mrf.mxu1  ;;  %2945 = vmatprep.subr.mxu0 %v5193_v25  ;;  %3563 = vmatpush1.msra.mxu1 %v3542_v6 }
 0x2a5   :  { %v2018_v55 = vadd.f32 %v6412_v38, %v1926_v3  ;;  %v1927_v26 = vadd.f32 %v8280_v63, %v1706_v29  ;;  %2483 = vmatprep.mubr.f32.mxu0 %v6695_v34  ;;  %2788 = vmatprep.mubr.f32.mxu1 %v6695_v34  ;;  %v6714_v3 = vmax.f32 %v2017_v5, 0.0  ;;  %v8284_v63 = vld [vmem:[#allocation49_spill] sm:$0xff] }
 0x2a6   :  { %v1708_v47 = vpop.f32.mrf.mxu1  ;;  %2484 = vmatmul.mubr.f32.gmra.mxu0 %v6697_v9  ;;  %2789 = vmatmul.mubr.f32.gmra.mxu1 %v6697_v9  ;;  %v1850_v56 = vadd.f32 %v8284_v63, %v8283_v22  ;;  %v5197_v22 = vld [vmem:[#allocation3 + $0x588] sm:$0xff]  ;;  %v8288_v63 = vld [vmem:[#allocation16_spill] sm:$0xff] }
 0x2a7   :  { %v1928_v44 = vadd.f32 %v1848_v13, %v1708_v47  ;;  %v6712_v35 = vmax.f32 %v2018_v55, 0.0  ;;  %2946 = vmatpush2.msra.mxu0 %v5194_v14  ;;  %8282 = vst [vmem:[#allocation32_spill] sm:$0xff] %v6714_v3  ;;  %v2019_v29 = vadd.f32 %v6407_v41, %v1927_v26  ;;  %3564 = vmatprep.subr.mxu1 %v8277_v37  ;;  %v8285_v13 = vld [vmem:[#allocation15_spill] sm:$0xff] }
 0x2a8   :  { %v1712_v25 = vpop.f32.mrf.mxu1  ;;  %2947 = vmatprep.subr.mxu0 %v5195_v15  ;;  %v5196_v47 = vld [vmem:[#allocation3 + $0x590] sm:$0xff] }
 0x2a9   :  { %8281 = vst [vmem:[#allocation20_spill] sm:$0xff] %v6712_v35  ;;  %v2020_v52 = vadd.f32 %v6412_v38, %v1928_v44  ;;  %v1929_v55 = vadd.f32 %v8285_v13, %v1712_v25  ;;  %2489 = vmatprep.mubr.f32.mxu0 %v6712_v35  ;;  %2794 = vmatprep.mubr.f32.mxu1 %v6712_v35  ;;  %v3541_v44 = vld [vmem:[%s8059_s4 + $0x68] sm:$0xff]  ;;  %v6731_v14 = vmax.f32 %v2019_v29, 0.0 }
 0x2aa   :  { %v1714_v5 = vpop.f32.mrf.mxu1  ;;  %2490 = vmatmul.mubr.f32.gmra.mxu0 %v6714_v3  ;;  %2795 = vmatmul.mubr.f32.gmra.mxu1 %v6714_v3  ;;  %v8289_v13 = vld [vmem:[#allocation50_spill] sm:$0xff] }
 0x2ab   :  { %v1930_v26 = vadd.f32 %v1850_v56, %v1714_v5  ;;  %v6726_v6 = vmax.f32 %v2020_v52, 0.0  ;;  %2948 = vmatpush2.msra.mxu0 %v5196_v47  ;;  %8287 = vst [vmem:[#allocation33_spill] sm:$0xff] %v6731_v14  ;;  %v2021_v25 = vadd.f32 %v6407_v41, %v1929_v55  ;;  %3565 = vmatpush1.msra.mxu1 %v3541_v44  ;;  %v8290_v56 = vld [vmem:[#allocation17_spill] sm:$0xff] }
 0x2ac   :  { %v1718_v15 = vpop.f32.mrf.mxu1  ;;  %2949 = vmatprep.subr.mxu0 %v5197_v22  ;;  %v1852_v3 = vadd.f32 %v8289_v13, %v8288_v63  ;;  %v5198_v44 = vld [vmem:[#allocation3 + $0x580] sm:$0xff]  ;;  %3566 = vmatprep.subr.mxu1 %v8277_v37  ;;  %v5199_v13 = vld [vmem:[#allocation3 + $0x578] sm:$0xff] }
 0x2ad   :  { %8286 = vst [vmem:[#allocation35_spill] sm:$0xff] %v6726_v6  ;;  %v2022_v52 = vadd.f32 %v6412_v38, %v1930_v26  ;;  %v1931_v5 = vadd.f32 %v8290_v56, %v1718_v15  ;;  %2495 = vmatprep.mubr.f32.mxu0 %v6726_v6  ;;  %2800 = vmatprep.mubr.f32.mxu1 %v6726_v6  ;;  %v3540_v26 = vld [vmem:[%s8059_s4 + $0x60] sm:$0xff]  ;;  %v6748_v15 = vmax.f32 %v2021_v25, 0.0  ;;  %v8293_v56 = vld [vmem:[#allocation18_spill] sm:$0xff] }
 0x2ae   :  { %v1720_v47 = vpop.f32.mrf.mxu1  ;;  %2496 = vmatmul.mubr.f32.gmra.mxu0 %v6731_v14  ;;  %2801 = vmatmul.mubr.f32.gmra.mxu1 %v6731_v14 }
 0x2af   :  { %v1932_v29 = vadd.f32 %v1852_v3, %v1720_v47  ;;  %v6742_v55 = vmax.f32 %v2022_v52, 0.0  ;;  %2950 = vmatpush2.msra.mxu0 %v5198_v44  ;;  %8292 = vst [vmem:[#allocation38_spill] sm:$0xff] %v6748_v15  ;;  %v2023_v22 = vadd.f32 %v6407_v41, %v1931_v5  ;;  %3567 = vmatpush1.msra.mxu1 %v3540_v26  ;;  %v8294_v3 = vld [vmem:[#allocation51_spill] sm:$0xff] }
 0x2b0   :  { %v1724_v63 = vpop.f32.mrf.mxu1  ;;  %2951 = vmatprep.subr.mxu0 %v5199_v13  ;;  %v1854_v52 = vadd.f32 %v8294_v3, %v8293_v56  ;;  %v8295_v44 = vld [vmem:[#allocation19_spill] sm:$0xff]  ;;  %3568 = vmatprep.subr.mxu1 %v8277_v37  ;;  %v5201_v56 = vld [vmem:[#allocation3 + $0x568] sm:$0xff]  ;;  %v8298_v3 = vld [vmem:[#allocation25_spill] sm:$0xff] }
 0x2b1   :  { %8291 = vst [vmem:[#allocation34_spill] sm:$0xff] %v6742_v55  ;;  %v2024_v47 = vadd.f32 %v6412_v38, %v1932_v29  ;;  %v1933_v14 = vadd.f32 %v8295_v44, %v1724_v63  ;;  %2501 = vmatprep.mubr.f32.mxu0 %v6742_v55  ;;  %2806 = vmatprep.mubr.f32.mxu1 %v6742_v55  ;;  %v5200_v26 = vld [vmem:[#allocation3 + $0x570] sm:$0xff]  ;;  %v6762_v13 = vmax.f32 %v2023_v22, 0.0  ;;  %v8299_v44 = vld [vmem:[#allocation52_spill] sm:$0xff] }
 0x2b2   :  { %v1726_v6 = vpop.f32.mrf.mxu1  ;;  %2502 = vmatmul.mubr.f32.gmra.mxu0 %v6748_v15  ;;  %2807 = vmatmul.mubr.f32.gmra.mxu1 %v6748_v15  ;;  %v1856_v55 = vadd.f32 %v8299_v44, %v8298_v3  ;;  %v8300_v15 = vld [vmem:[#allocation26_spill] sm:$0xff]  ;;  %v3539_v22 = vld [vmem:[%s8059_s4 + $0x58] sm:$0xff]  ;;  %v8303_v3 = vld [vmem:[#allocation27_spill] sm:$0xff] }
 0x2b3   :  { %v1934_v25 = vadd.f32 %v1854_v52, %v1726_v6  ;;  %v6759_v5 = vmax.f32 %v2024_v47, 0.0  ;;  %2952 = vmatpush2.msra.mxu0 %v5200_v26  ;;  %8297 = vst [vmem:[#allocation37_spill] sm:$0xff] %v6762_v13  ;;  %v2025_v29 = vadd.f32 %v6407_v41, %v1933_v14  ;;  %v5202_v26 = vld [vmem:[#allocation3 + $0x560] sm:$0xff]  ;;  %3569 = vmatpush1.msra.mxu1 %v3539_v22  ;;  %v8304_v44 = vld [vmem:[#allocation54_spill] sm:$0xff] }
 0x2b4   :  { %v1730_v63 = vpop.f32.mrf.mxu1  ;;  %2953 = vmatprep.subr.mxu0 %v5201_v56  ;;  %v5203_v56 = vld [vmem:[#allocation3 + $0x558] sm:$0xff]  ;;  %3570 = vmatprep.subr.mxu1 %v8277_v37 }
 0x2b5   :  { %8296 = vst [vmem:[#allocation36_spill] sm:$0xff] %v6759_v5  ;;  %v2026_v35 = vadd.f32 %v6412_v38, %v1934_v25  ;;  %v1935_v6 = vadd.f32 %v8300_v15, %v1730_v63  ;;  %2507 = vmatprep.mubr.f32.mxu0 %v6759_v5  ;;  %2812 = vmatprep.mubr.f32.mxu1 %v6759_v5  ;;  %v6778_v15 = vmax.f32 %v2025_v29, 0.0  ;;  %v3538_v29 = vld [vmem:[%s8059_s4 + $0x50] sm:$0xff] }
 0x2b6   :  { %v1732_v52 = vpop.f32.mrf.mxu1  ;;  %2508 = vmatmul.mubr.f32.gmra.mxu0 %v6762_v13  ;;  %2813 = vmatmul.mubr.f32.gmra.mxu1 %v6762_v13  ;;  %v1858_v5 = vadd.f32 %v8304_v44, %v8303_v3  ;;  %v5205_v3 = vld [vmem:[#allocation3 + $0x548] sm:$0xff]  ;;  %v8308_v44 = vld [vmem:[#allocation28_spill] sm:$0xff] }
 0x2b7   :  { %v1936_v14 = vadd.f32 %v1856_v55, %v1732_v52  ;;  %v6776_v47 = vmax.f32 %v2026_v35, 0.0  ;;  %2954 = vmatpush2.msra.mxu0 %v5202_v26  ;;  %8302 = vst [vmem:[#allocation21_spill] sm:$0xff] %v6778_v15  ;;  %v2027_v25 = vadd.f32 %v6407_v41, %v1935_v6  ;;  %v8305_v55 = vld [vmem:[#allocation53_spill] sm:$0xff]  ;;  %v5204_v26 = vld [vmem:[#allocation3 + $0x550] sm:$0xff]  ;;  %3571 = vmatpush1.msra.mxu1 %v3538_v29 }
 0x2b8   :  { %v1736_v63 = vpop.f32.mrf.mxu1  ;;  %2955 = vmatprep.subr.mxu0 %v5203_v56  ;;  %3572 = vmatprep.subr.mxu1 %v8277_v37 }
 0x2b9   :  { %8301 = vst [vmem:[#allocation39_spill] sm:$0xff] %v6776_v47  ;;  %v2028_v13 = vadd.f32 %v6412_v38, %v1936_v14  ;;  %v1937_v35 = vadd.f32 %v8305_v55, %v1736_v63  ;;  %2513 = vmatprep.mubr.f32.mxu0 %v6776_v47  ;;  %2818 = vmatprep.mubr.f32.mxu1 %v6776_v47  ;;  %v6795_v14 = vmax.f32 %v2027_v25, 0.0  ;;  %v8309_v55 = vld [vmem:[#allocation57_spill] sm:$0xff] }
 0x2ba   :  { %v1738_v6 = vpop.f32.mrf.mxu1  ;;  %2514 = vmatmul.mubr.f32.gmra.mxu0 %v6778_v15  ;;  %2819 = vmatmul.mubr.f32.gmra.mxu1 %v6778_v15  ;;  %v1860_v47 = vadd.f32 %v8309_v55, %v8308_v44  ;;  %v5207_v44 = vld [vmem:[#allocation3 + $0x538] sm:$0xff] }
 0x2bb   :  { %v1938_v22 = vadd.f32 %v1858_v5, %v1738_v6  ;;  %v6793_v52 = vmax.f32 %v2028_v13, 0.0  ;;  %2956 = vmatpush2.msra.mxu0 %v5204_v26  ;;  %8307 = vst [vmem:[#allocation23_spill] sm:$0xff] %v6795_v14  ;;  %v2029_v63 = vadd.f32 %v6407_v41, %v1937_v35  ;;  %v8310_v5 = vld [vmem:[#allocation55_spill] sm:$0xff]  ;;  %v5206_v6 = vld [vmem:[#allocation3 + $0x540] sm:$0xff]  ;;  %v8313_v55 = vld [vmem:[#allocation56_spill] sm:$0xff] }
 0x2bc   :  { %v1742_v56 = vpop.f32.mrf.mxu1  ;;  %2957 = vmatprep.subr.mxu0 %v5205_v3 }
 0x2bd   :  { %8306 = vst [vmem:[#allocation22_spill] sm:$0xff] %v6793_v52  ;;  %v2030_v15 = vadd.f32 %v6412_v38, %v1938_v22  ;;  %v1939_v13 = vadd.f32 %v8310_v5, %v1742_v56  ;;  %2519 = vmatprep.mubr.f32.mxu0 %v6793_v52  ;;  %2824 = vmatprep.mubr.f32.mxu1 %v6793_v52  ;;  %v3537_v22 = vld [vmem:[%s8059_s4 + $0x48] sm:$0xff]  ;;  %v6812_v26 = vmax.f32 %v2029_v63, 0.0 }
 0x2be   :  { %v1744_v25 = vpop.f32.mrf.mxu1  ;;  %2520 = vmatmul.mubr.f32.gmra.mxu0 %v6795_v14  ;;  %2825 = vmatmul.mubr.f32.gmra.mxu1 %v6795_v14  ;;  %v8314_v5 = vld [vmem:[#allocation58_spill] sm:$0xff] }
 0x2bf   :  { %v1940_v35 = vadd.f32 %v1860_v47, %v1744_v25  ;;  %v6807_v29 = vmax.f32 %v2030_v15, 0.0  ;;  %2958 = vmatpush2.msra.mxu0 %v5206_v6  ;;  %8312 = vst [vmem:[#allocation9_spill] sm:$0xff] %v6812_v26  ;;  %v2031_v56 = vadd.f32 %v6407_v41, %v1939_v13  ;;  %3573 = vmatpush1.msra.mxu1 %v3537_v22  ;;  %v8315_v15 = vld [vmem:[#allocation29_spill] sm:$0xff]  ;;  %v5208_v22 = vld [vmem:[#allocation3 + $0x530] sm:$0xff] }
 0x2c0   :  { %v1748_v3 = vpop.f32.mrf.mxu1  ;;  %2959 = vmatprep.subr.mxu0 %v5207_v44  ;;  %v1862_v14 = vadd.f32 %v8314_v5, %v8313_v55  ;;  %3574 = vmatprep.subr.mxu1 %v8277_v37  ;;  %v5209_v5 = vld [vmem:[#allocation3 + $0x528] sm:$0xff] }
 0x2c1   :  { %8311 = vst [vmem:[#allocation24_spill] sm:$0xff] %v6807_v29  ;;  %v2032_v47 = vadd.f32 %v6412_v38, %v1940_v35  ;;  %v1941_v25 = vadd.f32 %v8315_v15, %v1748_v3  ;;  %2525 = vmatprep.mubr.f32.mxu0 %v6807_v29  ;;  %2830 = vmatprep.mubr.f32.mxu1 %v6807_v29  ;;  %v3536_v35 = vld [vmem:[%s8059_s4 + $0x40] sm:$0xff]  ;;  %v6829_v3 = vmax.f32 %v2031_v56, 0.0  ;;  %v8318_v15 = vld [vmem:[#allocation30_spill] sm:$0xff] }
 0x2c2   :  { %v1750_v6 = vpop.f32.mrf.mxu1  ;;  %2526 = vmatmul.mubr.f32.gmra.mxu0 %v6812_v26  ;;  %2831 = vmatmul.mubr.f32.gmra.mxu1 %v6812_v26 }
 0x2c3   :  { %v1942_v63 = vadd.f32 %v1862_v14, %v1750_v6  ;;  %v6823_v13 = vmax.f32 %v2032_v47, 0.0  ;;  %2960 = vmatpush2.msra.mxu0 %v5208_v22  ;;  %8317 = vst [vmem:[#allocation11_spill] sm:$0xff] %v6829_v3  ;;  %v2033_v44 = vadd.f32 %v6407_v41, %v1941_v25  ;;  %3575 = vmatpush1.msra.mxu1 %v3536_v35  ;;  %v8319_v14 = vld [vmem:[#allocation60_spill] sm:$0xff]  ;;  %v8320_v22 = vld [vmem:[#allocation31_spill] sm:$0xff]  ;;  %v5210_v35 = vld [vmem:[#allocation3 + $0x520] sm:$0xff] }
 0x2c4   :  { %v1754_v55 = vpop.f32.mrf.mxu1  ;;  %2961 = vmatprep.subr.mxu0 %v5209_v5  ;;  %v1864_v47 = vadd.f32 %v8319_v14, %v8318_v15  ;;  %3576 = vmatprep.subr.mxu1 %v8277_v37  ;;  %v5211_v15 = vld [vmem:[#allocation3 + $0x518] sm:$0xff]  ;;  %v8323_v14 = vld [vmem:[#allocation59_spill] sm:$0xff] }
 0x2c5   :  { %8316 = vst [vmem:[#allocation10_spill] sm:$0xff] %v6823_v13  ;;  %v2034_v6 = vadd.f32 %v6412_v38, %v1942_v63  ;;  %v1943_v26 = vadd.f32 %v8320_v22, %v1754_v55  ;;  %2531 = vmatprep.mubr.f32.mxu0 %v6823_v13  ;;  %2836 = vmatprep.mubr.f32.mxu1 %v6823_v13  ;;  %v6843_v5 = vmax.f32 %v2033_v44, 0.0  ;;  %v8324_v22 = vld [vmem:[#allocation63_spill] sm:$0xff]  ;;  %v3535_v44 = vld [vmem:[%s8059_s4 + $0x38] sm:$0xff] }
 0x2c6   :  { %v1756_v29 = vpop.f32.mrf.mxu1  ;;  %2532 = vmatmul.mubr.f32.gmra.mxu0 %v6829_v3  ;;  %2837 = vmatmul.mubr.f32.gmra.mxu1 %v6829_v3  ;;  %v1866_v13 = vadd.f32 %v8324_v22, %v8323_v14  ;;  %v8325_v3 = vld [vmem:[#allocation61_spill] sm:$0xff]  ;;  %v8326_v14 = vld [vmem:[#allocation62_spill] sm:$0xff] }
 0x2c7   :  { %v1944_v56 = vadd.f32 %v1864_v47, %v1756_v29  ;;  %v6840_v25 = vmax.f32 %v2034_v6, 0.0  ;;  %2962 = vmatpush2.msra.mxu0 %v5210_v35  ;;  %8322 = vst [vmem:[#allocation40_spill] sm:$0xff] %v6843_v5  ;;  %v2035_v63 = vadd.f32 %v6407_v41, %v1943_v26  ;;  %v5212_v35 = vld [vmem:[#allocation3 + $0x510] sm:$0xff]  ;;  %3577 = vmatpush1.msra.mxu1 %v3535_v44  ;;  %v8327_v22 = vld [vmem:[#allocation65_spill] sm:$0xff] }
 0x2c8   :  { %v1760_v55 = vpop.f32.mrf.mxu1  ;;  %2963 = vmatprep.subr.mxu0 %v5211_v15  ;;  %v5213_v15 = vld [vmem:[#allocation3 + $0x508] sm:$0xff]  ;;  %3578 = vmatprep.subr.mxu1 %v8277_v37 }
 0x2c9   :  { %8321 = vst [vmem:[#allocation41_spill] sm:$0xff] %v6840_v25  ;;  %v2036_v52 = vadd.f32 %v6412_v38, %v1944_v56  ;;  %v1945_v29 = vadd.f32 %v8325_v3, %v1760_v55  ;;  %2537 = vmatprep.mubr.f32.mxu0 %v6840_v25  ;;  %2842 = vmatprep.mubr.f32.mxu1 %v6840_v25  ;;  %v6859_v3 = vmax.f32 %v2035_v63, 0.0  ;;  %v3534_v63 = vld [vmem:[%s8059_s4 + $0x30] sm:$0xff] }
 0x2ca   :  { %v1762_v47 = vpop.f32.mrf.mxu1  ;;  %2538 = vmatmul.mubr.f32.gmra.mxu0 %v6843_v5  ;;  %2843 = vmatmul.mubr.f32.gmra.mxu1 %v6843_v5  ;;  %v1868_v25 = vadd.f32 %v8327_v22, %v8326_v14 }
 0x2cb   :  { %v1946_v26 = vadd.f32 %v1866_v13, %v1762_v47  ;;  %v6857_v6 = vmax.f32 %v2036_v52, 0.0  ;;  %2964 = vmatpush2.msra.mxu0 %v5212_v35  ;;  %v2037_v56 = vadd.f32 %v6407_v41, %v1945_v29  ;;  %v8328_v13 = vld [vmem:[#allocation64_spill] sm:$0xff]  ;;  %v5214_v35 = vld [vmem:[#allocation3 + $0x500] sm:$0xff]  ;;  %3579 = vmatpush1.msra.mxu1 %v3534_v63 }
 0x2cc   :  { %v1766_v55 = vpop.f32.mrf.mxu1  ;;  %2965 = vmatprep.subr.mxu0 %v5213_v15  ;;  %3580 = vmatprep.subr.mxu1 %v8277_v37  ;;  %v3532_v63 = vld [vmem:[%s8059_s4 + $0x20] sm:$0xff] }
 0x2cd   :  { %v2038_v5 = vadd.f32 %v6412_v38, %v1946_v26  ;;  %v1947_v52 = vadd.f32 %v8328_v13, %v1766_v55  ;;  %2543 = vmatprep.mubr.f32.mxu0 %v6857_v6  ;;  %2848 = vmatprep.mubr.f32.mxu1 %v6857_v6  ;;  %v6876_v26 = vmax.f32 %v2037_v56, 0.0 }
 0x2ce   :  { %v1768_v29 = vpop.f32.mrf.mxu1  ;;  %2544 = vmatmul.mubr.f32.gmra.mxu0 %v6859_v3  ;;  %2849 = vmatmul.mubr.f32.gmra.mxu1 %v6859_v3 }
 0x2cf   :  { %v1948_v44 = vadd.f32 %v1868_v25, %v1768_v29  ;;  %v6874_v47 = vmax.f32 %v2038_v5, 0.0  ;;  %2966 = vmatpush2.msra.mxu0 %v5214_v35  ;;  %v2039_v55 = vadd.f32 %v6407_v41, %v1947_v52  ;;  %v3533_v5 = vld [vmem:[%s8059_s4 + $0x28] sm:$0xff] }
 0x2d0   :  { %v1772_v15 = vpop.f32.mrf.mxu1  ;;  %3581 = vmatpush1.msra.mxu1 %v3533_v5 }
 0x2d1   :  { %v2040_v14 = vadd.f32 %v6412_v38, %v1948_v44  ;;  %2549 = vmatprep.mubr.f32.mxu0 %v6874_v47  ;;  %2854 = vmatprep.mubr.f32.mxu1 %v6874_v47  ;;  %v6890_v56 = vmax.f32 %v2039_v55, 0.0  ;;  %v3531_v55 = vld [vmem:[%s8059_s4 + $0x18] sm:$0xff] }
 0x2d2   :  { %v1774_v22 = vpop.f32.mrf.mxu1  ;;  %2550 = vmatmul.mubr.f32.gmra.mxu0 %v6876_v26  ;;  %2855 = vmatmul.mubr.f32.gmra.mxu1 %v6876_v26 }
 0x2d3   :  { %v6885_v25 = vmax.f32 %v2040_v14, 0.0  ;;  %3582 = vmatprep.subr.mxu1 %v8277_v37  ;;  %v3530_v22 = vld [vmem:[%s8059_s4 + $0x10] sm:$0xff] }
 0x2d4   :  { %v1778_v13 = vpop.f32.mrf.mxu1  ;;  %3583 = vmatpush1.msra.mxu1 %v3532_v63  ;;  %v3559_v63 = vld [vmem:[%s8059_s4 + $0xf8] sm:$0xff] }
 0x2d5   :  { %2555 = vmatprep.mubr.f32.mxu0 %v6885_v25  ;;  %2860 = vmatprep.mubr.f32.mxu1 %v6885_v25  ;;  %v3529_v13 = vld [vmem:[%s8059_s4 + $0x8] sm:$0xff] }
 0x2d6   :  { %v1780_v52 = vpop.f32.mrf.mxu1  ;;  %2556 = vmatmul.mubr.f32.gmra.mxu0 %v6890_v56  ;;  %2861 = vmatmul.mubr.f32.gmra.mxu1 %v6890_v56 }
 0x2d7   :  { %2561 = vmatprep.mubr.f32.mxu0 %v8277_v37  ;;  %2866 = vmatprep.mubr.f32.mxu1 %v8277_v37  ;;  %v3528_v52 = vld [vmem:[%s8059_s4] sm:$0xff] }
 0x2d8   :  { %v1784_v29 = vpop.f32.mrf.mxu1  ;;  %3584 = vmatprep.subr.mxu1 %v8277_v37 }
 0x2d9   :  { %3585 = vmatpush1.msra.mxu1 %v3531_v55  ;;  %v3558_v29 = vld [vmem:[%s8059_s4 + $0xf0] sm:$0xff] }
 0x2da   :  { %v1786_v44 = vpop.f32.mrf.mxu1  ;;  %2562 = vmatmul.mubr.f32.gmra.mxu0 %v8277_v37  ;;  %2867 = vmatmul.mubr.f32.gmra.mxu1 %v8277_v37 }
 0x2db   :  { %2567 = vmatprep.mubr.f32.mxu0 %v8277_v37  ;;  %2872 = vmatprep.mubr.f32.mxu1 %v8277_v37 }
 0x2dc   :  { %v1790_v35 = vpop.f32.mrf.mxu1  ;;  %3586 = vmatprep.subr.mxu1 %v8277_v37 }
 0x2dd   :  { %3587 = vmatpush1.msra.mxu1 %v3530_v22 }
 0x2de   :  { %v1792_v15 = vpop.f32.mrf.mxu1  ;;  %2568 = vmatmul.mubr.f32.gmra.mxu0 %v8277_v37  ;;  %2873 = vmatmul.mubr.f32.gmra.mxu1 %v8277_v37 }
 0x2df   :  { %2573 = vmatprep.mubr.f32.mxu0 %v8277_v37  ;;  %2878 = vmatprep.mubr.f32.mxu1 %v8277_v37 }
 0x2e0   :  { %v1796_v14 = vpop.f32.mrf.mxu1  ;;  %3588 = vmatprep.subr.mxu1 %v8277_v37 }
 0x2e1   :  { %3589 = vmatpush1.msra.mxu1 %v3529_v13 }
 0x2e2   :  { %v1798_v5 = vpop.f32.mrf.mxu1  ;;  %2574 = vmatmul.mubr.f32.gmra.mxu0 %v8277_v37  ;;  %2879 = vmatmul.mubr.f32.gmra.mxu1 %v8277_v37 }
 0x2e3   :  { %2579 = vmatprep.mubr.f32.mxu0 %v8277_v37  ;;  %2884 = vmatprep.mubr.f32.mxu1 %v8277_v37 }
 0x2e4   :  { %3590 = vmatprep.subr.mxu1 %v8277_v37 }
 0x2e5   :  { %3591 = vmatpush1.msra.mxu1 %v3528_v52 }
 0x2e6   :  { %2580 = vmatmul.mubr.f32.gmra.mxu0 %v8277_v37  ;;  %2885 = vmatmul.mubr.f32.gmra.mxu1 %v8277_v37 }
 0x2e7   :  { %2585 = vmatprep.mubr.f32.mxu0 %v8277_v37  ;;  %2890 = vmatprep.mubr.f32.mxu1 %v8277_v37 }
 0x2e8   :  { %3592 = vmatprep.subr.mxu1 %v8277_v37 }
 0x2e9   :  { %3593 = vmatpush2.msra.mxu1 %v3559_v63  ;;  %v3547_v63 = vld [vmem:[%s8059_s4 + $0x98] sm:$0xff] }
 0x2ea   :  { %2586 = vmatmul.mubr.f32.gmra.mxu0 %v8277_v37  ;;  %2891 = vmatmul.mubr.f32.gmra.mxu1 %v8277_v37 }
 0x2eb   :  { %2591 = vmatprep.mubr.f32.mxu0 %v8277_v37  ;;  %2896 = vmatprep.mubr.f32.mxu1 %v8277_v37 }
 0x2ec   :  { %3594 = vmatprep.subr.mxu1 %v8277_v37 }
 0x2ed   :  { %3595 = vmatpush2.msra.mxu1 %v3558_v29 }
 0x2ee   :  { %2592 = vmatmul.mubr.f32.gmra.mxu0 %v8277_v37  ;;  %2897 = vmatmul.mubr.f32.gmra.mxu1 %v8277_v37 }
 0x2ef   :  { %2967 = vmatprep.mubr.f32.mxu0 %v6419_v28  ;;  %3596 = vmatprep.subr.mxu1 %v8277_v37  ;;  %v3557_v28 = vld [vmem:[%s8059_s4 + $0xe8] sm:$0xff] }
 0x2f0   :  { %3597 = vmatpush2.msra.mxu1 %v3557_v28 }
 0x2f1   :  { %3598 = vmatprep.subr.mxu1 %v8277_v37 }
 0x2f2   :  { %2968 = vmatmul.mubr.f32.vlgmr.msra.gmra.mxu0 %v6421_v46  ;;  %v3556_v46 = vld [vmem:[%s8059_s4 + $0xe0] sm:$0xff] }
 0x2f3   :  { %2973 = vmatprep.mubr.f32.mxu0 %v6432_v7  ;;  %3599 = vmatpush2.msra.mxu1 %v3556_v46  ;;  %v3555_v7 = vld [vmem:[%s8059_s4 + $0xd8] sm:$0xff]  ;;  %v3546_v46 = vld [vmem:[%s8059_s4 + $0x90] sm:$0xff] }
 0x2f4   :  { %3600 = vmatprep.subr.mxu1 %v8277_v37 }
 0x2f5   :  { %3601 = vmatpush2.msra.mxu1 %v3555_v7 }
 0x2f6   :  { %2974 = vmatmul.mubr.f32.gmra.mxu0 %v6434_v54  ;;  %3602 = vmatprep.subr.mxu1 %v8277_v37  ;;  %v3554_v54 = vld [vmem:[%s8059_s4 + $0xd0] sm:$0xff] }
 0x2f7   :  { %2979 = vmatprep.mubr.f32.mxu0 %v6445_v43  ;;  %3603 = vmatpush2.msra.mxu1 %v3554_v54  ;;  %v3553_v43 = vld [vmem:[%s8059_s4 + $0xc8] sm:$0xff] }
 0x2f8   :  { %3604 = vmatprep.subr.mxu1 %v8277_v37 }
 0x2f9   :  { %3605 = vmatpush2.msra.mxu1 %v3553_v43 }
 0x2fa   :  { %2980 = vmatmul.mubr.f32.gmra.mxu0 %v6447_v1  ;;  %3606 = vmatprep.subr.mxu1 %v8277_v37 }
 0x2fb   :  { %2985 = vmatprep.mubr.f32.mxu0 %v6458_v17 }
 0x2fe   :  { %2986 = vmatmul.mubr.f32.gmra.mxu0 %v6460_v59  ;;  %v3552_v59 = vld [vmem:[%s8059_s4 + $0xc0] sm:$0xff] }
 0x2ff   :  { %2991 = vmatprep.mubr.f32.mxu0 %v6471_v27  ;;  %3607 = vmatpush2.msra.mxu1 %v3552_v59 }
 0x300   :  { %3608 = vmatprep.subr.mxu1 %v8277_v37 }
 0x302   :  { %2992 = vmatmul.mubr.f32.gmra.mxu0 %v6473_v32 }
 0x303   :  { %2997 = vmatprep.mubr.f32.mxu0 %v6484_v20 }
 0x306   :  { %2998 = vmatmul.mubr.f32.gmra.mxu0 %v6486_v60 }
 0x307   :  { %3003 = vmatprep.mubr.f32.mxu0 %v6497_v10 }
 0x30a   :  { %3004 = vmatmul.mubr.f32.gmra.mxu0 %v6499_v36 }
 0x30b   :  { %3009 = vmatprep.mubr.f32.mxu0 %v6510_v48  ;;  %v3551_v48 = vld [vmem:[%s8059_s4 + $0xb8] sm:$0xff] }
 0x30c   :  { %3609 = vmatpush2.msra.mxu1 %v3551_v48 }
 0x30d   :  { %3610 = vmatprep.subr.mxu1 %v8277_v37 }
 0x30e   :  { %3010 = vmatmul.mubr.f32.gmra.mxu0 %v6512_v21 }
 0x30f   :  { %3015 = vmatprep.mubr.f32.mxu0 %v6523_v12 }
 0x312   :  { %v6986_v1 = vpop.f32.mrf.mxu0  ;;  %v6988_v17 = vpop.f32.mrf.mxu1  ;;  %3016 = vmatmul.mubr.f32.gmra.mxu0 %v6525_v24 }
 0x313   :  { %3021 = vmatprep.mubr.f32.mxu0 %v6536_v0 }
 0x314   :  { %v6995_v27 = vpop.f32.mrf.mxu0  ;;  %v6997_v32 = vpop.f32.mrf.mxu1 }
 0x316   :  { %v7000_v20 = vpop.f32.mrf.mxu0  ;;  %v7002_v60 = vpop.f32.mrf.mxu1  ;;  %3022 = vmatmul.mubr.f32.gmra.mxu0 %v6538_v39  ;;  %v3550_v39 = vld [vmem:[%s8059_s4 + $0xb0] sm:$0xff] }
 0x317   :  { %3027 = vmatprep.mubr.f32.mxu0 %v6549_v11  ;;  %3611 = vmatpush2.msra.mxu1 %v3550_v39 }
 0x318   :  { %v7006_v10 = vpop.f32.mrf.mxu0  ;;  %v7008_v36 = vpop.f32.mrf.mxu1  ;;  %3612 = vmatprep.subr.mxu1 %v8277_v37 }
 0x31a   :  { %v7013_v21 = vpop.f32.mrf.mxu0  ;;  %v7015_v12 = vpop.f32.mrf.mxu1  ;;  %3028 = vmatmul.mubr.f32.gmra.mxu0 %v6551_v58 }
 0x31b   :  { %3033 = vmatprep.mubr.f32.mxu0 %v6562_v57 }
 0x31c   :  { %v7020_v24 = vpop.f32.mrf.mxu0  ;;  %v7022_v0 = vpop.f32.mrf.mxu1 }
 0x31e   :  { %v7027_v11 = vpop.f32.mrf.mxu0  ;;  %v7029_v44 = vpop.f32.mrf.mxu1  ;;  %3034 = vmatmul.mubr.f32.gmra.mxu0 %v6564_v2  ;;  %v3549_v2 = vld [vmem:[%s8059_s4 + $0xa8] sm:$0xff] }
 0x31f   :  { %3039 = vmatprep.mubr.f32.mxu0 %v6575_v19  ;;  %3613 = vmatpush2.msra.mxu1 %v3549_v2  ;;  %v3545_v2 = vld [vmem:[%s8059_s4 + $0x88] sm:$0xff] }
 0x320   :  { %v7034_v58 = vpop.f32.mrf.mxu0  ;;  %v7036_v57 = vpop.f32.mrf.mxu1  ;;  %3614 = vmatprep.subr.mxu1 %v8277_v37 }
 0x322   :  { %v7038_v35 = vpop.f32.mrf.mxu0  ;;  %v7040_v55 = vpop.f32.mrf.mxu1  ;;  %3040 = vmatmul.mubr.f32.gmra.mxu0 %v6577_v31  ;;  %v3548_v31 = vld [vmem:[%s8059_s4 + $0xa0] sm:$0xff] }
 0x323   :  { %3045 = vmatprep.mubr.f32.mxu0 %v6588_v45  ;;  %3615 = vmatpush2.msra.mxu1 %v3548_v31 }
 0x324   :  { %v7047_v15 = vpop.f32.mrf.mxu0  ;;  %v7049_v19 = vpop.f32.mrf.mxu1  ;;  %3616 = vmatprep.subr.mxu1 %v8277_v37 }
 0x325   :  { %3617 = vmatpush2.msra.mxu1 %v3547_v63 }
 0x326   :  { %v7052_v14 = vpop.f32.mrf.mxu0  ;;  %v7054_v22 = vpop.f32.mrf.mxu1  ;;  %3046 = vmatmul.mubr.f32.gmra.mxu0 %v6590_v42  ;;  %3618 = vmatprep.subr.mxu1 %v8277_v37 }
 0x327   :  { %3051 = vmatprep.mubr.f32.mxu0 %v6601_v30  ;;  %3619 = vmatpush2.msra.mxu1 %v3546_v46 }
 0x328   :  { %v7061_v45 = vpop.f32.mrf.mxu0  ;;  %v7063_v5 = vpop.f32.mrf.mxu1  ;;  %3620 = vmatprep.subr.mxu1 %v8277_v37 }
 0x329   :  { %3621 = vmatpush2.msra.mxu1 %v3545_v2 }
 0x32a   :  { %v7066_v13 = vpop.f32.mrf.mxu0  ;;  %v7068_v52 = vpop.f32.mrf.mxu1  ;;  %3052 = vmatmul.mubr.f32.gmra.mxu0 %v6603_v33  ;;  %3622 = vmatprep.subr.mxu1 %v8277_v37 }
 0x32b   :  { %3057 = vmatprep.mubr.f32.mxu0 %v6614_v61 }
 0x32c   :  { %v7072_v42 = vpop.f32.mrf.mxu0  ;;  %v7074_v30 = vpop.f32.mrf.mxu1 }
 0x32e   :  { %v7079_v29 = vpop.f32.mrf.mxu0  ;;  %v7081_v28 = vpop.f32.mrf.mxu1  ;;  %3058 = vmatmul.mubr.f32.gmra.mxu0 %v6616_v8 }
 0x32f   :  { %3063 = vmatprep.mubr.f32.mxu0 %v6627_v16 }
 0x330   :  { %v7086_v33 = vpop.f32.mrf.mxu0  ;;  %v7088_v61 = vpop.f32.mrf.mxu1 }
 0x332   :  { %v7093_v7 = vpop.f32.mrf.mxu0  ;;  %v7095_v54 = vpop.f32.mrf.mxu1  ;;  %3064 = vmatmul.mubr.f32.gmra.mxu0 %v6629_v4 }
 0x333   :  { %3069 = vmatprep.mubr.f32.mxu0 %v6640_v18 }
 0x334   :  { %v7100_v8 = vpop.f32.mrf.mxu0  ;;  %v7102_v16 = vpop.f32.mrf.mxu1 }
 0x336   :  { %v7104_v43 = vpop.f32.mrf.mxu0  ;;  %v7106_v59 = vpop.f32.mrf.mxu1  ;;  %3070 = vmatmul.mubr.f32.gmra.mxu0 %v6642_v50 }
 0x337   :  { %3075 = vmatprep.mubr.f32.mxu0 %v6653_v53 }
 0x338   :  { %v7110_v48 = vpop.f32.mrf.mxu0  ;;  %v7112_v4 = vpop.f32.mrf.mxu1 }
 0x33a   :  { %v7114_v39 = vpop.f32.mrf.mxu0  ;;  %v7116_v18 = vpop.f32.mrf.mxu1  ;;  %3076 = vmatmul.mubr.f32.gmra.mxu0 %v6655_v51  ;;  %v3544_v51 = vld [vmem:[%s8059_s4 + $0x80] sm:$0xff]  ;;  %s5264_s4 = smov 96  }
 0x33b   :  { %3081 = vmatprep.mubr.f32.mxu0 %v6666_v49  ;;  %3623 = vmatpush2.msra.mxu1 %v3544_v51  ;;  %v8340_v51 = vld [vmem:[#allocation20_spill] sm:$0xff] }
 0x33c   :  { %v7123_v31 = vpop.f32.mrf.mxu0  ;;  %v7125_v50 = vpop.f32.mrf.mxu1 }
 0x33d   :  { %8329 = vst [vmem:[#allocation12_spill] sm:$0xff] %v7123_v31 }
 0x33e   :  { %v7128_v53 = vpop.f32.mrf.mxu0  ;;  %v7130_v63 = vpop.f32.mrf.mxu1  ;;  %3082 = vmatmul.mubr.f32.gmra.mxu0 %v6668_v40 }
 0x33f   :  { %8330 = vst [vmem:[#allocation44_spill] sm:$0xff] %v7128_v53  ;;  %8331 = vst [vmem:[#allocation42_spill] sm:$0xff] %v7130_v63  ;;  %3087 = vmatprep.mubr.f32.mxu0 %v6679_v62 }
 0x340   :  { %v7137_v49 = vpop.f32.mrf.mxu0  ;;  %v7139_v46 = vpop.f32.mrf.mxu1 }
 0x341   :  { %8332 = vst [vmem:[#allocation43_spill] sm:$0xff] %v7137_v49  ;;  %8333 = vst [vmem:[#allocation46_spill] sm:$0xff] %v7139_v46 }
 0x342   :  { %v7141_v2 = vpop.f32.mrf.mxu0  ;;  %v7143_v31 = vpop.f32.mrf.mxu1  ;;  %3088 = vmatmul.mubr.f32.gmra.mxu0 %v6681_v23 }
 0x343   :  { %8334 = vst [vmem:[#allocation45_spill] sm:$0xff] %v7141_v2  ;;  %8335 = vst [vmem:[#allocation13_spill] sm:$0xff] %v7143_v31  ;;  %3093 = vmatprep.mubr.f32.mxu0 %v6695_v34  ;;  %v8345_v34 = vld [vmem:[#allocation32_spill] sm:$0xff] }
 0x344   :  { %v7147_v40 = vpop.f32.mrf.mxu0  ;;  %v7149_v53 = vpop.f32.mrf.mxu1 }
 0x345   :  { %8336 = vst [vmem:[#allocation48_spill] sm:$0xff] %v7147_v40  ;;  %8337 = vst [vmem:[#allocation47_spill] sm:$0xff] %v7149_v53  ;;  %v8346_v40 = vld [vmem:[#allocation35_spill] sm:$0xff] }
 0x346   :  { %v7151_v63 = vpop.f32.mrf.mxu0  ;;  %v7153_v62 = vpop.f32.mrf.mxu1  ;;  %3094 = vmatmul.mubr.f32.gmra.mxu0 %v6697_v9 }
 0x347   :  { %8338 = vst [vmem:[#allocation14_spill] sm:$0xff] %v7151_v63  ;;  %8339 = vst [vmem:[#allocation49_spill] sm:$0xff] %v7153_v62  ;;  %3099 = vmatprep.mubr.f32.mxu0 %v8340_v51  ;;  %v8351_v51 = vld [vmem:[#allocation33_spill] sm:$0xff] }
 0x348   :  { %v7157_v49 = vpop.f32.mrf.mxu0  ;;  %v7159_v2 = vpop.f32.mrf.mxu1 }
 0x349   :  { %8341 = vst [vmem:[#allocation15_spill] sm:$0xff] %v7157_v49  ;;  %8342 = vst [vmem:[#allocation16_spill] sm:$0xff] %v7159_v2  ;;  %v8352_v49 = vld [vmem:[#allocation34_spill] sm:$0xff] }
 0x34a   :  { %v7161_v31 = vpop.f32.mrf.mxu0  ;;  %v7163_v23 = vpop.f32.mrf.mxu1  ;;  %3100 = vmatmul.mubr.f32.gmra.mxu0 %v8345_v34 }
 0x34b   :  { %8343 = vst [vmem:[#allocation50_spill] sm:$0xff] %v7161_v31  ;;  %8344 = vst [vmem:[#allocation17_spill] sm:$0xff] %v7163_v23  ;;  %3105 = vmatprep.mubr.f32.mxu0 %v8346_v40  ;;  %v8357_v40 = vld [vmem:[#allocation38_spill] sm:$0xff] }
 0x34c   :  { %v7167_v53 = vpop.f32.mrf.mxu0  ;;  %v7169_v63 = vpop.f32.mrf.mxu1 }
 0x34d   :  { %8347 = vst [vmem:[#allocation18_spill] sm:$0xff] %v7167_v53  ;;  %8348 = vst [vmem:[#allocation51_spill] sm:$0xff] %v7169_v63  ;;  %v8358_v53 = vld [vmem:[#allocation36_spill] sm:$0xff] }
 0x34e   :  { %v7171_v62 = vpop.f32.mrf.mxu0  ;;  %v7173_v9 = vpop.f32.mrf.mxu1  ;;  %3106 = vmatmul.mubr.f32.gmra.mxu0 %v8351_v51 }
 0x34f   :  { %8349 = vst [vmem:[#allocation19_spill] sm:$0xff] %v7171_v62  ;;  %8350 = vst [vmem:[#allocation25_spill] sm:$0xff] %v7173_v9  ;;  %3111 = vmatprep.mubr.f32.mxu0 %v8352_v49  ;;  %v8363_v49 = vld [vmem:[#allocation37_spill] sm:$0xff] }
 0x350   :  { %v7177_v2 = vpop.f32.mrf.mxu0  ;;  %v7179_v31 = vpop.f32.mrf.mxu1 }
 0x351   :  { %8353 = vst [vmem:[#allocation52_spill] sm:$0xff] %v7177_v2  ;;  %8354 = vst [vmem:[#allocation26_spill] sm:$0xff] %v7179_v31  ;;  %v8364_v2 = vld [vmem:[#allocation39_spill] sm:$0xff] }
 0x352   :  { %v7181_v23 = vpop.f32.mrf.mxu0  ;;  %v7183_v34 = vpop.f32.mrf.mxu1  ;;  %3112 = vmatmul.mubr.f32.gmra.mxu0 %v8357_v40 }
 0x353   :  { %8355 = vst [vmem:[#allocation27_spill] sm:$0xff] %v7181_v23  ;;  %8356 = vst [vmem:[#allocation54_spill] sm:$0xff] %v7183_v34  ;;  %3117 = vmatprep.mubr.f32.mxu0 %v8358_v53  ;;  %v8369_v53 = vld [vmem:[#allocation21_spill] sm:$0xff] }
 0x354   :  { %v7187_v63 = vpop.f32.mrf.mxu0  ;;  %v7189_v62 = vpop.f32.mrf.mxu1 }
 0x355   :  { %8359 = vst [vmem:[#allocation53_spill] sm:$0xff] %v7187_v63  ;;  %8360 = vst [vmem:[#allocation28_spill] sm:$0xff] %v7189_v62  ;;  %v8370_v63 = vld [vmem:[#allocation22_spill] sm:$0xff] }
 0x356   :  { %v7191_v9 = vpop.f32.mrf.mxu0  ;;  %v7193_v51 = vpop.f32.mrf.mxu1  ;;  %3118 = vmatmul.mubr.f32.gmra.mxu0 %v8363_v49 }
 0x357   :  { %8361 = vst [vmem:[#allocation57_spill] sm:$0xff] %v7191_v9  ;;  %8362 = vst [vmem:[#allocation55_spill] sm:$0xff] %v7193_v51  ;;  %3123 = vmatprep.mubr.f32.mxu0 %v8364_v2  ;;  %v8375_v2 = vld [vmem:[#allocation23_spill] sm:$0xff] }
 0x358   :  { %v7197_v31 = vpop.f32.mrf.mxu0  ;;  %v7199_v23 = vpop.f32.mrf.mxu1 }
 0x359   :  { %8365 = vst [vmem:[#allocation56_spill] sm:$0xff] %v7197_v31  ;;  %8366 = vst [vmem:[#allocation58_spill] sm:$0xff] %v7199_v23  ;;  %v8376_v31 = vld [vmem:[#allocation24_spill] sm:$0xff] }
 0x35a   :  { %v7201_v34 = vpop.f32.mrf.mxu0  ;;  %v7203_v40 = vpop.f32.mrf.mxu1  ;;  %3124 = vmatmul.mubr.f32.gmra.mxu0 %v8369_v53 }
 0x35b   :  { %8367 = vst [vmem:[#allocation29_spill] sm:$0xff] %v7201_v34  ;;  %8368 = vst [vmem:[#allocation30_spill] sm:$0xff] %v7203_v40  ;;  %3129 = vmatprep.mubr.f32.mxu0 %v8370_v63  ;;  %v8381_v63 = vld [vmem:[#allocation9_spill] sm:$0xff] }
 0x35c   :  { %v7207_v62 = vpop.f32.mrf.mxu0  ;;  %v7209_v9 = vpop.f32.mrf.mxu1 }
 0x35d   :  { %8371 = vst [vmem:[#allocation60_spill] sm:$0xff] %v7207_v62  ;;  %8372 = vst [vmem:[#allocation31_spill] sm:$0xff] %v7209_v9  ;;  %v8382_v62 = vld [vmem:[#allocation10_spill] sm:$0xff] }
 0x35e   :  { %v7211_v51 = vpop.f32.mrf.mxu0  ;;  %v7213_v49 = vpop.f32.mrf.mxu1  ;;  %3130 = vmatmul.mubr.f32.gmra.mxu0 %v8375_v2 }
 0x35f   :  { %8373 = vst [vmem:[#allocation59_spill] sm:$0xff] %v7211_v51  ;;  %8374 = vst [vmem:[#allocation63_spill] sm:$0xff] %v7213_v49  ;;  %3135 = vmatprep.mubr.f32.mxu0 %v8376_v31  ;;  %v8387_v31 = vld [vmem:[#allocation11_spill] sm:$0xff] }
 0x360   :  { %v7217_v23 = vpop.f32.mrf.mxu0  ;;  %v7219_v34 = vpop.f32.mrf.mxu1 }
 0x361   :  { %8377 = vst [vmem:[#allocation61_spill] sm:$0xff] %v7217_v23  ;;  %8378 = vst [vmem:[#allocation62_spill] sm:$0xff] %v7219_v34  ;;  %v8388_v23 = vld [vmem:[#allocation41_spill] sm:$0xff] }
 0x362   :  { %v7221_v40 = vpop.f32.mrf.mxu0  ;;  %v7223_v53 = vpop.f32.mrf.mxu1  ;;  %3136 = vmatmul.mubr.f32.gmra.mxu0 %v8381_v63 }
 0x363   :  { %8379 = vst [vmem:[#allocation65_spill] sm:$0xff] %v7221_v40  ;;  %8380 = vst [vmem:[#allocation64_spill] sm:$0xff] %v7223_v53  ;;  %3141 = vmatprep.mubr.f32.mxu0 %v8382_v62  ;;  %v8393_v62 = vld [vmem:[#allocation40_spill] sm:$0xff] }
 0x364   :  { %v7227_v9 = vpop.f32.mrf.mxu0  ;;  %v7229_v51 = vpop.f32.mrf.mxu1 }
 0x365   :  { %8383 = vst [vmem:[#allocation20_spill] sm:$0xff] %v7227_v9  ;;  %8384 = vst [vmem:[#allocation32_spill] sm:$0xff] %v7229_v51 }
 0x366   :  { %v7231_v49 = vpop.f32.mrf.mxu0  ;;  %v7233_v2 = vpop.f32.mrf.mxu1  ;;  %3142 = vmatmul.mubr.f32.gmra.mxu0 %v8387_v31 }
 0x367   :  { %8385 = vst [vmem:[#allocation35_spill] sm:$0xff] %v7231_v49  ;;  %8386 = vst [vmem:[#allocation33_spill] sm:$0xff] %v7233_v2  ;;  %3147 = vmatprep.mubr.f32.mxu0 %v8388_v23 }
 0x368   :  { %v7237_v34 = vpop.f32.mrf.mxu0  ;;  %v7239_v40 = vpop.f32.mrf.mxu1 }
 0x369   :  { %8389 = vst [vmem:[#allocation34_spill] sm:$0xff] %v7237_v34  ;;  %8390 = vst [vmem:[#allocation38_spill] sm:$0xff] %v7239_v40 }
 0x36a   :  { %v7241_v53 = vpop.f32.mrf.mxu0  ;;  %v7243_v63 = vpop.f32.mrf.mxu1  ;;  %3148 = vmatmul.mubr.f32.gmra.mxu0 %v8393_v62 }
 0x36b   :  { %8391 = vst [vmem:[#allocation36_spill] sm:$0xff] %v7241_v53  ;;  %8392 = vst [vmem:[#allocation37_spill] sm:$0xff] %v7243_v63  ;;  %3153 = vmatprep.mubr.f32.mxu0 %v6857_v6 }
 0x36c   :  { %v7247_v9 = vpop.f32.mrf.mxu0  ;;  %v7249_v49 = vpop.f32.mrf.mxu1 }
 0x36d   :  { %8394 = vst [vmem:[#allocation39_spill] sm:$0xff] %v7247_v9  ;;  %8395 = vst [vmem:[#allocation21_spill] sm:$0xff] %v7249_v49 }
 0x36e   :  { %v7251_v2 = vpop.f32.mrf.mxu0  ;;  %v7253_v31 = vpop.f32.mrf.mxu1  ;;  %3154 = vmatmul.mubr.f32.gmra.mxu0 %v6859_v3 }
 0x36f   :  { %8396 = vst [vmem:[#allocation22_spill] sm:$0xff] %v7251_v2  ;;  %8397 = vst [vmem:[#allocation23_spill] sm:$0xff] %v7253_v31  ;;  %3159 = vmatprep.mubr.f32.mxu0 %v6874_v47 }
 0x370   :  { %v7257_v23 = vpop.f32.mrf.mxu0  ;;  %v7259_v53 = vpop.f32.mrf.mxu1 }
 0x371   :  { %8398 = vst [vmem:[#allocation24_spill] sm:$0xff] %v7257_v23  ;;  %8399 = vst [vmem:[#allocation9_spill] sm:$0xff] %v7259_v53 }
 0x372   :  { %v7261_v34 = vpop.f32.mrf.mxu0  ;;  %v7263_v62 = vpop.f32.mrf.mxu1  ;;  %3160 = vmatmul.mubr.f32.gmra.mxu0 %v6876_v26 }
 0x373   :  { %8400 = vst [vmem:[#allocation10_spill] sm:$0xff] %v7261_v34  ;;  %8401 = vst [vmem:[#allocation11_spill] sm:$0xff] %v7263_v62  ;;  %3165 = vmatprep.mubr.f32.mxu0 %v6885_v25 }
 0x374   :  { %v7267_v6 = vpop.f32.mrf.mxu0  ;;  %v7269_v2 = vpop.f32.mrf.mxu1 }
 0x375   :  { %8402 = vst [vmem:[#allocation41_spill] sm:$0xff] %v7267_v6  ;;  %8403 = vst [vmem:[#allocation40_spill] sm:$0xff] %v7269_v2 }
 0x376   :  { %v7271_v9 = vpop.f32.mrf.mxu0  ;;  %v7273_v3 = vpop.f32.mrf.mxu1  ;;  %3166 = vmatmul.mubr.f32.gmra.mxu0 %v6890_v56 }
 0x377   :  { %8404 = vst [vmem:[#allocation67_spill] sm:$0xff] %v7271_v9  ;;  %8405 = vst [vmem:[#allocation68_spill] sm:$0xff] %v7273_v3  ;;  %3171 = vmatprep.mubr.f32.mxu0 %v8277_v37 }
 0x378   :  { %v7277_v47 = vpop.f32.mrf.mxu0  ;;  %v7279_v34 = vpop.f32.mrf.mxu1 }
 0x379   :  { %8406 = vst [vmem:[#allocation69_spill] sm:$0xff] %v7277_v47  ;;  %8407 = vst [vmem:[#allocation70_spill] sm:$0xff] %v7279_v34 }
 0x37a   :  { %v7281_v23 = vpop.f32.mrf.mxu0  ;;  %v7283_v26 = vpop.f32.mrf.mxu1  ;;  %3172 = vmatmul.mubr.f32.gmra.mxu0 %v8277_v37 }
 0x37b   :  { %8408 = vst [vmem:[#allocation71_spill] sm:$0xff] %v7281_v23  ;;  %8409 = vst [vmem:[#allocation72_spill] sm:$0xff] %v7283_v26  ;;  %3177 = vmatprep.mubr.f32.mxu0 %v8277_v37 }
 0x37c   :  { %v7287_v25 = vpop.f32.mrf.mxu0  ;;  %v7289_v9 = vpop.f32.mrf.mxu1 }
 0x37d   :  { %8410 = vst [vmem:[#allocation73_spill] sm:$0xff] %v7287_v25  ;;  %8411 = vst [vmem:[#allocation74_spill] sm:$0xff] %v7289_v9 }
 0x37e   :  { %v7291_v6 = vpop.f32.mrf.mxu0  ;;  %v7293_v56 = vpop.f32.mrf.mxu1  ;;  %3178 = vmatmul.mubr.f32.gmra.mxu0 %v8277_v37 }
 0x37f   :  { %8412 = vst [vmem:[#allocation75_spill] sm:$0xff] %v7291_v6  ;;  %8413 = vst [vmem:[#allocation76_spill] sm:$0xff] %v7293_v56  ;;  %3183 = vmatprep.mubr.f32.mxu0 %v8277_v37 }
 0x380   :  { %v7297_v47 = vpop.f32.mrf.mxu0  ;;  %v7299_v23 = vpop.f32.mrf.mxu1 }
 0x381   :  { %8414 = vst [vmem:[#allocation77_spill] sm:$0xff] %v7297_v47  ;;  %8415 = vst [vmem:[#allocation78_spill] sm:$0xff] %v7299_v23 }
 0x382   :  { %v7301_v26 = vpop.f32.mrf.mxu0  ;;  %v7303_v34 = vpop.f32.mrf.mxu1  ;;  %3184 = vmatmul.mubr.f32.gmra.mxu0 %v8277_v37 }
 0x383   :  { %8416 = vst [vmem:[#allocation79_spill] sm:$0xff] %v7301_v26  ;;  %8417 = vst [vmem:[#allocation80_spill] sm:$0xff] %v7303_v34  ;;  %3189 = vmatprep.mubr.f32.mxu0 %v8277_v37 }
 0x384   :  { %v7307_v25 = vpop.f32.mrf.mxu0  ;;  %v7309_v6 = vpop.f32.mrf.mxu1 }
 0x385   :  { %8418 = vst [vmem:[#allocation81_spill] sm:$0xff] %v7307_v25  ;;  %8419 = vst [vmem:[#allocation82_spill] sm:$0xff] %v7309_v6 }
 0x386   :  { %v7311_v56 = vpop.f32.mrf.mxu0  ;;  %v7313_v9 = vpop.f32.mrf.mxu1  ;;  %3190 = vmatmul.mubr.f32.gmra.mxu0 %v8277_v37 }
 0x387   :  { %8420 = vst [vmem:[#allocation83_spill] sm:$0xff] %v7311_v56  ;;  %8421 = vst [vmem:[#allocation84_spill] sm:$0xff] %v7313_v9  ;;  %3195 = vmatprep.mubr.f32.mxu0 %v8277_v37 }
 0x388   :  { %v7317_v47 = vpop.f32.mrf.mxu0  ;;  %v7319_v26 = vpop.f32.mrf.mxu1 }
 0x389   :  { %8422 = vst [vmem:[#allocation85_spill] sm:$0xff] %v7317_v47  ;;  %8423 = vst [vmem:[#allocation86_spill] sm:$0xff] %v7319_v26 }
 0x38a   :  { %v7321_v34 = vpop.f32.mrf.mxu0  ;;  %v7323_v23 = vpop.f32.mrf.mxu1  ;;  %3196 = vmatmul.mubr.f32.gmra.mxu0 %v8277_v37 }
 0x38b   :  { %8424 = vst [vmem:[#allocation87_spill] sm:$0xff] %v7321_v34  ;;  %8425 = vst [vmem:[#allocation88_spill] sm:$0xff] %v7323_v23  ;;  %3201 = vmatprep.mubr.f32.mxu0 %v8277_v37 }
 0x38c   :  { %v7327_v25 = vpop.f32.mrf.mxu0  ;;  %v7329_v56 = vpop.f32.mrf.mxu1 }
 0x38d   :  { %8426 = vst [vmem:[#allocation89_spill] sm:$0xff] %v7327_v25  ;;  %8427 = vst [vmem:[#allocation90_spill] sm:$0xff] %v7329_v56 }
 0x38e   :  { %v7331_v9 = vpop.f32.mrf.mxu0  ;;  %v7333_v6 = vpop.f32.mrf.mxu1  ;;  %3202 = vmatmul.mubr.f32.gmra.mxu0 %v8277_v37 }
 0x38f   :  { %8428 = vst [vmem:[#allocation91_spill] sm:$0xff] %v7331_v9  ;;  %8429 = vst [vmem:[#allocation92_spill] sm:$0xff] %v7333_v6 }
 0x390   :  { %v7336_v47 = vpop.f32.mrf.mxu0  ;;  %v7338_v26 = vpop.f32.mrf.mxu1 }
 0x391   :  { %8430 = vst [vmem:[#allocation93_spill] sm:$0xff] %v7336_v47  ;;  %8431 = vst [vmem:[#allocation94_spill] sm:$0xff] %v7338_v26 }
 0x392   :  { %v7340_v34 = vpop.f32.mrf.mxu0  ;;  %v7342_v23 = vpop.f32.mrf.mxu1 }
 0x393   :  { %8432 = vst [vmem:[#allocation95_spill] sm:$0xff] %v7340_v34  ;;  %8433 = vst [vmem:[#allocation96_spill] sm:$0xff] %v7342_v23 }
 0x394   :  { %v7344_v3 = vpop.f32.mrf.mxu0  ;;  %v7346_v2 = vpop.f32.mrf.mxu1 }
 0x395   :  { %8434 = vst [vmem:[#allocation97_spill] sm:$0xff] %v7344_v3  ;;  %8435 = vst [vmem:[#allocation98_spill] sm:$0xff] %v7346_v2 }
 0x396   :  { %v7348_v25 = vpop.f32.mrf.mxu0  ;;  %v7350_v56 = vpop.f32.mrf.mxu1 }
 0x397   :  { %8436 = vst [vmem:[#allocation99_spill] sm:$0xff] %v7348_v25  ;;  %8437 = vst [vmem:[#allocation100_spill] sm:$0xff] %v7350_v56 }
 0x398   :  { %v7352_v9 = vpop.f32.mrf.mxu0  ;;  %v7354_v6 = vpop.f32.mrf.mxu1 }
 0x399   :  { %8438 = vst [vmem:[#allocation101_spill] sm:$0xff] %v7352_v9  ;;  %8439 = vst [vmem:[#allocation102_spill] sm:$0xff] %v7354_v6 }
 0x39a   :  { %v7356_v37 = vpop.f32.mrf.mxu0  ;;  %v7358_v47 = vpop.f32.mrf.mxu1 }
 0x39b   :  { %8440 = vst [vmem:[#allocation103_spill] sm:$0xff] %v7356_v37  ;;  %8441 = vst [vmem:[#allocation104_spill] sm:$0xff] %v7358_v47 }
 0x39c   :  { %v7360_v26 = vpop.f32.mrf.mxu0  ;;  %v7362_v34 = vpop.f32.mrf.mxu1 }
 0x39d   :  { %8442 = vst [vmem:[#allocation105_spill] sm:$0xff] %v7360_v26  ;;  %8443 = vst [vmem:[#allocation106_spill] sm:$0xff] %v7362_v34 }
 0x39e   :  { %v7364_v23 = vpop.f32.mrf.mxu0  ;;  %v7366_v3 = vpop.f32.mrf.mxu1 }
 0x39f   :  { %8444 = vst [vmem:[#allocation107_spill] sm:$0xff] %v7364_v23  ;;  %8445 = vst [vmem:[#allocation108_spill] sm:$0xff] %v7366_v3 }
 0x3a0   :  { %v7368_v2 = vpop.f32.mrf.mxu0  ;;  %v7370_v25 = vpop.f32.mrf.mxu1 }
 0x3a1   :  { %8446 = vst [vmem:[#allocation109_spill] sm:$0xff] %v7368_v2  ;;  %8447 = vst [vmem:[#allocation110_spill] sm:$0xff] %v7370_v25 }
 0x3a2   :  { %v7372_v56 = vpop.f32.mrf.mxu0  ;;  %v7374_v9 = vpop.f32.mrf.mxu1 }
 0x3a3   :  { %8448 = vst [vmem:[#allocation111_spill] sm:$0xff] %v7372_v56  ;;  %8449 = vst [vmem:[#allocation112_spill] sm:$0xff] %v7374_v9 }
 0x3a4   :  { %v7376_v6 = vpop.f32.mrf.mxu0  ;;  %v7378_v37 = vpop.f32.mrf.mxu1 }
 0x3a5   :  { %8450 = vst [vmem:[#allocation113_spill] sm:$0xff] %v7376_v6  ;;  %8451 = vst [vmem:[#allocation114_spill] sm:$0xff] %v7378_v37 }
 0x3a6   :  { %v7380_v47 = vpop.f32.mrf.mxu0  ;;  %v7382_v26 = vpop.f32.mrf.mxu1 }
 0x3a7   :  { %8452 = vst [vmem:[#allocation115_spill] sm:$0xff] %v7380_v47  ;;  %8453 = vst [vmem:[#allocation116_spill] sm:$0xff] %v7382_v26 }
 0x3a8   :  { %v7384_v34 = vpop.f32.mrf.mxu0  ;;  %v7386_v23 = vpop.f32.mrf.mxu1 }
 0x3a9   :  { %8454 = vst [vmem:[#allocation117_spill] sm:$0xff] %v7384_v34  ;;  %8455 = vst [vmem:[#allocation118_spill] sm:$0xff] %v7386_v23 }
 0x3aa   :  { %v2587_v3 = vpop.f32.mrf.mxu0  ;;  %v7388_v2 = vpop.f32.mrf.mxu1 }
 0x3ab   :  { %8456 = vst [vmem:[#allocation119_spill] sm:$0xff] %v7388_v2 }
 0x3ac   :  { %v2589_v25 = vpop.f32.mrf.mxu0  ;;  %v7390_v62 = vpop.f32.mrf.mxu1 }
 0x3ad   :  { %8457 = vst [vmem:[#allocation120_spill] sm:$0xff] %v7390_v62  ;;  %v3210_v62 = vadd.f32 %v7002_v60, %v6986_v1  ;;  %v3213_v60 = vadd.f32 %v7022_v0, %v7006_v10 }
 0x3ae   :  { %v2593_v56 = vpop.f32.mrf.mxu0  ;;  %v2898_v9 = vpop.f32.mrf.mxu1 }
 0x3af   :  { %v3286_v31 = vadd.f32 %v2898_v9, %v2587_v3  ;;  %v3208_v34 = vadd.f32 %v6988_v17, %v2593_v56 }
 0x3b0   :  { %v2595_v53 = vpop.f32.mrf.mxu0  ;;  %v2900_v6 = vpop.f32.mrf.mxu1 }
 0x3b1   :  { %v3287_v49 = vadd.f32 %v2900_v6, %v2589_v25  ;;  %v3209_v2 = vadd.f32 %v6997_v32, %v2595_v53  ;;  %v3215_v25 = vadd.f32 %v7036_v57, %v7020_v24 }
 0x3b2   :  { %v2969_v37 = vpop.f32.mrf.mxu0 }
 0x3b3   :  { %v7392_v47 = vadd.f32 %v3286_v31, %v2969_v37  ;;  %v3211_v31 = vadd.f32 %v7008_v36, %v6995_v27  ;;  %v3214_v36 = vadd.f32 %v7029_v44, %v7013_v21  ;;  %v3216_v37 = vadd.f32 %v7040_v55, %v7027_v11 }
 0x3b4   :  { %v2971_v26 = vpop.f32.mrf.mxu0 }
 0x3b5   :  { %v7395_v63 = vadd.f32 %v3287_v49, %v2971_v26  ;;  %v3212_v26 = vadd.f32 %v7015_v12, %v7000_v20 }
 0x3b6   :  { %v2975_v23 = vpop.f32.mrf.mxu0 }
 0x3b7   :  { %v3288_v40 = vadd.f32 %v3208_v34, %v2975_v23 }
 0x3b8   :  { %v2977_v51 = vpop.f32.mrf.mxu0 }
 0x3b9   :  { %v3289_v46 = vadd.f32 %v3209_v2, %v2977_v51  ;;  %v3368_v9 = vadd.f32 %v3288_v40, %v6407_v41 }
 0x3ba   :  { %v2981_v3 = vpop.f32.mrf.mxu0 }
 0x3bb   :  { %v3369_v6 = vadd.f32 %v3289_v46, %v6412_v38  ;;  %v3290_v17 = vadd.f32 %v3210_v62, %v2981_v3  ;;  %v3448_v53 = vmax.f32 %v3368_v9, 0.0 }
 0x3bc   :  { %v2983_v49 = vpop.f32.mrf.mxu0 }
 0x3bd   :  { %v3449_v32 = vmax.f32 %v3369_v6, 0.0  ;;  %v3291_v34 = vadd.f32 %v3211_v31, %v2983_v49  ;;  %v3370_v23 = vadd.f32 %v3290_v17, %v6407_v41  ;;  %v3217_v6 = vadd.f32 %v7049_v19, %v7034_v58 }
 0x3be   :  { %v2987_v1 = vpop.f32.mrf.mxu0  ;;  %v3218_v49 = vadd.f32 %v7054_v22, %v7038_v35 }
 0x3bf   :  { %v3371_v51 = vadd.f32 %v3291_v34, %v6412_v38  ;;  %v3292_v40 = vadd.f32 %v3212_v26, %v2987_v1  ;;  %3624 = vmatprep.mubr.f32.mxu1 %v3449_v32  ;;  %v3450_v12 = vmax.f32 %v3370_v23, 0.0  ;;  %v3220_v1 = vadd.f32 %v7068_v52, %v7052_v14 }
 0x3c0   :  { %v2989_v27 = vpop.f32.mrf.mxu0  ;;  %3625 = vmatmul.mubr.f32.vlgmr.msra.gmra.mxu1 %v3448_v53  ;;  %v3219_v53 = vadd.f32 %v7063_v5, %v7047_v15 }
 0x3c1   :  { %v3451_v46 = vmax.f32 %v3371_v51, 0.0  ;;  %v3293_v20 = vadd.f32 %v3213_v60, %v2989_v27  ;;  %v3372_v2 = vadd.f32 %v3292_v40, %v6407_v41  ;;  %v3221_v27 = vadd.f32 %v7074_v30, %v7061_v45 }
 0x3c2   :  { %v2993_v62 = vpop.f32.mrf.mxu0 }
 0x3c3   :  { %v3373_v10 = vadd.f32 %v3293_v20, %v6412_v38  ;;  %v3294_v0 = vadd.f32 %v3214_v36, %v2993_v62  ;;  %3629 = vmatprep.mubr.f32.mxu1 %v3451_v46  ;;  %v3452_v44 = vmax.f32 %v3372_v2, 0.0  ;;  %v3222_v46 = vadd.f32 %v7081_v28, %v7066_v13 }
 0x3c4   :  { %v2995_v56 = vpop.f32.mrf.mxu0  ;;  %3630 = vmatmul.mubr.f32.gmra.mxu1 %v3450_v12  ;;  %v3223_v62 = vadd.f32 %v7088_v61, %v7072_v42 }
 0x3c5   :  { %v3453_v9 = vmax.f32 %v3373_v10, 0.0  ;;  %v3295_v21 = vadd.f32 %v3215_v25, %v2995_v56  ;;  %v3374_v3 = vadd.f32 %v3294_v0, %v6407_v41  ;;  %v3224_v10 = vadd.f32 %v7095_v54, %v7079_v29 }
 0x3c6   :  { %v2999_v31 = vpop.f32.mrf.mxu0 }
 0x3c7   :  { %v3375_v24 = vadd.f32 %v3295_v21, %v6412_v38  ;;  %v3296_v57 = vadd.f32 %v3216_v37, %v2999_v31  ;;  %3634 = vmatprep.mubr.f32.mxu1 %v3453_v9  ;;  %v3454_v55 = vmax.f32 %v3374_v3, 0.0  ;;  %v3225_v9 = vadd.f32 %v7102_v16, %v7086_v33 }
 0x3c8   :  { %v3001_v17 = vpop.f32.mrf.mxu0  ;;  %3635 = vmatmul.mubr.f32.gmra.mxu1 %v3452_v44  ;;  %v3226_v44 = vadd.f32 %v7106_v59, %v7093_v7 }
 0x3c9   :  { %v3455_v26 = vmax.f32 %v3375_v24, 0.0  ;;  %v3297_v11 = vadd.f32 %v3217_v6, %v3001_v17  ;;  %v3376_v32 = vadd.f32 %v3296_v57, %v6407_v41  ;;  %v3227_v24 = vadd.f32 %v7112_v4, %v7100_v8 }
 0x3ca   :  { %v3005_v34 = vpop.f32.mrf.mxu0  ;;  %v3228_v17 = vadd.f32 %v7116_v18, %v7104_v43 }
 0x3cb   :  { %v3377_v58 = vadd.f32 %v3297_v11, %v6412_v38  ;;  %v3298_v19 = vadd.f32 %v3218_v49, %v3005_v34  ;;  %3639 = vmatprep.mubr.f32.mxu1 %v3455_v26  ;;  %v3456_v22 = vmax.f32 %v3376_v32, 0.0  ;;  %v8458_v34 = vld [vmem:[#allocation42_spill] sm:$0xff] }
 0x3cc   :  { %v3007_v23 = vpop.f32.mrf.mxu0  ;;  %3640 = vmatmul.mubr.f32.gmra.mxu1 %v3454_v55  ;;  %v3229_v55 = vadd.f32 %v7125_v50, %v7110_v48 }
 0x3cd   :  { %v3457_v60 = vmax.f32 %v3377_v58, 0.0  ;;  %v3299_v35 = vadd.f32 %v3219_v53, %v3007_v23  ;;  %v3378_v51 = vadd.f32 %v3298_v19, %v6407_v41  ;;  %v3230_v53 = vadd.f32 %v8458_v34, %v7114_v39 }
 0x3ce   :  { %v3011_v40 = vpop.f32.mrf.mxu0 }
 0x3cf   :  { %v3379_v15 = vadd.f32 %v3299_v35, %v6412_v38  ;;  %v3300_v5 = vadd.f32 %v3220_v1, %v3011_v40  ;;  %3644 = vmatprep.mubr.f32.mxu1 %v3457_v60  ;;  %v3458_v52 = vmax.f32 %v3378_v51, 0.0  ;;  %v8459_v1 = vld [vmem:[#allocation12_spill] sm:$0xff]  ;;  %v8460_v60 = vld [vmem:[#allocation46_spill] sm:$0xff]  ;;  %v8462_v40 = vld [vmem:[#allocation13_spill] sm:$0xff] }
 0x3d0   :  { %v3013_v36 = vpop.f32.mrf.mxu0  ;;  %3645 = vmatmul.mubr.f32.gmra.mxu1 %v3456_v22  ;;  %v3231_v35 = vadd.f32 %v8460_v60, %v8459_v1  ;;  %v8461_v51 = vld [vmem:[#allocation44_spill] sm:$0xff] }
 0x3d1   :  { %v3459_v20 = vmax.f32 %v3379_v15, 0.0  ;;  %v3301_v14 = vadd.f32 %v3221_v27, %v3013_v36  ;;  %v3380_v12 = vadd.f32 %v3300_v5, %v6407_v41  ;;  %v3232_v27 = vadd.f32 %v8462_v40, %v8461_v51 }
 0x3d2   :  { %v3017_v2 = vpop.f32.mrf.mxu0 }
 0x3d3   :  { %v3381_v45 = vadd.f32 %v3301_v14, %v6412_v38  ;;  %v3302_v30 = vadd.f32 %v3222_v46, %v3017_v2  ;;  %3649 = vmatprep.mubr.f32.mxu1 %v3459_v20  ;;  %v3460_v28 = vmax.f32 %v3380_v12, 0.0  ;;  %v8463_v20 = vld [vmem:[#allocation43_spill] sm:$0xff] }
 0x3d4   :  { %v3019_v25 = vpop.f32.mrf.mxu0  ;;  %3650 = vmatmul.mubr.f32.gmra.mxu1 %v3458_v52  ;;  %v8464_v14 = vld [vmem:[#allocation47_spill] sm:$0xff] }
 0x3d5   :  { %v3461_v0 = vmax.f32 %v3381_v45, 0.0  ;;  %v3303_v13 = vadd.f32 %v3223_v62, %v3019_v25  ;;  %v3382_v56 = vadd.f32 %v3302_v30, %v6407_v41  ;;  %v3233_v52 = vadd.f32 %v8464_v14, %v8463_v20  ;;  %v8465_v45 = vld [vmem:[#allocation45_spill] sm:$0xff] }
 0x3d6   :  { %v3023_v37 = vpop.f32.mrf.mxu0  ;;  %v8466_v30 = vld [vmem:[#allocation49_spill] sm:$0xff] }
 0x3d7   :  { %v3383_v42 = vadd.f32 %v3303_v13, %v6412_v38  ;;  %v3304_v61 = vadd.f32 %v3224_v10, %v3023_v37  ;;  %3654 = vmatprep.mubr.f32.mxu1 %v3461_v0  ;;  %v3462_v54 = vmax.f32 %v3382_v56, 0.0  ;;  %v3234_v25 = vadd.f32 %v8466_v30, %v8465_v45  ;;  %v8467_v37 = vld [vmem:[#allocation48_spill] sm:$0xff] }
 0x3d8   :  { %v3025_v21 = vpop.f32.mrf.mxu0  ;;  %3655 = vmatmul.mubr.f32.gmra.mxu1 %v3460_v28 }
 0x3d9   :  { %v3463_v3 = vmax.f32 %v3383_v42, 0.0  ;;  %v3305_v29 = vadd.f32 %v3225_v9, %v3025_v21  ;;  %v3384_v31 = vadd.f32 %v3304_v61, %v6407_v41  ;;  %v8468_v9 = vld [vmem:[#allocation16_spill] sm:$0xff] }
 0x3da   :  { %v3029_v6 = vpop.f32.mrf.mxu0  ;;  %v3235_v42 = vadd.f32 %v8468_v9, %v8467_v37 }
 0x3db   :  { %v3385_v33 = vadd.f32 %v3305_v29, %v6412_v38  ;;  %v3306_v16 = vadd.f32 %v3226_v44, %v3029_v6  ;;  %3659 = vmatprep.mubr.f32.mxu1 %v3463_v3  ;;  %v3464_v59 = vmax.f32 %v3384_v31, 0.0  ;;  %v8469_v3 = vld [vmem:[#allocation14_spill] sm:$0xff]  ;;  %v8470_v29 = vld [vmem:[#allocation17_spill] sm:$0xff] }
 0x3dc   :  { %v3031_v57 = vpop.f32.mrf.mxu0  ;;  %3660 = vmatmul.mubr.f32.gmra.mxu1 %v3462_v54  ;;  %v3236_v54 = vadd.f32 %v8470_v29, %v8469_v3 }
 0x3dd   :  { %v3465_v49 = vmax.f32 %v3385_v33, 0.0  ;;  %v3307_v7 = vadd.f32 %v3227_v24, %v3031_v57  ;;  %v3386_v26 = vadd.f32 %v3306_v16, %v6407_v41  ;;  %v8471_v57 = vld [vmem:[#allocation15_spill] sm:$0xff] }
 0x3de   :  { %v3035_v11 = vpop.f32.mrf.mxu0 }
 0x3df   :  { %v3387_v8 = vadd.f32 %v3307_v7, %v6412_v38  ;;  %v3308_v4 = vadd.f32 %v3228_v17, %v3035_v11  ;;  %3664 = vmatprep.mubr.f32.mxu1 %v3465_v49  ;;  %v3466_v18 = vmax.f32 %v3386_v26, 0.0  ;;  %v8472_v17 = vld [vmem:[#allocation51_spill] sm:$0xff]  ;;  %v8473_v11 = vld [vmem:[#allocation50_spill] sm:$0xff] }
 0x3e0   :  { %v3037_v32 = vpop.f32.mrf.mxu0  ;;  %3665 = vmatmul.mubr.f32.gmra.mxu1 %v3464_v59  ;;  %v3237_v49 = vadd.f32 %v8472_v17, %v8471_v57 }
 0x3e1   :  { %v3467_v58 = vmax.f32 %v3387_v8, 0.0  ;;  %v3309_v43 = vadd.f32 %v3229_v55, %v3037_v32  ;;  %v3388_v19 = vadd.f32 %v3308_v4, %v6407_v41  ;;  %v8474_v55 = vld [vmem:[#allocation25_spill] sm:$0xff] }
 0x3e2   :  { %v3041_v23 = vpop.f32.mrf.mxu0  ;;  %v3238_v8 = vadd.f32 %v8474_v55, %v8473_v11 }
 0x3e3   :  { %v3389_v48 = vadd.f32 %v3309_v43, %v6412_v38  ;;  %v3310_v50 = vadd.f32 %v3230_v53, %v3041_v23  ;;  %3669 = vmatprep.mubr.f32.mxu1 %v3467_v58  ;;  %v3468_v5 = vmax.f32 %v3388_v19, 0.0  ;;  %v8475_v43 = vld [vmem:[#allocation18_spill] sm:$0xff] }
 0x3e4   :  { %v3043_v22 = vpop.f32.mrf.mxu0  ;;  %3670 = vmatmul.mubr.f32.gmra.mxu1 %v3466_v18  ;;  %v8476_v18 = vld [vmem:[#allocation26_spill] sm:$0xff] }
 0x3e5   :  { %v3469_v15 = vmax.f32 %v3389_v48, 0.0  ;;  %v3311_v39 = vadd.f32 %v3231_v35, %v3043_v22  ;;  %v3390_v36 = vadd.f32 %v3310_v50, %v6407_v41  ;;  %v3239_v19 = vadd.f32 %v8476_v18, %v8475_v43  ;;  %v8477_v35 = vld [vmem:[#allocation19_spill] sm:$0xff]  ;;  %v8478_v48 = vld [vmem:[#allocation54_spill] sm:$0xff] }
 0x3e6   :  { %v3047_v46 = vpop.f32.mrf.mxu0  ;;  %v3240_v50 = vadd.f32 %v8478_v48, %v8477_v35 }
 0x3e7   :  { %v3391_v12 = vadd.f32 %v3311_v39, %v6412_v38  ;;  %v3312_v2 = vadd.f32 %v3232_v27, %v3047_v46  ;;  %3674 = vmatprep.mubr.f32.mxu1 %v3469_v15  ;;  %v3470_v13 = vmax.f32 %v3390_v36, 0.0  ;;  %v8479_v39 = vld [vmem:[#allocation52_spill] sm:$0xff] }
 0x3e8   :  { %v3049_v62 = vpop.f32.mrf.mxu0  ;;  %3675 = vmatmul.mubr.f32.gmra.mxu1 %v3468_v5  ;;  %v8480_v5 = vld [vmem:[#allocation28_spill] sm:$0xff] }
 0x3e9   :  { %v3471_v10 = vmax.f32 %v3391_v12, 0.0  ;;  %v3313_v0 = vadd.f32 %v3233_v52, %v3049_v62  ;;  %v3392_v28 = vadd.f32 %v3312_v2, %v6407_v41  ;;  %v3241_v36 = vadd.f32 %v8480_v5, %v8479_v39  ;;  %v8481_v52 = vld [vmem:[#allocation27_spill] sm:$0xff] }
 0x3ea   :  { %v3053_v56 = vpop.f32.mrf.mxu0  ;;  %v8482_v12 = vld [vmem:[#allocation55_spill] sm:$0xff] }
 0x3eb   :  { %v3393_v61 = vadd.f32 %v3313_v0, %v6412_v38  ;;  %v3314_v21 = vadd.f32 %v3234_v25, %v3053_v56  ;;  %3679 = vmatprep.mubr.f32.mxu1 %v3471_v10  ;;  %v3472_v24 = vmax.f32 %v3392_v28, 0.0  ;;  %v3242_v2 = vadd.f32 %v8482_v12, %v8481_v52  ;;  %v8483_v0 = vld [vmem:[#allocation53_spill] sm:$0xff] }
 0x3ec   :  { %v3055_v44 = vpop.f32.mrf.mxu0  ;;  %3680 = vmatmul.mubr.f32.gmra.mxu1 %v3470_v13  ;;  %v8484_v13 = vld [vmem:[#allocation58_spill] sm:$0xff] }
 0x3ed   :  { %v3473_v31 = vmax.f32 %v3393_v61, 0.0  ;;  %v3315_v6 = vadd.f32 %v3235_v42, %v3055_v44  ;;  %v3394_v33 = vadd.f32 %v3314_v21, %v6407_v41  ;;  %v3243_v28 = vadd.f32 %v8484_v13, %v8483_v0  ;;  %v8485_v42 = vld [vmem:[#allocation57_spill] sm:$0xff]  ;;  %v8486_v61 = vld [vmem:[#allocation30_spill] sm:$0xff] }
 0x3ee   :  { %v3059_v16 = vpop.f32.mrf.mxu0  ;;  %v3244_v21 = vadd.f32 %v8486_v61, %v8485_v42 }
 0x3ef   :  { %v3395_v7 = vadd.f32 %v3315_v6, %v6412_v38  ;;  %v3316_v59 = vadd.f32 %v3236_v54, %v3059_v16  ;;  %3684 = vmatprep.mubr.f32.mxu1 %v3473_v31  ;;  %v3474_v34 = vmax.f32 %v3394_v33, 0.0  ;;  %v8487_v6 = vld [vmem:[#allocation56_spill] sm:$0xff] }
 0x3f0   :  { %v3061_v26 = vpop.f32.mrf.mxu0  ;;  %3685 = vmatmul.mubr.f32.gmra.mxu1 %v3472_v24  ;;  %v8488_v24 = vld [vmem:[#allocation31_spill] sm:$0xff] }
 0x3f1   :  { %v3475_v4 = vmax.f32 %v3395_v7, 0.0  ;;  %v3317_v32 = vadd.f32 %v3237_v49, %v3061_v26  ;;  %v3396_v53 = vadd.f32 %v3316_v59, %v6407_v41  ;;  %v3245_v33 = vadd.f32 %v8488_v24, %v8487_v6  ;;  %v8489_v49 = vld [vmem:[#allocation29_spill] sm:$0xff]  ;;  %v8490_v7 = vld [vmem:[#allocation63_spill] sm:$0xff] }
 0x3f2   :  { %v3065_v58 = vpop.f32.mrf.mxu0  ;;  %v3246_v59 = vadd.f32 %v8490_v7, %v8489_v49 }
 0x3f3   :  { %v3397_v23 = vadd.f32 %v3317_v32, %v6412_v38  ;;  %v3318_v1 = vadd.f32 %v3238_v8, %v3065_v58  ;;  %3689 = vmatprep.mubr.f32.mxu1 %v3475_v4  ;;  %v3476_v40 = vmax.f32 %v3396_v53, 0.0  ;;  %v8491_v32 = vld [vmem:[#allocation60_spill] sm:$0xff] }
 0x3f4   :  { %v3067_v60 = vpop.f32.mrf.mxu0  ;;  %3690 = vmatmul.mubr.f32.gmra.mxu1 %v3474_v34  ;;  %v8492_v34 = vld [vmem:[#allocation62_spill] sm:$0xff] }
 0x3f5   :  { %v3477_v22 = vmax.f32 %v3397_v23, 0.0  ;;  %v3319_v51 = vadd.f32 %v3239_v19, %v3067_v60  ;;  %v3398_v27 = vadd.f32 %v3318_v1, %v6407_v41  ;;  %v3247_v53 = vadd.f32 %v8492_v34, %v8491_v32  ;;  %v8493_v19 = vld [vmem:[#allocation59_spill] sm:$0xff]  ;;  %v8494_v23 = vld [vmem:[#allocation64_spill] sm:$0xff] }
 0x3f6   :  { %v3071_v15 = vpop.f32.mrf.mxu0  ;;  %v3248_v1 = vadd.f32 %v8494_v23, %v8493_v19 }
 0x3f7   :  { %v3399_v46 = vadd.f32 %v3319_v51, %v6412_v38  ;;  %v3320_v20 = vadd.f32 %v3240_v50, %v3071_v15  ;;  %3694 = vmatprep.mubr.f32.mxu1 %v3477_v22  ;;  %v3478_v30 = vmax.f32 %v3398_v27, 0.0  ;;  %v8495_v51 = vld [vmem:[#allocation61_spill] sm:$0xff] }
 0x3f8   :  { %v3073_v14 = vpop.f32.mrf.mxu0  ;;  %3695 = vmatmul.mubr.f32.gmra.mxu1 %v3476_v40  ;;  %v8496_v40 = vld [vmem:[#allocation32_spill] sm:$0xff] }
 0x3f9   :  { %v3479_v62 = vmax.f32 %v3399_v46, 0.0  ;;  %v3321_v45 = vadd.f32 %v3241_v36, %v3073_v14  ;;  %v3400_v25 = vadd.f32 %v3320_v20, %v6407_v41  ;;  %v3249_v27 = vadd.f32 %v8496_v40, %v8495_v51  ;;  %v8497_v36 = vld [vmem:[#allocation65_spill] sm:$0xff] }
 0x3fa   :  { %v3077_v10 = vpop.f32.mrf.mxu0  ;;  %v8498_v46 = vld [vmem:[#allocation33_spill] sm:$0xff] }
 0x3fb   :  { %v3401_v56 = vadd.f32 %v3321_v45, %v6412_v38  ;;  %v3322_v37 = vadd.f32 %v3242_v2, %v3077_v10  ;;  %3699 = vmatprep.mubr.f32.mxu1 %v3479_v62  ;;  %v3480_v29 = vmax.f32 %v3400_v25, 0.0  ;;  %v3250_v20 = vadd.f32 %v8498_v46, %v8497_v36  ;;  %v8499_v45 = vld [vmem:[#allocation20_spill] sm:$0xff] }
 0x3fc   :  { %v3079_v9 = vpop.f32.mrf.mxu0  ;;  %3700 = vmatmul.mubr.f32.gmra.mxu1 %v3478_v30  ;;  %v8500_v30 = vld [vmem:[#allocation38_spill] sm:$0xff] }
 0x3fd   :  { %v3481_v44 = vmax.f32 %v3401_v56, 0.0  ;;  %v3323_v3 = vadd.f32 %v3243_v28, %v3079_v9  ;;  %v3402_v54 = vadd.f32 %v3322_v37, %v6407_v41  ;;  %v3251_v25 = vadd.f32 %v8500_v30, %v8499_v45  ;;  %v8501_v28 = vld [vmem:[#allocation35_spill] sm:$0xff]  ;;  %v8502_v56 = vld [vmem:[#allocation37_spill] sm:$0xff] }
 0x3fe   :  { %v3083_v31 = vpop.f32.mrf.mxu0  ;;  %v3252_v37 = vadd.f32 %v8502_v56, %v8501_v28 }
 0x3ff   :  { %v3403_v16 = vadd.f32 %v3323_v3, %v6412_v38  ;;  %v3324_v57 = vadd.f32 %v3244_v21, %v3083_v31  ;;  %3704 = vmatprep.mubr.f32.mxu1 %v3481_v44  ;;  %v3482_v55 = vmax.f32 %v3402_v54, 0.0  ;;  %v8503_v3 = vld [vmem:[#allocation34_spill] sm:$0xff] }
 0x400   :  { %v3085_v17 = vpop.f32.mrf.mxu0  ;;  %3705 = vmatmul.mubr.f32.gmra.mxu1 %v3480_v29  ;;  %v8504_v29 = vld [vmem:[#allocation21_spill] sm:$0xff] }
 0x401   :  { %v3483_v26 = vmax.f32 %v3403_v16, 0.0  ;;  %v3325_v11 = vadd.f32 %v3245_v33, %v3085_v17  ;;  %v3404_v8 = vadd.f32 %v3324_v57, %v6407_v41  ;;  %v3253_v54 = vadd.f32 %v8504_v29, %v8503_v3  ;;  %v8505_v33 = vld [vmem:[#allocation36_spill] sm:$0xff]  ;;  %v8506_v16 = vld [vmem:[#allocation23_spill] sm:$0xff] }
 0x402   :  { %v3089_v4 = vpop.f32.mrf.mxu0  ;;  %v3254_v57 = vadd.f32 %v8506_v16, %v8505_v33 }
 0x403   :  { %v3405_v58 = vadd.f32 %v3325_v11, %v6412_v38  ;;  %v3326_v43 = vadd.f32 %v3246_v59, %v3089_v4  ;;  %3709 = vmatprep.mubr.f32.mxu1 %v3483_v26  ;;  %v3484_v48 = vmax.f32 %v3404_v8, 0.0  ;;  %v8507_v11 = vld [vmem:[#allocation39_spill] sm:$0xff] }
 0x404   :  { %v3091_v18 = vpop.f32.mrf.mxu0  ;;  %3710 = vmatmul.mubr.f32.gmra.mxu1 %v3482_v55  ;;  %v8508_v55 = vld [vmem:[#allocation9_spill] sm:$0xff] }
 0x405   :  { %v3485_v60 = vmax.f32 %v3405_v58, 0.0  ;;  %v3327_v35 = vadd.f32 %v3247_v53, %v3091_v18  ;;  %v3406_v50 = vadd.f32 %v3326_v43, %v6407_v41  ;;  %v3255_v8 = vadd.f32 %v8508_v55, %v8507_v11  ;;  %v8509_v53 = vld [vmem:[#allocation22_spill] sm:$0xff]  ;;  %v8510_v58 = vld [vmem:[#allocation11_spill] sm:$0xff] }
 0x406   :  { %v3095_v22 = vpop.f32.mrf.mxu0  ;;  %v3256_v43 = vadd.f32 %v8510_v58, %v8509_v53 }
 0x407   :  { %v3407_v15 = vadd.f32 %v3327_v35, %v6412_v38  ;;  %v3328_v39 = vadd.f32 %v3248_v1, %v3095_v22  ;;  %3714 = vmatprep.mubr.f32.mxu1 %v3485_v60  ;;  %v3486_v12 = vmax.f32 %v3406_v50, 0.0  ;;  %v8511_v35 = vld [vmem:[#allocation24_spill] sm:$0xff] }
 0x408   :  { %v3097_v5 = vpop.f32.mrf.mxu0  ;;  %3715 = vmatmul.mubr.f32.gmra.mxu1 %v3484_v48  ;;  %v8512_v48 = vld [vmem:[#allocation40_spill] sm:$0xff] }
 0x409   :  { %v3487_v14 = vmax.f32 %v3407_v15, 0.0  ;;  %v3329_v52 = vadd.f32 %v3249_v27, %v3097_v5  ;;  %v3408_v2 = vadd.f32 %v3328_v39, %v6407_v41  ;;  %v3257_v50 = vadd.f32 %v8512_v48, %v8511_v35  ;;  %v8513_v27 = vld [vmem:[#allocation10_spill] sm:$0xff]  ;;  %v8514_v15 = vld [vmem:[#allocation68_spill] sm:$0xff] }
 0x40a   :  { %v3101_v62 = vpop.f32.mrf.mxu0  ;;  %v3258_v39 = vadd.f32 %v8514_v15, %v8513_v27 }
 0x40b   :  { %v3409_v10 = vadd.f32 %v3329_v52, %v6412_v38  ;;  %v3330_v0 = vadd.f32 %v3250_v20, %v3101_v62  ;;  %3719 = vmatprep.mubr.f32.mxu1 %v3487_v14  ;;  %v3488_v61 = vmax.f32 %v3408_v2, 0.0  ;;  %v8515_v52 = vld [vmem:[#allocation41_spill] sm:$0xff] }
 0x40c   :  { %v3103_v13 = vpop.f32.mrf.mxu0  ;;  %3720 = vmatmul.mubr.f32.gmra.mxu1 %v3486_v12  ;;  %v8516_v12 = vld [vmem:[#allocation70_spill] sm:$0xff] }
 0x40d   :  { %v3489_v9 = vmax.f32 %v3409_v10, 0.0  ;;  %v3331_v42 = vadd.f32 %v3251_v25, %v3103_v13  ;;  %v3410_v21 = vadd.f32 %v3330_v0, %v6407_v41  ;;  %v3259_v2 = vadd.f32 %v8516_v12, %v8515_v52  ;;  %v8517_v25 = vld [vmem:[#allocation67_spill] sm:$0xff]  ;;  %v8518_v10 = vld [vmem:[#allocation72_spill] sm:$0xff] }
 0x40e   :  { %v3107_v44 = vpop.f32.mrf.mxu0  ;;  %v3260_v0 = vadd.f32 %v8518_v10, %v8517_v25 }
 0x40f   :  { %v3411_v31 = vadd.f32 %v3331_v42, %v6412_v38  ;;  %v3332_v6 = vadd.f32 %v3252_v37, %v3107_v44  ;;  %3724 = vmatprep.mubr.f32.mxu1 %v3489_v9  ;;  %v3490_v7 = vmax.f32 %v3410_v21, 0.0  ;;  %v8519_v42 = vld [vmem:[#allocation69_spill] sm:$0xff] }
 0x410   :  { %v3109_v24 = vpop.f32.mrf.mxu0  ;;  %3725 = vmatmul.mubr.f32.gmra.mxu1 %v3488_v61  ;;  %v8520_v61 = vld [vmem:[#allocation74_spill] sm:$0xff] }
 0x411   :  { %v3491_v17 = vmax.f32 %v3411_v31, 0.0  ;;  %v3333_v49 = vadd.f32 %v3253_v54, %v3109_v24  ;;  %v3412_v59 = vadd.f32 %v3332_v6, %v6407_v41  ;;  %v3261_v21 = vadd.f32 %v8520_v61, %v8519_v42  ;;  %v8521_v54 = vld [vmem:[#allocation71_spill] sm:$0xff]  ;;  %v8522_v31 = vld [vmem:[#allocation76_spill] sm:$0xff] }
 0x412   :  { %v3113_v26 = vpop.f32.mrf.mxu0  ;;  %v3262_v6 = vadd.f32 %v8522_v31, %v8521_v54 }
 0x413   :  { %v3413_v4 = vadd.f32 %v3333_v49, %v6412_v38  ;;  %v3334_v32 = vadd.f32 %v3254_v57, %v3113_v26  ;;  %3729 = vmatprep.mubr.f32.mxu1 %v3491_v17  ;;  %v3492_v23 = vmax.f32 %v3412_v59, 0.0  ;;  %v8523_v49 = vld [vmem:[#allocation73_spill] sm:$0xff] }
 0x414   :  { %v3115_v34 = vpop.f32.mrf.mxu0  ;;  %3730 = vmatmul.mubr.f32.gmra.mxu1 %v3490_v7  ;;  %v8524_v7 = vld [vmem:[#allocation78_spill] sm:$0xff] }
 0x415   :  { %v3493_v18 = vmax.f32 %v3413_v4, 0.0  ;;  %v3335_v19 = vadd.f32 %v3255_v8, %v3115_v34  ;;  %v3414_v1 = vadd.f32 %v3334_v32, %v6407_v41  ;;  %v3263_v59 = vadd.f32 %v8524_v7, %v8523_v49  ;;  %v8525_v8 = vld [vmem:[#allocation75_spill] sm:$0xff]  ;;  %v8526_v4 = vld [vmem:[#allocation80_spill] sm:$0xff] }
 0x416   :  { %v3119_v60 = vpop.f32.mrf.mxu0  ;;  %v3264_v32 = vadd.f32 %v8526_v4, %v8525_v8 }
 0x417   :  { %v3415_v22 = vadd.f32 %v3335_v19, %v6412_v38  ;;  %v3336_v51 = vadd.f32 %v3256_v43, %v3119_v60  ;;  %3734 = vmatprep.mubr.f32.mxu1 %v3493_v18  ;;  %v3494_v46 = vmax.f32 %v3414_v1, 0.0  ;;  %v8527_v19 = vld [vmem:[#allocation77_spill] sm:$0xff] }
 0x418   :  { %v3121_v40 = vpop.f32.mrf.mxu0  ;;  %3735 = vmatmul.mubr.f32.gmra.mxu1 %v3492_v23  ;;  %v8528_v23 = vld [vmem:[#allocation82_spill] sm:$0xff] }
 0x419   :  { %v3495_v5 = vmax.f32 %v3415_v22, 0.0  ;;  %v3337_v36 = vadd.f32 %v3257_v50, %v3121_v40  ;;  %v3416_v20 = vadd.f32 %v3336_v51, %v6407_v41  ;;  %v3265_v1 = vadd.f32 %v8528_v23, %v8527_v19  ;;  %v8529_v50 = vld [vmem:[#allocation79_spill] sm:$0xff]  ;;  %v8530_v22 = vld [vmem:[#allocation84_spill] sm:$0xff] }
 0x41a   :  { %v3125_v14 = vpop.f32.mrf.mxu0  ;;  %v3266_v51 = vadd.f32 %v8530_v22, %v8529_v50 }
 0x41b   :  { %v3417_v62 = vadd.f32 %v3337_v36, %v6412_v38  ;;  %v3338_v45 = vadd.f32 %v3258_v39, %v3125_v14  ;;  %3739 = vmatprep.mubr.f32.mxu1 %v3495_v5  ;;  %v3496_v56 = vmax.f32 %v3416_v20, 0.0  ;;  %v8531_v36 = vld [vmem:[#allocation81_spill] sm:$0xff] }
 0x41c   :  { %v3127_v30 = vpop.f32.mrf.mxu0  ;;  %3740 = vmatmul.mubr.f32.gmra.mxu1 %v3494_v46  ;;  %v8532_v46 = vld [vmem:[#allocation86_spill] sm:$0xff] }
 0x41d   :  { %v3497_v13 = vmax.f32 %v3417_v62, 0.0  ;;  %v3339_v28 = vadd.f32 %v3259_v2, %v3127_v30  ;;  %v3418_v37 = vadd.f32 %v3338_v45, %v6407_v41  ;;  %v3267_v20 = vadd.f32 %v8532_v46, %v8531_v36  ;;  %v8533_v2 = vld [vmem:[#allocation83_spill] sm:$0xff]  ;;  %v8534_v62 = vld [vmem:[#allocation88_spill] sm:$0xff] }
 0x41e   :  { %v3131_v9 = vpop.f32.mrf.mxu0  ;;  %v3268_v45 = vadd.f32 %v8534_v62, %v8533_v2 }
 0x41f   :  { %v3419_v44 = vadd.f32 %v3339_v28, %v6412_v38  ;;  %v3340_v3 = vadd.f32 %v3260_v0, %v3131_v9  ;;  %3744 = vmatprep.mubr.f32.mxu1 %v3497_v13  ;;  %v3498_v16 = vmax.f32 %v3418_v37, 0.0  ;;  %v8535_v28 = vld [vmem:[#allocation85_spill] sm:$0xff] }
 0x420   :  { %v3133_v29 = vpop.f32.mrf.mxu0  ;;  %3745 = vmatmul.mubr.f32.gmra.mxu1 %v3496_v56  ;;  %v8536_v56 = vld [vmem:[#allocation90_spill] sm:$0xff] }
 0x421   :  { %v3499_v24 = vmax.f32 %v3419_v44, 0.0  ;;  %v3341_v33 = vadd.f32 %v3261_v21, %v3133_v29  ;;  %v3420_v57 = vadd.f32 %v3340_v3, %v6407_v41  ;;  %v3269_v37 = vadd.f32 %v8536_v56, %v8535_v28  ;;  %v8537_v21 = vld [vmem:[#allocation87_spill] sm:$0xff]  ;;  %v8538_v44 = vld [vmem:[#allocation92_spill] sm:$0xff] }
 0x422   :  { %v3137_v17 = vpop.f32.mrf.mxu0  ;;  %v3270_v3 = vadd.f32 %v8538_v44, %v8537_v21 }
 0x423   :  { %v3421_v26 = vadd.f32 %v3341_v33, %v6412_v38  ;;  %v3342_v11 = vadd.f32 %v3262_v6, %v3137_v17  ;;  %3749 = vmatprep.mubr.f32.mxu1 %v3499_v24  ;;  %v3500_v58 = vmax.f32 %v3420_v57, 0.0  ;;  %v8539_v33 = vld [vmem:[#allocation89_spill] sm:$0xff] }
 0x424   :  { %v3139_v55 = vpop.f32.mrf.mxu0  ;;  %3750 = vmatmul.mubr.f32.gmra.mxu1 %v3498_v16  ;;  %v8540_v16 = vld [vmem:[#allocation94_spill] sm:$0xff] }
 0x425   :  { %v3501_v34 = vmax.f32 %v3421_v26, 0.0  ;;  %v3343_v53 = vadd.f32 %v3263_v59, %v3139_v55  ;;  %v3422_v43 = vadd.f32 %v3342_v11, %v6407_v41  ;;  %v3271_v57 = vadd.f32 %v8540_v16, %v8539_v33  ;;  %v8541_v59 = vld [vmem:[#allocation91_spill] sm:$0xff]  ;;  %v8542_v26 = vld [vmem:[#allocation96_spill] sm:$0xff] }
 0x426   :  { %v3143_v18 = vpop.f32.mrf.mxu0  ;;  %v3272_v11 = vadd.f32 %v8542_v26, %v8541_v59 }
 0x427   :  { %v3423_v60 = vadd.f32 %v3343_v53, %v6412_v38  ;;  %v3344_v35 = vadd.f32 %v3264_v32, %v3143_v18  ;;  %3754 = vmatprep.mubr.f32.mxu1 %v3501_v34  ;;  %v3502_v15 = vmax.f32 %v3422_v43, 0.0  ;;  %v8543_v53 = vld [vmem:[#allocation93_spill] sm:$0xff] }
 0x428   :  { %v3145_v48 = vpop.f32.mrf.mxu0  ;;  %3755 = vmatmul.mubr.f32.gmra.mxu1 %v3500_v58  ;;  %v8544_v58 = vld [vmem:[#allocation98_spill] sm:$0xff] }
 0x429   :  { %v3503_v40 = vmax.f32 %v3423_v60, 0.0  ;;  %v3345_v27 = vadd.f32 %v3265_v1, %v3145_v48  ;;  %v3424_v39 = vadd.f32 %v3344_v35, %v6407_v41  ;;  %v3273_v43 = vadd.f32 %v8544_v58, %v8543_v53  ;;  %v8545_v1 = vld [vmem:[#allocation95_spill] sm:$0xff]  ;;  %v8546_v60 = vld [vmem:[#allocation100_spill] sm:$0xff] }
 0x42a   :  { %v3149_v5 = vpop.f32.mrf.mxu0  ;;  %v3274_v35 = vadd.f32 %v8546_v60, %v8545_v1 }
 0x42b   :  { %v3425_v14 = vadd.f32 %v3345_v27, %v6412_v38  ;;  %v3346_v52 = vadd.f32 %v3266_v51, %v3149_v5  ;;  %3759 = vmatprep.mubr.f32.mxu1 %v3503_v40  ;;  %v3504_v10 = vmax.f32 %v3424_v39, 0.0  ;;  %v8547_v27 = vld [vmem:[#allocation97_spill] sm:$0xff] }
 0x42c   :  { %v3151_v12 = vpop.f32.mrf.mxu0  ;;  %3760 = vmatmul.mubr.f32.gmra.mxu1 %v3502_v15  ;;  %v8548_v15 = vld [vmem:[#allocation102_spill] sm:$0xff] }
 0x42d   :  { %v3505_v30 = vmax.f32 %v3425_v14, 0.0  ;;  %v3347_v25 = vadd.f32 %v3267_v20, %v3151_v12  ;;  %v3426_v0 = vadd.f32 %v3346_v52, %v6407_v41  ;;  %v3275_v39 = vadd.f32 %v8548_v15, %v8547_v27  ;;  %v8549_v20 = vld [vmem:[#allocation99_spill] sm:$0xff]  ;;  %v8550_v14 = vld [vmem:[#allocation104_spill] sm:$0xff] }
 0x42e   :  { %v3155_v13 = vpop.f32.mrf.mxu0  ;;  %v3276_v52 = vadd.f32 %v8550_v14, %v8549_v20 }
 0x42f   :  { %v3427_v9 = vadd.f32 %v3347_v25, %v6412_v38  ;;  %v3348_v42 = vadd.f32 %v3268_v45, %v3155_v13  ;;  %3764 = vmatprep.mubr.f32.mxu1 %v3505_v30  ;;  %v3506_v31 = vmax.f32 %v3426_v0, 0.0  ;;  %v8551_v25 = vld [vmem:[#allocation101_spill] sm:$0xff] }
 0x430   :  { %v3157_v61 = vpop.f32.mrf.mxu0  ;;  %3765 = vmatmul.mubr.f32.gmra.mxu1 %v3504_v10  ;;  %v8552_v10 = vld [vmem:[#allocation106_spill] sm:$0xff] }
 0x431   :  { %v3507_v29 = vmax.f32 %v3427_v9, 0.0  ;;  %v3349_v54 = vadd.f32 %v3269_v37, %v3157_v61  ;;  %v3428_v6 = vadd.f32 %v3348_v42, %v6407_v41  ;;  %v3277_v0 = vadd.f32 %v8552_v10, %v8551_v25  ;;  %v8553_v37 = vld [vmem:[#allocation103_spill] sm:$0xff]  ;;  %v8554_v9 = vld [vmem:[#allocation108_spill] sm:$0xff] }
 0x432   :  { %v3161_v24 = vpop.f32.mrf.mxu0  ;;  %v3278_v42 = vadd.f32 %v8554_v9, %v8553_v37  ;;  %v3447_v37 = vadd.f32 %v7395_v63, %v6412_v38 }
 0x433   :  { %v3429_v17 = vadd.f32 %v3349_v54, %v6412_v38  ;;  %v3350_v49 = vadd.f32 %v3270_v3, %v3161_v24  ;;  %3769 = vmatprep.mubr.f32.mxu1 %v3507_v29  ;;  %v3508_v4 = vmax.f32 %v3428_v6, 0.0  ;;  %v8555_v54 = vld [vmem:[#allocation105_spill] sm:$0xff] }
 0x434   :  { %v3163_v7 = vpop.f32.mrf.mxu0  ;;  %3770 = vmatmul.mubr.f32.gmra.mxu1 %v3506_v31  ;;  %v8556_v31 = vld [vmem:[#allocation110_spill] sm:$0xff] }
 0x435   :  { %v3509_v55 = vmax.f32 %v3429_v17, 0.0  ;;  %v3351_v8 = vadd.f32 %v3271_v57, %v3163_v7  ;;  %v3430_v32 = vadd.f32 %v3350_v49, %v6407_v41  ;;  %v3279_v6 = vadd.f32 %v8556_v31, %v8555_v54  ;;  %v8557_v57 = vld [vmem:[#allocation107_spill] sm:$0xff]  ;;  %v8558_v17 = vld [vmem:[#allocation112_spill] sm:$0xff] }
 0x436   :  { %v3167_v34 = vpop.f32.mrf.mxu0  ;;  %v3280_v49 = vadd.f32 %v8558_v17, %v8557_v57 }
 0x437   :  { %v3431_v18 = vadd.f32 %v3351_v8, %v6412_v38  ;;  %v3352_v19 = vadd.f32 %v3272_v11, %v3167_v34  ;;  %3774 = vmatprep.mubr.f32.mxu1 %v3509_v55  ;;  %v3510_v22 = vmax.f32 %v3430_v32, 0.0  ;;  %v8559_v8 = vld [vmem:[#allocation109_spill] sm:$0xff] }
 0x438   :  { %v3169_v23 = vpop.f32.mrf.mxu0  ;;  %3775 = vmatmul.mubr.f32.gmra.mxu1 %v3508_v4  ;;  %v8560_v4 = vld [vmem:[#allocation114_spill] sm:$0xff] }
 0x439   :  { %v3511_v48 = vmax.f32 %v3431_v18, 0.0  ;;  %v3353_v50 = vadd.f32 %v3273_v43, %v3169_v23  ;;  %v3432_v51 = vadd.f32 %v3352_v19, %v6407_v41  ;;  %v3281_v32 = vadd.f32 %v8560_v4, %v8559_v8  ;;  %v8561_v43 = vld [vmem:[#allocation111_spill] sm:$0xff]  ;;  %v8562_v18 = vld [vmem:[#allocation116_spill] sm:$0xff] }
 0x43a   :  { %v3173_v40 = vpop.f32.mrf.mxu0  ;;  %v3282_v19 = vadd.f32 %v8562_v18, %v8561_v43  ;;  %v4349_v8 = vld [vmem:[#allocation5 + $0xf0] sm:$0xff]  ;;  %v4414_v4 = vld [vmem:[#allocation5 + $0x2f8] sm:$0xff]  ;;  %v4347_v43 = vld [vmem:[#allocation5 + $0xe0] sm:$0xff] }
 0x43b   :  { %v3433_v5 = vadd.f32 %v3353_v50, %v6412_v38  ;;  %v3354_v36 = vadd.f32 %v3274_v35, %v3173_v40  ;;  %3779 = vmatprep.mubr.f32.mxu1 %v3511_v48  ;;  %v3512_v62 = vmax.f32 %v3432_v51, 0.0  ;;  %v8563_v50 = vld [vmem:[#allocation113_spill] sm:$0xff]  ;;  %4658 = vmatprep.subr.mxu1 %v4414_v4  ;;  %v4412_v18 = vld [vmem:[#allocation5 + $0x2e8] sm:$0xff] }
 0x43c   :  { %v3175_v46 = vpop.f32.mrf.mxu0  ;;  %3780 = vmatmul.mubr.f32.gmra.mxu1 %v3510_v22  ;;  %v8564_v22 = vld [vmem:[#allocation118_spill] sm:$0xff] }
 0x43d   :  { %v3513_v12 = vmax.f32 %v3433_v5, 0.0  ;;  %v3355_v2 = vadd.f32 %v3275_v39, %v3175_v46  ;;  %v3434_v45 = vadd.f32 %v3354_v36, %v6407_v41  ;;  %v3283_v51 = vadd.f32 %v8564_v22, %v8563_v50  ;;  %v8565_v39 = vld [vmem:[#allocation115_spill] sm:$0xff]  ;;  %v4410_v50 = vld [vmem:[#allocation5 + $0x2d8] sm:$0xff]  ;;  %v4332_v4 = vld [vmem:[#allocation5 + $0x68] sm:$0xff] }
 0x43e   :  { %v3179_v30 = vpop.f32.mrf.mxu0  ;;  %v8566_v5 = vld [vmem:[#allocation119_spill] sm:$0xff] }
 0x43f   :  { %v3435_v13 = vadd.f32 %v3355_v2, %v6412_v38  ;;  %v3356_v28 = vadd.f32 %v3276_v52, %v3179_v30  ;;  %3784 = vmatprep.mubr.f32.mxu1 %v3513_v12  ;;  %v3514_v44 = vmax.f32 %v3434_v45, 0.0  ;;  %v3284_v36 = vadd.f32 %v8566_v5, %v8565_v39  ;;  %v8567_v2 = vld [vmem:[#allocation117_spill] sm:$0xff]  ;;  %v4409_v22 = vld [vmem:[#allocation5 + $0x2d0] sm:$0xff]  ;;  %v4408_v39 = vld [vmem:[#allocation5 + $0x2c8] sm:$0xff] }
 0x440   :  { %v3181_v56 = vpop.f32.mrf.mxu0  ;;  %3785 = vmatmul.mubr.f32.gmra.mxu1 %v3512_v62  ;;  %v8568_v62 = vld [vmem:[#allocation120_spill] sm:$0xff]  ;;  %v4407_v5 = vld [vmem:[#allocation5 + $0x2c0] sm:$0xff] }
 0x441   :  { %v3515_v61 = vmax.f32 %v3435_v13, 0.0  ;;  %v3357_v21 = vadd.f32 %v3277_v0, %v3181_v56  ;;  %v3436_v3 = vadd.f32 %v3356_v28, %v6407_v41  ;;  %v3285_v45 = vadd.f32 %v8568_v62, %v8567_v2  ;;  %v4405_v2 = vld [vmem:[#allocation5 + $0x2b0] sm:$0xff] }
 0x442   :  { %v3185_v29 = vpop.f32.mrf.mxu0 }
 0x443   :  { %v3437_v24 = vadd.f32 %v3357_v21, %v6412_v38  ;;  %v3358_v33 = vadd.f32 %v3278_v42, %v3185_v29  ;;  %3789 = vmatprep.mubr.f32.mxu1 %v3515_v61  ;;  %v3516_v26 = vmax.f32 %v3436_v3, 0.0  ;;  %v3446_v61 = vadd.f32 %v7392_v47, %v6407_v41 }
 0x444   :  { %v3187_v16 = vpop.f32.mrf.mxu0  ;;  %3790 = vmatmul.mubr.f32.gmra.mxu1 %v3514_v44  ;;  %v3527_v44 = vmax.f32 %v3447_v37, 0.0  ;;  %v4337_v37 = vld [vmem:[#allocation5 + $0x90] sm:$0xff] }
 0x445   :  { %v3517_v7 = vmax.f32 %v3437_v24, 0.0  ;;  %v3359_v59 = vadd.f32 %v3279_v6, %v3187_v16  ;;  %v3438_v11 = vadd.f32 %v3358_v33, %v6407_v41  ;;  %v3526_v3 = vmax.f32 %v3446_v61, 0.0  ;;  %v4336_v61 = vld [vmem:[#allocation5 + $0x88] sm:$0xff] }
 0x446   :  { %v3191_v55 = vpop.f32.mrf.mxu0 }
 0x447   :  { %v3439_v34 = vadd.f32 %v3359_v59, %v6412_v38  ;;  %v3360_v53 = vadd.f32 %v3280_v49, %v3191_v55  ;;  %3794 = vmatprep.mubr.f32.mxu1 %v3517_v7  ;;  %v3518_v60 = vmax.f32 %v3438_v11, 0.0  ;;  %v4350_v55 = vld [vmem:[#allocation5 + $0xf8] sm:$0xff] }
 0x448   :  { %v3193_v58 = vpop.f32.mrf.mxu0  ;;  %3795 = vmatmul.mubr.f32.gmra.mxu1 %v3516_v26  ;;  %4587 = vmatprep.subr.mxu0 %v4350_v55 }
 0x449   :  { %v3519_v23 = vmax.f32 %v3439_v34, 0.0  ;;  %v3361_v1 = vadd.f32 %v3281_v32, %v3193_v58  ;;  %v3440_v35 = vadd.f32 %v3360_v53, %v6407_v41  ;;  %v4413_v32 = vld [vmem:[#allocation5 + $0x2f0] sm:$0xff]  ;;  %4588 = vmatpush1.msra.mxu0 %v4349_v8  ;;  %v4348_v58 = vld [vmem:[#allocation5 + $0xe8] sm:$0xff] }
 0x44a   :  { %v3197_v48 = vpop.f32.mrf.mxu0  ;;  %4659 = vmatpush1.msra.mxu1 %v4413_v32  ;;  %4589 = vmatprep.subr.mxu0 %v4348_v58  ;;  %v4331_v32 = vld [vmem:[#allocation5 + $0x60] sm:$0xff] }
 0x44b   :  { %v3441_v40 = vadd.f32 %v3361_v1, %v6412_v38  ;;  %v3362_v27 = vadd.f32 %v3282_v19, %v3197_v48  ;;  %3798 = vmatprep.mubr.f32.mxu1 %v3519_v23  ;;  %v3520_v14 = vmax.f32 %v3440_v35, 0.0  ;;  %4660 = vmatprep.subr.mxu1 %v4412_v18  ;;  %v4411_v19 = vld [vmem:[#allocation5 + $0x2e0] sm:$0xff]  ;;  %v4346_v23 = vld [vmem:[#allocation5 + $0xd8] sm:$0xff] }
 0x44c   :  { %v3199_v15 = vpop.f32.mrf.mxu0  ;;  %3799 = vmatmul.mubr.f32.gmra.mxu1 %v3518_v60  ;;  %4590 = vmatpush1.msra.mxu0 %v4347_v43  ;;  %v4345_v60 = vld [vmem:[#allocation5 + $0xd0] sm:$0xff]  ;;  %v4395_v18 = vld [vmem:[#allocation5 + $0x260] sm:$0xff] }
 0x44d   :  { %v3521_v46 = vmax.f32 %v3441_v40, 0.0  ;;  %v3363_v20 = vadd.f32 %v3283_v51, %v3199_v15  ;;  %v3442_v52 = vadd.f32 %v3362_v27, %v6407_v41  ;;  %4661 = vmatpush1.msra.mxu1 %v4411_v19  ;;  %4591 = vmatprep.subr.mxu0 %v4346_v23  ;;  %v4344_v51 = vld [vmem:[#allocation5 + $0xc8] sm:$0xff]  ;;  %v4343_v15 = vld [vmem:[#allocation5 + $0xc0] sm:$0xff]  ;;  %v4330_v19 = vld [vmem:[#allocation5 + $0x58] sm:$0xff] }
 0x44e   :  { %v3203_v12 = vpop.f32.mrf.mxu0  ;;  %4592 = vmatpush1.msra.mxu0 %v4345_v60  ;;  %4662 = vmatprep.subr.mxu1 %v4410_v50  ;;  %v4329_v23 = vld [vmem:[#allocation5 + $0x50] sm:$0xff]  ;;  %v4394_v60 = vld [vmem:[#allocation5 + $0x258] sm:$0xff]  ;;  %v4328_v50 = vld [vmem:[#allocation5 + $0x48] sm:$0xff] }
 0x44f   :  { %v3443_v30 = vadd.f32 %v3363_v20, %v6412_v38  ;;  %v3364_v25 = vadd.f32 %v3284_v36, %v3203_v12  ;;  %3802 = vmatprep.mubr.f32.mxu1 %v3521_v46  ;;  %v3522_v28 = vmax.f32 %v3442_v52, 0.0  ;;  %4593 = vmatprep.subr.mxu0 %v4344_v51  ;;  %v4341_v52 = vld [vmem:[#allocation5 + $0xb0] sm:$0xff]  ;;  %v4406_v12 = vld [vmem:[#allocation5 + $0x2b8] sm:$0xff] }
 0x450   :  { %v3205_v10 = vpop.f32.mrf.mxu0  ;;  %3803 = vmatmul.mubr.f32.gmra.mxu1 %v3520_v14  ;;  %4594 = vmatpush1.msra.mxu0 %v4343_v15  ;;  %v4342_v14 = vld [vmem:[#allocation5 + $0xb8] sm:$0xff] }
 0x451   :  { %v3523_v0 = vmax.f32 %v3443_v30, 0.0  ;;  %v3365_v13 = vadd.f32 %v3285_v45, %v3205_v10  ;;  %v3444_v56 = vadd.f32 %v3364_v25, %v6407_v41  ;;  %4663 = vmatpush1.msra.mxu1 %v4409_v22  ;;  %4595 = vmatprep.subr.mxu0 %v4342_v14  ;;  %v4340_v30 = vld [vmem:[#allocation5 + $0xa8] sm:$0xff]  ;;  %v4339_v25 = vld [vmem:[#allocation5 + $0xa0] sm:$0xff]  ;;  %v4325_v14 = vld [vmem:[#allocation5 + $0x30] sm:$0xff] }
 0x452   :  { %4664 = vmatprep.subr.mxu1 %v4408_v39  ;;  %4596 = vmatpush1.msra.mxu0 %v4341_v52  ;;  %v4404_v10 = vld [vmem:[#allocation5 + $0x2a8] sm:$0xff]  ;;  %v4327_v39 = vld [vmem:[#allocation5 + $0x40] sm:$0xff]  ;;  %v4390_v52 = vld [vmem:[#allocation5 + $0x238] sm:$0xff] }
 0x453   :  { %v3445_v9 = vadd.f32 %v3365_v13, %v6412_v38  ;;  %3806 = vmatprep.mubr.f32.mxu1 %v3523_v0  ;;  %v3524_v21 = vmax.f32 %v3444_v56, 0.0  ;;  %4665 = vmatpush1.msra.mxu1 %v4407_v5  ;;  %v4338_v56 = vld [vmem:[#allocation5 + $0x98] sm:$0xff]  ;;  %v4392_v5 = vld [vmem:[#allocation5 + $0x248] sm:$0xff] }
 0x454   :  { %3807 = vmatmul.mubr.f32.gmra.mxu1 %v3522_v28  ;;  %4666 = vmatprep.subr.mxu1 %v4406_v12  ;;  %v4403_v28 = vld [vmem:[#allocation5 + $0x2a0] sm:$0xff] }
 0x455   :  { %v3525_v42 = vmax.f32 %v3445_v9, 0.0  ;;  %4667 = vmatpush1.msra.mxu1 %v4405_v2  ;;  %4597 = vmatprep.subr.mxu0 %v4340_v30  ;;  %v4402_v9 = vld [vmem:[#allocation5 + $0x298] sm:$0xff]  ;;  %v4389_v2 = vld [vmem:[#allocation5 + $0x230] sm:$0xff] }
 0x456   :  { %4668 = vmatprep.subr.mxu1 %v4404_v10  ;;  %4598 = vmatpush1.msra.mxu0 %v4339_v25  ;;  %v4324_v10 = vld [vmem:[#allocation5 + $0x28] sm:$0xff] }
 0x457   :  { %3810 = vmatprep.mubr.f32.mxu1 %v3525_v42  ;;  %4669 = vmatpush1.msra.mxu1 %v4403_v28  ;;  %v4401_v42 = vld [vmem:[#allocation5 + $0x290] sm:$0xff]  ;;  %v4388_v28 = vld [vmem:[#allocation5 + $0x228] sm:$0xff] }
 0x458   :  { %3811 = vmatmul.mubr.f32.gmra.mxu1 %v3524_v21  ;;  %4599 = vmatprep.subr.mxu0 %v4338_v56  ;;  %v4387_v56 = vld [vmem:[#allocation5 + $0x220] sm:$0xff] }
 0x459   :  { %3814 = vmatprep.mubr.f32.mxu1 %v3527_v44  ;;  %4600 = vmatpush1.msra.mxu0 %v4337_v37  ;;  %v4322_v37 = vld [vmem:[#allocation5 + $0x18] sm:$0xff] }
 0x45a   :  { %4670 = vmatprep.subr.mxu1 %v4402_v9  ;;  %4601 = vmatprep.subr.mxu0 %v4336_v61 }
 0x45b   :  { %4671 = vmatpush1.msra.mxu1 %v4401_v42  ;;  %v4321_v42 = vld [vmem:[#allocation5 + $0x10] sm:$0xff] }
 0x45c   :  { %3815 = vmatmul.mubr.f32.gmra.mxu1 %v3526_v3 }
 0x480   :  { %v7632_v29 = vpop.f32.mrf.mxu1 }
 0x482   :  { %v3628_v54 = vpop.f32.mrf.mxu1 }
 0x483   :  { %v4335_v54 = vld [vmem:[#allocation5 + $0x80] sm:$0xff] }
 0x484   :  { %v7634_v31 = vpop.f32.mrf.mxu1  ;;  %4602 = vmatpush1.msra.mxu0 %v4335_v54 }
 0x485   :  { %3851 = vrot.lane.b32.xlu1 %v7634_v31, %s5264_s4 }
 0x486   :  { %v3633_v38 = vpop.f32.mrf.mxu1 }
 0x487   :  { %v4400_v38 = vld [vmem:[#allocation5 + $0x288] sm:$0xff] }
 0x488   :  { %v7638_v63 = vpop.f32.mrf.mxu1  ;;  %4672 = vmatprep.subr.mxu1 %v4400_v38  ;;  %v4386_v38 = vld [vmem:[#allocation5 + $0x218] sm:$0xff] }
 0x489   :  { %3980 = vrot.lane.b32.xlu1 %v7638_v63, %s5265_s6  ;;  %3853 = vrot.lane.b32.xlu0 %v7638_v63, %s5264_s4 }
 0x48a   :  { %v3638_v41 = vpop.f32.mrf.mxu1 }
 0x48b   :  { %v4399_v41 = vld [vmem:[#allocation5 + $0x280] sm:$0xff] }
 0x48c   :  { %v7644_v47 = vpop.f32.mrf.mxu1  ;;  %4673 = vmatpush1.msra.mxu1 %v4399_v41  ;;  %v4385_v41 = vld [vmem:[#allocation5 + $0x210] sm:$0xff] }
 0x48d   :  { %3982 = vrot.lane.b32.xlu0 %v7644_v47, %s5265_s6  ;;  %3855 = vrot.lane.b32.xlu1 %v7644_v47, %s5264_s4 }
 0x48e   :  { %v3643_v6 = vpop.f32.mrf.mxu1 }
 0x48f   :  { %v4334_v6 = vld [vmem:[#allocation5 + $0x78] sm:$0xff] }
 0x490   :  { %v7650_v24 = vpop.f32.mrf.mxu1  ;;  %4603 = vmatprep.subr.mxu0 %v4334_v6  ;;  %v4320_v6 = vld [vmem:[#allocation5 + $0x8] sm:$0xff] }
 0x491   :  { %3984 = vrot.lane.b32.xlu0 %v7650_v24, %s5265_s6  ;;  %3857 = vrot.lane.b32.xlu1 %v7650_v24, %s5264_s4 }
 0x492   :  { %v3648_v33 = vpop.f32.mrf.mxu1 }
 0x493   :  { %v4333_v33 = vld [vmem:[#allocation5 + $0x70] sm:$0xff] }
 0x494   :  { %v7656_v16 = vpop.f32.mrf.mxu1  ;;  %4604 = vmatpush1.msra.mxu0 %v4333_v33  ;;  %v4319_v33 = vld [vmem:[#allocation5] sm:$0xff] }
 0x495   :  { %3986 = vrot.lane.b32.xlu0 %v7656_v16, %s5265_s6  ;;  %4605 = vmatprep.subr.mxu0 %v4332_v4 }
 0x496   :  { %v3653_v57 = vpop.f32.mrf.mxu1  ;;  %4606 = vmatpush1.msra.mxu0 %v4331_v32 }
 0x497   :  { %v4398_v57 = vld [vmem:[#allocation5 + $0x278] sm:$0xff]  ;;  %4607 = vmatprep.subr.mxu0 %v4330_v19  ;;  %v4445_v19 = vld [vmem:[#allocation5 + $0x3f0] sm:$0xff] }
 0x498   :  { %v7660_v17 = vpop.f32.mrf.mxu1  ;;  %4674 = vmatprep.subr.mxu1 %v4398_v57  ;;  %4608 = vmatpush1.msra.mxu0 %v4329_v23  ;;  %v4384_v57 = vld [vmem:[#allocation5 + $0x208] sm:$0xff] }
 0x499   :  { %3859 = vrot.lane.b32.xlu0 %v7656_v16, %s5264_s4  ;;  %3988 = vrot.lane.b32.xlu1 %v7660_v17, %s5265_s6  ;;  %v4380_v23 = vld [vmem:[#allocation5 + $0x1e8] sm:$0xff] }
 0x49a   :  { %v3658_v49 = vpop.f32.mrf.mxu1  ;;  %4609 = vmatprep.subr.mxu0 %v4328_v50  ;;  %v4444_v50 = vld [vmem:[#allocation5 + $0x3e8] sm:$0xff] }
 0x49b   :  { %4610 = vmatpush1.msra.mxu0 %v4327_v39 }
 0x49c   :  { %v7666_v7 = vpop.f32.mrf.mxu1 }
 0x49d   :  { %3861 = vrot.lane.b32.xlu0 %v7660_v17, %s5264_s4  ;;  %3863 = vrot.lane.b32.xlu1 %v7666_v7, %s5264_s4 }
 0x49e   :  { %v3663_v59 = vpop.f32.mrf.mxu1 }
 0x49f   :  { %v4397_v59 = vld [vmem:[#allocation5 + $0x270] sm:$0xff] }
 0x4a0   :  { %v7672_v26 = vpop.f32.mrf.mxu1  ;;  %4675 = vmatpush1.msra.mxu1 %v4397_v59 }
 0x4a1   :  { %3990 = vrot.lane.b32.xlu0 %v7666_v7, %s5265_s6  ;;  %3992 = vrot.lane.b32.xlu1 %v7672_v26, %s5265_s6 }
 0x4a2   :  { %v3668_v11 = vpop.f32.mrf.mxu1 }
 0x4a4   :  { %v7678_v34 = vpop.f32.mrf.mxu1 }
 0x4a5   :  { %3865 = vrot.lane.b32.xlu0 %v7672_v26, %s5264_s4  ;;  %3994 = vrot.lane.b32.xlu1 %v7678_v34, %s5265_s6 }
 0x4a6   :  { %v3673_v53 = vpop.f32.mrf.mxu1 }
 0x4a7   :  { %v4396_v53 = vld [vmem:[#allocation5 + $0x268] sm:$0xff] }
 0x4a8   :  { %v7684_v1 = vpop.f32.mrf.mxu1  ;;  %4676 = vmatprep.subr.mxu1 %v4396_v53  ;;  %v4382_v53 = vld [vmem:[#allocation5 + $0x1f8] sm:$0xff] }
 0x4a9   :  { %3867 = vrot.lane.b32.xlu0 %v7678_v34, %s5264_s4  ;;  %3996 = vrot.lane.b32.xlu1 %v7684_v1, %s5265_s6 }
 0x4aa   :  { %v3678_v35 = vpop.f32.mrf.mxu1  ;;  %4677 = vmatpush1.msra.mxu1 %v4395_v18  ;;  %v4446_v18 = vld [vmem:[#allocation5 + $0x3f8] sm:$0xff] }
 0x4ab   :  { %v4393_v35 = vld [vmem:[#allocation5 + $0x250] sm:$0xff]  ;;  %4678 = vmatprep.subr.mxu1 %v4394_v60 }
 0x4ac   :  { %v7690_v48 = vpop.f32.mrf.mxu1  ;;  %4679 = vmatpush1.msra.mxu1 %v4393_v35  ;;  %v4379_v35 = vld [vmem:[#allocation5 + $0x1e0] sm:$0xff] }
 0x4ad   :  { %3869 = vrot.lane.b32.xlu0 %v7684_v1, %s5264_s4  ;;  %3998 = vrot.lane.b32.xlu1 %v7690_v48, %s5265_s6 }
 0x4ae   :  { %v3683_v40 = vpop.f32.mrf.mxu1  ;;  %4680 = vmatprep.subr.mxu1 %v4392_v5 }
 0x4b0   :  { %v7696_v27 = vpop.f32.mrf.mxu1 }
 0x4b1   :  { %3871 = vrot.lane.b32.xlu0 %v7690_v48, %s5264_s4  ;;  %3873 = vrot.lane.b32.xlu1 %v7696_v27, %s5264_s4 }
 0x4b2   :  { %v3688_v36 = vpop.f32.mrf.mxu1 }
 0x4b3   :  { %v4391_v36 = vld [vmem:[#allocation5 + $0x240] sm:$0xff] }
 0x4b4   :  { %v7702_v46 = vpop.f32.mrf.mxu1  ;;  %4681 = vmatpush1.msra.mxu1 %v4391_v36  ;;  %v4443_v36 = vld [vmem:[#allocation5 + $0x3e0] sm:$0xff] }
 0x4b5   :  { %4000 = vrot.lane.b32.xlu1 %v7696_v27, %s5265_s6  ;;  %3875 = vrot.lane.b32.xlu0 %v7702_v46, %s5264_s4 }
 0x4b6   :  { %v3693_v20 = vpop.f32.mrf.mxu1  ;;  %4682 = vmatprep.subr.mxu1 %v4390_v52 }
 0x4b7   :  { %v4326_v20 = vld [vmem:[#allocation5 + $0x38] sm:$0xff]  ;;  %4683 = vmatpush1.msra.mxu1 %v4389_v2  ;;  %v7800_v2 = vld [vmem:[%s8060_s5] ss:$0 sm:$0xff]  ;;  %s5266_s5 = smov 32  }
 0x4b8   :  { %v7708_v62 = vpop.f32.mrf.mxu1  ;;  %4611 = vmatprep.subr.mxu0 %v4326_v20  ;;  %4684 = vmatprep.subr.mxu1 %v4388_v28  ;;  %v4378_v20 = vld [vmem:[#allocation5 + $0x1d8] sm:$0xff] }
 0x4b9   :  { %4002 = vrot.lane.b32.xlu1 %v7702_v46, %s5265_s6  ;;  %4004 = vrot.lane.b32.xlu0 %v7708_v62, %s5265_s6 }
 0x4ba   :  { %v3698_v45 = vpop.f32.mrf.mxu1  ;;  %4612 = vmatpush1.msra.mxu0 %v4325_v14  ;;  %4685 = vmatpush1.msra.mxu1 %v4387_v56  ;;  %v4377_v14 = vld [vmem:[#allocation5 + $0x1d0] sm:$0xff]  ;;  %v4442_v56 = vld [vmem:[#allocation5 + $0x3d8] sm:$0xff] }
 0x4bb   :  { %4613 = vmatprep.subr.mxu0 %v4324_v10  ;;  %4686 = vmatprep.subr.mxu1 %v4386_v38 }
 0x4bc   :  { %v7714_v0 = vpop.f32.mrf.mxu1  ;;  %4687 = vmatpush1.msra.mxu1 %v4385_v41 }
 0x4bd   :  { %3877 = vrot.lane.b32.xlu1 %v7708_v62, %s5264_s4  ;;  %4006 = vrot.lane.b32.xlu0 %v7714_v0, %s5265_s6 }
 0x4be   :  { %v3703_v13 = vpop.f32.mrf.mxu1  ;;  %4688 = vmatprep.subr.mxu1 %v4384_v57 }
 0x4bf   :  { %v4323_v13 = vld [vmem:[#allocation5 + $0x20] sm:$0xff] }
 0x4c0   :  { %v7720_v21 = vpop.f32.mrf.mxu1  ;;  %4614 = vmatpush1.msra.mxu0 %v4323_v13 }
 0x4c1   :  { %3879 = vrot.lane.b32.xlu1 %v7714_v0, %s5264_s4  ;;  %4008 = vrot.lane.b32.xlu0 %v7720_v21, %s5265_s6 }
 0x4c2   :  { %v3708_v44 = vpop.f32.mrf.mxu1  ;;  %4615 = vmatprep.subr.mxu0 %v4322_v37  ;;  %v4441_v37 = vld [vmem:[#allocation5 + $0x3d0] sm:$0xff] }
 0x4c3   :  { %4616 = vmatpush1.msra.mxu0 %v4321_v42  ;;  %v4440_v42 = vld [vmem:[#allocation5 + $0x3c8] sm:$0xff] }
 0x4c4   :  { %v7726_v3 = vpop.f32.mrf.mxu1  ;;  %4617 = vmatprep.subr.mxu0 %v4320_v6 }
 0x4c5   :  { %3881 = vrot.lane.b32.xlu1 %v7720_v21, %s5264_s4  ;;  %4010 = vrot.lane.b32.xlu0 %v7726_v3, %s5265_s6 }
 0x4c6   :  { %v3713_v49 = vpop.f32.mrf.mxu1  ;;  %4618 = vmatpush1.msra.mxu0 %v4319_v33 }
 0x4c7   :  { %v4383_v49 = vld [vmem:[#allocation5 + $0x200] sm:$0xff]  ;;  %4619 = vmatprep.subr.mxu0 %v4382_v53  ;;  %v4374_v53 = vld [vmem:[#allocation5 + $0x1b8] sm:$0xff] }
 0x4c8   :  { %v7732_v11 = vpop.f32.mrf.mxu1  ;;  %4689 = vmatpush1.msra.mxu1 %v4383_v49 }
 0x4c9   :  { %3885 = vrot.lane.b32.xlu1 %v7732_v11, %s5264_s4  ;;  %4690 = vmatprep.subr.mxu1 %v4446_v18 }
 0x4ca   :  { %v3718_v55 = vpop.f32.mrf.mxu1  ;;  %4691 = vmatpush2.msra.mxu1 %v4445_v19 }
 0x4cb   :  { %4692 = vmatprep.subr.mxu1 %v4444_v50 }
 0x4cc   :  { %v7736_v8 = vpop.f32.mrf.mxu1  ;;  %4693 = vmatpush2.msra.mxu1 %v4443_v36  ;;  %v4436_v36 = vld [vmem:[#allocation5 + $0x3a8] sm:$0xff] }
 0x4cd   :  { %4014 = vrot.lane.b32.xlu0 %v7736_v8, %s5265_s6  ;;  %3887 = vrot.lane.b32.xlu1 %v7736_v8, %s5264_s4 }
 0x4ce   :  { %v3723_v58 = vpop.f32.mrf.mxu1  ;;  %4694 = vmatprep.subr.mxu1 %v4442_v56  ;;  %v4368_v56 = vld [vmem:[#allocation5 + $0x188] sm:$0xff] }
 0x4cf   :  { %v4381_v58 = vld [vmem:[#allocation5 + $0x1f0] sm:$0xff]  ;;  %4695 = vmatpush2.msra.mxu1 %v4441_v37 }
 0x4d0   :  { %v7742_v43 = vpop.f32.mrf.mxu1  ;;  %4620 = vmatpush2.msra.mxu0 %v4381_v58  ;;  %4696 = vmatprep.subr.mxu1 %v4440_v42  ;;  %v4373_v58 = vld [vmem:[#allocation5 + $0x1b0] sm:$0xff]  ;;  %v4367_v42 = vld [vmem:[#allocation5 + $0x180] sm:$0xff] }
 0x4d1   :  { %3889 = vrot.lane.b32.xlu1 %v7742_v43, %s5264_s4  ;;  %4621 = vmatprep.subr.mxu0 %v4380_v23  ;;  %v4437_v23 = vld [vmem:[#allocation5 + $0x3b0] sm:$0xff] }
 0x4d2   :  { %v3728_v22 = vpop.f32.mrf.mxu1  ;;  %4622 = vmatpush2.msra.mxu0 %v4379_v35 }
 0x4d3   :  { %4623 = vmatprep.subr.mxu0 %v4378_v20  ;;  %v4435_v20 = vld [vmem:[#allocation5 + $0x3a0] sm:$0xff] }
 0x4d4   :  { %v7746_v51 = vpop.f32.mrf.mxu1  ;;  %4624 = vmatpush2.msra.mxu0 %v4377_v14 }
 0x4d5   :  { %4016 = vrot.lane.b32.xlu1 %v7742_v43, %s5265_s6 }
 0x4d6   :  { %v3733_v40 = vpop.f32.mrf.mxu1 }
 0x4d8   :  { %v7750_v15 = vpop.f32.mrf.mxu1 }
 0x4d9   :  { %4018 = vrot.lane.b32.xlu1 %v7746_v51, %s5265_s6  ;;  %3893 = vrot.lane.b32.xlu0 %v7750_v15, %s5264_s4 }
 0x4da   :  { %v3738_v12 = vpop.f32.mrf.mxu1 }
 0x4dc   :  { %v7756_v45 = vpop.f32.mrf.mxu1 }
 0x4dd   :  { %3895 = vrot.lane.b32.xlu0 %v7756_v45, %s5264_s4 }
 0x4de   :  { %v3743_v30 = vpop.f32.mrf.mxu1 }
 0x4e0   :  { %v7760_v25 = vpop.f32.mrf.mxu1 }
 0x4e1   :  { %4022 = vrot.lane.b32.xlu0 %v7756_v45, %s5265_s6  ;;  %4024 = vrot.lane.b32.xlu1 %v7760_v25, %s5265_s6 }
 0x4e2   :  { %v3748_v9 = vpop.f32.mrf.mxu1 }
 0x4e3   :  { %v4376_v9 = vld [vmem:[#allocation5 + $0x1c8] sm:$0xff] }
 0x4e4   :  { %v7766_v61 = vpop.f32.mrf.mxu1  ;;  %4625 = vmatprep.subr.mxu0 %v4376_v9 }
 0x4e5   :  { %3897 = vrot.lane.b32.xlu0 %v7760_v25, %s5264_s4 }
 0x4e6   :  { %v3753_v44 = vpop.f32.mrf.mxu1 }
 0x4e7   :  { %v4439_v44 = vld [vmem:[#allocation5 + $0x3c0] sm:$0xff] }
 0x4e8   :  { %v7770_v54 = vpop.f32.mrf.mxu1  ;;  %4697 = vmatpush2.msra.mxu1 %v4439_v44 }
 0x4e9   :  { %4026 = vrot.lane.b32.xlu0 %v7766_v61, %s5265_s6 }
 0x4ea   :  { %v3758_v59 = vpop.f32.mrf.mxu1 }
 0x4ec   :  { %v7774_v55 = vpop.f32.mrf.mxu1 }
 0x4ed   :  { %3901 = vrot.lane.b32.xlu0 %v7770_v54, %s5264_s4  ;;  %3903 = vrot.lane.b32.xlu1 %v7774_v55, %s5264_s4 }
 0x4ee   :  { %v3763_v4 = vpop.f32.mrf.mxu1 }
 0x4f0   :  { %v7780_v32 = vpop.f32.mrf.mxu1 }
 0x4f1   :  { %4030 = vrot.lane.b32.xlu0 %v7774_v55, %s5265_s6  ;;  %4032 = vrot.lane.b32.xlu1 %v7780_v32, %s5265_s6 }
 0x4f2   :  { %v3768_v60 = vpop.f32.mrf.mxu1 }
 0x4f3   :  { %v4372_v60 = vld [vmem:[#allocation5 + $0x1a8] sm:$0xff] }
 0x4f4   :  { %v7786_v22 = vpop.f32.mrf.mxu1 }
 0x4f5   :  { %3905 = vrot.lane.b32.xlu0 %v7780_v32, %s5264_s4 }
 0x4f6   :  { %v3773_v40 = vpop.f32.mrf.mxu1 }
 0x4f7   :  { %v3852_v39 = vpop.permute.xlu1 %3851 }
 0x4f8   :  { %v7790_v5 = vpop.f32.mrf.mxu1  ;;  %v3947_v52 = vadd.f32 %v3852_v39, %v7632_v29  ;;  %v4375_v29 = vld [vmem:[#allocation5 + $0x1c0] sm:$0xff] }
 0x4f9   :  { %4034 = vrot.lane.b32.xlu0 %v7786_v22, %s5265_s6  ;;  %3909 = vrot.lane.b32.xlu1 %v7790_v5, %s5264_s4  ;;  %v4371_v39 = vld [vmem:[#allocation5 + $0x1a0] sm:$0xff] }
 0x4fa   :  { %v3778_v12 = vpop.f32.mrf.mxu1  ;;  %4626 = vmatpush2.msra.mxu0 %v4375_v29 }
 0x4fb   :  { %v3981_v30 = vpop.permute.xlu1 %3980  ;;  %v3854_v10 = vpop.permute.xlu0 %3853  ;;  %4627 = vmatprep.subr.mxu0 %v4374_v53  ;;  %v4369_v12 = vld [vmem:[#allocation5 + $0x190] sm:$0xff] }
 0x4fc   :  { %v4076_v13 = vadd.f32 %v3981_v30, %v3947_v52  ;;  %v7802_v28 = vpop.f32.mrf.mxu1  ;;  %v3948_v41 = vadd.f32 %v3854_v10, %v7634_v31  ;;  %v4438_v31 = vld [vmem:[#allocation5 + $0x3b8] sm:$0xff]  ;;  %4628 = vmatpush2.msra.mxu0 %v4373_v58  ;;  %v4365_v58 = vld [vmem:[#allocation5 + $0x170] sm:$0xff] }
 0x4fd   :  { %3911 = vrot.lane.b32.xlu1 %v7802_v28, %s5264_s4  ;;  %4698 = vmatprep.subr.mxu1 %v4438_v31  ;;  %v4434_v30 = vld [vmem:[#allocation5 + $0x398] sm:$0xff]  ;;  %v4364_v31 = vld [vmem:[#allocation5 + $0x168] sm:$0xff] }
 0x4fe   :  { %v4115_v38 = vadd.f32 %v7800_v2, %v4076_v13  ;;  %v3783_v6 = vpop.f32.mrf.mxu1  ;;  %4699 = vmatpush2.msra.mxu1 %v4437_v23  ;;  %4629 = vmatprep.subr.mxu0 %v4372_v60  ;;  %v4433_v23 = vld [vmem:[#allocation5 + $0x390] sm:$0xff]  ;;  %v4363_v60 = vld [vmem:[#allocation5 + $0x160] sm:$0xff] }
 0x4ff   :  { %v3983_v33 = vpop.permute.xlu0 %3982  ;;  %v3856_v57 = vpop.permute.xlu1 %3855  ;;  %4700 = vmatprep.subr.mxu1 %v4436_v36  ;;  %4630 = vmatpush2.msra.mxu0 %v4371_v39  ;;  %v4361_v39 = vld [vmem:[#allocation5 + $0x150] sm:$0xff]  ;;  %v4360_v36 = vld [vmem:[#allocation5 + $0x148] sm:$0xff] }
 0x500   :  { %v4147_v49 = vmax.f32 %v4115_v38, 0.0  ;;  %v4077_v59 = vadd.f32 %v3983_v33, %v3948_v41  ;;  %v3786_v4 = vpop.f32.mrf.mxu1  ;;  %v3949_v18 = vadd.f32 %v3856_v57, %v7638_v63  ;;  %v4370_v63 = vld [vmem:[#allocation5 + $0x198] sm:$0xff]  ;;  %4701 = vmatpush2.msra.mxu1 %v4435_v20 }
 0x501   :  { %4038 = vrot.lane.b32.xlu1 %v7802_v28, %s5265_s6  ;;  %3913 = vrot.lane.b32.xlu0 %v3786_v4, %s5264_s4  ;;  %v4366_v41 = vld [vmem:[#allocation5 + $0x178] sm:$0xff] }
 0x502   :  { %v3788_v19 = vpop.f32.mrf.mxu1  ;;  %4180 = vst.msk [vmem:[#allocation2] sm:$0xff] %vm4179_vm1, %v4147_v49  ;;  %v4116_v35 = vadd.f32 %v7800_v2, %v4077_v59  ;;  %4631 = vmatprep.subr.mxu0 %v4370_v63  ;;  %4702 = vmatprep.subr.mxu1 %v4434_v30 }
 0x503   :  { %v3985_v50 = vpop.permute.xlu0 %3984  ;;  %v3858_v40 = vpop.permute.xlu1 %3857  ;;  %4632 = vmatpush2.msra.mxu0 %v4369_v12  ;;  %4703 = vmatpush2.msra.mxu1 %v4433_v23  ;;  %v4352_v23 = vld [vmem:[#allocation5 + $0x108] sm:$0xff] }
 0x504   :  { %v4078_v14 = vadd.f32 %v3985_v50, %v3949_v18  ;;  %v3791_v52 = vpop.f32.mrf.mxu1  ;;  %v3950_v10 = vadd.f32 %v3858_v40, %v7644_v47  ;;  %v4148_v37 = vmax.f32 %v4116_v35, 0.0  ;;  %4633 = vmatprep.subr.mxu0 %v4368_v56  ;;  %v4362_v35 = vld [vmem:[#allocation5 + $0x158] sm:$0xff] }
 0x505   :  { %4040 = vrot.lane.b32.xlu1 %v3786_v4, %s5265_s6  ;;  %4042 = vrot.lane.b32.xlu0 %v3791_v52, %s5265_s6  ;;  %v4431_v52 = vld [vmem:[#allocation5 + $0x380] sm:$0xff] }
 0x506   :  { %v3793_v13 = vpop.f32.mrf.mxu1  ;;  %v4117_v9 = vadd.f32 %v7800_v2, %v4078_v14  ;;  %4634 = vmatpush2.msra.mxu0 %v4367_v42  ;;  %v4356_v42 = vld [vmem:[#allocation5 + $0x128] sm:$0xff] }
 0x507   :  { %v3987_v29 = vpop.permute.xlu0 %3986  ;;  %4635 = vmatprep.subr.mxu0 %v4366_v41  ;;  %v4359_v13 = vld [vmem:[#allocation5 + $0x140] sm:$0xff] }
 0x508   :  { %v4079_v44 = vadd.f32 %v3987_v29, %v3950_v10  ;;  %v3796_v38 = vpop.f32.mrf.mxu1  ;;  %v4149_v33 = vmax.f32 %v4117_v9, 0.0  ;;  %4636 = vmatpush2.msra.mxu0 %v4365_v58  ;;  %v4358_v9 = vld [vmem:[#allocation5 + $0x138] sm:$0xff]  ;;  %v4357_v29 = vld [vmem:[#allocation5 + $0x130] sm:$0xff] }
 0x509   :  { %4182 = vrot.lane.b32.xlu0 %v4148_v37, %s5266_s5  ;;  %4637 = vmatprep.subr.mxu0 %v4364_v31 }
 0x50a   :  { %v4118_v47 = vadd.f32 %v7800_v2, %v4079_v44  ;;  %v3797_v6 = vpop.f32.mrf.mxu1  ;;  %4638 = vmatpush2.msra.mxu0 %v4363_v60 }
 0x50b   :  { %v3860_v57 = vpop.permute.xlu0 %3859  ;;  %v3989_v49 = vpop.permute.xlu1 %3988  ;;  %4639 = vmatprep.subr.mxu0 %v4362_v35  ;;  %v4355_v6 = vld [vmem:[#allocation5 + $0x120] sm:$0xff] }
 0x50c   :  { %v4150_v59 = vmax.f32 %v4118_v47, 0.0  ;;  %v3951_v4 = vadd.f32 %v3860_v57, %v7650_v24  ;;  %v3800_v53 = vpop.f32.mrf.mxu1  ;;  %v4432_v24 = vld [vmem:[#allocation5 + $0x388] sm:$0xff]  ;;  %4640 = vmatpush2.msra.mxu0 %v4361_v39  ;;  %v4430_v47 = vld [vmem:[#allocation5 + $0x378] sm:$0xff] }
 0x50d   :  { %4188 = vrot.lane.b32.xlu0 %v4149_v33, %s5265_s6  ;;  %4704 = vmatprep.subr.mxu1 %v4432_v24  ;;  %v4428_v24 = vld [vmem:[#allocation5 + $0x368] sm:$0xff] }
 0x50e   :  { %v4080_v18 = vadd.f32 %v3989_v49, %v3951_v4  ;;  %4194 = vrot.lane.b32.xlu1 %v4150_v59, %s5264_s4  ;;  %v3801_v19 = vpop.f32.mrf.mxu1  ;;  %4705 = vmatpush2.msra.mxu1 %v4431_v52  ;;  %v4353_v59 = vld [vmem:[#allocation5 + $0x110] sm:$0xff]  ;;  %v4478_v52 = vld [vmem:[#allocation5 + $0x4f8] sm:$0xff] }
 0x50f   :  { %v3862_v50 = vpop.permute.xlu0 %3861  ;;  %v3864_v40 = vpop.permute.xlu1 %3863  ;;  %4641 = vmatprep.subr.mxu0 %v4360_v36  ;;  %4706 = vmatprep.subr.mxu1 %v4430_v47  ;;  %v4423_v47 = vld [vmem:[#allocation5 + $0x340] sm:$0xff] }
 0x510   :  { %v4119_v20 = vadd.f32 %v7800_v2, %v4080_v18  ;;  %v3804_v14 = vpop.f32.mrf.mxu1  ;;  %v3952_v12 = vadd.f32 %v3862_v50, %v7656_v16  ;;  %v3953_v30 = vadd.f32 %v3864_v40, %v7660_v17  ;;  %4642 = vmatpush2.msra.mxu0 %v4359_v13  ;;  %v4429_v16 = vld [vmem:[#allocation5 + $0x370] sm:$0xff]  ;;  %v4354_v17 = vld [vmem:[#allocation5 + $0x118] sm:$0xff]  ;;  %v4351_v50 = vld [vmem:[#allocation5 + $0x100] sm:$0xff] }
 0x511   :  { %4643 = vmatprep.subr.mxu0 %v4358_v9  ;;  %4707 = vmatpush2.msra.mxu1 %v4429_v16  ;;  %v4427_v14 = vld [vmem:[#allocation5 + $0x360] sm:$0xff] }
 0x512   :  { %v4151_v63 = vmax.f32 %v4119_v20, 0.0  ;;  %v3805_v10 = vpop.f32.mrf.mxu1  ;;  %4644 = vmatpush2.msra.mxu0 %v4357_v29  ;;  %4708 = vmatprep.subr.mxu1 %v4428_v24 }
 0x513   :  { %v3991_v56 = vpop.permute.xlu0 %3990  ;;  %v3993_v37 = vpop.permute.xlu1 %3992  ;;  %4645 = vmatprep.subr.mxu0 %v4356_v42  ;;  %4709 = vmatpush2.msra.mxu1 %v4427_v14 }
 0x514   :  { %v4081_v44 = vadd.f32 %v3991_v56, %v3952_v12  ;;  %v4082_v38 = vadd.f32 %v3993_v37, %v3953_v30  ;;  %v3808_v41 = vpop.f32.mrf.mxu1  ;;  %4199 = vst.msk [vmem:[#allocation2 + $0x8] sm:$0xff] %vm4179_vm1, %v4151_v63  ;;  %4646 = vmatpush2.msra.mxu0 %v4355_v6  ;;  %v4426_v63 = vld [vmem:[#allocation5 + $0x358] sm:$0xff] }
 0x515   :  { %4647 = vmatprep.subr.mxu0 %v4354_v17  ;;  %4710 = vmatprep.subr.mxu1 %v4426_v63 }
 0x516   :  { %v4120_v33 = vadd.f32 %v7800_v2, %v4081_v44  ;;  %v4121_v57 = vadd.f32 %v7800_v2, %v4082_v38  ;;  %v3809_v49 = vpop.f32.mrf.mxu1  ;;  %4648 = vmatpush2.msra.mxu0 %v4353_v59  ;;  %v4424_v44 = vld [vmem:[#allocation5 + $0x348] sm:$0xff] }
 0x517   :  { %v3866_v4 = vpop.permute.xlu0 %3865  ;;  %v3995_v53 = vpop.permute.xlu1 %3994  ;;  %4649 = vmatprep.subr.mxu0 %v4352_v23 }
 0x518   :  { %v4152_v58 = vmax.f32 %v4120_v33, 0.0  ;;  %v4153_v31 = vmax.f32 %v4121_v57, 0.0  ;;  %v3954_v18 = vadd.f32 %v3866_v4, %v7666_v7  ;;  %v3812_v19 = vpop.f32.mrf.mxu1  ;;  %4650 = vmatpush2.msra.mxu0 %v4351_v50  ;;  %v4422_v57 = vld [vmem:[#allocation5 + $0x338] sm:$0xff]  ;;  %v4419_v50 = vld [vmem:[#allocation5 + $0x320] sm:$0xff] }
 0x519   :  { %4729 = vmatprep.subr.mxu0 %v4478_v52 }
 0x51a   :  { %v4083_v60 = vadd.f32 %v3995_v53, %v3954_v18  ;;  %4206 = vrot.lane.b32.xlu1 %v4153_v31, %s5265_s6  ;;  %4201 = vrot.lane.b32.xlu0 %v4152_v58, %s5266_s5  ;;  %v3813_v35 = vpop.f32.mrf.mxu1  ;;  %v4421_v31 = vld [vmem:[#allocation5 + $0x330] sm:$0xff] }
 0x51b   :  { %v3868_v40 = vpop.permute.xlu0 %3867  ;;  %v3997_v39 = vpop.permute.xlu1 %3996  ;;  %v4420_v35 = vld [vmem:[#allocation5 + $0x328] sm:$0xff] }
 0x51c   :  { %v4122_v36 = vadd.f32 %v7800_v2, %v4083_v60  ;;  %v3955_v20 = vadd.f32 %v3868_v40, %v7672_v26  ;;  %v3816_v7 = vpop.f32.mrf.mxu1  ;;  %v4425_v26 = vld [vmem:[#allocation5 + $0x350] sm:$0xff] }
 0x51d   :  { %4711 = vmatpush2.msra.mxu1 %v4425_v26  ;;  %v4417_v7 = vld [vmem:[#allocation5 + $0x310] sm:$0xff] }
 0x51e   :  { %v4154_v12 = vmax.f32 %v4122_v36, 0.0  ;;  %v4084_v30 = vadd.f32 %v3997_v39, %v3955_v20  ;;  %v3817_v10 = vpop.f32.mrf.mxu1  ;;  %4712 = vmatprep.subr.mxu1 %v4424_v44  ;;  %v4418_v20 = vld [vmem:[#allocation5 + $0x318] sm:$0xff] }
 0x51f   :  { %v3870_v13 = vpop.permute.xlu0 %3869  ;;  %v3999_v56 = vpop.permute.xlu1 %3998  ;;  %4713 = vmatpush2.msra.mxu1 %v4423_v47 }
 0x520   :  { %v4123_v37 = vadd.f32 %v7800_v2, %v4084_v30  ;;  %v3956_v9 = vadd.f32 %v3870_v13, %v7678_v34  ;;  %4211 = vrot.lane.b32.xlu1 %v4154_v12, %s5264_s4  ;;  %4714 = vmatprep.subr.mxu1 %v4422_v57  ;;  %v4416_v13 = vld [vmem:[#allocation5 + $0x308] sm:$0xff] }
 0x521   :  { %4715 = vmatpush2.msra.mxu1 %v4421_v31 }
 0x522   :  { %v4155_v29 = vmax.f32 %v4123_v37, 0.0  ;;  %v4085_v42 = vadd.f32 %v3999_v56, %v3956_v9  ;;  %4716 = vmatprep.subr.mxu1 %v4420_v35  ;;  %v4415_v9 = vld [vmem:[#allocation5 + $0x300] sm:$0xff] }
 0x523   :  { %v3872_v38 = vpop.permute.xlu0 %3871  ;;  %v3874_v41 = vpop.permute.xlu1 %3873  ;;  %4717 = vmatpush2.msra.mxu1 %v4419_v50 }
 0x524   :  { %v4124_v6 = vadd.f32 %v7800_v2, %v4085_v42  ;;  %4215 = vst.msk [vmem:[#allocation2 + $0x10] sm:$0xff] %vm4179_vm1, %v4155_v29  ;;  %v3957_v17 = vadd.f32 %v3872_v38, %v7684_v1  ;;  %v3958_v14 = vadd.f32 %v3874_v41, %v7690_v48  ;;  %4718 = vmatprep.subr.mxu1 %v4418_v20  ;;  %v4542_v38 = vld [vmem:[#allocation5 + $0x6f8] sm:$0xff] }
 0x525   :  { %4719 = vmatpush2.msra.mxu1 %v4417_v7 }
 0x526   :  { %v4156_v16 = vmax.f32 %v4124_v6, 0.0  ;;  %4720 = vmatprep.subr.mxu1 %v4416_v13 }
 0x527   :  { %v4001_v34 = vpop.permute.xlu1 %4000  ;;  %v3876_v33 = vpop.permute.xlu0 %3875  ;;  %4721 = vmatpush2.msra.mxu1 %v4415_v9 }
 0x528   :  { %v4086_v49 = vadd.f32 %v4001_v34, %v3957_v17  ;;  %4217 = vrot.lane.b32.xlu0 %v4156_v16, %s5266_s5  ;;  %v3959_v4 = vadd.f32 %v3876_v33, %v7696_v27  ;;  %4800 = vmatprep.subr.mxu1 %v4542_v38 }
 0x52a   :  { %v4125_v59 = vadd.f32 %v7800_v2, %v4086_v49 }
 0x52b   :  { %v4003_v53 = vpop.permute.xlu1 %4002  ;;  %v4005_v58 = vpop.permute.xlu0 %4004 }
 0x52c   :  { %v4157_v18 = vmax.f32 %v4125_v59, 0.0  ;;  %v4088_v19 = vadd.f32 %v4005_v58, %v3959_v4  ;;  %v4087_v12 = vadd.f32 %v4003_v53, %v3958_v14 }
 0x52e   :  { %v4127_v23 = vadd.f32 %v7800_v2, %v4088_v19  ;;  %4222 = vrot.lane.b32.xlu1 %v4157_v18, %s5265_s6  ;;  %v4126_v26 = vadd.f32 %v7800_v2, %v4087_v12 }
 0x52f   :  { %v3878_v1 = vpop.permute.xlu1 %3877  ;;  %v4007_v60 = vpop.permute.xlu0 %4006 }
 0x530   :  { %v4159_v40 = vmax.f32 %v4127_v23, 0.0  ;;  %v3960_v39 = vadd.f32 %v3878_v1, %v7702_v46  ;;  %v4158_v41 = vmax.f32 %v4126_v26, 0.0 }
 0x532   :  { %v4089_v27 = vadd.f32 %v4007_v60, %v3960_v39  ;;  %4231 = vst.msk [vmem:[#allocation2 + $0x18] sm:$0xff] %vm4179_vm1, %v4159_v40 }
 0x533   :  { %v3880_v24 = vpop.permute.xlu1 %3879  ;;  %v4009_v36 = vpop.permute.xlu0 %4008 }
 0x534   :  { %v4128_v52 = vadd.f32 %v7800_v2, %v4089_v27  ;;  %v3961_v63 = vadd.f32 %v3880_v24, %v7708_v62 }
 0x536   :  { %v4160_v30 = vmax.f32 %v4128_v52, 0.0  ;;  %v4090_v46 = vadd.f32 %v4009_v36, %v3961_v63 }
 0x537   :  { %v3882_v10 = vpop.permute.xlu1 %3881  ;;  %v4011_v48 = vpop.permute.xlu0 %4010 }
 0x538   :  { %v4129_v56 = vadd.f32 %v7800_v2, %v4090_v46  ;;  %v3962_v37 = vadd.f32 %v3882_v10, %v7714_v0  ;;  %4233 = vrot.lane.b32.xlu0 %v4160_v30, %s5266_s5 }
 0x53a   :  { %v4161_v62 = vmax.f32 %v4129_v56, 0.0  ;;  %v4091_v29 = vadd.f32 %v4011_v48, %v3962_v37 }
 0x53b   :  { %v3886_v42 = vpop.permute.xlu1 %3885 }
 0x53c   :  { %v4130_v44 = vadd.f32 %v7800_v2, %v4091_v29  ;;  %4238 = vrot.lane.b32.xlu1 %v4161_v62, %s5265_s6  ;;  %v3964_v17 = vadd.f32 %v3886_v42, %v7726_v3 }
 0x53e   :  { %v4162_v47 = vmax.f32 %v4130_v44, 0.0 }
 0x53f   :  { %v3888_v0 = vpop.permute.xlu1 %3887  ;;  %v4015_v16 = vpop.permute.xlu0 %4014 }
 0x540   :  { %4227 = vrot.lane.b32.xlu1 %v4158_v41, %s5264_s4  ;;  %4243 = vrot.lane.b32.xlu0 %v4162_v47, %s5264_s4  ;;  %v4093_v33 = vadd.f32 %v4015_v16, %v3964_v17  ;;  %v3965_v4 = vadd.f32 %v3888_v0, %v7732_v11 }
 0x543   :  { %v3890_v6 = vpop.permute.xlu1 %3889 }
 0x544   :  { %3883 = vrot.lane.b32.xlu1 %v7726_v3, %s5264_s4  ;;  %3891 = vrot.lane.b32.xlu0 %v7746_v51, %s5264_s4  ;;  %v3966_v57 = vadd.f32 %v3890_v6, %v7736_v8  ;;  %v4132_v3 = vadd.f32 %v7800_v2, %v4093_v33 }
 0x546   :  { %v4164_v8 = vmax.f32 %v4132_v3, 0.0 }
 0x547   :  { %v4017_v34 = vpop.permute.xlu1 %4016 }
 0x548   :  { %4020 = vrot.lane.b32.xlu1 %v7750_v15, %s5265_s6  ;;  %3907 = vrot.lane.b32.xlu0 %v7786_v22, %s5264_s4  ;;  %v4094_v58 = vadd.f32 %v4017_v34, %v3965_v4 }
 0x54a   :  { %v4133_v19 = vadd.f32 %v7800_v2, %v4094_v58 }
 0x54b   :  { %v4019_v49 = vpop.permute.xlu1 %4018  ;;  %v3894_v59 = vpop.permute.xlu0 %3893 }
 0x54c   :  { %v4095_v53 = vadd.f32 %v4019_v49, %v3966_v57  ;;  %4012 = vrot.lane.b32.xlu1 %v7732_v11, %s5265_s6  ;;  %3899 = vrot.lane.b32.xlu0 %v7766_v61, %s5264_s4  ;;  %v3968_v11 = vadd.f32 %v3894_v59, %v7746_v51  ;;  %v4165_v39 = vmax.f32 %v4133_v19, 0.0 }
 0x54e   :  { %v4134_v31 = vadd.f32 %v7800_v2, %v4095_v53 }
 0x54f   :  { %v3896_v18 = vpop.permute.xlu0 %3895 }
 0x550   :  { %4028 = vrot.lane.b32.xlu1 %v7770_v54, %s5265_s6  ;;  %4036 = vrot.lane.b32.xlu0 %v7790_v5, %s5265_s6  ;;  %v4166_v23 = vmax.f32 %v4134_v31, 0.0  ;;  %v3969_v1 = vadd.f32 %v3896_v18, %v7750_v15 }
 0x553   :  { %v4023_v60 = vpop.permute.xlu0 %4022  ;;  %v4025_v35 = vpop.permute.xlu1 %4024 }
 0x554   :  { %v4097_v50 = vadd.f32 %v4023_v60, %v3968_v11  ;;  %v4098_v40 = vadd.f32 %v4025_v35, %v3969_v1  ;;  %4249 = vrot.lane.b32.xlu1 %v4164_v8, %s5266_s5  ;;  %4259 = vrot.lane.b32.xlu0 %v4166_v23, %s5264_s4  ;;  %v4477_v60 = vld [vmem:[#allocation5 + $0x4f0] sm:$0xff] }
 0x556   :  { %v4136_v27 = vadd.f32 %v7800_v2, %v4097_v50  ;;  %v4137_v20 = vadd.f32 %v7800_v2, %v4098_v40  ;;  %v4476_v50 = vld [vmem:[#allocation5 + $0x4e8] sm:$0xff]  ;;  %v4475_v40 = vld [vmem:[#allocation5 + $0x4e0] sm:$0xff] }
 0x557   :  { %v3898_v24 = vpop.permute.xlu0 %3897 }
 0x558   :  { %v4168_v36 = vmax.f32 %v4136_v27, 0.0  ;;  %4254 = vrot.lane.b32.xlu1 %v4165_v39, %s5265_s6  ;;  %v3970_v51 = vadd.f32 %v3898_v24, %v7756_v45  ;;  %v4169_v7 = vmax.f32 %v4137_v20, 0.0  ;;  %v4474_v39 = vld [vmem:[#allocation5 + $0x4d8] sm:$0xff]  ;;  %v4473_v27 = vld [vmem:[#allocation5 + $0x4d0] sm:$0xff]  ;;  %v4472_v24 = vld [vmem:[#allocation5 + $0x4c8] sm:$0xff] }
 0x559   :  { %v4471_v20 = vld [vmem:[#allocation5 + $0x4c0] sm:$0xff] }
 0x55a   :  { %4265 = vrot.lane.b32.xlu0 %v4168_v36, %s5266_s5 }
 0x55b   :  { %v4027_v15 = vpop.permute.xlu0 %4026 }
 0x55c   :  { %v4099_v14 = vadd.f32 %v4027_v15, %v3970_v51  ;;  %v4470_v51 = vld [vmem:[#allocation5 + $0x4b8] sm:$0xff]  ;;  %v4469_v15 = vld [vmem:[#allocation5 + $0x4b0] sm:$0xff] }
 0x55e   :  { %v4138_v52 = vadd.f32 %v7800_v2, %v4099_v14  ;;  %4270 = vrot.lane.b32.xlu0 %v4169_v7, %s5265_s6  ;;  %v4468_v7 = vld [vmem:[#allocation5 + $0x4a8] sm:$0xff]  ;;  %v4467_v14 = vld [vmem:[#allocation5 + $0x4a0] sm:$0xff] }
 0x55f   :  { %v3902_v63 = vpop.permute.xlu0 %3901  ;;  %v3904_v12 = vpop.permute.xlu1 %3903 }
 0x560   :  { %v4170_v30 = vmax.f32 %v4138_v52, 0.0  ;;  %v3972_v46 = vadd.f32 %v3902_v63, %v7766_v61  ;;  %v3973_v10 = vadd.f32 %v3904_v12, %v7770_v54  ;;  %v4466_v52 = vld [vmem:[#allocation5 + $0x498] sm:$0xff]  ;;  %v4465_v63 = vld [vmem:[#allocation5 + $0x490] sm:$0xff]  ;;  %v4464_v12 = vld [vmem:[#allocation5 + $0x488] sm:$0xff] }
 0x562   :  { %4275 = vrot.lane.b32.xlu0 %v4170_v30, %s5264_s4  ;;  %v4463_v30 = vld [vmem:[#allocation5 + $0x480] sm:$0xff] }
 0x563   :  { %v4031_v13 = vpop.permute.xlu0 %4030  ;;  %v4033_v45 = vpop.permute.xlu1 %4032 }
 0x564   :  { %v4101_v56 = vadd.f32 %v4031_v13, %v3972_v46  ;;  %v4102_v37 = vadd.f32 %v4033_v45, %v3973_v10  ;;  %v4462_v46 = vld [vmem:[#allocation5 + $0x478] sm:$0xff]  ;;  %v4461_v13 = vld [vmem:[#allocation5 + $0x470] sm:$0xff]  ;;  %v4460_v45 = vld [vmem:[#allocation5 + $0x468] sm:$0xff] }
 0x566   :  { %v4140_v9 = vadd.f32 %v7800_v2, %v4101_v56  ;;  %v4141_v26 = vadd.f32 %v7800_v2, %v4102_v37  ;;  %v4459_v56 = vld [vmem:[#allocation5 + $0x460] sm:$0xff]  ;;  %v4458_v37 = vld [vmem:[#allocation5 + $0x458] sm:$0xff] }
 0x567   :  { %v3906_v62 = vpop.permute.xlu0 %3905 }
 0x568   :  { %v4172_v48 = vmax.f32 %v4140_v9, 0.0  ;;  %v4173_v42 = vmax.f32 %v4141_v26, 0.0  ;;  %v3974_v44 = vadd.f32 %v3906_v62, %v7774_v55  ;;  %v4456_v26 = vld [vmem:[#allocation5 + $0x448] sm:$0xff]  ;;  %v4455_v62 = vld [vmem:[#allocation5 + $0x440] sm:$0xff] }
 0x56a   :  { %4281 = vrot.lane.b32.xlu1 %v4172_v48, %s5266_s5  ;;  %v4457_v48 = vld [vmem:[#allocation5 + $0x450] sm:$0xff] }
 0x56b   :  { %v3910_v29 = vpop.permute.xlu1 %3909  ;;  %v4035_v61 = vpop.permute.xlu0 %4034 }
 0x56c   :  { %v3976_v38 = vadd.f32 %v3910_v29, %v7786_v22  ;;  %v4103_v0 = vadd.f32 %v4035_v61, %v3974_v44  ;;  %v4454_v29 = vld [vmem:[#allocation5 + $0x438] sm:$0xff]  ;;  %v4452_v44 = vld [vmem:[#allocation5 + $0x428] sm:$0xff] }
 0x56e   :  { %4286 = vrot.lane.b32.xlu1 %v4173_v42, %s5265_s6  ;;  %v4142_v49 = vadd.f32 %v7800_v2, %v4103_v0 }
 0x56f   :  { %v3912_v54 = vpop.permute.xlu1 %3911 }
 0x570   :  { %v3977_v16 = vadd.f32 %v3912_v54, %v7790_v5  ;;  %v4174_v3 = vmax.f32 %v4142_v49, 0.0  ;;  %v4453_v54 = vld [vmem:[#allocation5 + $0x430] sm:$0xff] }
 0x573   :  { %v4039_v41 = vpop.permute.xlu1 %4038  ;;  %v3914_v47 = vpop.permute.xlu0 %3913 }
 0x574   :  { %v4105_v6 = vadd.f32 %v4039_v41, %v3976_v38  ;;  %v3978_v34 = vadd.f32 %v3914_v47, %v7802_v28  ;;  %v4451_v38 = vld [vmem:[#allocation5 + $0x420] sm:$0xff]  ;;  %v4450_v41 = vld [vmem:[#allocation5 + $0x418] sm:$0xff] }
 0x576   :  { %v4144_v17 = vadd.f32 %v7800_v2, %v4105_v6  ;;  %v4449_v6 = vld [vmem:[#allocation5 + $0x410] sm:$0xff] }
 0x577   :  { %v4041_v33 = vpop.permute.xlu1 %4040  ;;  %v4043_v57 = vpop.permute.xlu0 %4042 }
 0x578   :  { %v4176_v59 = vmax.f32 %v4144_v17, 0.0  ;;  %v4106_v4 = vadd.f32 %v4041_v33, %v3977_v16  ;;  %v4107_v53 = vadd.f32 %v4043_v57, %v3978_v34  ;;  %v4448_v16 = vld [vmem:[#allocation5 + $0x408] sm:$0xff]  ;;  %v4447_v17 = vld [vmem:[#allocation5 + $0x400] sm:$0xff]  ;;  %v4510_v33 = vld [vmem:[#allocation5 + $0x5f8] sm:$0xff] }
 0x579   :  { %v4509_v57 = vld [vmem:[#allocation5 + $0x5f0] sm:$0xff] }
 0x57a   :  { %v4145_v55 = vadd.f32 %v7800_v2, %v4106_v4  ;;  %4297 = vrot.lane.b32.xlu1 %v4176_v59, %s5266_s5  ;;  %v4146_v5 = vadd.f32 %v7800_v2, %v4107_v53 }
 0x57b   :  { %v4183_v22 = vpop.permute.xlu0 %4182 }
 0x57c   :  { %v4177_v58 = vmax.f32 %v4145_v55, 0.0  ;;  %4186 = vst.msk [vmem:[#allocation2] sm:$0xff] %vm4185_vm2, %v4183_v22  ;;  %v4178_v31 = vmax.f32 %v4146_v5, 0.0  ;;  %v4541_v55 = vld [vmem:[#allocation5 + $0x6f0] sm:$0xff]  ;;  %v4507_v5 = vld [vmem:[#allocation5 + $0x5e0] sm:$0xff] }
 0x57e   :  { %4291 = vrot.lane.b32.xlu1 %v4174_v3, %s5264_s4  ;;  %4302 = vrot.lane.b32.xlu0 %v4177_v58, %s5265_s6  ;;  %v4508_v3 = vld [vmem:[#allocation5 + $0x5e8] sm:$0xff] }
 0x57f   :  { %v4189_v28 = vpop.permute.xlu0 %4188  ;;  %v4540_v58 = vld [vmem:[#allocation5 + $0x6e8] sm:$0xff] }
 0x580   :  { %4192 = vst.msk [vmem:[#allocation2] sm:$0xff] %vm4191_vm3, %v4189_v28  ;;  %v4195_v18 = vpop.permute.xlu1 %4194  ;;  %v4539_v28 = vld [vmem:[#allocation5 + $0x6e0] sm:$0xff] }
 0x581   :  { %4198 = vst.msk [vmem:[#allocation2] sm:$0xff] %vm4197_vm4, %v4195_v18  ;;  %v4506_v18 = vld [vmem:[#allocation5 + $0x5d8] sm:$0xff] }
 0x582   :  { %4307 = vrot.lane.b32.xlu0 %v4178_v31, %s5264_s4 }
 0x588   :  { %v4311_v35 = vld [vmem:[#allocation2] sm:$0xff] }
 0x58c   :  { %v4207_v8 = vpop.permute.xlu1 %4206  ;;  %v4202_v19 = vpop.permute.xlu0 %4201 }
 0x58d   :  { %4204 = vst.msk [vmem:[#allocation2 + $0x8] sm:$0xff] %vm4185_vm2, %v4202_v19 }
 0x58e   :  { %4209 = vst.msk [vmem:[#allocation2 + $0x8] sm:$0xff] %vm4191_vm3, %v4207_v8  ;;  %v4538_v8 = vld [vmem:[#allocation5 + $0x6d8] sm:$0xff] }
 0x592   :  { %v4212_v23 = vpop.permute.xlu1 %4211 }
 0x593   :  { %4214 = vst.msk [vmem:[#allocation2 + $0x8] sm:$0xff] %vm4197_vm4, %v4212_v23 }
 0x59a   :  { %v4218_v11 = vpop.permute.xlu0 %4217  ;;  %v4312_v1 = vld [vmem:[#allocation2 + $0x8] sm:$0xff] }
 0x59b   :  { %4220 = vst.msk [vmem:[#allocation2 + $0x10] sm:$0xff] %vm4185_vm2, %v4218_v11  ;;  %4651 = vmatprep.mubr.f32.mxu0 %v4312_v1  ;;  %v4505_v11 = vld [vmem:[#allocation5 + $0x5d0] sm:$0xff] }
 0x59c   :  { %4652 = vmatmul.mubr.f32.vlgmr.msra.gmra.mxu0 %v4311_v35  ;;  %v4537_v1 = vld [vmem:[#allocation5 + $0x6d0] sm:$0xff] }
 0x59d   :  { %4730 = vmatpush1.msra.mxu0 %v4477_v60 }
 0x59e   :  { %4731 = vmatprep.subr.mxu0 %v4476_v50  ;;  %v4504_v50 = vld [vmem:[#allocation5 + $0x5c8] sm:$0xff] }
 0x59f   :  { %4732 = vmatpush1.msra.mxu0 %v4475_v40  ;;  %v4536_v40 = vld [vmem:[#allocation5 + $0x6c8] sm:$0xff] }
 0x5a0   :  { %v4223_v36 = vpop.permute.xlu1 %4222  ;;  %4733 = vmatprep.subr.mxu0 %v4474_v39  ;;  %v4535_v39 = vld [vmem:[#allocation5 + $0x6c0] sm:$0xff] }
 0x5a1   :  { %4225 = vst.msk [vmem:[#allocation2 + $0x10] sm:$0xff] %vm4191_vm3, %v4223_v36  ;;  %4734 = vmatpush1.msra.mxu0 %v4473_v27 }
 0x5a2   :  { %4735 = vmatprep.subr.mxu0 %v4472_v24 }
 0x5a3   :  { %4736 = vmatpush1.msra.mxu0 %v4471_v20  ;;  %v4502_v20 = vld [vmem:[#allocation5 + $0x5b8] sm:$0xff] }
 0x5a4   :  { %4737 = vmatprep.subr.mxu0 %v4470_v51  ;;  %v4534_v51 = vld [vmem:[#allocation5 + $0x6b8] sm:$0xff] }
 0x5a5   :  { %4738 = vmatpush1.msra.mxu0 %v4469_v15 }
 0x5a6   :  { %4739 = vmatprep.subr.mxu0 %v4468_v7 }
 0x5a7   :  { %4740 = vmatpush1.msra.mxu0 %v4467_v14  ;;  %v4501_v14 = vld [vmem:[#allocation5 + $0x5b0] sm:$0xff] }
 0x5a8   :  { %4741 = vmatprep.subr.mxu0 %v4466_v52  ;;  %v4533_v52 = vld [vmem:[#allocation5 + $0x6b0] sm:$0xff] }
 0x5a9   :  { %4742 = vmatpush1.msra.mxu0 %v4465_v63 }
 0x5aa   :  { %v4234_v10 = vpop.permute.xlu0 %4233  ;;  %4743 = vmatprep.subr.mxu0 %v4464_v12 }
 0x5ab   :  { %4236 = vst.msk [vmem:[#allocation2 + $0x18] sm:$0xff] %vm4185_vm2, %v4234_v10  ;;  %4744 = vmatpush1.msra.mxu0 %v4463_v30  ;;  %v4531_v10 = vld [vmem:[#allocation5 + $0x6a0] sm:$0xff] }
 0x5ac   :  { %4745 = vmatprep.subr.mxu0 %v4462_v46  ;;  %v4532_v46 = vld [vmem:[#allocation5 + $0x6a8] sm:$0xff] }
 0x5ad   :  { %4746 = vmatpush1.msra.mxu0 %v4461_v13 }
 0x5ae   :  { %v4239_v9 = vpop.permute.xlu1 %4238  ;;  %4747 = vmatprep.subr.mxu0 %v4460_v45 }
 0x5af   :  { %4241 = vst.msk [vmem:[#allocation2 + $0x18] sm:$0xff] %vm4191_vm3, %v4239_v9  ;;  %4748 = vmatpush1.msra.mxu0 %v4459_v56  ;;  %v4498_v56 = vld [vmem:[#allocation5 + $0x598] sm:$0xff] }
 0x5b0   :  { %4749 = vmatprep.subr.mxu0 %v4458_v37  ;;  %v4530_v37 = vld [vmem:[#allocation5 + $0x698] sm:$0xff] }
 0x5b1   :  { %4750 = vmatpush1.msra.mxu0 %v4457_v48  ;;  %v4497_v48 = vld [vmem:[#allocation5 + $0x590] sm:$0xff] }
 0x5b2   :  { %v4228_v42 = vpop.permute.xlu1 %4227  ;;  %v4244_v61 = vpop.permute.xlu0 %4243  ;;  %4751 = vmatprep.subr.mxu0 %v4456_v26  ;;  %v4529_v26 = vld [vmem:[#allocation5 + $0x690] sm:$0xff] }
 0x5b3   :  { %4230 = vst.msk [vmem:[#allocation2 + $0x10] sm:$0xff] %vm4197_vm4, %v4228_v42  ;;  %4246 = vst.msk [vmem:[#allocation2 + $0x18] sm:$0xff] %vm4197_vm4, %v4244_v61  ;;  %4752 = vmatpush1.msra.mxu0 %v4455_v62  ;;  %v4496_v42 = vld [vmem:[#allocation5 + $0x588] sm:$0xff] }
 0x5b4   :  { %4753 = vmatprep.subr.mxu0 %v4454_v29  ;;  %v4528_v61 = vld [vmem:[#allocation5 + $0x688] sm:$0xff] }
 0x5b5   :  { %4754 = vmatpush1.msra.mxu0 %v4453_v54 }
 0x5b6   :  { %v3884_v47 = vpop.permute.xlu1 %3883  ;;  %v3892_v0 = vpop.permute.xlu0 %3891  ;;  %4755 = vmatprep.subr.mxu0 %v4452_v44  ;;  %v4527_v44 = vld [vmem:[#allocation5 + $0x680] sm:$0xff] }
 0x5b7   :  { %4756 = vmatpush1.msra.mxu0 %v4451_v38  ;;  %v3967_v34 = vadd.f32 %v3892_v0, %v7742_v43  ;;  %v3963_v43 = vadd.f32 %v3884_v47, %v7720_v21  ;;  %v4503_v21 = vld [vmem:[#allocation5 + $0x5c0] sm:$0xff]  ;;  %v4494_v38 = vld [vmem:[#allocation5 + $0x578] sm:$0xff]  ;;  %v4493_v0 = vld [vmem:[#allocation5 + $0x570] sm:$0xff] }
 0x5b8   :  { %4757 = vmatprep.subr.mxu0 %v4450_v41  ;;  %v4526_v41 = vld [vmem:[#allocation5 + $0x678] sm:$0xff] }
 0x5b9   :  { %4758 = vmatpush1.msra.mxu0 %v4449_v6  ;;  %v4525_v6 = vld [vmem:[#allocation5 + $0x670] sm:$0xff] }
 0x5ba   :  { %v4021_v49 = vpop.permute.xlu1 %4020  ;;  %v3908_v59 = vpop.permute.xlu0 %3907  ;;  %v4314_v4 = vld [vmem:[#allocation2 + $0x18] sm:$0xff]  ;;  %v4313_v53 = vld [vmem:[#allocation2 + $0x10] sm:$0xff]  ;;  %4759 = vmatprep.subr.mxu0 %v4448_v16  ;;  %v4492_v16 = vld [vmem:[#allocation5 + $0x568] sm:$0xff] }
 0x5bb   :  { %v4096_v22 = vadd.f32 %v4021_v49, %v3967_v34  ;;  %4722 = vmatprep.mubr.f32.mxu1 %v4314_v4  ;;  %4760 = vmatpush1.msra.mxu0 %v4447_v17  ;;  %v3975_v27 = vadd.f32 %v3908_v59, %v7780_v32  ;;  %v4500_v32 = vld [vmem:[#allocation5 + $0x5a8] sm:$0xff]  ;;  %v4490_v49 = vld [vmem:[#allocation5 + $0x558] sm:$0xff]  ;;  %v4489_v4 = vld [vmem:[#allocation5 + $0x550] sm:$0xff] }
 0x5bc   :  { %4723 = vmatmul.mubr.f32.vlgmr.msra.gmra.mxu1 %v4313_v53  ;;  %4761 = vmatprep.subr.mxu0 %v4510_v33  ;;  %v4524_v17 = vld [vmem:[#allocation5 + $0x668] sm:$0xff]  ;;  %v4491_v33 = vld [vmem:[#allocation5 + $0x560] sm:$0xff]  ;;  %v4522_v59 = vld [vmem:[#allocation5 + $0x658] sm:$0xff] }
 0x5bd   :  { %v4135_v31 = vadd.f32 %v7800_v2, %v4096_v22  ;;  %4762 = vmatpush2.msra.mxu0 %v4509_v57  ;;  %4801 = vmatpush1.msra.mxu1 %v4541_v55  ;;  %v4523_v57 = vld [vmem:[#allocation5 + $0x660] sm:$0xff]  ;;  %v4521_v53 = vld [vmem:[#allocation5 + $0x650] sm:$0xff]  ;;  %v4488_v55 = vld [vmem:[#allocation5 + $0x548] sm:$0xff] }
 0x5be   :  { %v4013_v19 = vpop.permute.xlu1 %4012  ;;  %v3900_v23 = vpop.permute.xlu0 %3899  ;;  %4763 = vmatprep.subr.mxu0 %v4508_v3  ;;  %4802 = vmatprep.subr.mxu1 %v4540_v58  ;;  %v4520_v22 = vld [vmem:[#allocation5 + $0x648] sm:$0xff]  ;;  %v4487_v58 = vld [vmem:[#allocation5 + $0x540] sm:$0xff] }
 0x5bf   :  { %v4167_v60 = vmax.f32 %v4135_v31, 0.0  ;;  %v4092_v35 = vadd.f32 %v4013_v19, %v3963_v43  ;;  %4764 = vmatpush2.msra.mxu0 %v4507_v5  ;;  %4803 = vmatpush1.msra.mxu1 %v4539_v28  ;;  %v3971_v36 = vadd.f32 %v3900_v23, %v7760_v25  ;;  %v4499_v25 = vld [vmem:[#allocation5 + $0x5a0] sm:$0xff]  ;;  %v4486_v28 = vld [vmem:[#allocation5 + $0x538] sm:$0xff]  ;;  %v4485_v31 = vld [vmem:[#allocation5 + $0x530] sm:$0xff] }
 0x5c0   :  { %4765 = vmatprep.subr.mxu0 %v4506_v18  ;;  %4804 = vmatprep.subr.mxu1 %v4538_v8  ;;  %v4519_v5 = vld [vmem:[#allocation5 + $0x640] sm:$0xff]  ;;  %v4518_v43 = vld [vmem:[#allocation5 + $0x638] sm:$0xff]  ;;  %v4517_v18 = vld [vmem:[#allocation5 + $0x630] sm:$0xff] }
 0x5c1   :  { %4263 = vst.msk [vmem:[#allocation2 + $0x28] sm:$0xff] %vm4179_vm1, %v4167_v60  ;;  %v4131_v24 = vadd.f32 %v7800_v2, %v4092_v35  ;;  %4766 = vmatpush2.msra.mxu0 %v4505_v11  ;;  %4805 = vmatpush1.msra.mxu1 %v4537_v1  ;;  %v4484_v8 = vld [vmem:[#allocation5 + $0x528] sm:$0xff]  ;;  %v4483_v11 = vld [vmem:[#allocation5 + $0x520] sm:$0xff]  ;;  %v4482_v60 = vld [vmem:[#allocation5 + $0x518] sm:$0xff] }
 0x5c2   :  { %v4029_v15 = vpop.permute.xlu1 %4028  ;;  %v4037_v7 = vpop.permute.xlu0 %4036  ;;  %4767 = vmatprep.subr.mxu0 %v4504_v50  ;;  %4806 = vmatprep.subr.mxu1 %v4536_v40  ;;  %v4516_v19 = vld [vmem:[#allocation5 + $0x628] sm:$0xff]  ;;  %v4515_v1 = vld [vmem:[#allocation5 + $0x620] sm:$0xff]  ;;  %v4514_v35 = vld [vmem:[#allocation5 + $0x618] sm:$0xff] }
 0x5c3   :  { %v4163_v63 = vmax.f32 %v4131_v24, 0.0  ;;  %v4100_v12 = vadd.f32 %v4029_v15, %v3971_v36  ;;  %v4104_v30 = vadd.f32 %v4037_v7, %v3975_v27  ;;  %4768 = vmatpush2.msra.mxu0 %v4503_v21  ;;  %4807 = vmatpush1.msra.mxu1 %v4535_v39  ;;  %v4481_v50 = vld [vmem:[#allocation5 + $0x510] sm:$0xff]  ;;  %v4480_v21 = vld [vmem:[#allocation5 + $0x508] sm:$0xff]  ;;  %v4479_v27 = vld [vmem:[#allocation5 + $0x500] sm:$0xff] }
 0x5c4   :  { %4769 = vmatprep.subr.mxu0 %v4502_v20  ;;  %4808 = vmatprep.subr.mxu1 %v4534_v51  ;;  %v4513_v40 = vld [vmem:[#allocation5 + $0x610] sm:$0xff]  ;;  %v4512_v39 = vld [vmem:[#allocation5 + $0x608] sm:$0xff]  ;;  %v4511_v24 = vld [vmem:[#allocation5 + $0x600] sm:$0xff] }
 0x5c5   :  { %4247 = vst.msk [vmem:[#allocation2 + $0x20] sm:$0xff] %vm4179_vm1, %v4163_v63  ;;  %v4139_v13 = vadd.f32 %v7800_v2, %v4100_v12  ;;  %v4143_v45 = vadd.f32 %v7800_v2, %v4104_v30  ;;  %4770 = vmatpush2.msra.mxu0 %v4501_v14  ;;  %4809 = vmatpush1.msra.mxu1 %v4533_v52  ;;  %v4495_v2 = vld [vmem:[#allocation5 + $0x580] sm:$0xff]  ;;  %v4574_v36 = vld [vmem:[#allocation5 + $0x7f8] sm:$0xff]  ;;  %v4573_v20 = vld [vmem:[#allocation5 + $0x7f0] sm:$0xff] }
 0x5c6   :  { %v4250_v9 = vpop.permute.xlu1 %4249  ;;  %4771 = vmatprep.subr.mxu0 %v4500_v32  ;;  %4810 = vmatprep.subr.mxu1 %v4532_v46  ;;  %v4260_v54 = vpop.permute.xlu0 %4259  ;;  %v4572_v51 = vld [vmem:[#allocation5 + $0x7e8] sm:$0xff]  ;;  %v4571_v14 = vld [vmem:[#allocation5 + $0x7e0] sm:$0xff]  ;;  %v4570_v63 = vld [vmem:[#allocation5 + $0x7d8] sm:$0xff] }
 0x5c7   :  { %v4171_v62 = vmax.f32 %v4139_v13, 0.0  ;;  %v4175_v29 = vmax.f32 %v4143_v45, 0.0  ;;  %4252 = vst.msk [vmem:[#allocation2 + $0x20] sm:$0xff] %vm4185_vm2, %v4250_v9  ;;  %4772 = vmatpush2.msra.mxu0 %v4499_v25  ;;  %4811 = vmatpush1.msra.mxu1 %v4531_v10  ;;  %v4569_v12 = vld [vmem:[#allocation5 + $0x7d0] sm:$0xff]  ;;  %v4568_v30 = vld [vmem:[#allocation5 + $0x7c8] sm:$0xff]  ;;  %v4567_v46 = vld [vmem:[#allocation5 + $0x7c0] sm:$0xff] }
 0x5c8   :  { %4773 = vmatprep.subr.mxu0 %v4498_v56  ;;  %4812 = vmatprep.subr.mxu1 %v4530_v37  ;;  %v4566_v25 = vld [vmem:[#allocation5 + $0x7b8] sm:$0xff]  ;;  %v4565_v10 = vld [vmem:[#allocation5 + $0x7b0] sm:$0xff]  ;;  %v4564_v13 = vld [vmem:[#allocation5 + $0x7a8] sm:$0xff] }
 0x5c9   :  { %4279 = vst.msk [vmem:[#allocation2 + $0x30] sm:$0xff] %vm4179_vm1, %v4171_v62  ;;  %4295 = vst.msk [vmem:[#allocation2 + $0x38] sm:$0xff] %vm4179_vm1, %v4175_v29  ;;  %4774 = vmatpush2.msra.mxu0 %v4497_v48  ;;  %4813 = vmatpush1.msra.mxu1 %v4529_v26  ;;  %v4563_v45 = vld [vmem:[#allocation5 + $0x7a0] sm:$0xff]  ;;  %v4562_v56 = vld [vmem:[#allocation5 + $0x798] sm:$0xff] }
 0x5ca   :  { %v4255_v47 = vpop.permute.xlu1 %4254  ;;  %4775 = vmatprep.subr.mxu0 %v4496_v42  ;;  %4814 = vmatprep.subr.mxu1 %v4528_v61  ;;  %v4561_v37 = vld [vmem:[#allocation5 + $0x790] sm:$0xff]  ;;  %v4560_v9 = vld [vmem:[#allocation5 + $0x788] sm:$0xff]  ;;  %v4559_v48 = vld [vmem:[#allocation5 + $0x780] sm:$0xff] }
 0x5cb   :  { %4257 = vst.msk [vmem:[#allocation2 + $0x20] sm:$0xff] %vm4191_vm3, %v4255_v47  ;;  %4776 = vmatpush2.msra.mxu0 %v4495_v2  ;;  %4815 = vmatpush1.msra.mxu1 %v4527_v44  ;;  %v4558_v26 = vld [vmem:[#allocation5 + $0x778] sm:$0xff]  ;;  %v4557_v62 = vld [vmem:[#allocation5 + $0x770] sm:$0xff]  ;;  %v4556_v29 = vld [vmem:[#allocation5 + $0x768] sm:$0xff] }
 0x5cc   :  { %4262 = vst.msk [vmem:[#allocation2 + $0x20] sm:$0xff] %vm4197_vm4, %v4260_v54  ;;  %v4266_v34 = vpop.permute.xlu0 %4265  ;;  %4777 = vmatprep.subr.mxu0 %v4494_v38  ;;  %4816 = vmatprep.subr.mxu1 %v4526_v41  ;;  %v4555_v61 = vld [vmem:[#allocation5 + $0x760] sm:$0xff]  ;;  %v4554_v54 = vld [vmem:[#allocation5 + $0x758] sm:$0xff]  ;;  %v4553_v2 = vld [vmem:[#allocation5 + $0x750] sm:$0xff] }
 0x5cd   :  { %4268 = vst.msk [vmem:[#allocation2 + $0x28] sm:$0xff] %vm4185_vm2, %v4266_v34  ;;  %4778 = vmatpush2.msra.mxu0 %v4493_v0  ;;  %4817 = vmatpush1.msra.mxu1 %v4525_v6  ;;  %v4552_v44 = vld [vmem:[#allocation5 + $0x748] sm:$0xff]  ;;  %v4551_v47 = vld [vmem:[#allocation5 + $0x740] sm:$0xff]  ;;  %v4550_v0 = vld [vmem:[#allocation5 + $0x738] sm:$0xff] }
 0x5ce   :  { %4779 = vmatprep.subr.mxu0 %v4492_v16  ;;  %4818 = vmatprep.subr.mxu1 %v4524_v17  ;;  %v4549_v6 = vld [vmem:[#allocation5 + $0x730] sm:$0xff]  ;;  %v4548_v16 = vld [vmem:[#allocation5 + $0x728] sm:$0xff]  ;;  %v4547_v34 = vld [vmem:[#allocation5 + $0x720] sm:$0xff] }
 0x5cf   :  { %4780 = vmatpush2.msra.mxu0 %v4491_v33  ;;  %4819 = vmatpush1.msra.mxu1 %v4523_v57  ;;  %v4546_v33 = vld [vmem:[#allocation5 + $0x718] sm:$0xff]  ;;  %v4545_v57 = vld [vmem:[#allocation5 + $0x710] sm:$0xff] }
 0x5d0   :  { %v4271_v3 = vpop.permute.xlu0 %4270  ;;  %4781 = vmatprep.subr.mxu0 %v4490_v49  ;;  %4820 = vmatprep.subr.mxu1 %v4522_v59  ;;  %v4544_v49 = vld [vmem:[#allocation5 + $0x708] sm:$0xff]  ;;  %v4543_v59 = vld [vmem:[#allocation5 + $0x700] sm:$0xff] }
 0x5d1   :  { %4273 = vst.msk [vmem:[#allocation2 + $0x28] sm:$0xff] %vm4191_vm3, %v4271_v3  ;;  %4782 = vmatpush2.msra.mxu0 %v4489_v4  ;;  %4821 = vmatpush1.msra.mxu1 %v4521_v53  ;;  %v4901_v3 = vld [vmem:[%s8063_s8 + $0xf0] sm:$0xff] }
 0x5d2   :  { %4783 = vmatprep.subr.mxu0 %v4488_v55  ;;  %4822 = vmatprep.subr.mxu1 %v4520_v22  ;;  %v4902_v55 = vld [vmem:[%s8063_s8 + $0xf8] sm:$0xff] }
 0x5d3   :  { %4784 = vmatpush2.msra.mxu0 %v4487_v58  ;;  %4823 = vmatpush1.msra.mxu1 %v4519_v5  ;;  %v4315_v52 = vld [vmem:[#allocation2 + $0x20] sm:$0xff]  ;;  %v4886_v22 = vld [vmem:[%s8063_s8 + $0x78] sm:$0xff]  ;;  %v4885_v58 = vld [vmem:[%s8063_s8 + $0x70] sm:$0xff] }
 0x5d4   :  { %v4276_v23 = vpop.permute.xlu0 %4275  ;;  %4785 = vmatprep.subr.mxu0 %v4486_v28  ;;  %4824 = vmatprep.subr.mxu1 %v4518_v43  ;;  %v4900_v5 = vld [vmem:[%s8063_s8 + $0xe8] sm:$0xff]  ;;  %v4899_v43 = vld [vmem:[%s8063_s8 + $0xe0] sm:$0xff] }
 0x5d5   :  { %4278 = vst.msk [vmem:[#allocation2 + $0x28] sm:$0xff] %vm4197_vm4, %v4276_v23  ;;  %4786 = vmatpush2.msra.mxu0 %v4485_v31  ;;  %4825 = vmatpush1.msra.mxu1 %v4517_v18  ;;  %v4884_v28 = vld [vmem:[%s8063_s8 + $0x68] sm:$0xff]  ;;  %v4883_v31 = vld [vmem:[%s8063_s8 + $0x60] sm:$0xff]  ;;  %v4898_v18 = vld [vmem:[%s8063_s8 + $0xd8] sm:$0xff] }
 0x5d6   :  { %4787 = vmatprep.subr.mxu0 %v4484_v8  ;;  %4826 = vmatprep.subr.mxu1 %v4516_v19  ;;  %v4882_v8 = vld [vmem:[%s8063_s8 + $0x58] sm:$0xff]  ;;  %v4897_v19 = vld [vmem:[%s8063_s8 + $0xd0] sm:$0xff] }
 0x5d7   :  { %4788 = vmatpush2.msra.mxu0 %v4483_v11  ;;  %4827 = vmatpush1.msra.mxu1 %v4515_v1  ;;  %v4881_v23 = vld [vmem:[%s8063_s8 + $0x50] sm:$0xff]  ;;  %v4896_v11 = vld [vmem:[%s8063_s8 + $0xc8] sm:$0xff] }
 0x5d8   :  { %4789 = vmatprep.subr.mxu0 %v4482_v60  ;;  %4828 = vmatprep.subr.mxu1 %v4514_v35  ;;  %v4880_v1 = vld [vmem:[%s8063_s8 + $0x48] sm:$0xff]  ;;  %v4895_v60 = vld [vmem:[%s8063_s8 + $0xc0] sm:$0xff] }
 0x5d9   :  { %4790 = vmatpush2.msra.mxu0 %v4481_v50  ;;  %4829 = vmatpush1.msra.mxu1 %v4513_v40  ;;  %v4879_v35 = vld [vmem:[%s8063_s8 + $0x40] sm:$0xff]  ;;  %v4894_v50 = vld [vmem:[%s8063_s8 + $0xb8] sm:$0xff] }
 0x5da   :  { %4791 = vmatprep.subr.mxu0 %v4480_v21  ;;  %4830 = vmatprep.subr.mxu1 %v4512_v39  ;;  %v4878_v40 = vld [vmem:[%s8063_s8 + $0x38] sm:$0xff]  ;;  %v4893_v21 = vld [vmem:[%s8063_s8 + $0xb0] sm:$0xff] }
 0x5db   :  { %4792 = vmatpush2.msra.mxu0 %v4479_v27  ;;  %4831 = vmatpush1.msra.mxu1 %v4511_v24  ;;  %v4877_v39 = vld [vmem:[%s8063_s8 + $0x30] sm:$0xff]  ;;  %v4892_v27 = vld [vmem:[%s8063_s8 + $0xa8] sm:$0xff] }
 0x5dc   :  { %v4282_v15 = vpop.permute.xlu1 %4281  ;;  %v4316_v7 = vld [vmem:[#allocation2 + $0x28] sm:$0xff]  ;;  %4832 = vmatprep.subr.mxu1 %v4574_v36  ;;  %5041 = vmatprep.subr.mxu0 %v4902_v55  ;;  %v4891_v36 = vld [vmem:[%s8063_s8 + $0xa0] sm:$0xff] }
 0x5dd   :  { %4284 = vst.msk [vmem:[#allocation2 + $0x30] sm:$0xff] %vm4185_vm2, %v4282_v15  ;;  %4793 = vmatprep.mubr.f32.mxu0 %v4316_v7  ;;  %4833 = vmatpush2.msra.mxu1 %v4573_v20  ;;  %v4876_v24 = vld [vmem:[%s8063_s8 + $0x28] sm:$0xff]  ;;  %v4875_v20 = vld [vmem:[%s8063_s8 + $0x20] sm:$0xff]  ;;  %v4874_v15 = vld [vmem:[%s8063_s8 + $0x18] sm:$0xff] }
 0x5de   :  { %4794 = vmatmul.mubr.f32.vlgmr.msra.gmra.mxu0 %v4315_v52  ;;  %4834 = vmatprep.subr.mxu1 %v4572_v51  ;;  %v4890_v51 = vld [vmem:[%s8063_s8 + $0x98] sm:$0xff]  ;;  %v4889_v7 = vld [vmem:[%s8063_s8 + $0x90] sm:$0xff]  ;;  %v4888_v52 = vld [vmem:[%s8063_s8 + $0x88] sm:$0xff] }
 0x5df   :  { %4835 = vmatpush2.msra.mxu1 %v4571_v14  ;;  %5042 = vmatpush3.msra.mxu0 %v4886_v22  ;;  %v4873_v14 = vld [vmem:[%s8063_s8 + $0x10] sm:$0xff] }
 0x5e0   :  { %v4287_v32 = vpop.permute.xlu1 %4286  ;;  %4836 = vmatprep.subr.mxu1 %v4570_v63  ;;  %5043 = vmatprep.subr.mxu0 %v4901_v3  ;;  %v4872_v63 = vld [vmem:[%s8063_s8 + $0x8] sm:$0xff] }
 0x5e1   :  { %4289 = vst.msk [vmem:[#allocation2 + $0x30] sm:$0xff] %vm4191_vm3, %v4287_v32  ;;  %4837 = vmatpush2.msra.mxu1 %v4569_v12  ;;  %5044 = vmatpush3.msra.mxu0 %v4885_v58  ;;  %v4887_v12 = vld [vmem:[%s8063_s8 + $0x80] sm:$0xff] }
 0x5e2   :  { %4838 = vmatprep.subr.mxu1 %v4568_v30  ;;  %5045 = vmatprep.subr.mxu0 %v4900_v5  ;;  %v4871_v30 = vld [vmem:[%s8063_s8] sm:$0xff] }
 0x5e3   :  { %4839 = vmatpush2.msra.mxu1 %v4567_v46  ;;  %5046 = vmatpush3.msra.mxu0 %v4884_v28  ;;  %v4575_v46 = vld [vmem:[%s8062_s7] sm:$0x3] }
 0x5e4   :  { %4840 = vmatprep.subr.mxu1 %v4566_v25  ;;  %5047 = vmatprep.subr.mxu0 %v4899_v43 }
 0x5e5   :  { %4841 = vmatpush2.msra.mxu1 %v4565_v10  ;;  %5048 = vmatpush3.msra.mxu0 %v4883_v31 }
 0x5e6   :  { %4842 = vmatprep.subr.mxu1 %v4564_v13  ;;  %5049 = vmatprep.subr.mxu0 %v4898_v18  ;;  %v8569_v13 = vld [vmem:[#allocation66_spill] sm:$0xff] }
 0x5e7   :  { %4843 = vmatpush2.msra.mxu1 %v4563_v45  ;;  %5050 = vmatpush3.msra.mxu0 %v4882_v8  ;;  %v8570_v45 = vsub.s32 1, %v8569_v13 }
 0x5e8   :  { %4844 = vmatprep.subr.mxu1 %v4562_v56  ;;  %5051 = vmatprep.subr.mxu0 %v4897_v19 }
 0x5e9   :  { %4845 = vmatpush2.msra.mxu1 %v4561_v37  ;;  %5052 = vmatpush3.msra.mxu0 %v4881_v23  ;;  %v4584_v56 = vrot.slane %v4575_v46, %v8570_v45  ;;  %v8571_v37 = vsub.s32 0, %v8569_v13 }
 0x5ea   :  { %4846 = vmatprep.subr.mxu1 %v4560_v9  ;;  %5053 = vmatprep.subr.mxu0 %v4896_v11 }
 0x5eb   :  { %4847 = vmatpush2.msra.mxu1 %v4559_v48  ;;  %5054 = vmatpush3.msra.mxu0 %v4880_v1  ;;  %v4580_v9 = vrot.slane %v4575_v46, %v8571_v37 }
 0x5ec   :  { %v4298_v42 = vpop.permute.xlu1 %4297  ;;  %4848 = vmatprep.subr.mxu1 %v4558_v26  ;;  %5055 = vmatprep.subr.mxu0 %v4895_v60 }
 0x5ed   :  { %4300 = vst.msk [vmem:[#allocation2 + $0x38] sm:$0xff] %vm4185_vm2, %v4298_v42  ;;  %4849 = vmatpush2.msra.mxu1 %v4557_v62  ;;  %5056 = vmatpush3.msra.mxu0 %v4879_v35 }
 0x5ee   :  { %4850 = vmatprep.subr.mxu1 %v4556_v29  ;;  %5057 = vmatprep.subr.mxu0 %v4894_v50 }
 0x5ef   :  { %4851 = vmatpush2.msra.mxu1 %v4555_v61  ;;  %5058 = vmatpush3.msra.mxu0 %v4878_v40 }
 0x5f0   :  { %v4292_v38 = vpop.permute.xlu1 %4291  ;;  %v4303_v41 = vpop.permute.xlu0 %4302  ;;  %4852 = vmatprep.subr.mxu1 %v4554_v54  ;;  %5059 = vmatprep.subr.mxu0 %v4893_v21 }
 0x5f1   :  { %4294 = vst.msk [vmem:[#allocation2 + $0x30] sm:$0xff] %vm4197_vm4, %v4292_v38  ;;  %4853 = vmatpush2.msra.mxu1 %v4553_v2  ;;  %5060 = vmatpush3.msra.mxu0 %v4877_v39 }
 0x5f2   :  { %4305 = vst.msk [vmem:[#allocation2 + $0x38] sm:$0xff] %vm4191_vm3, %v4303_v41  ;;  %4854 = vmatprep.subr.mxu1 %v4552_v44  ;;  %5061 = vmatprep.subr.mxu0 %v4892_v27 }
 0x5f3   :  { %4855 = vmatpush2.msra.mxu1 %v4551_v47  ;;  %5062 = vmatpush3.msra.mxu0 %v4876_v24 }
 0x5f4   :  { %v4308_v17 = vpop.permute.xlu0 %4307  ;;  %4856 = vmatprep.subr.mxu1 %v4550_v0  ;;  %5063 = vmatprep.subr.mxu0 %v4891_v36 }
 0x5f5   :  { %4310 = vst.msk [vmem:[#allocation2 + $0x38] sm:$0xff] %vm4197_vm4, %v4308_v17  ;;  %4857 = vmatpush2.msra.mxu1 %v4549_v6  ;;  %5064 = vmatpush3.msra.mxu0 %v4875_v20  ;;  %v5040_v17 = vld [vmem:[%s8064_s9] ss:$0 sm:$0xff] }
 0x5f6   :  { %4858 = vmatprep.subr.mxu1 %v4548_v16  ;;  %5065 = vmatprep.subr.mxu0 %v4890_v51 }
 0x5f7   :  { %4859 = vmatpush2.msra.mxu1 %v4547_v34  ;;  %5066 = vmatpush3.msra.mxu0 %v4874_v15 }
 0x5f8   :  { %4860 = vmatprep.subr.mxu1 %v4546_v33  ;;  %v4317_v53 = vld [vmem:[#allocation2 + $0x30] sm:$0xff]  ;;  %5067 = vmatprep.subr.mxu0 %v4889_v7 }
 0x5f9   :  { %4861 = vmatpush2.msra.mxu1 %v4545_v57  ;;  %5068 = vmatpush3.msra.mxu0 %v4873_v14 }
 0x5fa   :  { %4862 = vmatprep.subr.mxu1 %v4544_v49  ;;  %5069 = vmatprep.subr.mxu0 %v4888_v52 }
 0x5fb   :  { %4863 = vmatpush2.msra.mxu1 %v4543_v59  ;;  %5070 = vmatpush3.msra.mxu0 %v4872_v63 }
 0x5fc   :  { %v4318_v4 = vld [vmem:[#allocation2 + $0x38] sm:$0xff]  ;;  %5071 = vmatprep.subr.mxu0 %v4887_v12 }
 0x5fd   :  { %4864 = vmatprep.mubr.f32.mxu1 %v4318_v4  ;;  %5072 = vmatpush3.msra.mxu0 %v4871_v30 }
 0x5fe   :  { %4865 = vmatmul.mubr.f32.vlgmr.msra.gmra.mxu1 %v4317_v53 }
 0x65c   :  { %v4653_v32 = vpop.f32.mrf.mxu0 }
 0x65d   :  { %v4654_v29 = vadd.f32 %v4653_v32, %v4580_v9 }
 0x65e   :  { %v4655_v25 = vpop.f32.mrf.mxu0 }
 0x65f   :  { %v4656_v62 = vadd.f32 %v4655_v25, %v4584_v56 }
 0x67c   :  { %v4724_v10 = vpop.f32.mrf.mxu1 }
 0x67d   :  { %v4725_v54 = vadd.f32 %v4724_v10, %v4654_v29 }
 0x67e   :  { %v4726_v26 = vpop.f32.mrf.mxu1 }
 0x67f   :  { %v4727_v61 = vadd.f32 %v4726_v26, %v4656_v62 }
 0x69e   :  { %v4795_v48 = vpop.f32.mrf.mxu0 }
 0x69f   :  { %v4796_v38 = vadd.f32 %v4795_v48, %v4725_v54 }
 0x6a0   :  { %v4797_v42 = vpop.f32.mrf.mxu0 }
 0x6a1   :  { %v4798_v44 = vadd.f32 %v4797_v42, %v4727_v61 }
 0x6be   :  { %v4866_v2 = vpop.f32.mrf.mxu1 }
 0x6bf   :  { %v4867_v0 = vadd.f32 %v4866_v2, %v4796_v38 }
 0x6c0   :  { %v4868_v41 = vpop.f32.mrf.mxu1 }
 0x6c1   :  { %v4869_v47 = vadd.f32 %v4868_v41, %v4798_v44 }
 0x6c3   :  { %4974 = vmatprep.mubr.f32.mxu0 %v4869_v47 }
 0x6c4   :  { %4975 = vmatmul.mubr.f32.vlgmr.msra.gmra.mxu0 %v4867_v0 }
 0x784   :  { %v5073_v6 = vpop.f32.mrf.mxu0 }
 0x786   :  { %v5074_v16 = vpop.f32.mrf.mxu0 }
 0x787   :  { %v5075_v34 = vadd.f32 %v5074_v16, %v5073_v6 }
 0x789   :  { %v4977_v33 = vadd.f32 %v5075_v34, %v5040_v17 }
 0x78b   :  { %v4981_v57 = vsel %vm4980_vm5, %v4977_v33, -inf }
 0x78c   :  { %4982 = vmax.xlane.f32.xlu0 %v4981_v57 }
 0x815   :  { %v4983_v49 = vpop.xlane.xlu0 %4982 }
 0x816   :  { %v4984_v59 = vsub.f32 %v4977_v33, %v4983_v49 }
 0x818   :  { %v4985_v4 = vmul.f32 1.442695, %v4984_v59 }
 0x81a   :  { %5084 = vpow2.f32 %v4985_v4 }
 0x827   :  { %v5085_v53 = vpop.eup %5084 }
 0x828   :  { %v4987_v55 = vsel %vm4980_vm5, %v5085_v53, 0.0 }
 0x829   :  { %4988 = vadd.xlane.f32.xlu1 %v4987_v55 }
 0x8b2   :  { %v4989_v22 = vpop.xlane.xlu1 %4988 }
 0x8b3   :  { %5086 = vrcp.f32 %v4989_v22 }
 0x8c0   :  { %v5087_v3 = vpop.eup %5086 }
 0x8c1   :  { %v4991_v58 = vmul.f32 %v5087_v3, %v5085_v53 }
 0x8c3   :  { %4992 = vst.msk [vmem:[%s8065_s10] sm:$0xff] %vm4980_vm5, %v4991_v58 }
 0x8c4   :  { %4997 = vsyncpa [#allocation4], 1 }
 0x8c5   :  { %4998 = vsyncpa [#allocation6], 1 }

</bundles_post_ra>
